<compile_context>
chip_gen: v6e
topology: v6e:2x2x1
jax: 0.10.0
libtpu: 0.0.40
codegen_flags: <defaults>
</compile_context>

<pallas_src>
import functools
import math

import jax
import jax.numpy as jnp
from jax.experimental import pallas as pl
from jax.experimental.pallas import tpu as pltpu


def _residual_block_kernel(x_ref, w1_ref, b1_ref, w2_ref, b2_ref, out_ref,
                           pad_ref, fused_ref, acc_ref, *, H, W, C):
    """One batch element per grid step.

    x_ref     : (H, W, C)        f32   unpadded NHWC input tile
    w*_ref    : (3, 3*C, C)      bf16  weights, row index = dx*C + cin
    b*_ref    : (1, C)           f32   biases
    out_ref   : (H, W, C)        f32
    pad_ref   : (H+2, W+2, C)    bf16  scratch: zero-padded activation
    fused_ref : (H+2, W, 3*C)    bf16  scratch: dx-fused (K = 3*C) patches
    acc_ref   : (H*W, C)         f32   scratch: matmul accumulator
    """
    bf16 = jnp.bfloat16

    # ---- zero the 1-px halo of the padded scratch ---------------------------
    # The interior is always overwritten; the border stays zero between conv1
    # and conv2 because only the interior is re-written.  Re-zeroed every grid
    # step (scratch is not zero-initialized) — thin strips, megacore-safe.
    pad_ref[0:1, :, :] = jnp.zeros((1, W + 2, C), bf16)
    pad_ref[H + 1:H + 2, :, :] = jnp.zeros((1, W + 2, C), bf16)
    pad_ref[:, 0:1, :] = jnp.zeros((H + 2, 1, C), bf16)
    pad_ref[:, W + 1:W + 2, :] = jnp.zeros((H + 2, 1, C), bf16)

    def conv3x3_fused(w_ref):
        # Build the dx-fused patch buffer: fused[:, :, dx*C:(dx+1)*C] is the
        # padded activation shifted by dx along W.  Three wide slab copies
        # instead of nine per-tap slice+reshape+cast relayouts.
        for dx in range(3):
            fused_ref[:, :, dx * C:(dx + 1) * C] = pad_ref[:, dx:dx + W, :]
        # Three MXU matmuls with K = 3*C, accumulated into the VMEM scratch.
        # The dy slice is on the untiled leading dim of fused_ref (free), and
        # the (H, W, 3C) -> (H*W, 3C) reshape is layout-preserving (W % 8 == 0).
        for dy in range(3):
            lhs = fused_ref[dy:dy + H, :, :].reshape(H * W, 3 * C)
            contrib = jnp.dot(lhs, w_ref[dy],
                              preferred_element_type=jnp.float32)
            if dy == 0:
                acc_ref[...] = contrib
            else:
                acc_ref[...] += contrib

    # ---- conv1: cast input to bf16 once, into the padded scratch ------------
    pad_ref[1:H + 1, 1:W + 1, :] = x_ref[...].astype(bf16)
    conv3x3_fused(w1_ref)
    h1 = jnp.maximum(acc_ref[...] + b1_ref[...], 0.0)          # (H*W, C) f32

    # ---- conv2: reuse the same padded scratch (border already zero) ---------
    pad_ref[1:H + 1, 1:W + 1, :] = h1.reshape(H, W, C).astype(bf16)
    conv3x3_fused(w2_ref)

    # ---- residual add in f32 -------------------------------------------------
    out = (acc_ref[...] + b2_ref[...]).reshape(H, W, C)
    out_ref[...] = (x_ref[...] + out).astype(out_ref.dtype)


def residual_block_nobn(x_nchw, w1, b1, w2, b2):
    """x_nchw: (B, C, H, W) f32; w*: (3,3,C,C) in (kh,kw,cin,cout); b*: (C,)."""
    B, C, H, W = x_nchw.shape
    # NCHW -> NHWC only because the public interface mirrors PyTorch; in a
    # full RawEDVR stack keep activations NHWC across blocks (no per-block
    # transpose) and note there is no XLA-side jnp.pad anymore — the halo is
    # produced inside the kernel.
    x = jnp.transpose(x_nchw, (0, 2, 3, 1))                    # (B, H, W, C)

    # K-fused weight slabs: (kh, 3*C, C) with row index dx*C + cin.
    w1f = w1.reshape(3, 3 * C, C).astype(jnp.bfloat16)
    w2f = w2.reshape(3, 3 * C, C).astype(jnp.bfloat16)
    b1r = b1.reshape(1, C).astype(jnp.float32)
    b2r = b2.reshape(1, C).astype(jnp.float32)

    kernel = functools.partial(_residual_block_kernel, H=H, W=W, C=C)

    out_nhwc = pl.pallas_call(
        kernel,
        out_shape=jax.ShapeDtypeStruct((B, H, W, C), x.dtype),
        grid_spec=pltpu.PrefetchScalarGridSpec(
            num_scalar_prefetch=0,
            grid=(B,),
            in_specs=[
                pl.BlockSpec((None, H, W, C), lambda b: (b, 0, 0, 0)),
                pl.BlockSpec((3, 3 * C, C), lambda b: (0, 0, 0)),
                pl.BlockSpec((1, C), lambda b: (0, 0)),
                pl.BlockSpec((3, 3 * C, C), lambda b: (0, 0, 0)),
                pl.BlockSpec((1, C), lambda b: (0, 0)),
            ],
            out_specs=pl.BlockSpec((None, H, W, C), lambda b: (b, 0, 0, 0)),
            scratch_shapes=[
                pltpu.VMEM((H + 2, W + 2, C), jnp.bfloat16),    # padded act
                pltpu.VMEM((H + 2, W, 3 * C), jnp.bfloat16),    # dx-fused K=3C
                pltpu.VMEM((H * W, C), jnp.float32),            # accumulator
            ],
        ),
        compiler_params=pltpu.CompilerParams(
            dimension_semantics=("parallel",)),
    )(x, w1f, b1r, w2f, b2r)

    return jnp.transpose(out_nhwc, (0, 3, 1, 2))                # back to NCHW


def _init_params(key, nf, scale=0.1):
    """Kaiming-normal (fan_in, a=0 -> gain=sqrt(2)) * scale, zero bias —
    mirrors initialize_weights([conv1, conv2], 0.1)."""
    fan_in = nf * 3 * 3
    std = math.sqrt(2.0 / fan_in)
    k1, k2 = jax.random.split(key)
    w1 = jax.random.normal(k1, (3, 3, nf, nf), jnp.float32) * std * scale
    w2 = jax.random.normal(k2, (3, 3, nf, nf), jnp.float32) * std * scale
    b1 = jnp.zeros((nf,), jnp.float32)
    b2 = jnp.zeros((nf,), jnp.float32)
    return w1, b1, w2, b2


def _reference(x_nchw, w1, b1, w2, b2, *, bf16_mxu=True):
    """Pure-JAX reference.  bf16_mxu=True matches the kernel's bf16-operand /
    f32-accumulate numerics; bf16_mxu=False is the full-f32 PyTorch-style ref."""
    C = x_nchw.shape[1]
    dn = jax.lax.conv_dimension_numbers(
        x_nchw.shape, (3, 3, C, C), ("NCHW", "HWIO", "NCHW"))
    cdt = jnp.bfloat16 if bf16_mxu else jnp.float32
    prec = None if bf16_mxu else jax.lax.Precision.HIGHEST

    def conv(z, w):
        return jax.lax.conv_general_dilated(
            z.astype(cdt), w.astype(cdt), (1, 1), ((1, 1), (1, 1)),
            dimension_numbers=dn, precision=prec,
            preferred_element_type=jnp.float32)

    h = jnp.maximum(conv(x_nchw, w1) + b1[None, :, None, None], 0.0)
    return x_nchw + conv(h, w2) + b2[None, :, None, None]


if __name__ == "__main__":
    B, nf, H, W = 2, 64, 16, 16
    key = jax.random.PRNGKey(0)
    kx, kp = jax.random.split(key)

    x = jax.random.normal(kx, (B, nf, H, W), jnp.float32)     # NCHW, like PyTorch
    w1, b1, w2, b2 = _init_params(kp, nf, scale=0.1)

    out = residual_block_nobn(x, w1, b1, w2, b2)
    out = jax.block_until_ready(out)

    ref_bf16 = _reference(x, w1, b1, w2, b2, bf16_mxu=True)    # kernel numerics
    ref_f32 = _reference(x, w1, b1, w2, b2, bf16_mxu=False)    # module semantics

    assert out.shape == (B, nf, H, W)
    assert jnp.allclose(out, ref_bf16, atol=2e-3, rtol=2e-3), \
        "mismatch vs bf16-matched reference"
    assert jnp.allclose(out, ref_f32, atol=1e-2, rtol=1e-2), \
        "mismatch vs f32 reference"

    print("KERNEL_OK")
</pallas_src>

<mosaic_0001>
module attributes {stable_mosaic.version = 11 : i64} {
  func.func @_residual_block_kernel(%arg0: i32, %arg1: memref<1x16x16x64xf32, #tpu.memory_space<vmem>>, %arg2: memref<3x192x64xbf16, #tpu.memory_space<vmem>>, %arg3: memref<1x64xf32, #tpu.memory_space<vmem>>, %arg4: memref<3x192x64xbf16, #tpu.memory_space<vmem>>, %arg5: memref<1x64xf32, #tpu.memory_space<vmem>>, %arg6: memref<1x16x16x64xf32, #tpu.memory_space<vmem>>, %arg7: memref<18x18x64xbf16, #tpu.memory_space<vmem>>, %arg8: memref<18x16x192xbf16, #tpu.memory_space<vmem>>, %arg9: memref<256x64xf32, #tpu.memory_space<vmem>>) attributes {dimension_semantics = [#tpu.dimension_semantics<parallel>], iteration_bounds = array<i64: 2>, scalar_prefetch = 0 : i64, scratch_operands = 3 : i64, tpu.core_type = #tpu.core_type<tc>, window_params = [{transform_indices = @transform_0, window_bounds = array<i64: 1, 16, 16, 64>}, {pipeline_mode = #tpu.pipeline_mode<synchronous>, transform_indices = @transform_1, window_bounds = array<i64: 3, 192, 64>}, {pipeline_mode = #tpu.pipeline_mode<synchronous>, transform_indices = @transform_2, window_bounds = array<i64: 1, 64>}, {pipeline_mode = #tpu.pipeline_mode<synchronous>, transform_indices = @transform_3, window_bounds = array<i64: 3, 192, 64>}, {pipeline_mode = #tpu.pipeline_mode<synchronous>, transform_indices = @transform_4, window_bounds = array<i64: 1, 64>}, {transform_indices = @transform_5, window_bounds = array<i64: 1, 16, 16, 64>}]} {
    %cst = arith.constant 0.000000e+00 : bf16
    %0 = vector.broadcast %cst : bf16 to vector<1x18x64xbf16>
    %c0 = arith.constant 0 : index
    %c0_0 = arith.constant 0 : index
    %c0_1 = arith.constant 0 : index
    %1 = vector.load %arg7[%c0, %c0_0, %c0_1] : memref<18x18x64xbf16, #tpu.memory_space<vmem>>, vector<1x18x64xbf16>
    tpu.vector_store %arg7[%c0, %c0_0, %c0_1], %0 {strides = array<i32>} : memref<18x18x64xbf16, #tpu.memory_space<vmem>>, vector<1x18x64xbf16>,
    %cst_2 = arith.constant 0.000000e+00 : bf16
    %2 = vector.broadcast %cst_2 : bf16 to vector<1x18x64xbf16>
    %c17 = arith.constant 17 : index
    %c0_3 = arith.constant 0 : index
    %c0_4 = arith.constant 0 : index
    %3 = vector.load %arg7[%c17, %c0_3, %c0_4] : memref<18x18x64xbf16, #tpu.memory_space<vmem>>, vector<1x18x64xbf16>
    tpu.vector_store %arg7[%c17, %c0_3, %c0_4], %2 {strides = array<i32>} : memref<18x18x64xbf16, #tpu.memory_space<vmem>>, vector<1x18x64xbf16>,
    %cst_5 = arith.constant 0.000000e+00 : bf16
    %4 = vector.broadcast %cst_5 : bf16 to vector<18x1x64xbf16>
    %c0_6 = arith.constant 0 : index
    %c0_7 = arith.constant 0 : index
    %c0_8 = arith.constant 0 : index
    %5 = vector.load %arg7[%c0_6, %c0_7, %c0_8] : memref<18x18x64xbf16, #tpu.memory_space<vmem>>, vector<18x1x64xbf16>
    tpu.vector_store %arg7[%c0_6, %c0_7, %c0_8], %4 {strides = array<i32>} : memref<18x18x64xbf16, #tpu.memory_space<vmem>>, vector<18x1x64xbf16>,
    %cst_9 = arith.constant 0.000000e+00 : bf16
    %6 = vector.broadcast %cst_9 : bf16 to vector<18x1x64xbf16>
    %c0_10 = arith.constant 0 : index
    %c17_11 = arith.constant 17 : index
    %c0_12 = arith.constant 0 : index
    %7 = vector.load %arg7[%c0_10, %c17_11, %c0_12] : memref<18x18x64xbf16, #tpu.memory_space<vmem>>, vector<18x1x64xbf16>
    tpu.vector_store %arg7[%c0_10, %c17_11, %c0_12], %6 {strides = array<i32>} : memref<18x18x64xbf16, #tpu.memory_space<vmem>>, vector<18x1x64xbf16>,
    %c0_13 = arith.constant 0 : index
    %c0_14 = arith.constant 0 : index
    %c0_15 = arith.constant 0 : index
    %c0_16 = arith.constant 0 : index
    %8 = vector.load %arg1[%c0_13, %c0_14, %c0_15, %c0_16] : memref<1x16x16x64xf32, #tpu.memory_space<vmem>>, vector<1x16x16x64xf32>
    %9 = vector.shape_cast %8 : vector<1x16x16x64xf32> to vector<16x16x64xf32>
    %10 = arith.truncf %9 : vector<16x16x64xf32> to vector<16x16x64xbf16>
    %c1 = arith.constant 1 : index
    %c1_17 = arith.constant 1 : index
    %c0_18 = arith.constant 0 : index
    %11 = vector.load %arg7[%c1, %c1_17, %c0_18] : memref<18x18x64xbf16, #tpu.memory_space<vmem>>, vector<16x16x64xbf16>
    tpu.vector_store %arg7[%c1, %c1_17, %c0_18], %10 {strides = array<i32>} : memref<18x18x64xbf16, #tpu.memory_space<vmem>>, vector<16x16x64xbf16>,
    %c0_19 = arith.constant 0 : index
    %c0_20 = arith.constant 0 : index
    %c0_21 = arith.constant 0 : index
    %12 = vector.load %arg7[%c0_19, %c0_20, %c0_21] : memref<18x18x64xbf16, #tpu.memory_space<vmem>>, vector<18x16x64xbf16>
    %c0_22 = arith.constant 0 : index
    %c0_23 = arith.constant 0 : index
    %c0_24 = arith.constant 0 : index
    %13 = vector.load %arg8[%c0_22, %c0_23, %c0_24] : memref<18x16x192xbf16, #tpu.memory_space<vmem>>, vector<18x16x64xbf16>
    tpu.vector_store %arg8[%c0_22, %c0_23, %c0_24], %12 {strides = array<i32>} : memref<18x16x192xbf16, #tpu.memory_space<vmem>>, vector<18x16x64xbf16>,
    %c0_25 = arith.constant 0 : index
    %c1_26 = arith.constant 1 : index
    %c0_27 = arith.constant 0 : index
    %14 = vector.load %arg7[%c0_25, %c1_26, %c0_27] : memref<18x18x64xbf16, #tpu.memory_space<vmem>>, vector<18x16x64xbf16>
    %c0_28 = arith.constant 0 : index
    %c0_29 = arith.constant 0 : index
    %c64 = arith.constant 64 : index
    %15 = vector.load %arg8[%c0_28, %c0_29, %c64] : memref<18x16x192xbf16, #tpu.memory_space<vmem>>, vector<18x16x64xbf16>
    tpu.vector_store %arg8[%c0_28, %c0_29, %c64], %14 {strides = array<i32>} : memref<18x16x192xbf16, #tpu.memory_space<vmem>>, vector<18x16x64xbf16>,
    %c0_30 = arith.constant 0 : index
    %c2 = arith.constant 2 : index
    %c0_31 = arith.constant 0 : index
    %16 = vector.load %arg7[%c0_30, %c2, %c0_31] : memref<18x18x64xbf16, #tpu.memory_space<vmem>>, vector<18x16x64xbf16>
    %c0_32 = arith.constant 0 : index
    %c0_33 = arith.constant 0 : index
    %c128 = arith.constant 128 : index
    %17 = vector.load %arg8[%c0_32, %c0_33, %c128] : memref<18x16x192xbf16, #tpu.memory_space<vmem>>, vector<18x16x64xbf16>
    tpu.vector_store %arg8[%c0_32, %c0_33, %c128], %16 {strides = array<i32>} : memref<18x16x192xbf16, #tpu.memory_space<vmem>>, vector<18x16x64xbf16>,
    %c0_34 = arith.constant 0 : index
    %c0_35 = arith.constant 0 : index
    %c0_36 = arith.constant 0 : index
    %18 = vector.load %arg8[%c0_34, %c0_35, %c0_36] : memref<18x16x192xbf16, #tpu.memory_space<vmem>>, vector<16x16x192xbf16>
    %19 = vector.shape_cast %18 : vector<16x16x192xbf16> to vector<256x192xbf16>
    %c0_37 = arith.constant 0 : index
    %c0_38 = arith.constant 0 : index
    %c0_39 = arith.constant 0 : index
    %20 = vector.load %arg2[%c0_37, %c0_38, %c0_39] : memref<3x192x64xbf16, #tpu.memory_space<vmem>>, vector<1x192x64xbf16>
    %21 = vector.shape_cast %20 : vector<1x192x64xbf16> to vector<192x64xbf16>
    %cst_40 = arith.constant dense<0.000000e+00> : vector<256x64xf32>
    %22 = tpu.matmul %19, %21, %cst_40 {dimension_numbers = #tpu.dot_dimension_numbers<[1], [0], [0], [1], [0, 0, 1, 1], [], []>} : vector<256x192xbf16>, vector<192x64xbf16>, vector<256x64xf32> -> vector<256x64xf32>
    %c0_41 = arith.constant 0 : index
    %c0_42 = arith.constant 0 : index
    %23 = vector.load %arg9[%c0_41, %c0_42] : memref<256x64xf32, #tpu.memory_space<vmem>>, vector<256x64xf32>
    tpu.vector_store %arg9[%c0_41, %c0_42], %22 {strides = array<i32>} : memref<256x64xf32, #tpu.memory_space<vmem>>, vector<256x64xf32>,
    %c1_43 = arith.constant 1 : index
    %c0_44 = arith.constant 0 : index
    %c0_45 = arith.constant 0 : index
    %24 = vector.load %arg8[%c1_43, %c0_44, %c0_45] : memref<18x16x192xbf16, #tpu.memory_space<vmem>>, vector<16x16x192xbf16>
    %25 = vector.shape_cast %24 : vector<16x16x192xbf16> to vector<256x192xbf16>
    %c1_46 = arith.constant 1 : index
    %c0_47 = arith.constant 0 : index
    %c0_48 = arith.constant 0 : index
    %26 = vector.load %arg2[%c1_46, %c0_47, %c0_48] : memref<3x192x64xbf16, #tpu.memory_space<vmem>>, vector<1x192x64xbf16>
    %27 = vector.shape_cast %26 : vector<1x192x64xbf16> to vector<192x64xbf16>
    %cst_49 = arith.constant dense<0.000000e+00> : vector<256x64xf32>
    %28 = tpu.matmul %25, %27, %cst_49 {dimension_numbers = #tpu.dot_dimension_numbers<[1], [0], [0], [1], [0, 0, 1, 1], [], []>} : vector<256x192xbf16>, vector<192x64xbf16>, vector<256x64xf32> -> vector<256x64xf32>
    %c0_50 = arith.constant 0 : index
    %c0_51 = arith.constant 0 : index
    %29 = vector.load %arg9[%c0_50, %c0_51] : memref<256x64xf32, #tpu.memory_space<vmem>>, vector<256x64xf32>
    %30 = arith.addf %29, %28 : vector<256x64xf32>
    %c0_52 = arith.constant 0 : index
    %c0_53 = arith.constant 0 : index
    %31 = vector.load %arg9[%c0_52, %c0_53] : memref<256x64xf32, #tpu.memory_space<vmem>>, vector<256x64xf32>
    tpu.vector_store %arg9[%c0_52, %c0_53], %30 {strides = array<i32>} : memref<256x64xf32, #tpu.memory_space<vmem>>, vector<256x64xf32>,
    %c2_54 = arith.constant 2 : index
    %c0_55 = arith.constant 0 : index
    %c0_56 = arith.constant 0 : index
    %32 = vector.load %arg8[%c2_54, %c0_55, %c0_56] : memref<18x16x192xbf16, #tpu.memory_space<vmem>>, vector<16x16x192xbf16>
    %33 = vector.shape_cast %32 : vector<16x16x192xbf16> to vector<256x192xbf16>
    %c2_57 = arith.constant 2 : index
    %c0_58 = arith.constant 0 : index
    %c0_59 = arith.constant 0 : index
    %34 = vector.load %arg2[%c2_57, %c0_58, %c0_59] : memref<3x192x64xbf16, #tpu.memory_space<vmem>>, vector<1x192x64xbf16>
    %35 = vector.shape_cast %34 : vector<1x192x64xbf16> to vector<192x64xbf16>
    %cst_60 = arith.constant dense<0.000000e+00> : vector<256x64xf32>
    %36 = tpu.matmul %33, %35, %cst_60 {dimension_numbers = #tpu.dot_dimension_numbers<[1], [0], [0], [1], [0, 0, 1, 1], [], []>} : vector<256x192xbf16>, vector<192x64xbf16>, vector<256x64xf32> -> vector<256x64xf32>
    %c0_61 = arith.constant 0 : index
    %c0_62 = arith.constant 0 : index
    %37 = vector.load %arg9[%c0_61, %c0_62] : memref<256x64xf32, #tpu.memory_space<vmem>>, vector<256x64xf32>
    %38 = arith.addf %37, %36 : vector<256x64xf32>
    %c0_63 = arith.constant 0 : index
    %c0_64 = arith.constant 0 : index
    %39 = vector.load %arg9[%c0_63, %c0_64] : memref<256x64xf32, #tpu.memory_space<vmem>>, vector<256x64xf32>
    tpu.vector_store %arg9[%c0_63, %c0_64], %38 {strides = array<i32>} : memref<256x64xf32, #tpu.memory_space<vmem>>, vector<256x64xf32>,
    %c0_65 = arith.constant 0 : index
    %c0_66 = arith.constant 0 : index
    %40 = vector.load %arg9[%c0_65, %c0_66] : memref<256x64xf32, #tpu.memory_space<vmem>>, vector<256x64xf32>
    %c0_67 = arith.constant 0 : index
    %c0_68 = arith.constant 0 : index
    %41 = vector.load %arg3[%c0_67, %c0_68] : memref<1x64xf32, #tpu.memory_space<vmem>>, vector<1x64xf32>
    %42 = vector.broadcast %41 : vector<1x64xf32> to vector<256x64xf32>
    %43 = arith.addf %40, %42 : vector<256x64xf32>
    %cst_69 = arith.constant 0.000000e+00 : f32
    %44 = vector.broadcast %cst_69 : f32 to vector<256x64xf32>
    %45 = arith.maximumf %43, %44 : vector<256x64xf32>
    %46 = vector.shape_cast %45 : vector<256x64xf32> to vector<16x16x64xf32>
    %47 = arith.truncf %46 : vector<16x16x64xf32> to vector<16x16x64xbf16>
    %c1_70 = arith.constant 1 : index
    %c1_71 = arith.constant 1 : index
    %c0_72 = arith.constant 0 : index
    %48 = vector.load %arg7[%c1_70, %c1_71, %c0_72] : memref<18x18x64xbf16, #tpu.memory_space<vmem>>, vector<16x16x64xbf16>
    tpu.vector_store %arg7[%c1_70, %c1_71, %c0_72], %47 {strides = array<i32>} : memref<18x18x64xbf16, #tpu.memory_space<vmem>>, vector<16x16x64xbf16>,
    %c0_73 = arith.constant 0 : index
    %c0_74 = arith.constant 0 : index
    %c0_75 = arith.constant 0 : index
    %49 = vector.load %arg7[%c0_73, %c0_74, %c0_75] : memref<18x18x64xbf16, #tpu.memory_space<vmem>>, vector<18x16x64xbf16>
    %c0_76 = arith.constant 0 : index
    %c0_77 = arith.constant 0 : index
    %c0_78 = arith.constant 0 : index
    %50 = vector.load %arg8[%c0_76, %c0_77, %c0_78] : memref<18x16x192xbf16, #tpu.memory_space<vmem>>, vector<18x16x64xbf16>
    tpu.vector_store %arg8[%c0_76, %c0_77, %c0_78], %49 {strides = array<i32>} : memref<18x16x192xbf16, #tpu.memory_space<vmem>>, vector<18x16x64xbf16>,
    %c0_79 = arith.constant 0 : index
    %c1_80 = arith.constant 1 : index
    %c0_81 = arith.constant 0 : index
    %51 = vector.load %arg7[%c0_79, %c1_80, %c0_81] : memref<18x18x64xbf16, #tpu.memory_space<vmem>>, vector<18x16x64xbf16>
    %c0_82 = arith.constant 0 : index
    %c0_83 = arith.constant 0 : index
    %c64_84 = arith.constant 64 : index
    %52 = vector.load %arg8[%c0_82, %c0_83, %c64_84] : memref<18x16x192xbf16, #tpu.memory_space<vmem>>, vector<18x16x64xbf16>
    tpu.vector_store %arg8[%c0_82, %c0_83, %c64_84], %51 {strides = array<i32>} : memref<18x16x192xbf16, #tpu.memory_space<vmem>>, vector<18x16x64xbf16>,
    %c0_85 = arith.constant 0 : index
    %c2_86 = arith.constant 2 : index
    %c0_87 = arith.constant 0 : index
    %53 = vector.load %arg7[%c0_85, %c2_86, %c0_87] : memref<18x18x64xbf16, #tpu.memory_space<vmem>>, vector<18x16x64xbf16>
    %c0_88 = arith.constant 0 : index
    %c0_89 = arith.constant 0 : index
    %c128_90 = arith.constant 128 : index
    %54 = vector.load %arg8[%c0_88, %c0_89, %c128_90] : memref<18x16x192xbf16, #tpu.memory_space<vmem>>, vector<18x16x64xbf16>
    tpu.vector_store %arg8[%c0_88, %c0_89, %c128_90], %53 {strides = array<i32>} : memref<18x16x192xbf16, #tpu.memory_space<vmem>>, vector<18x16x64xbf16>,
    %c0_91 = arith.constant 0 : index
    %c0_92 = arith.constant 0 : index
    %c0_93 = arith.constant 0 : index
    %55 = vector.load %arg8[%c0_91, %c0_92, %c0_93] : memref<18x16x192xbf16, #tpu.memory_space<vmem>>, vector<16x16x192xbf16>
    %56 = vector.shape_cast %55 : vector<16x16x192xbf16> to vector<256x192xbf16>
    %c0_94 = arith.constant 0 : index
    %c0_95 = arith.constant 0 : index
    %c0_96 = arith.constant 0 : index
    %57 = vector.load %arg4[%c0_94, %c0_95, %c0_96] : memref<3x192x64xbf16, #tpu.memory_space<vmem>>, vector<1x192x64xbf16>
    %58 = vector.shape_cast %57 : vector<1x192x64xbf16> to vector<192x64xbf16>
    %cst_97 = arith.constant dense<0.000000e+00> : vector<256x64xf32>
    %59 = tpu.matmul %56, %58, %cst_97 {dimension_numbers = #tpu.dot_dimension_numbers<[1], [0], [0], [1], [0, 0, 1, 1], [], []>} : vector<256x192xbf16>, vector<192x64xbf16>, vector<256x64xf32> -> vector<256x64xf32>
    %c0_98 = arith.constant 0 : index
    %c0_99 = arith.constant 0 : index
    %60 = vector.load %arg9[%c0_98, %c0_99] : memref<256x64xf32, #tpu.memory_space<vmem>>, vector<256x64xf32>
    tpu.vector_store %arg9[%c0_98, %c0_99], %59 {strides = array<i32>} : memref<256x64xf32, #tpu.memory_space<vmem>>, vector<256x64xf32>,
    %c1_100 = arith.constant 1 : index
    %c0_101 = arith.constant 0 : index
    %c0_102 = arith.constant 0 : index
    %61 = vector.load %arg8[%c1_100, %c0_101, %c0_102] : memref<18x16x192xbf16, #tpu.memory_space<vmem>>, vector<16x16x192xbf16>
    %62 = vector.shape_cast %61 : vector<16x16x192xbf16> to vector<256x192xbf16>
    %c1_103 = arith.constant 1 : index
    %c0_104 = arith.constant 0 : index
    %c0_105 = arith.constant 0 : index
    %63 = vector.load %arg4[%c1_103, %c0_104, %c0_105] : memref<3x192x64xbf16, #tpu.memory_space<vmem>>, vector<1x192x64xbf16>
    %64 = vector.shape_cast %63 : vector<1x192x64xbf16> to vector<192x64xbf16>
    %cst_106 = arith.constant dense<0.000000e+00> : vector<256x64xf32>
    %65 = tpu.matmul %62, %64, %cst_106 {dimension_numbers = #tpu.dot_dimension_numbers<[1], [0], [0], [1], [0, 0, 1, 1], [], []>} : vector<256x192xbf16>, vector<192x64xbf16>, vector<256x64xf32> -> vector<256x64xf32>
    %c0_107 = arith.constant 0 : index
    %c0_108 = arith.constant 0 : index
    %66 = vector.load %arg9[%c0_107, %c0_108] : memref<256x64xf32, #tpu.memory_space<vmem>>, vector<256x64xf32>
    %67 = arith.addf %66, %65 : vector<256x64xf32>
    %c0_109 = arith.constant 0 : index
    %c0_110 = arith.constant 0 : index
    %68 = vector.load %arg9[%c0_109, %c0_110] : memref<256x64xf32, #tpu.memory_space<vmem>>, vector<256x64xf32>
    tpu.vector_store %arg9[%c0_109, %c0_110], %67 {strides = array<i32>} : memref<256x64xf32, #tpu.memory_space<vmem>>, vector<256x64xf32>,
    %c2_111 = arith.constant 2 : index
    %c0_112 = arith.constant 0 : index
    %c0_113 = arith.constant 0 : index
    %69 = vector.load %arg8[%c2_111, %c0_112, %c0_113] : memref<18x16x192xbf16, #tpu.memory_space<vmem>>, vector<16x16x192xbf16>
    %70 = vector.shape_cast %69 : vector<16x16x192xbf16> to vector<256x192xbf16>
    %c2_114 = arith.constant 2 : index
    %c0_115 = arith.constant 0 : index
    %c0_116 = arith.constant 0 : index
    %71 = vector.load %arg4[%c2_114, %c0_115, %c0_116] : memref<3x192x64xbf16, #tpu.memory_space<vmem>>, vector<1x192x64xbf16>
    %72 = vector.shape_cast %71 : vector<1x192x64xbf16> to vector<192x64xbf16>
    %cst_117 = arith.constant dense<0.000000e+00> : vector<256x64xf32>
    %73 = tpu.matmul %70, %72, %cst_117 {dimension_numbers = #tpu.dot_dimension_numbers<[1], [0], [0], [1], [0, 0, 1, 1], [], []>} : vector<256x192xbf16>, vector<192x64xbf16>, vector<256x64xf32> -> vector<256x64xf32>
    %c0_118 = arith.constant 0 : index
    %c0_119 = arith.constant 0 : index
    %74 = vector.load %arg9[%c0_118, %c0_119] : memref<256x64xf32, #tpu.memory_space<vmem>>, vector<256x64xf32>
    %75 = arith.addf %74, %73 : vector<256x64xf32>
    %c0_120 = arith.constant 0 : index
    %c0_121 = arith.constant 0 : index
    %76 = vector.load %arg9[%c0_120, %c0_121] : memref<256x64xf32, #tpu.memory_space<vmem>>, vector<256x64xf32>
    tpu.vector_store %arg9[%c0_120, %c0_121], %75 {strides = array<i32>} : memref<256x64xf32, #tpu.memory_space<vmem>>, vector<256x64xf32>,
    %c0_122 = arith.constant 0 : index
    %c0_123 = arith.constant 0 : index
    %77 = vector.load %arg9[%c0_122, %c0_123] : memref<256x64xf32, #tpu.memory_space<vmem>>, vector<256x64xf32>
    %c0_124 = arith.constant 0 : index
    %c0_125 = arith.constant 0 : index
    %78 = vector.load %arg5[%c0_124, %c0_125] : memref<1x64xf32, #tpu.memory_space<vmem>>, vector<1x64xf32>
    %79 = vector.broadcast %78 : vector<1x64xf32> to vector<256x64xf32>
    %80 = arith.addf %77, %79 : vector<256x64xf32>
    %81 = vector.shape_cast %80 : vector<256x64xf32> to vector<16x16x64xf32>
    %c0_126 = arith.constant 0 : index
    %c0_127 = arith.constant 0 : index
    %c0_128 = arith.constant 0 : index
    %c0_129 = arith.constant 0 : index
    %82 = vector.load %arg1[%c0_126, %c0_127, %c0_128, %c0_129] : memref<1x16x16x64xf32, #tpu.memory_space<vmem>>, vector<1x16x16x64xf32>
    %83 = vector.shape_cast %82 : vector<1x16x16x64xf32> to vector<16x16x64xf32>
    %84 = arith.addf %83, %81 : vector<16x16x64xf32>
    %c0_130 = arith.constant 0 : index
    %c0_131 = arith.constant 0 : index
    %c0_132 = arith.constant 0 : index
    %c0_133 = arith.constant 0 : index
    %85 = vector.load %arg6[%c0_130, %c0_131, %c0_132, %c0_133] : memref<1x16x16x64xf32, #tpu.memory_space<vmem>>, vector<1x16x16x64xf32>
    %86 = vector.shape_cast %85 : vector<1x16x16x64xf32> to vector<16x16x64xf32>
    %87 = vector.shape_cast %84 : vector<16x16x64xf32> to vector<1x16x16x64xf32>
    tpu.vector_store %arg6[%c0_130, %c0_131, %c0_132, %c0_133], %87 {strides = array<i32>} : memref<1x16x16x64xf32, #tpu.memory_space<vmem>>, vector<1x16x16x64xf32>,
    return
  }
  func.func @transform_0(%arg0: i32) -> (i32, i32, i32, i32) {
    %c0_i32 = arith.constant 0 : i32
    %c0_i32_0 = arith.constant 0 : i32
    %c0_i32_1 = arith.constant 0 : i32
    %c0_i32_2 = arith.constant 0 : i32
    return %arg0, %c0_i32, %c0_i32_0, %c0_i32_1 : i32, i32, i32, i32
  }
  func.func @transform_1(%arg0: i32) -> (i32, i32, i32) {
    %c0_i32 = arith.constant 0 : i32
    %c0_i32_0 = arith.constant 0 : i32
    %c0_i32_1 = arith.constant 0 : i32
    %c0_i32_2 = arith.constant 0 : i32
    return %c0_i32, %c0_i32_0, %c0_i32_1 : i32, i32, i32
  }
  func.func @transform_2(%arg0: i32) -> (i32, i32) {
    %c0_i32 = arith.constant 0 : i32
    %c0_i32_0 = arith.constant 0 : i32
    %c0_i32_1 = arith.constant 0 : i32
    return %c0_i32, %c0_i32_0 : i32, i32
  }
  func.func @transform_3(%arg0: i32) -> (i32, i32, i32) {
    %c0_i32 = arith.constant 0 : i32
    %c0_i32_0 = arith.constant 0 : i32
    %c0_i32_1 = arith.constant 0 : i32
    %c0_i32_2 = arith.constant 0 : i32
    return %c0_i32, %c0_i32_0, %c0_i32_1 : i32, i32, i32
  }
  func.func @transform_4(%arg0: i32) -> (i32, i32) {
    %c0_i32 = arith.constant 0 : i32
    %c0_i32_0 = arith.constant 0 : i32
    %c0_i32_1 = arith.constant 0 : i32
    return %c0_i32, %c0_i32_0 : i32, i32
  }
  func.func @transform_5(%arg0: i32) -> (i32, i32, i32, i32) {
    %c0_i32 = arith.constant 0 : i32
    %c0_i32_0 = arith.constant 0 : i32
    %c0_i32_1 = arith.constant 0 : i32
    %c0_i32_2 = arith.constant 0 : i32
    return %arg0, %c0_i32, %c0_i32_0, %c0_i32_1 : i32, i32, i32, i32
  }
}

</mosaic_0001>

<bundles_post_ra>
// kernel: tpu_custom_call.1
= control target key start
LH: loop header
LB: loop body
LE: loop exit
PB: predicated region body
PF: predicated region fallthrough
CT: control target
= control target key end

     0   :  { %10 = vsyncpa [#allocation6], 0  ;;  %s10408_s0 = inlined_call_operand.vmem [shape: f32[2,16,16,64], index: 0, kind: input, shape index: {}]   ;;  %s10409_s1 = inlined_call_operand.vmem [shape: bf16[3,192,64], index: 1, kind: input, shape index: {}]   ;;  %s10410_s2 = inlined_call_operand.vmem [shape: f32[1,64], index: 2, kind: input, shape index: {}]   ;;  %s10411_s3 = inlined_call_operand.vmem [shape: bf16[3,192,64], index: 3, kind: input, shape index: {}]   ;;  %s10412_s4 = inlined_call_operand.vmem [shape: f32[1,64], index: 4, kind: input, shape index: {}]   ;;  %s10413_s5 = inlined_call_operand.hbm [shape: f32[2,16,16,64], index: 5, kind: output, shape index: {}]  }
   0x1   :  { %12 = vsyncpa [#allocation6 + $0x1], 0  ;;  %s8099_s18 = smov 0   ;;  %s8101_s19 = smov 0  }
   0x2   :  { %s8103_s20 = smov 0   ;;  %s8105_s21 = smov 0  }
   0x3 LB: > { %s8120_s22 = sadd.s32 4294967295, %s8062_s21   ;;  %s7149_s23 = sadd.s32 4294967294, %s8062_s21   ;;  %s8062_s21 = sphi %s8105_s21, %s10431_s21   ;;  %s8058_s20 = sphi %s8103_s20, %s10430_s20   ;;  %s8054_s19 = sphi %s8101_s19, %s10429_s19   ;;  %s8050_s18 = sphi %s8099_s18, %s10428_s18  }
   0x4   : > { %s8124_s24 = sadd.s32 1, %s8062_s21   ;;  %s135_s25 = sadd.s32 1, %s8058_s20 }
   0x5   : > { %s132_s26 = ssub.s32 %s8062_s21, %s8124_s24  ;;  %p145_p0 = scmp.ne.s32.totalorder %s8058_s20, %s8054_s19 }
   0x6   : > { %p133_p1 = scmp.eq.s32.totalorder %s132_s26, 0  ;;  %p146_p2 = scmp.eq.s32.totalorder %s8120_s22, 1 }
   0x7   : > { %p151_p3 = scmp.ne.s32.totalorder %s8054_s19, %s8050_s18  ;;  %p152_p4 = scmp.eq.s32.totalorder %s7149_s23, 1 }
   0x8   : > { %s8135_s27 = scalar_select %p133_p1, %s8058_s20, %s135_s25  }
   0x9   : > { %p8137_p5 = por %p146_p2, %p145_p0  ;;  %p8141_p6 = por %p152_p4, %p151_p3 }
   0xa   : > { %p7152_p7 = scmp.ge.s32.totalorder %s8062_s21, 1  ;;  %p190_p8 = scmp.lt.s32.totalorder %s8062_s21, 3 }
   0xc   : > { %p191_p9 = pnand %p7152_p7, %p190_p8 }
   0xd   : > { %p218_p10 = scmp.lt.s32.totalorder (!%p191_p9), %s8120_s22, 1  ;;  %s8065_s23 = smov (!%p191_p9), 64  }
   0xe   : > { %194 = sbr.rel (%p191_p9) target bundleno = 1183 (0x49f), region = 40  ;;  %s8066_s12 = smov (!%p191_p9), [#allocation5]  }
   0xf   : > { %s8006_s13 = sshll.u32 (!%p191_p9), %s8066_s12, 4  ;;  %s8007_s13 = int_to_ptr.vmem [resolvable:$false] %s8006_s13 }
  0x10   : > { %s8008_s14 = scalar_lea.vmem (!%p191_p9), %s8007_s13, 8192 }
  0x13   : > { %vm224_vm0 = vcmask 519168   ;;  %vm227_vm1 = vcmask 516096   ;;  %vm234_vm2 = vsmask.f32 256  ;;  %v8064_v0 = vmov 0   ;;  %v7828_v3 = vld [vmem:[%s10409_s1 + $0x38] sm:$0xff]  }
  0x14   : > { %225 = vst.msk [vmem:[#allocation2] sm:$0xf] %vm224_vm0, %v8064_v0  ;;  %226 = vst.msk [vmem:[#allocation2 + $0x4] sm:$0xf] %vm224_vm0, %v8064_v0  ;;  %vm290_vm4 = vsmask.f32 7938  ;;  %2247 = vmatprep.subr.bf16.mxu0 %v8064_v0  ;;  %2762 = vmatprep.subr.bf16.mxu1 %v8064_v0 }
  0x15   : > { %vm8153_vm3 = vmand %vm227_vm1, %vm234_vm2  ;;  %228 = vst.msk [vmem:[#allocation2 + $0x8] sm:$0x1] %vm227_vm1, %v8064_v0  ;;  %v239_v2 = vld [vmem:[#allocation2 + $0xc] sm:$0x1]  ;;  %v295_v6 = vld [vmem:[#allocation2 + $0x14] sm:$0x1]  ;;  %2248 = vmatpush1.bf16.msra.mxu0 %v7828_v3 }
  0x16   : > { %230 = vst.msk [vmem:[#allocation2 + $0xcc] sm:$0xf] %vm224_vm0, %v8064_v0  ;;  %231 = vst.msk [vmem:[#allocation2 + $0xd0] sm:$0xf] %vm224_vm0, %v8064_v0  ;;  %v240_v5 = vsel %vm8153_vm3, 0, %v239_v2  ;;  %s219_s7 = scalar_select %p218_p10, %s8120_s22, 1  ;;  %2249 = vmatprep.subr.bf16.mxu0 %v8064_v0 }
  0x17   : > { %232 = vst.msk [vmem:[#allocation2 + $0xd4] sm:$0x1] %vm227_vm1, %v8064_v0  ;;  %vm8173_vm5 = vmand %vm227_vm1, %vm290_vm4  ;;  %v242_v7 = vld [vmem:[#allocation2 + $0x18] sm:$0x1]  ;;  %vm474_vm6 = vsmask.f32 4368 }
  0x18   : > { %241 = vst [vmem:[#allocation2 + $0xc] sm:$0x1] %v240_v5  ;;  %v296_v8 = vsel %vm8173_vm5, 0, %v295_v6  ;;  %v243_v9 = vsel %vm8153_vm3, 0, %v242_v7  ;;  %v298_v10 = vld [vmem:[#allocation2 + $0x20] sm:$0x1]  ;;  %vm8231_vm9 = vmor %vm234_vm2, %vm474_vm6 }
  0x19   : > { %v7829_v11 = vld [vmem:[%s10409_s1 + $0x30] sm:$0xff]   ;;  %297 = vst [vmem:[#allocation2 + $0x14] sm:$0x1] %v296_v8  ;;  %244 = vst [vmem:[#allocation2 + $0x18] sm:$0x1] %v243_v9  ;;  %v299_v12 = vsel %vm8173_vm5, 0, %v298_v10 }
  0x1a   : > { %v245_v13 = vld [vmem:[#allocation2 + $0x24] sm:$0x1]  ;;  %v301_v14 = vld [vmem:[#allocation2 + $0x2c] sm:$0x1]  ;;  %s7719_s10 = sshll.u32 %s219_s7, 8  ;;  %v7830_v18 = vld [vmem:[%s10409_s1 + $0x98] sm:$0xff]   ;;  %2250 = vmatpush1.bf16.msra.mxu0 %v7829_v11 }
  0x1b   : > { %300 = vst [vmem:[#allocation2 + $0x20] sm:$0x1] %v299_v12  ;;  %v246_v15 = vsel %vm8153_vm3, 0, %v245_v13  ;;  %v302_v16 = vsel %vm8173_vm5, 0, %v301_v14  ;;  %v248_v17 = vld [vmem:[#allocation2 + $0x30] sm:$0x1]  ;;  %s8200_s15 = scalar_lea.vmem %s10408_s0, %s7719_s10  ;;  %2763 = vmatpush1.bf16.msra.mxu1 %v7830_v18  ;;  %2251 = vmatprep.subr.bf16.mxu0 %v8064_v0  ;;  %vm8237_vm10 = vmand %vm224_vm0, %vm290_vm4 }
  0x1c   : > { %247 = vst [vmem:[#allocation2 + $0x24] sm:$0x1] %v246_v15  ;;  %303 = vst [vmem:[#allocation2 + $0x2c] sm:$0x1] %v302_v16  ;;  %v249_v19 = vsel %vm8153_vm3, 0, %v248_v17  ;;  %v7831_v22 = vld [vmem:[%s10409_s1 + $0x28] sm:$0xff]   ;;  %2764 = vmatprep.subr.bf16.mxu1 %v8064_v0 }
  0x1d   : > { %v304_v20 = vld [vmem:[#allocation2 + $0x38] sm:$0x1]  ;;  %v251_v21 = vld [vmem:[#allocation2 + $0x3c] sm:$0x1]  ;;  %v236_v23 = vld [vmem:[#allocation2] sm:$0x1] }
  0x1e   : > { %v984_v24 = vld [vmem:[#allocation2 + $0x4] sm:$0xf]  ;;  %v292_v25 = vld [vmem:[#allocation2 + $0x8] sm:$0x1]  ;;  %250 = vst [vmem:[#allocation2 + $0x30] sm:$0x1] %v249_v19  ;;  %2252 = vmatpush1.bf16.msra.mxu0 %v7831_v22 }
  0x1f   : > { %v237_v26 = vsel %vm8153_vm3, 0, %v236_v23  ;;  %v1050_v27 = vshll.u32 %v984_v24, 16  ;;  %v1054_v28 = vshrl.u32 %v984_v24, 16  ;;  %v293_v29 = vsel %vm8173_vm5, 0, %v292_v25  ;;  %v346_v30 = vld [vmem:[%s8200_s15] sm:$0xff]  ;;  %v347_v31 = vld [vmem:[%s8200_s15 + $0x8] sm:$0xff]  ;;  %2253 = vmatprep.subr.bf16.mxu0 %v8064_v0 }
  0x20   : > { %238 = vst [vmem:[#allocation2] sm:$0x1] %v237_v26  ;;  %vm1037_vm7 = vsmask.f32 3328  ;;  %vm1038_vm8 = vsmask.f32 7440  ;;  %v7720_v32 = vpack.c.bf16 %v346_v30, %v346_v30  ;;  %v7721_v33 = vpack.c.bf16 %v347_v31, %v347_v31 }
  0x21   : > { %294 = vst [vmem:[#allocation2 + $0x8] sm:$0x1] %v293_v29  ;;  %v348_v34 = vld [vmem:[%s8200_s15 + $0x10] sm:$0xff]  ;;  %v349_v35 = vld [vmem:[%s8200_s15 + $0x18] sm:$0xff]  ;;  %v305_v36 = vsel %vm8173_vm5, 0, %v304_v20  ;;  %v252_v37 = vsel %vm8153_vm3, 0, %v251_v21  ;;  %vm8263_vm11 = vmor %vm1037_vm7, %vm1038_vm8 }
  0x22   : > { %v8221_v38 = vrot.slane %v1050_v27, 5  ;;  %v1056_v39 = vrot.slane %v1054_v28, 4  ;;  %v7722_v40 = vpack.c.bf16 %v348_v34, %v348_v34  ;;  %v7723_v41 = vpack.c.bf16 %v349_v35, %v349_v35  ;;  %v350_v42 = vld [vmem:[%s8200_s15 + $0x20] sm:$0xff]  ;;  %306 = vst [vmem:[#allocation2 + $0x38] sm:$0x1] %v305_v36  ;;  %v351_v47 = vld [vmem:[%s8200_s15 + $0x28] sm:$0xff] }
  0x23   : > { %253 = vst [vmem:[#allocation2 + $0x3c] sm:$0x1] %v252_v37  ;;  %v477_v43 = vshrl.u32 %v7720_v32, 16  ;;  %v480_v44 = vshll.u32 %v7720_v32, 16  ;;  %v485_v45 = vshrl.u32 %v7721_v33, 16  ;;  %v488_v46 = vshll.u32 %v7721_v33, 16 }
  0x24   : > { %v1057_v48 = vor.u32 %v1056_v39, %v8221_v38  ;;  %v494_v49 = vshrl.u32 %v7722_v40, 16  ;;  %v497_v50 = vshll.u32 %v7722_v40, 16  ;;  %v502_v51 = vshrl.u32 %v7723_v41, 16  ;;  %v799_v54 = vld [vmem:[#allocation2 + $0xc] sm:$0xf]  ;;  %v352_v23 = vld [vmem:[%s8200_s15 + $0x30] sm:$0xff] }
  0x25   : > { %v479_v52 = vrot.slane %v477_v43, 7  ;;  %v487_v53 = vrot.slane %v485_v45, 7  ;;  %v505_v55 = vshll.u32 %v7723_v41, 16  ;;  %v7724_v56 = vpack.c.bf16 %v350_v42, %v350_v42  ;;  %v803_v59 = vld [vmem:[#allocation2 + $0x14] sm:$0x1]  ;;  %v353_v24 = vld [vmem:[%s8200_s15 + $0x38] sm:$0xff] }
  0x26   : > { %v8227_v57 = vrot.slane %v1057_v48, 4  ;;  %v496_v60 = vrot.slane %v494_v49, 7  ;;  %v504_v61 = vrot.slane %v502_v51, 7  ;;  %v7725_v62 = vpack.c.bf16 %v351_v47, %v351_v47  ;;  %v806_v7 = vld [vmem:[#allocation2 + $0x18] sm:$0xf]  ;;  %v354_v29 = vld [vmem:[%s8200_s15 + $0x40] sm:$0xff] }
  0x27   : > { %v482_v2 = vor.u32 %v480_v44, %v479_v52  ;;  %v483_v3 = vrot.slane %v479_v52, 4  ;;  %v490_v5 = vor.u32 %v488_v46, %v487_v53  ;;  %v492_v6 = vrot.slane %v487_v53, 4  ;;  %v810_v8 = vld [vmem:[#allocation2 + $0x20] sm:$0x1]  ;;  %v355_v30 = vld [vmem:[%s8200_s15 + $0x48] sm:$0xff]  ;;  %s7784_s7 = sshll.u32 %s8120_s22, 12 }
  0x28   : > { %v983_v9 = vld [vmem:[#allocation2] sm:$0xf]  ;;  %v985_v10 = vld [vmem:[#allocation2 + $0x8] sm:$0x1]  ;;  %v499_v11 = vor.u32 %v497_v50, %v496_v60  ;;  %v500_v12 = vrot.slane %v496_v60, 4  ;;  %v507_v13 = vor.u32 %v505_v55, %v504_v61  ;;  %v509_v14 = vrot.slane %v504_v61, 4  ;;  %s10360_s11 = scalar_lea.hbm %s10413_s5, %s7784_s7 }
  0x29   : > { %v1041_v15 = vshrl.u32 %v983_v9, 16  ;;  %v1044_v16 = vshll.u32 %v983_v9, 16  ;;  %v1060_v17 = vshll.u32 %v985_v10, 16  ;;  %v491_v18 = vsel %vm8231_vm9, %v483_v3, %v490_v5  ;;  %v813_v46 = vld [vmem:[#allocation2 + $0x24] sm:$0xf] }
  0x2a   : > { %v800_v19 = vsel %vm8237_vm10, %v482_v2, %v799_v54  ;;  %802 = vst.msk [vmem:[#allocation2 + $0x10] sm:$0xf] %vm224_vm0, %v491_v18  ;;  %v804_v20 = vsel %vm8153_vm3, %v492_v6, %v803_v59  ;;  %v508_v21 = vsel %vm8231_vm9, %v500_v12, %v507_v13  ;;  %v807_v22 = vsel %vm8237_vm10, %v499_v11, %v806_v7  ;;  %v817_v54 = vld [vmem:[#allocation2 + $0x2c] sm:$0x1] }
  0x2b   : > { %v1043_v25 = vrot.slane %v1041_v15, 4  ;;  %v1046_v26 = vrot.slane %v1044_v16, 5  ;;  %v8254_v27 = vrot.slane %v1060_v17, 5  ;;  %801 = vst [vmem:[#allocation2 + $0xc] sm:$0xf] %v800_v19  ;;  %v811_v28 = vsel %vm8153_vm3, %v509_v14, %v810_v8 }
  0x2c   : > { %805 = vst [vmem:[#allocation2 + $0x14] sm:$0x1] %v804_v20  ;;  %808 = vst [vmem:[#allocation2 + $0x18] sm:$0xf] %v807_v22  ;;  %v511_v32 = vshrl.u32 %v7724_v56, 16  ;;  %v514_v33 = vshll.u32 %v7724_v56, 16  ;;  %v7726_v39 = vpack.c.bf16 %v352_v23, %v352_v23  ;;  %v8271_v40 = vpack.c.bf16 %v353_v24, %v353_v24 }
  0x2d   : > { %809 = vst.msk [vmem:[#allocation2 + $0x1c] sm:$0xf] %vm224_vm0, %v508_v21  ;;  %812 = vst [vmem:[#allocation2 + $0x20] sm:$0x1] %v811_v28  ;;  %v519_v34 = vshrl.u32 %v7725_v62, 16  ;;  %v522_v35 = vshll.u32 %v7725_v62, 16  ;;  %v1047_v36 = vor.u32 %v1046_v26, %v1043_v25  ;;  %v1063_v37 = vsel %vm8263_vm11, %v8227_v57, %v8254_v27 }
  0x2e   : > { %v513_v41 = vrot.slane %v511_v32, 7  ;;  %v8273_v43 = vpack.c.bf16 %v354_v29, %v354_v29  ;;  %v8275_v44 = vpack.c.bf16 %v355_v30, %v355_v30  ;;  %v528_v47 = vshrl.u32 %v7726_v39, 16  ;;  %v820_v25 = vld [vmem:[#allocation2 + $0x30] sm:$0xf] }
  0x2f   : > { %v521_v42 = vrot.slane %v519_v34, 7  ;;  %v1048_v45 = vrot.slane %v1047_v36, 4  ;;  %v531_v48 = vshll.u32 %v7726_v39, 16  ;;  %v536_v49 = vshrl.u32 %v8271_v40, 16 }
  0x30   : > { %v516_v50 = vor.u32 %v514_v33, %v513_v41  ;;  %v517_v51 = vrot.slane %v513_v41, 4  ;;  %v8281_v57 = vrot.slane %v528_v47, 7  ;;  %v539_v60 = vshll.u32 %v8271_v40, 16  ;;  %v824_v40 = vld [vmem:[#allocation2 + $0x38] sm:$0x1] }
  0x31   : > { %v524_v52 = vor.u32 %v522_v35, %v521_v42  ;;  %v526_v53 = vrot.slane %v521_v42, 4  ;;  %v1053_v55 = vsel %vm8263_vm11, %v1048_v45, %v8221_v38  ;;  %v987_v56 = vld [vmem:[#allocation2 + $0x10] sm:$0xf]  ;;  %v8283_v59 = vrot.slane %v536_v49, 7 }
  0x32   : > { %1472 = vrot.lane.b32.xlu0 %v1053_v55, %s8065_s23  ;;  %v986_v61 = vld [vmem:[#allocation2 + $0xc] sm:$0xf]  ;;  %v1074_v62 = vshll.u32 %v987_v56, 16  ;;  %v1078_v3 = vshrl.u32 %v987_v56, 16  ;;  %v814_v38 = vsel %vm8237_vm10, %v516_v50, %v813_v46  ;;  %v533_v29 = vor.u32 %v531_v48, %v8281_v57  ;;  %v254_v55 = vld [vmem:[#allocation2 + $0x48] sm:$0x1] }
  0x33   : > { %v988_v2 = vld [vmem:[#allocation2 + $0x14] sm:$0x1]  ;;  %v525_v5 = vsel %vm8231_vm9, %v517_v51, %v524_v52  ;;  %v1065_v6 = vshrl.u32 %v986_v61, 16  ;;  %v1068_v7 = vshll.u32 %v986_v61, 16  ;;  %v989_v9 = vld [vmem:[#allocation2 + $0x18] sm:$0xf]  ;;  %v818_v10 = vsel %vm8153_vm3, %v526_v53, %v817_v54 }
  0x34   : > { %v1084_v8 = vshll.u32 %v988_v2, 16  ;;  %815 = vst [vmem:[#allocation2 + $0x24] sm:$0xf] %v814_v38  ;;  %816 = vst.msk [vmem:[#allocation2 + $0x28] sm:$0xf] %vm224_vm0, %v525_v5  ;;  %v1076_v11 = vrot.slane %v1074_v62, 5  ;;  %v821_v39 = vsel %vm8237_vm10, %v533_v29, %v820_v25 }
  0x35   : > { %v1080_v12 = vrot.slane %v1078_v3, 4  ;;  %v990_v13 = vld [vmem:[#allocation2 + $0x1c] sm:$0xf]  ;;  %v1089_v14 = vshrl.u32 %v989_v9, 16  ;;  %v1092_v15 = vshll.u32 %v989_v9, 16  ;;  %v1067_v16 = vrot.slane %v1065_v6, 4 }
  0x36   : > { %819 = vst [vmem:[#allocation2 + $0x2c] sm:$0x1] %v818_v10  ;;  %v1070_v17 = vrot.slane %v1068_v7, 5  ;;  %v8294_v18 = vrot.slane %v1084_v8, 5  ;;  %v1098_v19 = vshll.u32 %v990_v13, 16  ;;  %1474 = vrot.lane.b32.xlu0 %v1063_v37, %s8065_s23  ;;  %v1102_v24 = vshrl.u32 %v990_v13, 16 }
  0x37   : > { %v991_v20 = vld [vmem:[#allocation2 + $0x20] sm:$0x1]  ;;  %v1081_v21 = vor.u32 %v1080_v12, %v1076_v11  ;;  %v1091_v22 = vrot.slane %v1089_v14, 4  ;;  %v1094_v23 = vrot.slane %v1092_v15, 5  ;;  %v534_v34 = vrot.slane %v8281_v57, 4  ;;  %v7832_v56 = vld [vmem:[%s10409_s1 + $0x90] sm:$0xff]  }
  0x38   : > { %v1071_v26 = vor.u32 %v1070_v17, %v1067_v16  ;;  %v1100_v27 = vrot.slane %v1098_v19, 5  ;;  %v1108_v28 = vshll.u32 %v991_v20, 16  ;;  %v1104_v33 = vrot.slane %v1102_v24, 4  ;;  %822 = vst [vmem:[#allocation2 + $0x30] sm:$0xf] %v821_v39  ;;  %v356_v62 = vld [vmem:[%s8200_s15 + $0x50] sm:$0xff]  ;;  %2765 = vmatpush1.bf16.msra.mxu1 %v7832_v56 }
  0x39   : > { %v1082_v30 = vrot.slane %v1081_v21, 4  ;;  %v1095_v32 = vor.u32 %v1094_v23, %v1091_v22  ;;  %v541_v37 = vor.u32 %v539_v60, %v8283_v59  ;;  %v543_v48 = vrot.slane %v8283_v59, 4  ;;  %v307_v54 = vld [vmem:[#allocation2 + $0x44] sm:$0x1]  ;;  %v357_v7 = vld [vmem:[%s8200_s15 + $0x58] sm:$0xff]  ;;  %v7834_v8 = vld [vmem:[%s10409_s1 + $0x88] sm:$0xff]   ;;  %2766 = vmatprep.subr.bf16.mxu1 %v8064_v0 }
  0x3a   : > { %v1072_v35 = vrot.slane %v1071_v26, 4  ;;  %v8299_v36 = vrot.slane %v1108_v28, 5  ;;  %v1105_v45 = vor.u32 %v1104_v33, %v1100_v27  ;;  %v7833_v2 = vld [vmem:[%s10409_s1 + $0x20] sm:$0xff]   ;;  %v545_v14 = vshrl.u32 %v8273_v43, 16  ;;  %v7835_v17 = vld [vmem:[%s10409_s1 + $0x18] sm:$0xff]  }
  0x3b   : > { %v1087_v41 = vsel %vm8263_vm11, %v1082_v30, %v8294_v18  ;;  %v1096_v42 = vrot.slane %v1095_v32, 4  ;;  %v992_v46 = vld [vmem:[#allocation2 + $0x24] sm:$0xf]  ;;  %v993_v47 = vld [vmem:[#allocation2 + $0x28] sm:$0xf]  ;;  %v542_v6 = vsel %vm8231_vm9, %v534_v34, %v541_v37  ;;  %v825_v12 = vsel %vm8153_vm3, %v543_v48, %v824_v40  ;;  %2254 = vmatpush1.bf16.msra.mxu0 %v7833_v2  ;;  %v7837_v37 = vld [vmem:[%s10409_s1 + $0x10] sm:$0xff]  }
  0x3c   : > { %v1077_v49 = vsel %vm8263_vm11, %v1072_v35, %v1076_v11  ;;  %v1113_v50 = vshrl.u32 %v992_v46, 16  ;;  %v1116_v51 = vshll.u32 %v992_v46, 16  ;;  %v1122_v52 = vshll.u32 %v993_v47, 16  ;;  %823 = vst.msk [vmem:[#allocation2 + $0x34] sm:$0xf] %vm224_vm0, %v542_v6  ;;  %2255 = vmatprep.subr.bf16.mxu0 %v8064_v0  ;;  %2767 = vmatpush1.bf16.msra.mxu1 %v7834_v8  ;;  %v7836_v32 = vld [vmem:[%s10409_s1 + $0x80] sm:$0xff]  }
  0x3d   : > { %v994_v53 = vld [vmem:[#allocation2 + $0x2c] sm:$0x1]  ;;  %1476 = vrot.lane.b32.xlu1 %v1077_v49, %s8065_s23  ;;  %v1101_v57 = vsel %vm8263_vm11, %v1096_v42, %v1100_v27  ;;  %v1106_v59 = vrot.slane %v1105_v45, 4  ;;  %v1126_v60 = vshrl.u32 %v993_v47, 16  ;;  %826 = vst [vmem:[#allocation2 + $0x38] sm:$0x1] %v825_v12  ;;  %v7730_v26 = vpack.c.bf16 %v356_v62, %v356_v62  ;;  %2768 = vmatprep.subr.bf16.mxu1 %v8064_v0 }
  0x3e   : > { %v1132_v61 = vshll.u32 %v994_v53, 16  ;;  %1480 = vrot.lane.b32.xlu0 %v1101_v57, %s8065_s23  ;;  %v1115_v3 = vrot.slane %v1113_v50, 4  ;;  %v1118_v5 = vrot.slane %v1116_v51, 5  ;;  %v1124_v38 = vrot.slane %v1122_v52, 5  ;;  %v827_v20 = vld [vmem:[#allocation2 + $0x3c] sm:$0xf] }
  0x3f   : > { %v1111_v9 = vsel %vm8263_vm11, %v1106_v59, %v8299_v36  ;;  %v1128_v10 = vrot.slane %v1126_v60, 4  ;;  %v548_v15 = vshll.u32 %v8273_v43, 16  ;;  %v553_v16 = vshrl.u32 %v8275_v44, 16  ;;  %v995_v23 = vld [vmem:[#allocation2 + $0x30] sm:$0xf]  ;;  %2256 = vmatpush1.bf16.msra.mxu0 %v7835_v17  ;;  %v7838_v45 = vld [vmem:[%s10409_s1 + $0x78] sm:$0xff]  }
  0x40   : > { %v8330_v11 = vrot.slane %v1132_v61, 5  ;;  %v1119_v13 = vor.u32 %v1118_v5, %v1115_v3  ;;  %v556_v19 = vshll.u32 %v8275_v44, 16  ;;  %v308_v21 = vsel %vm8173_vm5, 0, %v307_v54  ;;  %v310_v30 = vld [vmem:[#allocation2 + $0x50] sm:$0x1]  ;;  %2257 = vmatprep.subr.bf16.mxu0 %v8064_v0  ;;  %2769 = vmatpush1.bf16.msra.mxu1 %v7836_v32  ;;  %v358_v57 = vld [vmem:[%s8200_s15 + $0x60] sm:$0xff] }
  0x41   : > { %1478 = vrot.lane.b32.xlu1 %v1087_v41, %s8065_s23  ;;  %v1129_v18 = vor.u32 %v1128_v10, %v1124_v38  ;;  %v255_v43 = vsel %vm8153_vm3, 0, %v254_v55  ;;  %v547_v24 = vrot.slane %v545_v14, 7  ;;  %v8349_v25 = vrot.slane %v553_v16, 7  ;;  %309 = vst [vmem:[#allocation2 + $0x44] sm:$0x1] %v308_v21  ;;  %v359_v59 = vld [vmem:[%s8200_s15 + $0x68] sm:$0xff]  ;;  %2770 = vmatprep.subr.bf16.mxu1 %v8064_v0 }
  0x42   : > { %v1120_v22 = vrot.slane %v1119_v13, 4  ;;  %256 = vst [vmem:[#allocation2 + $0x48] sm:$0x1] %v255_v43  ;;  %v1137_v28 = vshrl.u32 %v995_v23, 16  ;;  %v1140_v29 = vshll.u32 %v995_v23, 16  ;;  %v7731_v44 = vpack.c.bf16 %v357_v7, %v357_v7  ;;  %v7839_v60 = vld [vmem:[%s10409_s1 + $0x8] sm:$0xff]  }
  0x43   : > { %v1130_v27 = vrot.slane %v1129_v18, 4  ;;  %v550_v34 = vor.u32 %v548_v15, %v547_v24  ;;  %v551_v35 = vrot.slane %v547_v24, 4  ;;  %v558_v36 = vor.u32 %v556_v19, %v8349_v25  ;;  %v996_v46 = vld [vmem:[#allocation2 + $0x34] sm:$0xf]  ;;  %2258 = vmatpush1.bf16.msra.mxu0 %v7837_v37  ;;  %v313_v5 = vld [vmem:[#allocation2 + $0x5c] sm:$0x1] }
  0x44   : > { %v1125_v33 = vsel %vm8263_vm11, %v1120_v22, %v1124_v38  ;;  %v1139_v40 = vrot.slane %v1137_v28, 4  ;;  %v1142_v41 = vrot.slane %v1140_v29, 5  ;;  %v560_v42 = vrot.slane %v8349_v25, 4  ;;  %v997_v53 = vld [vmem:[#allocation2 + $0x38] sm:$0x1]  ;;  %2259 = vmatprep.subr.bf16.mxu0 %v8064_v0  ;;  %2771 = vmatpush1.bf16.msra.mxu1 %v7838_v45  ;;  %v7840_v29 = vld [vmem:[%s10409_s1 + $0x70] sm:$0xff]  }
  0x45   : > { %1482 = vrot.lane.b32.xlu1 %v1111_v9, %s8065_s23  ;;  %1484 = vrot.lane.b32.xlu0 %v1125_v33, %s8065_s23  ;;  %v1135_v39 = vsel %vm8263_vm11, %v1130_v27, %v8330_v11  ;;  %v559_v47 = vsel %vm8231_vm9, %v551_v35, %v558_v36  ;;  %v828_v48 = vsel %vm8237_vm10, %v550_v34, %v827_v20  ;;  %v562_v49 = vshrl.u32 %v7730_v26, 16  ;;  %v257_v56 = vld [vmem:[#allocation2 + $0x54] sm:$0x1]  ;;  %v260_v38 = vld [vmem:[#allocation2 + $0x60] sm:$0x1]  ;;  %v361_v21 = vld [vmem:[%s8200_s15 + $0x78] sm:$0xff] }
  0x46   : > { %v565_v50 = vshll.u32 %v7730_v26, 16  ;;  %v1143_v51 = vor.u32 %v1142_v41, %v1139_v40  ;;  %v1146_v52 = vshll.u32 %v996_v46, 16  ;;  %v1150_v54 = vshrl.u32 %v996_v46, 16  ;;  %829 = vst [vmem:[#allocation2 + $0x3c] sm:$0xf] %v828_v48  ;;  %v360_v11 = vld [vmem:[%s8200_s15 + $0x70] sm:$0xff]  ;;  %2772 = vmatprep.subr.bf16.mxu1 %v8064_v0 }
  0x47   : > { %830 = vst.msk [vmem:[#allocation2 + $0x40] sm:$0xf] %vm224_vm0, %v559_v47  ;;  %v570_v55 = vshrl.u32 %v7731_v44, 16  ;;  %v1156_v61 = vshll.u32 %v997_v53, 16  ;;  %v564_v62 = vrot.slane %v562_v49, 7  ;;  %v573_v2 = vshll.u32 %v7731_v44, 16  ;;  %2260 = vmatpush1.bf16.msra.mxu0 %v7839_v60 }
  0x48   : > { %v311_v3 = vsel %vm8173_vm5, 0, %v310_v30  ;;  %v1144_v6 = vrot.slane %v1143_v51, 4  ;;  %v1148_v7 = vrot.slane %v1146_v52, 5  ;;  %v1152_v8 = vrot.slane %v1150_v54, 4  ;;  %v831_v9 = vld [vmem:[#allocation2 + $0x44] sm:$0x1]  ;;  %2261 = vmatprep.subr.bf16.mxu0 %v8064_v0  ;;  %2773 = vmatpush1.bf16.msra.mxu1 %v7840_v29 }
  0x49   : > { %1486 = vrot.lane.b32.xlu1 %v1135_v39, %s8065_s23  ;;  %v572_v10 = vrot.slane %v570_v55, 7  ;;  %312 = vst [vmem:[#allocation2 + $0x50] sm:$0x1] %v311_v3  ;;  %v1158_v12 = vrot.slane %v1156_v61, 5  ;;  %v832_v13 = vsel %vm8153_vm3, %v560_v42, %v831_v9  ;;  %v567_v14 = vor.u32 %v565_v50, %v564_v62  ;;  %v834_v16 = vld [vmem:[#allocation2 + $0x48] sm:$0xf]  ;;  %2774 = vmatprep.subr.bf16.mxu1 %v8064_v0 }
  0x4a   : > { %v568_v15 = vrot.slane %v564_v62, 4  ;;  %v1149_v17 = vsel %vm8263_vm11, %v1144_v6, %v1148_v7  ;;  %v1153_v18 = vor.u32 %v1152_v8, %v1148_v7  ;;  %833 = vst [vmem:[#allocation2 + $0x44] sm:$0x1] %v832_v13  ;;  %v258_v22 = vsel %vm8153_vm3, 0, %v257_v56  ;;  %v7841_v41 = vld [vmem:[%s10409_s1] sm:$0xff]   ;;  %v7842_v53 = vld [vmem:[%s10409_s1 + $0x68] sm:$0xff]  }
  0x4b   : > { %v575_v19 = vor.u32 %v573_v2, %v572_v10  ;;  %v577_v20 = vrot.slane %v572_v10, 4  ;;  %1488 = vrot.lane.b32.xlu0 %v1149_v17, %s8065_s23  ;;  %v835_v43 = vsel %vm8237_vm10, %v567_v14, %v834_v16  ;;  %v7732_v23 = vpack.c.bf16 %v358_v57, %v358_v57  ;;  %259 = vst [vmem:[#allocation2 + $0x54] sm:$0x1] %v258_v22  ;;  %v7843_v60 = vld [vmem:[%s10409_s1 + $0x58] sm:$0xff]   ;;  %v263_v16 = vld [vmem:[#allocation2 + $0x6c] sm:$0x1] }
  0x4c   : > { %v7733_v24 = vpack.c.bf16 %v359_v59, %v359_v59  ;;  %v1154_v25 = vrot.slane %v1153_v18, 4  ;;  %836 = vst [vmem:[#allocation2 + $0x48] sm:$0xf] %v835_v43  ;;  %v314_v27 = vsel %vm8173_vm5, 0, %v313_v5  ;;  %v261_v28 = vsel %vm8153_vm3, 0, %v260_v38  ;;  %2262 = vmatpush1.bf16.msra.mxu0 %v7841_v41  ;;  %2775 = vmatpush1.bf16.msra.mxu1 %v7842_v53 }
  0x4d   : > { %v576_v26 = vsel %vm8231_vm9, %v568_v15, %v575_v19  ;;  %v998_v44 = vld [vmem:[#allocation2 + $0x3c] sm:$0xf]  ;;  %v579_v32 = vshrl.u32 %v7732_v23, 16  ;;  %v582_v33 = vshll.u32 %v7732_v23, 16  ;;  %315 = vst [vmem:[#allocation2 + $0x5c] sm:$0x1] %v314_v27  ;;  %v8409_v34 = vpack.c.bf16 %v360_v11, %v360_v11  ;;  %2271 = vmatprep.subr.bf16.mxu0 %v8064_v0  ;;  %2776 = vmatprep.subr.bf16.mxu1 %v8064_v0 }
  0x4e   : > { %v999_v30 = vld [vmem:[#allocation2 + $0x40] sm:$0xf]  ;;  %837 = vst.msk [vmem:[#allocation2 + $0x4c] sm:$0xf] %vm224_vm0, %v576_v26  ;;  %262 = vst [vmem:[#allocation2 + $0x60] sm:$0x1] %v261_v28  ;;  %v8411_v35 = vpack.c.bf16 %v361_v21, %v361_v21  ;;  %v1159_v36 = vsel %vm8263_vm11, %v1154_v25, %v1158_v12 }
  0x4f   : > { %v1161_v37 = vshrl.u32 %v998_v44, 16  ;;  %v1164_v39 = vshll.u32 %v998_v44, 16  ;;  %v1170_v40 = vshll.u32 %v999_v30, 16  ;;  %1490 = vrot.lane.b32.xlu1 %v1159_v36, %s8065_s23  ;;  %v1174_v42 = vshrl.u32 %v999_v30, 16  ;;  %v316_v15 = vld [vmem:[#allocation2 + $0x68] sm:$0x1] }
  0x50   : > { %v838_v45 = vld [vmem:[#allocation2 + $0x50] sm:$0x1]  ;;  %v581_v46 = vrot.slane %v579_v32, 7  ;;  %v587_v47 = vshrl.u32 %v7733_v24, 16  ;;  %v590_v48 = vshll.u32 %v7733_v24, 16  ;;  %v596_v2 = vshrl.u32 %v8409_v34, 16  ;;  %2272 = vmatpush2.bf16.msra.mxu0 %v7843_v60 }
  0x51   : > { %v1163_v49 = vrot.slane %v1161_v37, 4  ;;  %v1166_v50 = vrot.slane %v1164_v39, 5  ;;  %v1172_v51 = vrot.slane %v1170_v40, 5  ;;  %v839_v52 = vsel %vm8153_vm3, %v577_v20, %v838_v45  ;;  %v1000_v54 = vld [vmem:[#allocation2 + $0x44] sm:$0x1]  ;;  %2273 = vmatprep.subr.bf16.mxu0 %v8064_v0  ;;  %v363_v30 = vld [vmem:[%s8200_s15 + $0x88] sm:$0xff] }
  0x52   : > { %v1176_v55 = vrot.slane %v1174_v42, 4  ;;  %840 = vst [vmem:[#allocation2 + $0x50] sm:$0x1] %v839_v52  ;;  %v584_v56 = vor.u32 %v582_v33, %v581_v46  ;;  %v585_v57 = vrot.slane %v581_v46, 4  ;;  %v589_v59 = vrot.slane %v587_v47, 7  ;;  %v362_v25 = vld [vmem:[%s8200_s15 + $0x80] sm:$0xff] }
  0x53   : > { %v1167_v61 = vor.u32 %v1166_v50, %v1163_v49  ;;  %v1180_v62 = vshll.u32 %v1000_v54, 16  ;;  %v599_v3 = vshll.u32 %v8409_v34, 16  ;;  %v1001_v38 = vld [vmem:[#allocation2 + $0x48] sm:$0xf]  ;;  %v841_v7 = vld [vmem:[#allocation2 + $0x54] sm:$0xf] }
  0x54   : > { %v1177_v5 = vor.u32 %v1176_v55, %v1172_v51  ;;  %v592_v6 = vor.u32 %v590_v48, %v589_v59  ;;  %v594_v8 = vrot.slane %v589_v59, 4  ;;  %v604_v9 = vshrl.u32 %v8411_v35, 16  ;;  %v845_v21 = vld [vmem:[#allocation2 + $0x5c] sm:$0x1]  ;;  %v7844_v39 = vld [vmem:[%s10409_s1 + $0x60] sm:$0xff]   ;;  %v7845_v46 = vld [vmem:[%s10409_s1 + $0x50] sm:$0xff]  }
  0x55   : > { %v1168_v10 = vrot.slane %v1167_v61, 4  ;;  %v1182_v11 = vrot.slane %v1180_v62, 5  ;;  %v1002_v12 = vld [vmem:[#allocation2 + $0x4c] sm:$0xf]  ;;  %v1185_v13 = vshrl.u32 %v1001_v38, 16  ;;  %v1188_v14 = vshll.u32 %v1001_v38, 16  ;;  %2777 = vmatpush1.bf16.msra.mxu1 %v7844_v39  ;;  %2274 = vmatpush2.bf16.msra.mxu0 %v7845_v46 }
  0x56   : > { %v1178_v17 = vrot.slane %v1177_v5, 4  ;;  %v1194_v18 = vshll.u32 %v1002_v12, 16  ;;  %v1198_v19 = vshrl.u32 %v1002_v12, 16  ;;  %v593_v20 = vsel %vm8231_vm9, %v585_v57, %v592_v6  ;;  %v848_v44 = vld [vmem:[#allocation2 + $0x60] sm:$0xf]  ;;  %2786 = vmatprep.subr.bf16.mxu1 %v8064_v0  ;;  %2275 = vmatprep.subr.bf16.mxu0 %v8064_v0  ;;  %v7847_v6 = vld [vmem:[%s10409_s1 + $0x48] sm:$0xff]  }
  0x57   : > { %v1173_v43 = vsel %vm8263_vm11, %v1168_v10, %v1172_v51  ;;  %v1187_v22 = vrot.slane %v1185_v13, 4  ;;  %v1190_v23 = vrot.slane %v1188_v14, 5  ;;  %v842_v24 = vsel %vm8237_vm10, %v584_v56, %v841_v7  ;;  %844 = vst.msk [vmem:[#allocation2 + $0x58] sm:$0xf] %vm224_vm0, %v593_v20  ;;  %v319_v50 = vld [vmem:[#allocation2 + $0x74] sm:$0x1] }
  0x58   : > { %1492 = vrot.lane.b32.xlu0 %v1173_v43, %s8065_s23  ;;  %v1183_v26 = vsel %vm8263_vm11, %v1178_v17, %v1182_v11  ;;  %v1196_v27 = vrot.slane %v1194_v18, 5  ;;  %v1200_v28 = vrot.slane %v1198_v19, 4  ;;  %843 = vst [vmem:[#allocation2 + $0x54] sm:$0xf] %v842_v24  ;;  %v846_v29 = vsel %vm8153_vm3, %v594_v8, %v845_v21  ;;  %v266_v51 = vld [vmem:[#allocation2 + $0x78] sm:$0x1] }
  0x59   : > { %1494 = vrot.lane.b32.xlu1 %v1183_v26, %s8065_s23  ;;  %v1191_v32 = vor.u32 %v1190_v23, %v1187_v22  ;;  %v1003_v33 = vld [vmem:[#allocation2 + $0x50] sm:$0x1]  ;;  %847 = vst [vmem:[#allocation2 + $0x5c] sm:$0x1] %v846_v29  ;;  %v598_v34 = vrot.slane %v596_v2, 7  ;;  %v8449_v36 = vrot.slane %v604_v9, 7  ;;  %v7736_v55 = vpack.c.bf16 %v362_v25, %v362_v25  ;;  %2276 = vmatpush2.bf16.msra.mxu0 %v7847_v6 }
  0x5a   : > { %v607_v37 = vshll.u32 %v8411_v35, 16  ;;  %v1201_v40 = vor.u32 %v1200_v28, %v1196_v27  ;;  %v1204_v41 = vshll.u32 %v1003_v33, 16  ;;  %v317_v42 = vsel %vm8173_vm5, 0, %v316_v15  ;;  %v7846_v56 = vld [vmem:[%s10409_s1 + $0xb8] sm:$0xff]   ;;  %v364_v12 = vld [vmem:[%s8200_s15 + $0x90] sm:$0xff]  ;;  %2277 = vmatprep.subr.bf16.mxu0 %v8064_v0 }
  0x5b   : > { %v264_v45 = vsel %vm8153_vm3, 0, %v263_v16  ;;  %v1192_v47 = vrot.slane %v1191_v32, 4  ;;  %v601_v48 = vor.u32 %v599_v3, %v598_v34  ;;  %v602_v49 = vrot.slane %v598_v34, 4  ;;  %318 = vst [vmem:[#allocation2 + $0x68] sm:$0x1] %v317_v42  ;;  %2787 = vmatpush2.bf16.msra.mxu1 %v7846_v56  ;;  %v7848_v39 = vld [vmem:[%s10409_s1 + $0xb0] sm:$0xff]  }
  0x5c   : > { %v609_v35 = vor.u32 %v607_v37, %v8449_v36  ;;  %265 = vst [vmem:[#allocation2 + $0x6c] sm:$0x1] %v264_v45  ;;  %v1202_v52 = vrot.slane %v1201_v40, 4  ;;  %v1206_v53 = vrot.slane %v1204_v41, 5  ;;  %v611_v54 = vrot.slane %v8449_v36, 4  ;;  %2788 = vmatprep.subr.bf16.mxu1 %v8064_v0 }
  0x5d   : > { %v1197_v57 = vsel %vm8263_vm11, %v1192_v47, %v1196_v27  ;;  %v849_v60 = vsel %vm8237_vm10, %v601_v48, %v848_v44  ;;  %v7737_v61 = vpack.c.bf16 %v363_v30, %v363_v30  ;;  %v613_v3 = vshrl.u32 %v7736_v55, 16  ;;  %v322_v18 = vld [vmem:[#allocation2 + $0x80] sm:$0x1]  ;;  %v365_v27 = vld [vmem:[%s8200_s15 + $0x98] sm:$0xff]  ;;  %v269_v56 = vld [vmem:[#allocation2 + $0x84] sm:$0x1] }
  0x5e   : > { %v610_v59 = vsel %vm8231_vm9, %v602_v49, %v609_v35  ;;  %1496 = vrot.lane.b32.xlu0 %v1197_v57, %s8065_s23  ;;  %v1207_v62 = vsel %vm8263_vm11, %v1202_v52, %v1206_v53  ;;  %v1005_v2 = vld [vmem:[#allocation2 + $0x58] sm:$0xf]  ;;  %850 = vst [vmem:[#allocation2 + $0x60] sm:$0xf] %v849_v60  ;;  %v616_v5 = vshll.u32 %v7736_v55, 16  ;;  %v320_v38 = vsel %vm8173_vm5, 0, %v319_v50 }
  0x5f   : > { %851 = vst.msk [vmem:[#allocation2 + $0x64] sm:$0xf] %vm224_vm0, %v610_v59  ;;  %1498 = vrot.lane.b32.xlu1 %v1207_v62, %s8065_s23  ;;  %v1004_v7 = vld [vmem:[#allocation2 + $0x54] sm:$0xf]  ;;  %v1218_v8 = vshll.u32 %v1005_v2, 16  ;;  %v1222_v9 = vshrl.u32 %v1005_v2, 16  ;;  %v7738_v37 = vpack.c.bf16 %v364_v12, %v364_v12  ;;  %v7739_v46 = vpack.c.bf16 %v365_v27, %v365_v27  ;;  %2789 = vmatpush2.bf16.msra.mxu1 %v7848_v39 }
  0x60   : > { %v621_v10 = vshrl.u32 %v7737_v61, 16  ;;  %v624_v11 = vshll.u32 %v7737_v61, 16  ;;  %321 = vst [vmem:[#allocation2 + $0x74] sm:$0x1] %v320_v38  ;;  %v1209_v13 = vshrl.u32 %v1004_v7, 16  ;;  %v1212_v14 = vshll.u32 %v1004_v7, 16  ;;  %2790 = vmatprep.subr.bf16.mxu1 %v8064_v0 }
  0x61   : > { %v1006_v15 = vld [vmem:[#allocation2 + $0x5c] sm:$0x1]  ;;  %v615_v16 = vrot.slane %v613_v3, 7  ;;  %v267_v17 = vsel %vm8153_vm3, 0, %v266_v51  ;;  %v1220_v19 = vrot.slane %v1218_v8, 5  ;;  %v1224_v20 = vrot.slane %v1222_v9, 4 }
  0x62   : > { %v1228_v21 = vshll.u32 %v1006_v15, 16  ;;  %v623_v43 = vrot.slane %v621_v10, 7  ;;  %268 = vst [vmem:[#allocation2 + $0x78] sm:$0x1] %v267_v17  ;;  %v1211_v22 = vrot.slane %v1209_v13, 4  ;;  %v1214_v23 = vrot.slane %v1212_v14, 5 }
  0x63   : > { %v852_v24 = vld [vmem:[#allocation2 + $0x68] sm:$0x1]  ;;  %v618_v25 = vor.u32 %v616_v5, %v615_v16  ;;  %v619_v26 = vrot.slane %v615_v16, 4  ;;  %v1225_v28 = vor.u32 %v1224_v20, %v1220_v19  ;;  %v855_v32 = vld [vmem:[#allocation2 + $0x6c] sm:$0xf]  ;;  %v323_v47 = vsel %vm8173_vm5, 0, %v322_v18 }
  0x64   : > { %v1230_v29 = vrot.slane %v1228_v21, 5  ;;  %v853_v44 = vsel %vm8153_vm3, %v611_v54, %v852_v24  ;;  %v626_v30 = vor.u32 %v624_v11, %v623_v43  ;;  %v1215_v33 = vor.u32 %v1214_v23, %v1211_v22  ;;  %324 = vst [vmem:[#allocation2 + $0x80] sm:$0x1] %v323_v47  ;;  %v366_v57 = vld [vmem:[%s8200_s15 + $0xa0] sm:$0xff]  ;;  %v367_v7 = vld [vmem:[%s8200_s15 + $0xa8] sm:$0xff] }
  0x65   : > { %854 = vst [vmem:[#allocation2 + $0x68] sm:$0x1] %v853_v44  ;;  %v856_v34 = vsel %vm8237_vm10, %v618_v25, %v855_v32  ;;  %v628_v36 = vrot.slane %v623_v43, 4  ;;  %v1226_v40 = vrot.slane %v1225_v28, 4  ;;  %v1007_v41 = vld [vmem:[#allocation2 + $0x60] sm:$0xf]  ;;  %v7740_v12 = vpack.c.bf16 %v366_v57, %v366_v57 }
  0x66   : > { %v1008_v42 = vld [vmem:[#allocation2 + $0x64] sm:$0xf]  ;;  %v627_v45 = vsel %vm8231_vm9, %v619_v26, %v626_v30  ;;  %857 = vst [vmem:[#allocation2 + $0x6c] sm:$0xf] %v856_v34  ;;  %v1216_v48 = vrot.slane %v1215_v33, 4  ;;  %v1233_v49 = vshrl.u32 %v1007_v41, 16  ;;  %v8520_v43 = vpack.c.bf16 %v367_v7, %v367_v7 }
  0x67   : > { %v1236_v35 = vshll.u32 %v1007_v41, 16  ;;  %v1242_v50 = vshll.u32 %v1008_v42, 16  ;;  %858 = vst.msk [vmem:[#allocation2 + $0x70] sm:$0xf] %vm224_vm0, %v627_v45  ;;  %v859_v51 = vld [vmem:[#allocation2 + $0x74] sm:$0x1]  ;;  %v1231_v52 = vsel %vm8263_vm11, %v1226_v40, %v1230_v29 }
  0x68   : > { %v1246_v53 = vshrl.u32 %v1008_v42, 16  ;;  %v860_v54 = vsel %vm8153_vm3, %v628_v36, %v859_v51  ;;  %v630_v55 = vshrl.u32 %v7738_v37, 16  ;;  %v1221_v59 = vsel %vm8263_vm11, %v1216_v48, %v1220_v19  ;;  %1502 = vrot.lane.b32.xlu1 %v1231_v52, %s8065_s23  ;;  %v7849_v2 = vld [vmem:[%s10409_s1 + $0x40] sm:$0xff]   ;;  %v7850_v23 = vld [vmem:[%s10409_s1 + $0xa8] sm:$0xff]   ;;  %v272_v41 = vld [vmem:[#allocation2 + $0x90] sm:$0x1] }
  0x69   : > { %v1235_v60 = vrot.slane %v1233_v49, 4  ;;  %v1238_v61 = vrot.slane %v1236_v35, 5  ;;  %v1244_v62 = vrot.slane %v1242_v50, 5  ;;  %861 = vst [vmem:[#allocation2 + $0x74] sm:$0x1] %v860_v54  ;;  %1500 = vrot.lane.b32.xlu0 %v1221_v59, %s8065_s23  ;;  %v633_v38 = vshll.u32 %v7738_v37, 16  ;;  %2278 = vmatpush2.bf16.msra.mxu0 %v7849_v2 }
  0x6a   : > { %v1248_v3 = vrot.slane %v1246_v53, 4  ;;  %v632_v5 = vrot.slane %v630_v55, 7  ;;  %v638_v6 = vshrl.u32 %v7739_v46, 16  ;;  %v641_v9 = vshll.u32 %v7739_v46, 16  ;;  %v862_v10 = vld [vmem:[#allocation2 + $0x78] sm:$0xf]  ;;  %3341 = vmatprep.subr.bf16.mxu0 %v8064_v0  ;;  %2791 = vmatpush2.bf16.msra.mxu1 %v7850_v23 }
  0x6b   : > { %v1239_v8 = vor.u32 %v1238_v61, %v1235_v60  ;;  %v270_v11 = vsel %vm8153_vm3, 0, %v269_v56  ;;  %v911_v18 = vld [vmem:[#allocation2] sm:$0xf]  ;;  %v647_v22 = vshrl.u32 %v7740_v12, 16  ;;  %v325_v40 = vld [vmem:[#allocation2 + $0x8c] sm:$0x1]  ;;  %2792 = vmatprep.subr.bf16.mxu1 %v8064_v0 }
  0x6c   : > { %v1009_v13 = vld [vmem:[#allocation2 + $0x68] sm:$0x1]  ;;  %v1249_v14 = vor.u32 %v1248_v3, %v1244_v62  ;;  %v635_v15 = vor.u32 %v633_v38, %v632_v5  ;;  %v636_v16 = vrot.slane %v632_v5, 4  ;;  %v640_v17 = vrot.slane %v638_v6, 7  ;;  %271 = vst [vmem:[#allocation2 + $0x84] sm:$0x1] %v270_v11 }
  0x6d   : > { %v1240_v19 = vrot.slane %v1239_v8, 4  ;;  %v1252_v20 = vshll.u32 %v1009_v13, 16  ;;  %v1010_v21 = vld [vmem:[#allocation2 + $0x6c] sm:$0xf]  ;;  %947 = vst.msk [vmem:[#allocation3] sm:$0xf] %vm224_vm0, %v911_v18 }
  0x6e   : > { %v1250_v24 = vrot.slane %v1249_v14, 4  ;;  %v1011_v25 = vld [vmem:[#allocation2 + $0x70] sm:$0xf]  ;;  %v1257_v26 = vshrl.u32 %v1010_v21, 16  ;;  %v1260_v27 = vshll.u32 %v1010_v21, 16  ;;  %v643_v28 = vor.u32 %v641_v9, %v640_v17  ;;  %v369_v35 = vld [vmem:[%s8200_s15 + $0xb8] sm:$0xff] }
  0x6f   : > { %v1245_v29 = vsel %vm8263_vm11, %v1240_v19, %v1244_v62  ;;  %v1254_v44 = vrot.slane %v1252_v20, 5  ;;  %v1266_v30 = vshll.u32 %v1011_v25, 16  ;;  %v1270_v32 = vshrl.u32 %v1011_v25, 16  ;;  %v866_v48 = vld [vmem:[#allocation2 + $0x80] sm:$0x1]  ;;  %v368_v49 = vld [vmem:[%s8200_s15 + $0xb0] sm:$0xff] }
  0x70   : > { %1504 = vrot.lane.b32.xlu0 %v1245_v29, %s8065_s23  ;;  %v1259_v33 = vrot.slane %v1257_v26, 4  ;;  %v1262_v34 = vrot.slane %v1260_v27, 5  ;;  %v1012_v36 = vld [vmem:[#allocation2 + $0x74] sm:$0x1]  ;;  %v644_v37 = vsel %vm8231_vm9, %v636_v16, %v643_v28  ;;  %v863_v39 = vsel %vm8237_vm10, %v635_v15, %v862_v10  ;;  %v328_v54 = vld [vmem:[#allocation2 + $0x98] sm:$0x1] }
  0x71   : > { %v1255_v42 = vsel %vm8263_vm11, %v1250_v24, %v1254_v44  ;;  %v1268_v45 = vrot.slane %v1266_v30, 5  ;;  %v1272_v46 = vrot.slane %v1270_v32, 4  ;;  %v1276_v47 = vshll.u32 %v1012_v36, 16  ;;  %864 = vst [vmem:[#allocation2 + $0x78] sm:$0xf] %v863_v39  ;;  %v7852_v55 = vld [vmem:[%s10409_s1 + $0xa0] sm:$0xff]  }
  0x72   : > { %865 = vst.msk [vmem:[#allocation2 + $0x7c] sm:$0xf] %vm224_vm0, %v644_v37  ;;  %1506 = vrot.lane.b32.xlu1 %v1255_v42, %s8065_s23  ;;  %v1263_v50 = vor.u32 %v1262_v34, %v1259_v33  ;;  %v645_v51 = vrot.slane %v640_v17, 4  ;;  %v649_v52 = vrot.slane %v647_v22, 7  ;;  %v650_v53 = vshll.u32 %v7740_v12, 16  ;;  %v370_v62 = vld [vmem:[%s8200_s15 + $0xc0] sm:$0xff]  ;;  %2793 = vmatpush2.bf16.msra.mxu1 %v7852_v55 }
  0x73   : > { %v1273_v56 = vor.u32 %v1272_v46, %v1268_v45  ;;  %v1278_v57 = vrot.slane %v1276_v47, 5  ;;  %v655_v59 = vshrl.u32 %v8520_v43, 16  ;;  %v658_v60 = vshll.u32 %v8520_v43, 16  ;;  %v869_v61 = vld [vmem:[#allocation2 + $0x84] sm:$0xf]  ;;  %v371_v2 = vld [vmem:[%s8200_s15 + $0xc8] sm:$0xff]  ;;  %5557 = vmatprep.subr.bf16.mxu1 %v8064_v0 }
  0x74   : > { %v1264_v3 = vrot.slane %v1263_v50, 4  ;;  %v867_v5 = vsel %vm8153_vm3, %v645_v51, %v866_v48  ;;  %v652_v38 = vor.u32 %v650_v53, %v649_v52  ;;  %v653_v6 = vrot.slane %v649_v52, 4  ;;  %v912_v15 = vld [vmem:[#allocation2 + $0x4] sm:$0xf]  ;;  %v275_v20 = vld [vmem:[#allocation2 + $0x9c] sm:$0x1] }
  0x75   : > { %v1274_v7 = vrot.slane %v1273_v56, 4  ;;  %868 = vst [vmem:[#allocation2 + $0x80] sm:$0x1] %v867_v5  ;;  %v657_v8 = vrot.slane %v655_v59, 7  ;;  %v326_v9 = vsel %vm8173_vm5, 0, %v325_v40  ;;  %v273_v10 = vsel %vm8153_vm3, 0, %v272_v41 }
  0x76   : > { %v1269_v11 = vsel %vm8263_vm11, %v1264_v3, %v1268_v45  ;;  %v870_v12 = vsel %vm8237_vm10, %v652_v38, %v869_v61  ;;  %327 = vst [vmem:[#allocation2 + $0x8c] sm:$0x1] %v326_v9  ;;  %274 = vst [vmem:[#allocation2 + $0x90] sm:$0x1] %v273_v10  ;;  %v7742_v13 = vpack.c.bf16 %v368_v49, %v368_v49  ;;  %v329_v19 = vsel %vm8173_vm5, 0, %v328_v54 }
  0x77   : > { %v7743_v14 = vpack.c.bf16 %v369_v35, %v369_v35  ;;  %1508 = vrot.lane.b32.xlu0 %v1269_v11, %s8065_s23  ;;  %v1279_v16 = vsel %vm8263_vm11, %v1274_v7, %v1278_v57  ;;  %v660_v17 = vor.u32 %v658_v60, %v657_v8  ;;  %871 = vst [vmem:[#allocation2 + $0x84] sm:$0xf] %v870_v12  ;;  %v662_v18 = vrot.slane %v657_v8, 4  ;;  %v913_v21 = vld [vmem:[#allocation2 + $0xc] sm:$0xf] }
  0x78   : > { %948 = vst.msk [vmem:[#allocation3 + $0x8] sm:$0xf] %vm224_vm0, %v912_v15  ;;  %1510 = vrot.lane.b32.xlu1 %v1279_v16, %s8065_s23  ;;  %v1013_v43 = vld [vmem:[#allocation2 + $0x78] sm:$0xf]  ;;  %v664_v23 = vshrl.u32 %v7742_v13, 16  ;;  %v667_v24 = vshll.u32 %v7742_v13, 16  ;;  %v8565_v25 = vpack.c.bf16 %v370_v62, %v370_v62  ;;  %v8567_v26 = vpack.c.bf16 %v371_v2, %v371_v2 }
  0x79   : > { %v1014_v22 = vld [vmem:[#allocation2 + $0x7c] sm:$0xf]  ;;  %330 = vst [vmem:[#allocation2 + $0x98] sm:$0x1] %v329_v19  ;;  %949 = vst.msk [vmem:[#allocation3 + $0x10] sm:$0xf] %vm224_vm0, %v913_v21  ;;  %v661_v30 = vsel %vm8231_vm9, %v653_v6, %v660_v17 }
  0x7a   : > { %v1281_v27 = vshrl.u32 %v1013_v43, 16  ;;  %v1284_v28 = vshll.u32 %v1013_v43, 16  ;;  %v1290_v29 = vshll.u32 %v1014_v22, 16  ;;  %v1294_v44 = vshrl.u32 %v1014_v22, 16  ;;  %872 = vst.msk [vmem:[#allocation2 + $0x88] sm:$0xf] %vm224_vm0, %v661_v30 }
  0x7b   : > { %v666_v32 = vrot.slane %v664_v23, 7  ;;  %v672_v33 = vshrl.u32 %v7743_v14, 16  ;;  %v675_v34 = vshll.u32 %v7743_v14, 16  ;;  %vm1725_vm12 = vcmask 1042432   ;;  %v331_v59 = vld [vmem:[#allocation2 + $0xa4] sm:$0x1] }
  0x7c   : > { %v1283_v36 = vrot.slane %v1281_v27, 4  ;;  %v1286_v37 = vrot.slane %v1284_v28, 5  ;;  %v1292_v39 = vrot.slane %v1290_v29, 5  ;;  %v1296_v40 = vrot.slane %v1294_v44, 4  ;;  %v1015_v41 = vld [vmem:[#allocation2 + $0x80] sm:$0x1] }
  0x7d   : > { %v669_v42 = vor.u32 %v667_v24, %v666_v32  ;;  %v670_v45 = vrot.slane %v666_v32, 4  ;;  %v674_v46 = vrot.slane %v672_v33, 7  ;;  %v276_v47 = vsel %vm8153_vm3, 0, %v275_v20  ;;  %v873_v50 = vld [vmem:[#allocation2 + $0x8c] sm:$0x1]  ;;  %v372_v32 = vld [vmem:[%s8200_s15 + $0xd0] sm:$0xff] }
  0x7e   : > { %v1287_v48 = vor.u32 %v1286_v37, %v1283_v36  ;;  %v1297_v49 = vor.u32 %v1296_v40, %v1292_v39  ;;  %v1300_v35 = vshll.u32 %v1015_v41, 16  ;;  %v876_v51 = vld [vmem:[#allocation2 + $0x90] sm:$0xf]  ;;  %277 = vst [vmem:[#allocation2 + $0x9c] sm:$0x1] %v276_v47  ;;  %v681_v52 = vshrl.u32 %v8565_v25, 16 }
  0x7f   : > { %v1016_v53 = vld [vmem:[#allocation2 + $0x84] sm:$0xf]  ;;  %v874_v54 = vsel %vm8153_vm3, %v662_v18, %v873_v50  ;;  %v677_v55 = vor.u32 %v675_v34, %v674_v46  ;;  %v877_v56 = vsel %vm8237_vm10, %v669_v42, %v876_v51  ;;  %v679_v57 = vrot.slane %v674_v46, 4  ;;  %v1617_v8 = vld [vmem:[#allocation2] sm:$0xe]  ;;  %v373_v46 = vld [vmem:[%s8200_s15 + $0xd8] sm:$0xff] }
  0x80   : > { %v1288_v60 = vrot.slane %v1287_v48, 4  ;;  %v1298_v61 = vrot.slane %v1297_v49, 4  ;;  %v1302_v62 = vrot.slane %v1300_v35, 5  ;;  %v1305_v2 = vshrl.u32 %v1016_v53, 16  ;;  %875 = vst [vmem:[#allocation2 + $0x8c] sm:$0x1] %v874_v54 }
  0x81   : > { %878 = vst [vmem:[#allocation2 + $0x90] sm:$0xf] %v877_v56  ;;  %v880_v3 = vld [vmem:[#allocation2 + $0x98] sm:$0x1]  ;;  %v1308_v5 = vshll.u32 %v1016_v53, 16  ;;  %v678_v38 = vsel %vm8231_vm9, %v670_v45, %v677_v55  ;;  %v683_v7 = vrot.slane %v681_v52, 7  ;;  %v7746_v52 = vpack.c.bf16 %v372_v32, %v372_v32 }
  0x82   : > { %v881_v6 = vsel %vm8153_vm3, %v679_v57, %v880_v3  ;;  %v8584_v9 = vld [vmem:[#allocation2 + $0x4] sm:$0xf]  ;;  %v1293_v10 = vsel %vm8263_vm11, %v1288_v60, %v1292_v39  ;;  %v1303_v11 = vsel %vm8263_vm11, %v1298_v61, %v1302_v62  ;;  %v1307_v12 = vrot.slane %v1305_v2, 4  ;;  %879 = vst.msk [vmem:[#allocation2 + $0x94] sm:$0xf] %vm224_vm0, %v678_v38 }
  0x83   : > { %882 = vst [vmem:[#allocation2 + $0x98] sm:$0x1] %v881_v6  ;;  %v684_v13 = vshll.u32 %v8565_v25, 16  ;;  %v914_v14 = vld [vmem:[#allocation2 + $0x10] sm:$0xf]  ;;  %1512 = vrot.lane.b32.xlu0 %v1293_v10, %s8065_s23  ;;  %1514 = vrot.lane.b32.xlu1 %v1303_v11, %s8065_s23  ;;  %v1310_v16 = vrot.slane %v1308_v5, 5  ;;  %v7747_v5 = vpack.c.bf16 %v373_v46, %v373_v46 }
  0x84   : > { %v1017_v15 = vld [vmem:[#allocation2 + $0x88] sm:$0xf]  ;;  %v687_v17 = vrot.slane %v683_v7, 4  ;;  %v689_v18 = vshrl.u32 %v8567_v26, 16  ;;  %v692_v19 = vshll.u32 %v8567_v26, 16  ;;  %v332_v22 = vsel %vm8173_vm5, 0, %v331_v59 }
  0x85   : > { %950 = vst.msk [vmem:[#allocation3 + $0x18] sm:$0xf] %vm224_vm0, %v914_v14  ;;  %v1314_v20 = vshll.u32 %v1017_v15, 16  ;;  %v1318_v21 = vshrl.u32 %v1017_v15, 16  ;;  %v686_v43 = vor.u32 %v684_v13, %v683_v7  ;;  %v1311_v23 = vor.u32 %v1310_v16, %v1307_v12  ;;  %v883_v25 = vld [vmem:[#allocation2 + $0x9c] sm:$0xf] }
  0x86   : > { %v691_v24 = vrot.slane %v689_v18, 7  ;;  %333 = vst [vmem:[#allocation2 + $0xa4] sm:$0x1] %v332_v22  ;;  %vm1726_vm13 = vcmask 1046532   ;;  %v7188_v27 = vrot.slane %v1617_v8, 9  ;;  %v1730_v30 = vrot.slane %v8584_v9, 5 }
  0x87   : > { %v1316_v28 = vrot.slane %v1314_v20, 5  ;;  %v1320_v29 = vrot.slane %v1318_v21, 4  ;;  %v884_v26 = vsel %vm8237_vm10, %v686_v43, %v883_v25  ;;  %vm8602_vm14 = vmor %vm1725_vm12, %vm1726_vm13  ;;  %v1312_v33 = vrot.slane %v1311_v23, 4  ;;  %v1018_v34 = vld [vmem:[#allocation2 + $0x8c] sm:$0x1] }
  0x88   : > { %v1019_v36 = vld [vmem:[#allocation2 + $0x90] sm:$0xf]  ;;  %v694_v37 = vor.u32 %v692_v19, %v691_v24  ;;  %885 = vst [vmem:[#allocation2 + $0x9c] sm:$0xf] %v884_v26  ;;  %v696_v39 = vrot.slane %v691_v24, 4  ;;  %v1324_v41 = vshll.u32 %v1018_v34, 16  ;;  %v1731_v50 = vsel %vm8602_vm14, %v7188_v27, %v1730_v30 }
  0x89   : > { %v1321_v40 = vor.u32 %v1320_v29, %v1316_v28  ;;  %v1329_v42 = vshrl.u32 %v1019_v36, 16  ;;  %v1332_v45 = vshll.u32 %v1019_v36, 16  ;;  %v1317_v47 = vsel %vm8263_vm11, %v1312_v33, %v1316_v28  ;;  %v1020_v48 = vld [vmem:[#allocation2 + $0x94] sm:$0xf]  ;;  %v278_v51 = vld [vmem:[#allocation2 + $0xa8] sm:$0x1] }
  0x8a   : > { %v1021_v49 = vld [vmem:[#allocation2 + $0x98] sm:$0x1]  ;;  %v695_v35 = vsel %vm8231_vm9, %v687_v17, %v694_v37  ;;  %1516 = vrot.lane.b32.xlu0 %v1317_v47, %s8065_s23  ;;  %v1326_v54 = vrot.slane %v1324_v41, 5  ;;  %1890 = vst.msk [vmem:[#allocation3 + $0x4] sm:$0xf] %vm224_vm0, %v1731_v50  ;;  %v1338_v57 = vshll.u32 %v1020_v48, 16 }
  0x8b   : > { %v1322_v53 = vrot.slane %v1321_v40, 4  ;;  %v1331_v55 = vrot.slane %v1329_v42, 4  ;;  %v1334_v56 = vrot.slane %v1332_v45, 5  ;;  %886 = vst.msk [vmem:[#allocation2 + $0xa0] sm:$0xf] %vm224_vm0, %v695_v35  ;;  %v1342_v59 = vshrl.u32 %v1020_v48, 16 }
  0x8c   : > { %v1348_v60 = vshll.u32 %v1021_v49, 16  ;;  %v279_v3 = vsel %vm8153_vm3, 0, %v278_v51  ;;  %v1340_v38 = vrot.slane %v1338_v57, 5  ;;  %v334_v8 = vld [vmem:[#allocation2 + $0xb0] sm:$0x1]  ;;  %v698_v14 = vshrl.u32 %v7746_v52, 16 }
  0x8d   : > { %v1327_v61 = vsel %vm8263_vm11, %v1322_v53, %v1326_v54  ;;  %v1335_v62 = vor.u32 %v1334_v56, %v1331_v55  ;;  %v887_v2 = vld [vmem:[#allocation2 + $0xa4] sm:$0x1]  ;;  %v1344_v6 = vrot.slane %v1342_v59, 4  ;;  %280 = vst [vmem:[#allocation2 + $0xa8] sm:$0x1] %v279_v3  ;;  %v701_v15 = vshll.u32 %v7746_v52, 16 }
  0x8e   : > { %1518 = vrot.lane.b32.xlu1 %v1327_v61, %s8065_s23  ;;  %v888_v7 = vsel %vm8153_vm3, %v696_v39, %v887_v2  ;;  %v1350_v11 = vrot.slane %v1348_v60, 5  ;;  %v8627_v13 = vld [vmem:[#allocation2 + $0x4] sm:$0xf]  ;;  %v706_v19 = vshrl.u32 %v7747_v5, 16  ;;  %v1619_v20 = vld [vmem:[#allocation2 + $0x8] sm:$0x1] }
  0x8f   : > { %v1336_v10 = vrot.slane %v1335_v62, 4  ;;  %v1022_v12 = vld [vmem:[#allocation2 + $0x9c] sm:$0xf]  ;;  %889 = vst [vmem:[#allocation2 + $0xa4] sm:$0x1] %v888_v7  ;;  %v1345_v16 = vor.u32 %v1344_v6, %v1340_v38  ;;  %v700_v43 = vrot.slane %v698_v14, 7 }
  0x90   : > { %v1353_v17 = vshrl.u32 %v1022_v12, 16  ;;  %v1356_v18 = vshll.u32 %v1022_v12, 16  ;;  %v709_v22 = vshll.u32 %v7747_v5, 16  ;;  %v335_v23 = vsel %vm8173_vm5, 0, %v334_v8  ;;  %v915_v24 = vld [vmem:[#allocation2 + $0x18] sm:$0xf] }
  0x91   : > { %v1341_v21 = vsel %vm8263_vm11, %v1336_v10, %v1340_v38  ;;  %v1346_v25 = vrot.slane %v1345_v16, 4  ;;  %v8634_v26 = vld [vmem:[#allocation2] sm:$0xe]  ;;  %v708_v32 = vrot.slane %v706_v19, 7  ;;  %336 = vst [vmem:[#allocation2 + $0xb0] sm:$0x1] %v335_v23  ;;  %v703_v36 = vor.u32 %v701_v15, %v700_v43 }
  0x92   : > { %1520 = vrot.lane.b32.xlu0 %v1341_v21, %s8065_s23  ;;  %v1023_v27 = vld [vmem:[#allocation2 + $0xa0] sm:$0xf]  ;;  %v1355_v28 = vrot.slane %v1353_v17, 4  ;;  %v1358_v29 = vrot.slane %v1356_v18, 5  ;;  %951 = vst.msk [vmem:[#allocation3 + $0x20] sm:$0xf] %vm224_vm0, %v915_v24 }
  0x93   : > { %v1362_v33 = vshll.u32 %v1023_v27, 16  ;;  %v1366_v34 = vshrl.u32 %v1023_v27, 16  ;;  %v704_v37 = vrot.slane %v700_v43, 4  ;;  %v281_v39 = vld [vmem:[#allocation2 + $0xb4] sm:$0x1]  ;;  %v374_v40 = vld [vmem:[%s8200_s15 + $0xe0] sm:$0xff]  ;;  %v1351_v41 = vsel %vm8263_vm11, %v1346_v25, %v1350_v11 }
  0x94   : > { %v1359_v42 = vor.u32 %v1358_v29, %v1355_v28  ;;  %v5041_v45 = vrot.slane %v8627_v13, 5  ;;  %v711_v46 = vor.u32 %v709_v22, %v708_v32  ;;  %v375_v47 = vld [vmem:[%s8200_s15 + $0xe8] sm:$0xff]  ;;  %v337_v48 = vld [vmem:[#allocation2 + $0xbc] sm:$0x1]  ;;  %1522 = vrot.lane.b32.xlu1 %v1351_v41, %s8065_s23  ;;  %v1732_v52 = vrot.slane %v1730_v30, 4  ;;  %v376_v3 = vld [vmem:[%s8200_s15 + $0xf0] sm:$0xff] }
  0x95   : > { %v916_v49 = vld [vmem:[#allocation2 + $0x1c] sm:$0xf]  ;;  %v1364_v35 = vrot.slane %v1362_v33, 5  ;;  %v1368_v50 = vrot.slane %v1366_v34, 4  ;;  %v890_v51 = vld [vmem:[#allocation2 + $0xa8] sm:$0xf]  ;;  %v7748_v6 = vpack.c.bf16 %v374_v40, %v374_v40  ;;  %v7749_v7 = vpack.c.bf16 %v375_v47, %v375_v47 }
  0x96   : > { %v1733_v53 = vrot.slane %v1619_v20, 5  ;;  %952 = vst.msk [vmem:[#allocation3 + $0x28] sm:$0xf] %vm224_vm0, %v916_v49  ;;  %v1360_v54 = vrot.slane %v1359_v42, 4  ;;  %v1024_v55 = vld [vmem:[#allocation2 + $0xa4] sm:$0x1]  ;;  %v712_v56 = vsel %vm8231_vm9, %v704_v37, %v711_v46  ;;  %v891_v57 = vsel %vm8237_vm10, %v703_v36, %v890_v51 }
  0x97   : > { %v713_v59 = vrot.slane %v708_v32, 4  ;;  %v1369_v60 = vor.u32 %v1368_v50, %v1364_v35  ;;  %v1372_v61 = vshll.u32 %v1024_v55, 16  ;;  %v7467_v62 = vrot.slane %v8634_v26, 9  ;;  %892 = vst [vmem:[#allocation2 + $0xa8] sm:$0xf] %v891_v57  ;;  %v377_v8 = vld [vmem:[%s8200_s15 + $0xf8] sm:$0xff] }
  0x98   : > { %893 = vst.msk [vmem:[#allocation2 + $0xac] sm:$0xf] %vm224_vm0, %v712_v56  ;;  %v1734_v9 = vsel %vm8602_vm14, %v1732_v52, %v1733_v53  ;;  %v8654_v30 = vld [vmem:[#allocation2 + $0x8] sm:$0x1]  ;;  %v284_v2 = vld [vmem:[#allocation2 + $0xc0] sm:$0x1]  ;;  %v1365_v5 = vsel %vm8263_vm11, %v1360_v54, %v1364_v35  ;;  %v7750_v34 = vpack.c.bf16 %v376_v3, %v376_v3  ;;  %v7751_v36 = vpack.c.bf16 %v377_v8, %v377_v8 }
  0x99   : > { %1891 = vst.msk [vmem:[#allocation3 + $0xc] sm:$0xf] %vm224_vm0, %v1734_v9  ;;  %v282_v38 = vsel %vm8153_vm3, 0, %v281_v39  ;;  %v340_v10 = vld [vmem:[#allocation2 + $0xc8] sm:$0x1]  ;;  %1524 = vrot.lane.b32.xlu0 %v1365_v5, %s8065_s23  ;;  %v1370_v16 = vrot.slane %v1369_v60, 4 }
  0x9a   : > { %v8663_v11 = vld [vmem:[#allocation2 + $0xc] sm:$0xe]  ;;  %v8665_v12 = vld [vmem:[#allocation2 + $0x10] sm:$0xf]  ;;  %v8667_v14 = vld [vmem:[#allocation2 + $0x14] sm:$0x1] }
  0x9b   : > { %v917_v15 = vld [vmem:[#allocation2 + $0x24] sm:$0xf]  ;;  %v1374_v17 = vrot.slane %v1372_v61, 5  ;;  %v894_v18 = vld [vmem:[#allocation2 + $0xb0] sm:$0x1]  ;;  %v8672_v19 = vrot.slane %v5041_v45, 4 }
  0x9c   : > { %283 = vst [vmem:[#allocation2 + $0xb4] sm:$0x1] %v282_v38  ;;  %v338_v20 = vsel %vm8173_vm5, 0, %v337_v48  ;;  %953 = vst.msk [vmem:[#allocation3 + $0x30] sm:$0xf] %vm224_vm0, %v917_v15  ;;  %v895_v21 = vsel %vm8153_vm3, %v713_v59, %v894_v18  ;;  %v715_v43 = vshrl.u32 %v7748_v6, 16 }
  0x9d   : > { %v718_v22 = vshll.u32 %v7748_v6, 16  ;;  %v723_v23 = vshrl.u32 %v7749_v7, 16  ;;  %339 = vst [vmem:[#allocation2 + $0xbc] sm:$0x1] %v338_v20  ;;  %v918_v24 = vld [vmem:[#allocation2 + $0x28] sm:$0xf]  ;;  %v1375_v25 = vsel %vm8263_vm11, %v1370_v16, %v1374_v17 }
  0x9e   : > { %896 = vst [vmem:[#allocation2 + $0xb0] sm:$0x1] %v895_v21  ;;  %v5044_v27 = vrot.slane %v8654_v30, 5  ;;  %v726_v28 = vshll.u32 %v7749_v7, 16  ;;  %v285_v29 = vsel %vm8153_vm3, 0, %v284_v2  ;;  %1526 = vrot.lane.b32.xlu1 %v1375_v25, %s8065_s23  ;;  %v717_v32 = vrot.slane %v715_v43, 7 }
  0x9f   : > { %954 = vst.msk [vmem:[#allocation3 + $0x38] sm:$0xf] %vm224_vm0, %v918_v24  ;;  %v725_v33 = vrot.slane %v723_v23, 7  ;;  %286 = vst [vmem:[#allocation2 + $0xc0] sm:$0x1] %v285_v29  ;;  %v341_v37 = vsel %vm8173_vm5, 0, %v340_v10 }
  0xa0   : > { %v7189_v39 = vrot.slane %v8663_v11, 9  ;;  %v1737_v40 = vrot.slane %v8665_v12, 5  ;;  %v1740_v41 = vrot.slane %v8667_v14, 5  ;;  %vm1580_vm15 = vcmask 1043968   ;;  %v1025_v42 = vld [vmem:[#allocation2 + $0xa8] sm:$0xf] }
  0xa1   : > { %v1026_v46 = vld [vmem:[#allocation2 + $0xac] sm:$0xf]  ;;  %v720_v47 = vor.u32 %v718_v22, %v717_v32  ;;  %v721_v48 = vrot.slane %v717_v32, 4  ;;  %v728_v49 = vor.u32 %v726_v28, %v725_v33  ;;  %v730_v35 = vrot.slane %v725_v33, 4  ;;  %342 = vst [vmem:[#allocation2 + $0xc8] sm:$0x1] %v341_v37 }
  0xa2   : > { %v1377_v50 = vshrl.u32 %v1025_v42, 16  ;;  %v1380_v51 = vshll.u32 %v1025_v42, 16  ;;  %v1386_v52 = vshll.u32 %v1026_v46, 16  ;;  %v1390_v53 = vshrl.u32 %v1026_v46, 16  ;;  %v1623_v5 = vld [vmem:[#allocation2 + $0x18] sm:$0xe] }
  0xa3   : > { %v729_v54 = vsel %vm8231_vm9, %v721_v48, %v728_v49  ;;  %v897_v55 = vld [vmem:[#allocation2 + $0xb4] sm:$0xf]  ;;  %v732_v56 = vshrl.u32 %v7750_v34, 16  ;;  %v735_v57 = vshll.u32 %v7750_v34, 16  ;;  %v740_v59 = vshrl.u32 %v7751_v36, 16 }
  0xa4   : > { %v1379_v60 = vrot.slane %v1377_v50, 4  ;;  %v1382_v61 = vrot.slane %v1380_v51, 5  ;;  %v1388_v9 = vrot.slane %v1386_v52, 5  ;;  %v1392_v2 = vrot.slane %v1390_v53, 4  ;;  %900 = vst.msk [vmem:[#allocation2 + $0xb8] sm:$0xf] %vm224_vm0, %v729_v54  ;;  %v1473_v53 = vpop.permute.xlu0 %1472 }
  0xa5   : > { %v901_v3 = vld [vmem:[#allocation2 + $0xbc] sm:$0x1]  ;;  %v1027_v38 = vld [vmem:[#allocation2 + $0xb0] sm:$0x1]  ;;  %v898_v6 = vsel %vm8237_vm10, %v720_v47, %v897_v55  ;;  %v734_v8 = vrot.slane %v732_v56, 7  ;;  %v742_v10 = vrot.slane %v740_v59, 7  ;;  %v1738_v25 = vsel %vm8602_vm14, %v7189_v39, %v1737_v40 }
  0xa6   : > { %v902_v7 = vsel %vm8153_vm3, %v730_v35, %v901_v3  ;;  %v1624_v11 = vld [vmem:[#allocation2 + $0x1c] sm:$0xf]  ;;  %v919_v12 = vld [vmem:[#allocation2 + $0x30] sm:$0xf]  ;;  %v1383_v15 = vor.u32 %v1382_v61, %v1379_v60  ;;  %v1393_v16 = vor.u32 %v1392_v2, %v1388_v9  ;;  %v1396_v17 = vshll.u32 %v1027_v38, 16 }
  0xa7   : > { %899 = vst [vmem:[#allocation2 + $0xb4] sm:$0xf] %v898_v6  ;;  %903 = vst [vmem:[#allocation2 + $0xbc] sm:$0x1] %v902_v7  ;;  %v743_v18 = vshll.u32 %v7751_v36, 16  ;;  %v737_v22 = vor.u32 %v735_v57, %v734_v8  ;;  %v738_v23 = vrot.slane %v734_v8, 4 }
  0xa8   : > { %v904_v20 = vld [vmem:[#allocation2 + $0xc0] sm:$0xf]  ;;  %955 = vst.msk [vmem:[#allocation3 + $0x40] sm:$0xf] %vm224_vm0, %v919_v12  ;;  %v920_v43 = vld [vmem:[#allocation2 + $0x34] sm:$0xf] }
  0xa9   : > { %v8698_v21 = vld [vmem:[#allocation2 + $0x20] sm:$0x1]  ;;  %v747_v24 = vrot.slane %v742_v10, 4  ;;  %956 = vst.msk [vmem:[#allocation3 + $0x48] sm:$0xf] %vm224_vm0, %v920_v43  ;;  %v1384_v32 = vrot.slane %v1383_v15, 4  ;;  %v745_v36 = vor.u32 %v743_v18, %v742_v10  ;;  %v905_v42 = vsel %vm8237_vm10, %v737_v22, %v904_v20  ;;  %v1475_v15 = vpop.permute.xlu0 %1474 }
  0xaa   : > { %v1626_v28 = vld [vmem:[#allocation2 + $0x24] sm:$0xe]  ;;  %v1627_v29 = vld [vmem:[#allocation2 + $0x28] sm:$0xf]  ;;  %v1394_v33 = vrot.slane %v1393_v16, 4  ;;  %v1398_v34 = vrot.slane %v1396_v17, 5 }
  0xab   : > { %v908_v37 = vld [vmem:[#allocation2 + $0xc8] sm:$0x1]  ;;  %1892 = vst.msk [vmem:[#allocation3 + $0x14] sm:$0xf] %vm224_vm0, %v1738_v25  ;;  %v1739_v47 = vrot.slane %v1737_v40, 4  ;;  %v7190_v48 = vrot.slane %v1623_v5, 9  ;;  %v1389_v49 = vsel %vm8263_vm11, %v1384_v32, %v1388_v9  ;;  %v746_v50 = vsel %vm8231_vm9, %v738_v23, %v745_v36 }
  0xac   : > { %v909_v46 = vsel %vm8153_vm3, %v747_v24, %v908_v37  ;;  %v1628_v39 = vld [vmem:[#allocation2 + $0x2c] sm:$0x1]  ;;  %v1399_v35 = vsel %vm8263_vm11, %v1394_v33, %v1398_v34  ;;  %906 = vst [vmem:[#allocation2 + $0xc0] sm:$0xf] %v905_v42  ;;  %v1744_v51 = vrot.slane %v1624_v11, 5  ;;  %1528 = vrot.lane.b32.xlu0 %v1389_v49, %s8065_s23  ;;  %v1747_v55 = vrot.slane %v8698_v21, 5 }
  0xad   : > { %910 = vst [vmem:[#allocation2 + $0xc8] sm:$0x1] %v909_v46  ;;  %v921_v52 = vld [vmem:[#allocation2 + $0x3c] sm:$0xf]  ;;  %1530 = vrot.lane.b32.xlu1 %v1399_v35, %s8065_s23  ;;  %v1029_v40 = vld [vmem:[#allocation2 + $0xb8] sm:$0xf]  ;;  %v1741_v54 = vsel %vm8602_vm14, %v1739_v47, %v1740_v41 }
  0xae   : > { %907 = vst.msk [vmem:[#allocation2 + $0xc4] sm:$0xf] %vm224_vm0, %v746_v50  ;;  %v7191_v56 = vrot.slane %v1626_v28, 9  ;;  %v1751_v57 = vrot.slane %v1627_v29, 5  ;;  %957 = vst.msk [vmem:[#allocation3 + $0x50] sm:$0xf] %vm224_vm0, %v921_v52  ;;  %v1745_v61 = vsel %vm8602_vm14, %v7190_v48, %v1744_v51  ;;  %v5042_v28 = vsel %vm8602_vm14, %v7467_v62, %v5041_v45 }
  0xaf   : > { %1581 = vst.msk [vmem:[#allocation3] sm:$0xf] %vm1580_vm15, %v1473_v53  ;;  %v1410_v59 = vshll.u32 %v1029_v40, 16  ;;  %v1414_v60 = vshrl.u32 %v1029_v40, 16  ;;  %v1746_v9 = vrot.slane %v1744_v51, 4  ;;  %v1754_v38 = vrot.slane %v1628_v39, 5  ;;  %v1477_v51 = vpop.permute.xlu1 %1476 }
  0xb0   : > { %1893 = vst.msk [vmem:[#allocation3 + $0x1c] sm:$0xf] %vm224_vm0, %v1741_v54  ;;  %v922_v14 = vld [vmem:[#allocation2 + $0x40] sm:$0xf]  ;;  %v1028_v2 = vld [vmem:[#allocation2 + $0xb4] sm:$0xf]  ;;  %v1752_v41 = vsel %vm8602_vm14, %v7191_v56, %v1751_v57  ;;  %v5045_v29 = vsel %vm8602_vm14, %v8672_v19, %v5044_v27 }
  0xb1   : > { %v1030_v3 = vld [vmem:[#allocation2 + $0xbc] sm:$0x1]  ;;  %1894 = vst.msk [vmem:[#allocation3 + $0x24] sm:$0xf] %vm224_vm0, %v1745_v61  ;;  %v1753_v5 = vrot.slane %v1751_v57, 4  ;;  %v1401_v6 = vshrl.u32 %v1028_v2, 16  ;;  %v1748_v17 = vsel %vm8602_vm14, %v1746_v9, %v1747_v55 }
  0xb2   : > { %958 = vst.msk [vmem:[#allocation3 + $0x58] sm:$0xf] %vm224_vm0, %v922_v14  ;;  %v1404_v7 = vshll.u32 %v1028_v2, 16  ;;  %v1412_v8 = vrot.slane %v1410_v59, 5  ;;  %v1416_v10 = vrot.slane %v1414_v60, 4  ;;  %v1420_v16 = vshll.u32 %v1030_v3, 16  ;;  %v1481_v59 = vpop.permute.xlu0 %1480 }
  0xb3   : > { %1896 = vst.msk [vmem:[#allocation3 + $0x34] sm:$0xf] %vm224_vm0, %v1752_v41  ;;  %v1629_v11 = vld [vmem:[#allocation2 + $0x30] sm:$0xe]  ;;  %v4229_v12 = vld [vmem:[#allocation2] sm:$0xf]  ;;  %v1755_v18 = vsel %vm8602_vm14, %v1753_v5, %v1754_v38 }
  0xb4   : > { %vm2198_vm1 = vcmask 523264   ;;  %v1630_v20 = vld [vmem:[#allocation2 + $0x34] sm:$0xf]  ;;  %v1631_v21 = vld [vmem:[#allocation2 + $0x38] sm:$0x1]  ;;  %v7192_v43 = vrot.slane %v1629_v11, 9  ;;  %v1417_v24 = vor.u32 %v1416_v10, %v1412_v8 }
  0xb5   : > { %1582 = vst.msk [vmem:[#allocation3 + $0x8] sm:$0xf] %vm1580_vm15, %v1475_v15  ;;  %v1403_v22 = vrot.slane %v1401_v6, 4  ;;  %v1406_v23 = vrot.slane %v1404_v7, 5  ;;  %v1758_v25 = vrot.slane %v1630_v20, 5  ;;  %v1422_v32 = vrot.slane %v1420_v16, 5  ;;  %v1479_v15 = vpop.permute.xlu1 %1478 }
  0xb6   : > { %1895 = vst.msk [vmem:[#allocation3 + $0x2c] sm:$0xf] %vm224_vm0, %v1748_v17  ;;  %1897 = vst.msk [vmem:[#allocation3 + $0x3c] sm:$0xf] %vm224_vm0, %v1755_v18  ;;  %v1031_v33 = vld [vmem:[#allocation2 + $0xc0] sm:$0xf] }
  0xb7   : > { %v1033_v34 = vld [vmem:[#allocation2 + $0xc8] sm:$0x1]  ;;  %v1761_v36 = vrot.slane %v1631_v21, 5  ;;  %v1407_v37 = vor.u32 %v1406_v23, %v1403_v22  ;;  %v1418_v42 = vrot.slane %v1417_v24, 4  ;;  %v1032_v46 = vld [vmem:[#allocation2 + $0xc4] sm:$0xf]  ;;  %v1759_v62 = vsel %vm8602_vm14, %v7192_v43, %v1758_v25 }
  0xb8   : > { %v1425_v47 = vshrl.u32 %v1031_v33, 16  ;;  %v1428_v13 = vshll.u32 %v1031_v33, 16  ;;  %v1926_v48 = vld [vmem:[#allocation3] sm:$0xff]  ;;  %v4230_v26 = vld [vmem:[#allocation2 + $0x4] sm:$0xf]  ;;  %v1434_v39 = vshll.u32 %v1032_v46, 16 }
  0xb9   : > { %v1438_v49 = vshrl.u32 %v1032_v46, 16  ;;  %v1444_v45 = vshll.u32 %v1033_v34, 16  ;;  %4265 = vst.msk [vmem:[#allocation3] sm:$0xf] %vm224_vm0, %v4229_v12  ;;  %5201 = vst.msk [vmem:[#allocation3 + $0x4] sm:$0xf] %vm224_vm0, %v5042_v28  ;;  %v1423_v19 = vsel %vm8263_vm11, %v1418_v42, %v1422_v32  ;;  %v1483_v46 = vpop.permute.xlu1 %1482 }
  0xba   : > { %v1408_v30 = vrot.slane %v1407_v37, 4  ;;  %v1427_v27 = vrot.slane %v1425_v47, 4  ;;  %v1430_v35 = vrot.slane %v1428_v13, 5  ;;  %1898 = vst.msk [vmem:[#allocation3 + $0x44] sm:$0xf] %vm224_vm0, %v1759_v62  ;;  %1534 = vrot.lane.b32.xlu1 %v1423_v19, %s8065_s23  ;;  %v1436_v52 = vrot.slane %v1434_v39, 5  ;;  %v1485_v47 = vpop.permute.xlu0 %1484 }
  0xbb   : > { %v923_v50 = vld [vmem:[#allocation2 + $0x48] sm:$0xf]  ;;  %v1440_v53 = vrot.slane %v1438_v49, 4  ;;  %v1446_v40 = vrot.slane %v1444_v45, 5  ;;  %v1760_v54 = vrot.slane %v1758_v25, 4  ;;  %v7851_v2 = vld [vmem:[%s10409_s1 + $0xf8] sm:$0xff]  }
  0xbc   : > { %959 = vst.msk [vmem:[#allocation3 + $0x60] sm:$0xf] %vm224_vm0, %v923_v50  ;;  %v924_v55 = vld [vmem:[#allocation2 + $0x4c] sm:$0xf]  ;;  %v1413_v56 = vsel %vm8263_vm11, %v1408_v30, %v1412_v8  ;;  %v1431_v57 = vor.u32 %v1430_v35, %v1427_v27  ;;  %v1632_v60 = vld [vmem:[#allocation2 + $0x3c] sm:$0xe] }
  0xbd   : > { %1583 = vst.msk [vmem:[#allocation3 + $0x10] sm:$0xf] %vm1580_vm15, %v1477_v51  ;;  %v1633_v61 = vld [vmem:[#allocation2 + $0x40] sm:$0xf]  ;;  %v1634_v9 = vld [vmem:[#allocation2 + $0x44] sm:$0x1]  ;;  %1532 = vrot.lane.b32.xlu0 %v1413_v56, %s8065_s23  ;;  %v1441_v3 = vor.u32 %v1440_v53, %v1436_v52  ;;  %v1762_v41 = vsel %vm8602_vm14, %v1760_v54, %v1761_v36 }
  0xbe   : > { %960 = vst.msk [vmem:[#allocation3 + $0x68] sm:$0xf] %vm224_vm0, %v924_v55  ;;  %v1927_v14 = vld [vmem:[#allocation3 + $0x8] sm:$0xff]  ;;  %v7193_v5 = vrot.slane %v1632_v60, 9  ;;  %v1765_v38 = vrot.slane %v1633_v61, 5  ;;  %v1432_v10 = vrot.slane %v1431_v57, 4  ;;  %v1487_v55 = vpop.permute.xlu1 %1486 }
  0xbf   : > { %1585 = vst.msk [vmem:[#allocation3 + $0x20] sm:$0xf] %vm1580_vm15, %v1481_v59  ;;  %v925_v6 = vld [vmem:[#allocation2 + $0x54] sm:$0xf]  ;;  %v7207_v7 = vcombine.high %v1926_v48, %v1927_v14  ;;  %v7206_v8 = vcombine.low %v1926_v48, %v1927_v14  ;;  %v1768_v11 = vrot.slane %v1634_v9, 5  ;;  %v1442_v16 = vrot.slane %v1441_v3, 4 }
  0xc0   : > { %4266 = vst.msk [vmem:[#allocation3 + $0x8] sm:$0xf] %vm224_vm0, %v4230_v26  ;;  %5202 = vst.msk [vmem:[#allocation3 + $0xc] sm:$0xf] %vm224_vm0, %v5045_v29  ;;  %v926_v12 = vld [vmem:[#allocation2 + $0x58] sm:$0xf]  ;;  %v1766_v17 = vsel %vm8602_vm14, %v7193_v5, %v1765_v38  ;;  %v1437_v21 = vsel %vm8263_vm11, %v1432_v10, %v1436_v52 }
  0xc1   : > { %1899 = vst.msk [vmem:[#allocation3 + $0x4c] sm:$0xf] %vm224_vm0, %v1762_v41  ;;  %961 = vst.msk [vmem:[#allocation3 + $0x70] sm:$0xf] %vm224_vm0, %v925_v6  ;;  %v1767_v18 = vrot.slane %v1765_v38, 4  ;;  %7250 = vmatprep.mubr.msk.bf16.mxu0 %vm2198_vm1, %v7207_v7  ;;  %v7856_v43 = vld [vmem:[%s10409_s1 + $0xf0] sm:$0xff]   ;;  %1536 = vrot.lane.b32.xlu0 %v1437_v21, %s8065_s23  ;;  %v1447_v25 = vsel %vm8263_vm11, %v1442_v16, %v1446_v40 }
  0xc2   : > { %962 = vst.msk [vmem:[#allocation3 + $0x78] sm:$0xf] %vm224_vm0, %v926_v12  ;;  %v1635_v20 = vld [vmem:[#allocation2 + $0x48] sm:$0xe]  ;;  %1900 = vst.msk [vmem:[#allocation3 + $0x54] sm:$0xf] %vm224_vm0, %v1766_v17  ;;  %2280 = vmatmul.mubr.bf16.vlgmr.msra.gmra.mxu0 %v7206_v8  ;;  %1538 = vrot.lane.b32.xlu1 %v1447_v25, %s8065_s23  ;;  %v1491_v17 = vpop.permute.xlu1 %1490 }
  0xc3   : > { %1584 = vst.msk [vmem:[#allocation3 + $0x18] sm:$0xf] %vm1580_vm15, %v1479_v15  ;;  %v1636_v22 = vld [vmem:[#allocation2 + $0x4c] sm:$0xf]  ;;  %v1637_v23 = vld [vmem:[#allocation2 + $0x50] sm:$0x1]  ;;  %v1769_v28 = vsel %vm8602_vm14, %v1767_v18, %v1768_v11  ;;  %3342 = vmatpush1.bf16.msra.mxu0 %v7851_v2  ;;  %v1489_v2 = vpop.permute.xlu0 %1488 }
  0xc4   : > { %v7194_v24 = vrot.slane %v1635_v20, 9  ;;  %v1772_v29 = vrot.slane %v1636_v22, 5  ;;  %v1775_v32 = vrot.slane %v1637_v23, 5  ;;  %v927_v33 = vld [vmem:[#allocation2 + $0x60] sm:$0xf]  ;;  %3343 = vmatprep.subr.bf16.mxu0 %v8064_v0  ;;  %v7863_v50 = vld [vmem:[%s10409_s1 + $0xe8] sm:$0xff]  }
  0xc5   : > { %v928_v34 = vld [vmem:[#allocation2 + $0x64] sm:$0xf]  ;;  %1901 = vst.msk [vmem:[#allocation3 + $0x5c] sm:$0xf] %vm224_vm0, %v1769_v28  ;;  %963 = vst.msk [vmem:[#allocation3 + $0x80] sm:$0xf] %vm224_vm0, %v927_v33 }
  0xc6   : > { %964 = vst.msk [vmem:[#allocation3 + $0x88] sm:$0xf] %vm224_vm0, %v928_v34  ;;  %v1638_v36 = vld [vmem:[#allocation2 + $0x54] sm:$0xe]  ;;  %v1639_v37 = vld [vmem:[#allocation2 + $0x58] sm:$0xf]  ;;  %v1773_v13 = vsel %vm8602_vm14, %v7194_v24, %v1772_v29 }
  0xc7   : > { %v1640_v42 = vld [vmem:[#allocation2 + $0x5c] sm:$0x1]  ;;  %v1774_v48 = vrot.slane %v1772_v29, 4  ;;  %v7195_v26 = vrot.slane %v1638_v36, 9  ;;  %v1779_v39 = vrot.slane %v1639_v37, 5  ;;  %3344 = vmatpush1.bf16.msra.mxu0 %v7856_v43  ;;  %v7867_v6 = vld [vmem:[%s10409_s1 + $0xe0] sm:$0xff]  }
  0xc8   : > { %1586 = vst.msk [vmem:[#allocation3 + $0x28] sm:$0xf] %vm1580_vm15, %v1483_v46  ;;  %1587 = vst.msk [vmem:[#allocation3 + $0x30] sm:$0xf] %vm1580_vm15, %v1485_v47  ;;  %v1782_v49 = vrot.slane %v1640_v42, 5  ;;  %3345 = vmatprep.subr.bf16.mxu0 %v8064_v0  ;;  %v7871_v24 = vld [vmem:[%s10409_s1 + $0xd8] sm:$0xff]  }
  0xc9   : > { %1902 = vst.msk [vmem:[#allocation3 + $0x64] sm:$0xf] %vm224_vm0, %v1773_v13  ;;  %v929_v45 = vld [vmem:[#allocation2 + $0x6c] sm:$0xf]  ;;  %v1776_v62 = vsel %vm8602_vm14, %v1774_v48, %v1775_v32  ;;  %v1780_v30 = vsel %vm8602_vm14, %v7195_v26, %v1779_v39  ;;  %v1781_v19 = vrot.slane %v1779_v39, 4  ;;  %v7878_v13 = vld [vmem:[%s10409_s1 + $0xd0] sm:$0xff]  }
  0xca   : > { %965 = vst.msk [vmem:[#allocation3 + $0x90] sm:$0xf] %vm224_vm0, %v929_v45  ;;  %v930_v27 = vld [vmem:[#allocation2 + $0x70] sm:$0xf]  ;;  %v1641_v35 = vld [vmem:[#allocation2 + $0x60] sm:$0xe] }
  0xcb   : > { %1903 = vst.msk [vmem:[#allocation3 + $0x6c] sm:$0xf] %vm224_vm0, %v1776_v62  ;;  %1904 = vst.msk [vmem:[#allocation3 + $0x74] sm:$0xf] %vm224_vm0, %v1780_v30  ;;  %v1642_v51 = vld [vmem:[#allocation2 + $0x64] sm:$0xf]  ;;  %v1783_v56 = vsel %vm8602_vm14, %v1781_v19, %v1782_v49  ;;  %3346 = vmatpush1.bf16.msra.mxu0 %v7863_v50 }
  0xcc   : > { %966 = vst.msk [vmem:[#allocation3 + $0x98] sm:$0xf] %vm224_vm0, %v930_v27  ;;  %v1643_v52 = vld [vmem:[#allocation2 + $0x68] sm:$0x1]  ;;  %v7196_v53 = vrot.slane %v1641_v35, 9  ;;  %v1786_v57 = vrot.slane %v1642_v51, 5  ;;  %3347 = vmatprep.subr.bf16.mxu0 %v8064_v0  ;;  %v1493_v51 = vpop.permute.xlu0 %1492 }
  0xcd   : > { %v7853_v40 = vld [vmem:[#allocation3 + $0x14] ss:$8 sps:$4 sm:$0xff]   ;;  %v7855_v54 = vld [vmem:[#allocation3 + $0x10] ss:$8 sps:$4 sm:$0xff]   ;;  %1588 = vst.msk [vmem:[#allocation3 + $0x38] sm:$0xf] %vm1580_vm15, %v1487_v55 }
  0xce   : > { %1905 = vst.msk [vmem:[#allocation3 + $0x7c] sm:$0xf] %vm224_vm0, %v1783_v56  ;;  %v1789_v59 = vrot.slane %v1643_v52, 5  ;;  %7251 = vmatprep.mubr.msk.bf16.mxu0 %vm2198_vm1, %v7853_v40  ;;  %7334 = vmatprep.mubr.msk.bf16.mxu1 %vm2198_vm1, %v7853_v40  ;;  %v1787_v60 = vsel %vm8602_vm14, %v7196_v53, %v1786_v57  ;;  %v1788_v61 = vrot.slane %v1786_v57, 4  ;;  %v931_v9 = vld [vmem:[#allocation2 + $0x78] sm:$0xf]  ;;  %v1495_v40 = vpop.permute.xlu1 %1494 }
  0xcf   : > { %v932_v14 = vld [vmem:[#allocation2 + $0x7c] sm:$0xf]  ;;  %2795 = vmatmul.mubr.bf16.vlgmr.msra.gmra.mxu1 %v7855_v54  ;;  %2288 = vmatmul.mubr.bf16.gmra.mxu0 %v7855_v54  ;;  %1906 = vst.msk [vmem:[#allocation3 + $0x84] sm:$0xf] %vm224_vm0, %v1787_v60  ;;  %967 = vst.msk [vmem:[#allocation3 + $0xa0] sm:$0xf] %vm224_vm0, %v931_v9 }
  0xd0   : > { %968 = vst.msk [vmem:[#allocation3 + $0xa8] sm:$0xf] %vm224_vm0, %v932_v14  ;;  %v1644_v3 = vld [vmem:[#allocation2 + $0x6c] sm:$0xe]  ;;  %v1645_v41 = vld [vmem:[#allocation2 + $0x70] sm:$0xf]  ;;  %v1790_v7 = vsel %vm8602_vm14, %v1788_v61, %v1789_v59  ;;  %3348 = vmatpush1.bf16.msra.mxu0 %v7867_v6 }
  0xd1   : > { %v1646_v5 = vld [vmem:[#allocation2 + $0x74] sm:$0x1]  ;;  %v8824_v38 = vld [vmem:[#allocation3 + $0x24] ss:$8 sps:$4 sm:$0xff]   ;;  %1589 = vst.msk [vmem:[#allocation3 + $0x40] sm:$0xf] %vm1580_vm15, %v1489_v2  ;;  %3349 = vmatprep.subr.bf16.mxu0 %v8064_v0 }
  0xd2   : > { %v7197_v8 = vrot.slane %v1644_v3, 9  ;;  %v8832_v10 = vld [vmem:[#allocation3 + $0x20] ss:$8 sps:$4 sm:$0xff]   ;;  %1907 = vst.msk [vmem:[#allocation3 + $0x8c] sm:$0xf] %vm224_vm0, %v1790_v7  ;;  %v1793_v11 = vrot.slane %v1645_v41, 5  ;;  %7335 = vmatprep.mubr.msk.bf16.mxu1 %vm2198_vm1, %v8824_v38  ;;  %7252 = vmatprep.mubr.msk.bf16.mxu0 %vm2198_vm1, %v8824_v38 }
  0xd3   : > { %v1796_v12 = vrot.slane %v1646_v5, 5  ;;  %v933_v15 = vld [vmem:[#allocation2 + $0x84] sm:$0xf]  ;;  %v934_v16 = vld [vmem:[#allocation2 + $0x88] sm:$0xf] }
  0xd4   : > { %969 = vst.msk [vmem:[#allocation3 + $0xb0] sm:$0xf] %vm224_vm0, %v933_v15  ;;  %v1794_v18 = vsel %vm8602_vm14, %v7197_v8, %v1793_v11  ;;  %v1795_v20 = vrot.slane %v1793_v11, 4  ;;  %970 = vst.msk [vmem:[#allocation3 + $0xb8] sm:$0xf] %vm224_vm0, %v934_v16  ;;  %3350 = vmatpush1.bf16.msra.mxu0 %v7871_v24  ;;  %v7882_v57 = vld [vmem:[%s10409_s1 + $0xc8] sm:$0xff]  }
  0xd5   : > { %v1647_v21 = vld [vmem:[#allocation2 + $0x78] sm:$0xe]  ;;  %v1648_v43 = vld [vmem:[#allocation2 + $0x7c] sm:$0xf]  ;;  %1590 = vst.msk [vmem:[#allocation3 + $0x48] sm:$0xf] %vm1580_vm15, %v1491_v17  ;;  %3351 = vmatprep.subr.bf16.mxu0 %v8064_v0  ;;  %v1497_v17 = vpop.permute.xlu0 %1496 }
  0xd6   : > { %v8845_v22 = vld [vmem:[#allocation3 + $0x34] ss:$8 sps:$4 sm:$0xff]   ;;  %1908 = vst.msk [vmem:[#allocation3 + $0x94] sm:$0xf] %vm224_vm0, %v1794_v18  ;;  %v7198_v23 = vrot.slane %v1647_v21, 9  ;;  %v1797_v25 = vsel %vm8602_vm14, %v1795_v20, %v1796_v12  ;;  %v1800_v29 = vrot.slane %v1648_v43, 5  ;;  %v1499_v20 = vpop.permute.xlu1 %1498 }
  0xd7   : > { %v1649_v28 = vld [vmem:[#allocation2 + $0x80] sm:$0x1]  ;;  %v935_v32 = vld [vmem:[#allocation2 + $0x90] sm:$0xf]  ;;  %1909 = vst.msk [vmem:[#allocation3 + $0x9c] sm:$0xf] %vm224_vm0, %v1797_v25  ;;  %2803 = vmatmul.mubr.bf16.gmra.mxu1 %v8832_v10  ;;  %2296 = vmatmul.mubr.bf16.gmra.mxu0 %v8832_v10 }
  0xd8   : > { %v1803_v33 = vrot.slane %v1649_v28, 5  ;;  %971 = vst.msk [vmem:[#allocation3 + $0xc0] sm:$0xf] %vm224_vm0, %v935_v32  ;;  %v936_v34 = vld [vmem:[#allocation2 + $0x94] sm:$0xf]  ;;  %v1801_v37 = vsel %vm8602_vm14, %v7198_v23, %v1800_v29  ;;  %v1802_v42 = vrot.slane %v1800_v29, 4  ;;  %7336 = vmatprep.mubr.msk.bf16.mxu1 %vm2198_vm1, %v8845_v22  ;;  %7253 = vmatprep.mubr.msk.bf16.mxu0 %vm2198_vm1, %v8845_v22 }
  0xd9   : > { %v1650_v36 = vld [vmem:[#allocation2 + $0x84] sm:$0xe]  ;;  %972 = vst.msk [vmem:[#allocation3 + $0xc8] sm:$0xf] %vm224_vm0, %v936_v34  ;;  %v1651_v46 = vld [vmem:[#allocation2 + $0x88] sm:$0xf]  ;;  %3352 = vmatpush1.bf16.msra.mxu0 %v7878_v13 }
  0xda   : > { %v1652_v47 = vld [vmem:[#allocation2 + $0x8c] sm:$0x1]  ;;  %1910 = vst.msk [vmem:[#allocation3 + $0xa4] sm:$0xf] %vm224_vm0, %v1801_v37  ;;  %v7199_v48 = vrot.slane %v1650_v36, 9  ;;  %v1807_v26 = vrot.slane %v1651_v46, 5  ;;  %v1804_v49 = vsel %vm8602_vm14, %v1802_v42, %v1803_v33  ;;  %3353 = vmatprep.subr.bf16.mxu0 %v8064_v0 }
  0xdb   : > { %v1810_v39 = vrot.slane %v1652_v47, 5  ;;  %v937_v45 = vld [vmem:[#allocation2 + $0x9c] sm:$0xf]  ;;  %v938_v62 = vld [vmem:[#allocation2 + $0xa0] sm:$0xf] }
  0xdc   : > { %1911 = vst.msk [vmem:[#allocation3 + $0xac] sm:$0xf] %vm224_vm0, %v1804_v49  ;;  %v1808_v30 = vsel %vm8602_vm14, %v7199_v48, %v1807_v26  ;;  %v1809_v19 = vrot.slane %v1807_v26, 4  ;;  %973 = vst.msk [vmem:[#allocation3 + $0xd0] sm:$0xf] %vm224_vm0, %v937_v45  ;;  %v7886_v3 = vld [vmem:[%s10409_s1 + $0xc0] sm:$0xff]  }
  0xdd   : > { %974 = vst.msk [vmem:[#allocation3 + $0xd8] sm:$0xf] %vm224_vm0, %v938_v62  ;;  %v1653_v27 = vld [vmem:[#allocation2 + $0x90] sm:$0xe]  ;;  %v1654_v35 = vld [vmem:[#allocation2 + $0x94] sm:$0xf]  ;;  %3354 = vmatpush1.bf16.msra.mxu0 %v7882_v57 }
  0xde   : > { %v8877_v50 = vld [vmem:[#allocation3 + $0x30] ss:$8 sps:$4 sm:$0xff]   ;;  %v8879_v52 = vld [vmem:[#allocation3 + $0x44] ss:$8 sps:$4 sm:$0xff]   ;;  %1912 = vst.msk [vmem:[#allocation3 + $0xb4] sm:$0xf] %vm224_vm0, %v1808_v30  ;;  %v1811_v54 = vsel %vm8602_vm14, %v1809_v19, %v1810_v39  ;;  %3355 = vmatprep.subr.bf16.mxu0 %v8064_v0 }
  0xdf   : > { %v7200_v53 = vrot.slane %v1653_v27, 9  ;;  %1591 = vst.msk [vmem:[#allocation3 + $0x50] sm:$0xf] %vm1580_vm15, %v1493_v51  ;;  %v1655_v55 = vld [vmem:[#allocation2 + $0x98] sm:$0x1]  ;;  %v1814_v56 = vrot.slane %v1654_v35, 5  ;;  %2811 = vmatmul.mubr.bf16.gmra.mxu1 %v8877_v50  ;;  %2304 = vmatmul.mubr.bf16.gmra.mxu0 %v8877_v50 }
  0xe0   : > { %1592 = vst.msk [vmem:[#allocation3 + $0x58] sm:$0xf] %vm1580_vm15, %v1495_v40  ;;  %v1817_v59 = vrot.slane %v1655_v55, 5  ;;  %v939_v60 = vld [vmem:[#allocation2 + $0xa8] sm:$0xf]  ;;  %7337 = vmatprep.mubr.msk.bf16.mxu1 %vm2198_vm1, %v8879_v52  ;;  %7254 = vmatprep.mubr.msk.bf16.mxu0 %vm2198_vm1, %v8879_v52  ;;  %v7893_v36 = vld [vmem:[%s10409_s1 + $0x118] sm:$0xff]  }
  0xe1   : > { %1913 = vst.msk [vmem:[#allocation3 + $0xbc] sm:$0xf] %vm224_vm0, %v1811_v54  ;;  %v1815_v61 = vsel %vm8602_vm14, %v7200_v53, %v1814_v56  ;;  %v1816_v9 = vrot.slane %v1814_v56, 4  ;;  %975 = vst.msk [vmem:[#allocation3 + $0xe0] sm:$0xf] %vm224_vm0, %v939_v60  ;;  %3356 = vmatpush1.bf16.msra.mxu0 %v7886_v3  ;;  %v7897_v39 = vld [vmem:[%s10409_s1 + $0x110] sm:$0xff]  }
  0xe2   : > { %v940_v14 = vld [vmem:[#allocation2 + $0xac] sm:$0xf]  ;;  %v1656_v2 = vld [vmem:[#allocation2 + $0x9c] sm:$0xe]  ;;  %1914 = vst.msk [vmem:[#allocation3 + $0xc4] sm:$0xf] %vm224_vm0, %v1815_v61  ;;  %3365 = vmatprep.subr.bf16.mxu0 %v8064_v0 }
  0xe3   : > { %976 = vst.msk [vmem:[#allocation3 + $0xe8] sm:$0xf] %vm224_vm0, %v940_v14  ;;  %v1657_v41 = vld [vmem:[#allocation2 + $0xa0] sm:$0xf]  ;;  %v1658_v5 = vld [vmem:[#allocation2 + $0xa4] sm:$0x1]  ;;  %v1818_v7 = vsel %vm8602_vm14, %v1816_v9, %v1817_v59  ;;  %v1503_v59 = vpop.permute.xlu1 %1502 }
  0xe4   : > { %v7201_v6 = vrot.slane %v1656_v2, 9  ;;  %v1821_v8 = vrot.slane %v1657_v41, 5  ;;  %v1824_v11 = vrot.slane %v1658_v5, 5  ;;  %v941_v12 = vld [vmem:[#allocation2 + $0xb4] sm:$0xf]  ;;  %v7901_v60 = vld [vmem:[%s10409_s1 + $0x108] sm:$0xff]   ;;  %v1501_v41 = vpop.permute.xlu0 %1500 }
  0xe5   : > { %v942_v15 = vld [vmem:[#allocation2 + $0xb8] sm:$0xf]  ;;  %1915 = vst.msk [vmem:[#allocation3 + $0xcc] sm:$0xf] %vm224_vm0, %v1818_v7  ;;  %977 = vst.msk [vmem:[#allocation3 + $0xf0] sm:$0xf] %vm224_vm0, %v941_v12  ;;  %3366 = vmatpush2.bf16.msra.mxu0 %v7893_v36 }
  0xe6   : > { %v8907_v16 = vld [vmem:[#allocation3 + $0x40] ss:$8 sps:$4 sm:$0xff]   ;;  %978 = vst.msk [vmem:[#allocation3 + $0xf8] sm:$0xf] %vm224_vm0, %v942_v15  ;;  %v1659_v18 = vld [vmem:[#allocation2 + $0xa8] sm:$0xe]  ;;  %v1822_v21 = vsel %vm8602_vm14, %v7201_v6, %v1821_v8  ;;  %3367 = vmatprep.subr.bf16.mxu0 %v8064_v0 }
  0xe7   : > { %1593 = vst.msk [vmem:[#allocation3 + $0x60] sm:$0xf] %vm1580_vm15, %v1497_v17  ;;  %v1823_v43 = vrot.slane %v1821_v8, 4  ;;  %v1660_v23 = vld [vmem:[#allocation2 + $0xac] sm:$0xf]  ;;  %v7202_v25 = vrot.slane %v1659_v18, 9  ;;  %2819 = vmatmul.mubr.bf16.gmra.mxu1 %v8907_v16  ;;  %2312 = vmatmul.mubr.bf16.gmra.mxu0 %v8907_v16 }
  0xe8   : > { %v1661_v24 = vld [vmem:[#allocation2 + $0xb0] sm:$0x1]  ;;  %1594 = vst.msk [vmem:[#allocation3 + $0x68] sm:$0xf] %vm1580_vm15, %v1499_v20  ;;  %v1828_v28 = vrot.slane %v1660_v23, 5  ;;  %v7908_v12 = vld [vmem:[%s10409_s1 + $0x100] sm:$0xff]  }
  0xe9   : > { %1916 = vst.msk [vmem:[#allocation3 + $0xd4] sm:$0xf] %vm224_vm0, %v1822_v21  ;;  %v1831_v29 = vrot.slane %v1661_v24, 5  ;;  %v943_v32 = vld [vmem:[#allocation2 + $0xc0] sm:$0xf]  ;;  %v1825_v34 = vsel %vm8602_vm14, %v1823_v43, %v1824_v11  ;;  %3368 = vmatpush2.bf16.msra.mxu0 %v7897_v39  ;;  %v1505_v21 = vpop.permute.xlu0 %1504 }
  0xea   : > { %v8918_v33 = vld [vmem:[#allocation3 + $0x54] ss:$8 sps:$4 sm:$0xff]   ;;  %979 = vst.msk [vmem:[#allocation3 + $0x100] sm:$0xf] %vm224_vm0, %v943_v32  ;;  %1917 = vst.msk [vmem:[#allocation3 + $0xdc] sm:$0xf] %vm224_vm0, %v1825_v34  ;;  %v1829_v37 = vsel %vm8602_vm14, %v7202_v25, %v1828_v28  ;;  %3369 = vmatprep.subr.bf16.mxu0 %v8064_v0  ;;  %v1507_v25 = vpop.permute.xlu1 %1506 }
  0xeb   : > { %v1830_v42 = vrot.slane %v1828_v28, 4  ;;  %v944_v46 = vld [vmem:[#allocation2 + $0xc4] sm:$0xf]  ;;  %v1662_v47 = vld [vmem:[#allocation2 + $0xb4] sm:$0xe]  ;;  %7338 = vmatprep.mubr.msk.bf16.mxu1 %vm2198_vm1, %v8918_v33  ;;  %7255 = vmatprep.mubr.msk.bf16.mxu0 %vm2198_vm1, %v8918_v33 }
  0xec   : > { %1918 = vst.msk [vmem:[#allocation3 + $0xe4] sm:$0xf] %vm224_vm0, %v1829_v37  ;;  %980 = vst.msk [vmem:[#allocation3 + $0x108] sm:$0xf] %vm224_vm0, %v944_v46  ;;  %v1663_v13 = vld [vmem:[#allocation2 + $0xb8] sm:$0xf] }
  0xed   : > { %v1664_v48 = vld [vmem:[#allocation2 + $0xbc] sm:$0x1]  ;;  %v7203_v26 = vrot.slane %v1662_v47, 9  ;;  %v1832_v49 = vsel %vm8602_vm14, %v1830_v42, %v1831_v29  ;;  %v1835_v45 = vrot.slane %v1663_v13, 5  ;;  %v287_v30 = vld [vmem:[#allocation2 + $0xcc] sm:$0x1]  ;;  %3370 = vmatpush2.bf16.msra.mxu0 %v7901_v60  ;;  %v1509_v47 = vpop.permute.xlu0 %1508 }
  0xee   : > { %v1838_v62 = vrot.slane %v1664_v48, 5  ;;  %1919 = vst.msk [vmem:[#allocation3 + $0xec] sm:$0xf] %vm224_vm0, %v1832_v49  ;;  %v1035_v19 = vld [vmem:[#allocation2 + $0xd0] sm:$0xf]  ;;  %v288_v53 = vsel %vm8153_vm3, 0, %v287_v30  ;;  %3371 = vmatprep.subr.bf16.mxu0 %v8064_v0 }
  0xef   : > { %v343_v27 = vld [vmem:[#allocation2 + $0xd4] sm:$0x1]  ;;  %v1836_v35 = vsel %vm8602_vm14, %v7203_v26, %v1835_v45  ;;  %v1837_v51 = vrot.slane %v1835_v45, 4  ;;  %v1458_v40 = vshll.u32 %v1035_v19, 16  ;;  %v1665_v54 = vld [vmem:[#allocation2 + $0xc0] sm:$0xe]  ;;  %v1511_v26 = vpop.permute.xlu1 %1510 }
  0xf0   : > { %v8948_v55 = vld [vmem:[#allocation3 + $0x50] ss:$8 sps:$4 sm:$0xff]   ;;  %v8950_v56 = vld [vmem:[#allocation3 + $0x64] ss:$8 sps:$4 sm:$0xff]   ;;  %1920 = vst.msk [vmem:[#allocation3 + $0xf4] sm:$0xf] %vm224_vm0, %v1836_v35 }
  0xf1   : > { %289 = vst [vmem:[#allocation2 + $0xcc] sm:$0x1] %v288_v53  ;;  %v1462_v57 = vshrl.u32 %v1035_v19, 16  ;;  %v1839_v61 = vsel %vm8602_vm14, %v1837_v51, %v1838_v62  ;;  %v1460_v9 = vrot.slane %v1458_v40, 5  ;;  %v344_v14 = vsel %vm8173_vm5, 0, %v343_v27  ;;  %2827 = vmatmul.mubr.bf16.gmra.mxu1 %v8948_v55  ;;  %2320 = vmatmul.mubr.bf16.gmra.mxu0 %v8948_v55 }
  0xf2   : > { %v1666_v2 = vld [vmem:[#allocation2 + $0xc4] sm:$0xf]  ;;  %v1667_v3 = vld [vmem:[#allocation2 + $0xc8] sm:$0x1]  ;;  %1596 = vst.msk [vmem:[#allocation3 + $0x78] sm:$0xf] %vm1580_vm15, %v1503_v59  ;;  %7339 = vmatprep.mubr.msk.bf16.mxu1 %vm2198_vm1, %v8950_v56  ;;  %7256 = vmatprep.mubr.msk.bf16.mxu0 %vm2198_vm1, %v8950_v56 }
  0xf3   : > { %1921 = vst.msk [vmem:[#allocation3 + $0xfc] sm:$0xf] %vm224_vm0, %v1839_v61  ;;  %345 = vst [vmem:[#allocation2 + $0xd4] sm:$0x1] %v344_v14  ;;  %v1464_v5 = vrot.slane %v1462_v57, 4  ;;  %v7204_v6 = vrot.slane %v1665_v54, 9  ;;  %3372 = vmatpush2.bf16.msra.mxu0 %v7908_v12 }
  0xf4   : > { %v1842_v7 = vrot.slane %v1666_v2, 5  ;;  %v1845_v8 = vrot.slane %v1667_v3, 5  ;;  %1595 = vst.msk [vmem:[#allocation3 + $0x70] sm:$0xf] %vm1580_vm15, %v1501_v41  ;;  %v8979_v18 = vld [vmem:[#allocation3 + $0x60] ss:$8 sps:$4 sm:$0xff]   ;;  %6071 = vmatprep.subr.bf16.mxu0 %v8064_v0 }
  0xf5   : > { %v1465_v15 = vor.u32 %v1464_v5, %v1460_v9  ;;  %1597 = vst.msk [vmem:[#allocation3 + $0x80] sm:$0xf] %vm1580_vm15, %v1505_v21  ;;  %v8984_v28 = vld [vmem:[#allocation3 + $0x74] ss:$8 sps:$4 sm:$0xff]   ;;  %1598 = vst.msk [vmem:[#allocation3 + $0x88] sm:$0xf] %vm1580_vm15, %v1507_v25  ;;  %v1513_v30 = vpop.permute.xlu0 %1512  ;;  %v1515_v19 = vpop.permute.xlu1 %1514 }
  0xf6   : > { %v1843_v4 = vsel %vm8602_vm14, %v7204_v6, %v1842_v7  ;;  %v1844_v11 = vrot.slane %v1842_v7, 4  ;;  %1599 = vst.msk [vmem:[#allocation3 + $0x90] sm:$0xf] %vm1580_vm15, %v1509_v47  ;;  %1600 = vst.msk [vmem:[#allocation3 + $0x98] sm:$0xf] %vm1580_vm15, %v1511_v26 }
  0xf7   : > { %1922 = vst.msk [vmem:[#allocation3 + $0x104] sm:$0xf] %vm224_vm0, %v1843_v4  ;;  %v1466_v32 = vrot.slane %v1465_v15, 4  ;;  %v9003_v49 = vld [vmem:[#allocation3 + $0x84] ss:$8 sps:$4 sm:$0xff]  }
  0xf8   : > { %v1846_v17 = vsel %vm8602_vm14, %v1844_v11, %v1845_v8  ;;  %v1034_v20 = vld [vmem:[#allocation2 + $0xcc] sm:$0xf]  ;;  %1601 = vst.msk [vmem:[#allocation3 + $0xa0] sm:$0xf] %vm1580_vm15, %v1513_v30  ;;  %1602 = vst.msk [vmem:[#allocation3 + $0xa8] sm:$0xf] %vm1580_vm15, %v1515_v19 }
  0xf9   : > { %1923 = vst.msk [vmem:[#allocation3 + $0x10c] sm:$0xf] %vm224_vm0, %v1846_v17  ;;  %v1449_v43 = vshrl.u32 %v1034_v20, 16  ;;  %v1452_v23 = vshll.u32 %v1034_v20, 16  ;;  %2835 = vmatmul.mubr.bf16.gmra.mxu1 %v8979_v18  ;;  %2328 = vmatmul.mubr.bf16.gmra.mxu0 %v8979_v18  ;;  %v9014_v62 = vld [vmem:[#allocation3 + $0x94] ss:$8 sps:$4 sm:$0xff]  }
  0xfa   : > { %v1036_v24 = vld [vmem:[#allocation2 + $0xd4] sm:$0x1]  ;;  %7340 = vmatprep.mubr.msk.bf16.mxu1 %vm2198_vm1, %v8984_v28  ;;  %7257 = vmatprep.mubr.msk.bf16.mxu0 %vm2198_vm1, %v8984_v28  ;;  %v9027_v51 = vld [vmem:[#allocation3 + $0xa4] ss:$8 sps:$4 sm:$0xff]   ;;  %v1669_v8 = vld [vmem:[#allocation2 + $0xd0] sm:$0xf] }
  0xfb   : > { %v1451_v29 = vrot.slane %v1449_v43, 4  ;;  %v1454_v34 = vrot.slane %v1452_v23, 5  ;;  %v1468_v36 = vshll.u32 %v1036_v24, 16  ;;  %v8994_v46 = vld [vmem:[#allocation3 + $0x70] ss:$8 sps:$4 sm:$0xff]   ;;  %v1849_v11 = vrot.slane %v1669_v8, 5 }
  0xfc   : > { %v9012_v45 = vld [vmem:[#allocation3 + $0x80] ss:$8 sps:$4 sm:$0xff]   ;;  %v1517_v35 = vpop.permute.xlu0 %1516  ;;  %v9040_v59 = vld [vmem:[#allocation3 + $0xb4] ss:$8 sps:$4 sm:$0xff]   ;;  %v9052_v14 = vld [vmem:[#allocation3 + $0xc4] ss:$8 sps:$4 sm:$0xff]  }
  0xfd   : > { %v1455_v37 = vor.u32 %v1454_v34, %v1451_v29  ;;  %v1470_v42 = vrot.slane %v1468_v36, 5  ;;  %v9024_v27 = vld [vmem:[#allocation3 + $0x90] ss:$8 sps:$4 sm:$0xff]   ;;  %1603 = vst.msk [vmem:[#allocation3 + $0xb0] sm:$0xf] %vm1580_vm15, %v1517_v35  ;;  %v1851_v43 = vrot.slane %v1849_v11, 4 }
  0xfe   : > { %v9062_v3 = vld [vmem:[#allocation3 + $0xd4] ss:$8 sps:$4 sm:$0xff]   ;;  %v9076_v7 = vld [vmem:[#allocation3 + $0xe4] ss:$8 sps:$4 sm:$0xff]   ;;  %v946_v25 = vld [vmem:[#allocation2 + $0xd0] sm:$0xf] }
  0xff   : > { %v1456_v13 = vrot.slane %v1455_v37, 4  ;;  %v1471_v48 = vsel %vm8263_vm11, %v1466_v32, %v1470_v42  ;;  %v9036_v54 = vld [vmem:[#allocation3 + $0xa0] ss:$8 sps:$4 sm:$0xff]   ;;  %v1668_v15 = vld [vmem:[#allocation2 + $0xcc] sm:$0xe] }
 0x100   : > { %1542 = vrot.lane.b32.xlu1 %v1471_v48, %s8065_s23  ;;  %v1519_v53 = vpop.permute.xlu1 %1518  ;;  %v1670_v17 = vld [vmem:[#allocation2 + $0xd4] sm:$0x1]  ;;  %v7205_v21 = vrot.slane %v1668_v15, 9  ;;  %v945_v24 = vld [vmem:[#allocation2 + $0xcc] sm:$0xf] }
 0x101   : > { %v1461_v39 = vsel %vm8263_vm11, %v1456_v13, %v1460_v9  ;;  %2843 = vmatmul.mubr.bf16.gmra.mxu1 %v8994_v46  ;;  %2336 = vmatmul.mubr.bf16.gmra.mxu0 %v8994_v46  ;;  %1604 = vst.msk [vmem:[#allocation3 + $0xb8] sm:$0xf] %vm1580_vm15, %v1519_v53  ;;  %v1852_v23 = vrot.slane %v1670_v17, 5  ;;  %v9098_v37 = vld [vmem:[#allocation3 + $0xf4] ss:$8 sps:$4 sm:$0xff]  }
 0x102   : > { %1540 = vrot.lane.b32.xlu0 %v1461_v39, %s8065_s23  ;;  %7341 = vmatprep.mubr.msk.bf16.mxu1 %vm2198_vm1, %v9003_v49  ;;  %981 = vst.msk [vmem:[#allocation3 + $0x110] sm:$0xf] %vm224_vm0, %v945_v24  ;;  %v1850_v29 = vsel %vm8602_vm14, %v7205_v21, %v1849_v11  ;;  %982 = vst.msk [vmem:[#allocation3 + $0x118] sm:$0xf] %vm224_vm0, %v946_v25  ;;  %v9110_v47 = vld [vmem:[#allocation3 + $0x104] ss:$8 sps:$4 sm:$0xff]  }
 0x103   : > { %7258 = vmatprep.mubr.msk.bf16.mxu0 %vm2198_vm1, %v9003_v49  ;;  %v1853_v32 = vsel %vm8602_vm14, %v1851_v43, %v1852_v23  ;;  %1924 = vst.msk [vmem:[#allocation3 + $0x114] sm:$0xf] %vm224_vm0, %v1850_v29  ;;  %v4302_v24 = vld [vmem:[#allocation2 + $0x4] sm:$0xf] }
 0x104   : > { %v1521_v40 = vpop.permute.xlu0 %1520  ;;  %1925 = vst.msk [vmem:[#allocation3 + $0x11c] sm:$0xf] %vm224_vm0, %v1853_v32 }
 0x105   : > { %1605 = vst.msk [vmem:[#allocation3 + $0xc0] sm:$0xf] %vm1580_vm15, %v1521_v40 }
 0x106   : > { %v1523_v57 = vpop.permute.xlu1 %1522 }
 0x107   : > { %1606 = vst.msk [vmem:[#allocation3 + $0xc8] sm:$0xf] %vm1580_vm15, %v1523_v57 }
 0x108   : > { %v9049_v61 = vld [vmem:[#allocation3 + $0xb0] ss:$8 sps:$4 sm:$0xff]  }
 0x109   : > { %2851 = vmatmul.mubr.bf16.gmra.mxu1 %v9012_v45  ;;  %2344 = vmatmul.mubr.bf16.gmra.mxu0 %v9012_v45 }
 0x10a   : > { %7342 = vmatprep.mubr.msk.bf16.mxu1 %vm2198_vm1, %v9014_v62  ;;  %7259 = vmatprep.mubr.msk.bf16.mxu0 %vm2198_vm1, %v9014_v62 }
 0x10b   : > { %v1525_v60 = vpop.permute.xlu0 %1524 }
 0x10c   : > { %1607 = vst.msk [vmem:[#allocation3 + $0xd0] sm:$0xf] %vm1580_vm15, %v1525_v60 }
 0x10e   : > { %v9060_v2 = vld [vmem:[#allocation3 + $0xc0] ss:$8 sps:$4 sm:$0xff]  }
 0x110   : > { %v1527_v9 = vpop.permute.xlu1 %1526 }
 0x111   : > { %2859 = vmatmul.mubr.bf16.gmra.mxu1 %v9024_v27  ;;  %2352 = vmatmul.mubr.bf16.gmra.mxu0 %v9024_v27  ;;  %1608 = vst.msk [vmem:[#allocation3 + $0xd8] sm:$0xf] %vm1580_vm15, %v1527_v9 }
 0x112   : > { %7343 = vmatprep.mubr.msk.bf16.mxu1 %vm2198_vm1, %v9027_v51  ;;  %7260 = vmatprep.mubr.msk.bf16.mxu0 %vm2198_vm1, %v9027_v51 }
 0x118   : > { %v9072_v6 = vld [vmem:[#allocation3 + $0xd0] ss:$8 sps:$4 sm:$0xff]  }
 0x119   : > { %2867 = vmatmul.mubr.bf16.gmra.mxu1 %v9036_v54  ;;  %2360 = vmatmul.mubr.bf16.gmra.mxu0 %v9036_v54 }
 0x11a   : > { %7344 = vmatprep.mubr.msk.bf16.mxu1 %vm2198_vm1, %v9040_v59  ;;  %7261 = vmatprep.mubr.msk.bf16.mxu0 %vm2198_vm1, %v9040_v59 }
 0x11e   : > { %v1529_v41 = vpop.permute.xlu0 %1528 }
 0x11f   : > { %v1531_v5 = vpop.permute.xlu1 %1530  ;;  %1609 = vst.msk [vmem:[#allocation3 + $0xe0] sm:$0xf] %vm1580_vm15, %v1529_v41 }
 0x120   : > { %1610 = vst.msk [vmem:[#allocation3 + $0xe8] sm:$0xf] %vm1580_vm15, %v1531_v5 }
 0x121   : > { %2875 = vmatmul.mubr.bf16.gmra.mxu1 %v9049_v61  ;;  %2368 = vmatmul.mubr.bf16.gmra.mxu0 %v9049_v61 }
 0x122   : > { %7345 = vmatprep.mubr.msk.bf16.mxu1 %vm2198_vm1, %v9052_v14  ;;  %7262 = vmatprep.mubr.msk.bf16.mxu0 %vm2198_vm1, %v9052_v14 }
 0x127   : > { %v9083_v12 = vld [vmem:[#allocation3 + $0xe0] ss:$8 sps:$4 sm:$0xff]  }
 0x129   : > { %2883 = vmatmul.mubr.bf16.gmra.mxu1 %v9060_v2  ;;  %2376 = vmatmul.mubr.bf16.gmra.mxu0 %v9060_v2 }
 0x12a   : > { %7346 = vmatprep.mubr.msk.bf16.mxu1 %vm2198_vm1, %v9062_v3  ;;  %7263 = vmatprep.mubr.msk.bf16.mxu0 %vm2198_vm1, %v9062_v3 }
 0x12c   : > { %v1535_v4 = vpop.permute.xlu1 %1534 }
 0x12d   : > { %1612 = vst.msk [vmem:[#allocation3 + $0xf8] sm:$0xf] %vm1580_vm15, %v1535_v4 }
 0x12f   : > { %v1533_v20 = vpop.permute.xlu0 %1532 }
 0x130   : > { %1611 = vst.msk [vmem:[#allocation3 + $0xf0] sm:$0xf] %vm1580_vm15, %v1533_v20 }
 0x131   : > { %2891 = vmatmul.mubr.bf16.gmra.mxu1 %v9072_v6  ;;  %2384 = vmatmul.mubr.bf16.gmra.mxu0 %v9072_v6 }
 0x132   : > { %7347 = vmatprep.mubr.msk.bf16.mxu1 %vm2198_vm1, %v9076_v7  ;;  %7264 = vmatprep.mubr.msk.bf16.mxu0 %vm2198_vm1, %v9076_v7 }
 0x133   : > { %v1537_v34 = vpop.permute.xlu0 %1536 }
 0x134   : > { %1613 = vst.msk [vmem:[#allocation3 + $0x100] sm:$0xf] %vm1580_vm15, %v1537_v34  ;;  %v1539_v36 = vpop.permute.xlu1 %1538 }
 0x135   : > { %1614 = vst.msk [vmem:[#allocation3 + $0x108] sm:$0xf] %vm1580_vm15, %v1539_v36  ;;  %v4365_v36 = vshll.u32 %v4302_v24, 16 }
 0x137   : > { %v9100_v42 = vld [vmem:[#allocation3 + $0xf0] ss:$8 sps:$4 sm:$0xff]  }
 0x139   : > { %2899 = vmatmul.mubr.bf16.gmra.mxu1 %v9083_v12  ;;  %2392 = vmatmul.mubr.bf16.gmra.mxu0 %v9083_v12 }
 0x13a   : > { %7348 = vmatprep.mubr.msk.bf16.mxu1 %vm2198_vm1, %v9098_v37  ;;  %7265 = vmatprep.mubr.msk.bf16.mxu0 %vm2198_vm1, %v9098_v37 }
 0x13c   : > { %v9114_v13 = vld [vmem:[#allocation3 + $0x100] ss:$8 sps:$4 sm:$0xff]  }
 0x141   : > { %2907 = vmatmul.mubr.bf16.gmra.mxu1 %v9100_v42  ;;  %2400 = vmatmul.mubr.bf16.gmra.mxu0 %v9100_v42 }
 0x142   : > { %7418 = vmatprep.mubr.msk.bf16.mxu0 %vm2198_vm1, %v8824_v38  ;;  %7349 = vmatprep.mubr.msk.bf16.mxu1 %vm2198_vm1, %v9110_v47  ;;  %v4983_v38 = vld [vmem:[#allocation2 + $0xd0] sm:$0xf] }
 0x149   : > { %2915 = vmatmul.mubr.bf16.gmra.mxu1 %v9114_v13  ;;  %3374 = vmatmul.mubr.bf16.vlgmr.msra.gmra.mxu0 %v8832_v10  ;;  %v5160_v10 = vrot.slane %v4983_v38, 5  ;;  %v4369_v38 = vshrl.u32 %v4302_v24, 16 }
 0x14a   : > { %7419 = vmatprep.mubr.msk.bf16.mxu0 %vm2198_vm1, %v8845_v22  ;;  %v4984_v22 = vld [vmem:[#allocation2 + $0xd4] sm:$0x1] }
 0x14b   : > { %v5162_v48 = vrot.slane %v5160_v10, 4 }
 0x151   : > { %3382 = vmatmul.mubr.bf16.gmra.mxu0 %v8877_v50 }
 0x152   : > { %7420 = vmatprep.mubr.msk.bf16.mxu0 %vm2198_vm1, %v8879_v52  ;;  %v4982_v52 = vld [vmem:[#allocation2 + $0xcc] sm:$0xe] }
 0x159   : > { %3390 = vmatmul.mubr.bf16.gmra.mxu0 %v8907_v16 }
 0x15a   : > { %7421 = vmatprep.mubr.msk.bf16.mxu0 %vm2198_vm1, %v8918_v33  ;;  %v5163_v33 = vrot.slane %v4984_v22, 5 }
 0x161   : > { %3398 = vmatmul.mubr.bf16.gmra.mxu0 %v8948_v55  ;;  %v7484_v55 = vrot.slane %v4982_v52, 9 }
 0x162   : > { %7422 = vmatprep.mubr.msk.bf16.mxu0 %vm2198_vm1, %v8950_v56  ;;  %v4264_v56 = vld [vmem:[#allocation2 + $0xd0] sm:$0xf] }
 0x163   : > { %v5161_v26 = vsel %vm8602_vm14, %v7484_v55, %v5160_v10  ;;  %v4303_v55 = vld [vmem:[#allocation2 + $0x8] sm:$0x1] }
 0x169   : > { %3406 = vmatmul.mubr.bf16.gmra.mxu0 %v8979_v18  ;;  %v5164_v18 = vsel %vm8602_vm14, %v5162_v48, %v5163_v33  ;;  %v4367_v48 = vrot.slane %v4365_v36, 5  ;;  %v4371_v33 = vrot.slane %v4369_v38, 4 }
 0x16a   : > { %7423 = vmatprep.mubr.msk.bf16.mxu0 %vm2198_vm1, %v8984_v28  ;;  %v4263_v28 = vld [vmem:[#allocation2 + $0xcc] sm:$0xf] }
 0x171   : > { %3414 = vmatmul.mubr.bf16.gmra.mxu0 %v8994_v46 }
 0x172   : > { %v1543_v50 = vpop.permute.xlu1 %1542  ;;  %7424 = vmatprep.mubr.msk.bf16.mxu0 %vm2198_vm1, %v9003_v49 }
 0x173   : > { %1616 = vst.msk [vmem:[#allocation3 + $0x118] sm:$0xf] %vm1580_vm15, %v1543_v50 }
 0x174   : > { %v1541_v16 = vpop.permute.xlu0 %1540 }
 0x175   : > { %1615 = vst.msk [vmem:[#allocation3 + $0x110] sm:$0xf] %vm1580_vm15, %v1541_v16 }
 0x179   : > { %3422 = vmatmul.mubr.bf16.gmra.mxu0 %v9012_v45 }
 0x17a   : > { %v9141_v39 = vld [vmem:[#allocation3 + $0x118] sm:$0xff]  ;;  %7425 = vmatprep.mubr.msk.bf16.mxu0 %vm2198_vm1, %v9014_v62 }
 0x17b   : > { %4300 = vst.msk [vmem:[#allocation3 + $0x118] sm:$0xf] %vm224_vm0, %v4264_v56  ;;  %5236 = vst.msk [vmem:[#allocation3 + $0x11c] sm:$0xf] %vm224_vm0, %v5164_v18 }
 0x17c   : > { %v9145_v46 = vld [vmem:[#allocation3 + $0x110] sm:$0xff] }
 0x17d   : > { %4299 = vst.msk [vmem:[#allocation3 + $0x110] sm:$0xf] %vm224_vm0, %v4263_v28  ;;  %5235 = vst.msk [vmem:[#allocation3 + $0x114] sm:$0xf] %vm224_vm0, %v5161_v26  ;;  %v4372_v26 = vor.u32 %v4371_v33, %v4367_v48 }
 0x181   : > { %3430 = vmatmul.mubr.bf16.gmra.mxu0 %v9024_v27 }
 0x182   : > { %7426 = vmatprep.mubr.msk.bf16.mxu0 %vm2198_vm1, %v9027_v51  ;;  %v2281_v49 = vpop.f32.mrf.mxu0 }
 0x183   : > { %2408 = vst.msk [vmem:[#allocation4] sm:$0xff] %vm2198_vm1, %v2281_v49  ;;  %v4375_v49 = vshll.u32 %v4303_v55, 16 }
 0x184   : > { %v2283_v45 = vpop.f32.mrf.mxu0 }
 0x186   : > { %v2284_v30 = vpop.f32.mrf.mxu0 }
 0x187   : > { %2409 = vst.msk [vmem:[#allocation4 + $0x8] sm:$0xff] %vm2198_vm1, %v2284_v30 }
 0x188   : > { %v2286_v19 = vpop.f32.mrf.mxu0 }
 0x189   : > { %3438 = vmatmul.mubr.bf16.gmra.mxu0 %v9036_v54 }
 0x18a   : > { %7427 = vmatprep.mubr.msk.bf16.mxu0 %vm2198_vm1, %v9040_v59  ;;  %v2923_v35 = vld [vmem:[#allocation4] sm:$0xff] }
 0x18e   : > { %v2924_v54 = vld [vmem:[#allocation4 + $0x8] sm:$0xff] }
 0x18f   : > { %v2796_v62 = vpop.f32.mrf.mxu1  ;;  %v2289_v53 = vpop.f32.mrf.mxu0 }
 0x190   : > { %v2955_v27 = vadd.f32 %v2923_v35, %v2796_v62  ;;  %2410 = vst.msk [vmem:[#allocation4 + $0x10] sm:$0xff] %vm2198_vm1, %v2289_v53  ;;  %v4373_v35 = vrot.slane %v4372_v26, 4  ;;  %v4377_v62 = vrot.slane %v4375_v49, 5 }
 0x191   : > { %3446 = vmatmul.mubr.bf16.gmra.mxu0 %v9049_v61  ;;  %v2798_v51 = vpop.f32.mrf.mxu1  ;;  %v2291_v40 = vpop.f32.mrf.mxu0 }
 0x192   : > { %7428 = vmatprep.mubr.msk.bf16.mxu0 %vm2198_vm1, %v9052_v14  ;;  %2987 = vst.msk [vmem:[#allocation4] sm:$0xff] %vm2198_vm1, %v2955_v27 }
 0x193   : > { %v2799_v57 = vpop.f32.mrf.mxu1  ;;  %v2292_v59 = vpop.f32.mrf.mxu0 }
 0x194   : > { %v2956_v60 = vadd.f32 %v2924_v54, %v2799_v57  ;;  %2411 = vst.msk [vmem:[#allocation4 + $0x18] sm:$0xff] %vm2198_vm1, %v2292_v59  ;;  %v4378_v54 = vsel %vm8263_vm11, %v4373_v35, %v4377_v62 }
 0x195   : > { %v2801_v9 = vpop.f32.mrf.mxu1  ;;  %v2294_v41 = vpop.f32.mrf.mxu0  ;;  %4789 = vrot.lane.b32.xlu1 %v4378_v54, %s8065_s23 }
 0x196   : > { %2988 = vst.msk [vmem:[#allocation4 + $0x8] sm:$0xff] %vm2198_vm1, %v2956_v60 }
 0x197   : > { %v2804_v61 = vpop.f32.mrf.mxu1  ;;  %v2925_v5 = vld [vmem:[#allocation4 + $0x10] sm:$0xff]  ;;  %v2297_v8 = vpop.f32.mrf.mxu0 }
 0x198   : > { %v2957_v14 = vadd.f32 %v2925_v5, %v2804_v61  ;;  %2412 = vst.msk [vmem:[#allocation4 + $0x20] sm:$0xff] %vm2198_vm1, %v2297_v8 }
 0x199   : > { %3454 = vmatmul.mubr.bf16.gmra.mxu0 %v9060_v2  ;;  %v2806_v4 = vpop.f32.mrf.mxu1  ;;  %v2299_v11 = vpop.f32.mrf.mxu0  ;;  %v4301_v2 = vld [vmem:[#allocation2] sm:$0xf] }
 0x19a   : > { %7429 = vmatprep.mubr.msk.bf16.mxu0 %vm2198_vm1, %v9062_v3  ;;  %2989 = vst.msk [vmem:[#allocation4 + $0x10] sm:$0xff] %vm2198_vm1, %v2957_v14  ;;  %v4356_v3 = vshrl.u32 %v4301_v2, 16  ;;  %v4359_v34 = vshll.u32 %v4301_v2, 16  ;;  %v7405_v2 = vcombine.high %v9145_v46, %v9141_v39 }
 0x19b   : > { %v2807_v15 = vpop.f32.mrf.mxu1  ;;  %v2926_v17 = vld [vmem:[#allocation4 + $0x18] sm:$0xff]  ;;  %v2300_v20 = vpop.f32.mrf.mxu0 }
 0x19c   : > { %v2958_v21 = vadd.f32 %v2926_v17, %v2807_v15  ;;  %2413 = vst.msk [vmem:[#allocation4 + $0x28] sm:$0xff] %vm2198_vm1, %v2300_v20  ;;  %v4358_v52 = vrot.slane %v4356_v3, 4  ;;  %v4361_v16 = vrot.slane %v4359_v34, 5 }
 0x19d   : > { %v2809_v43 = vpop.f32.mrf.mxu1  ;;  %v2302_v23 = vpop.f32.mrf.mxu0 }
 0x19e   : > { %2990 = vst.msk [vmem:[#allocation4 + $0x18] sm:$0xff] %vm2198_vm1, %v2958_v21  ;;  %v4362_v28 = vor.u32 %v4361_v16, %v4358_v52 }
 0x19f   : > { %v2812_v25 = vpop.f32.mrf.mxu1  ;;  %v2927_v29 = vld [vmem:[#allocation4 + $0x20] sm:$0xff]  ;;  %v2305_v32 = vpop.f32.mrf.mxu0 }
 0x1a0   : > { %v2959_v10 = vadd.f32 %v2927_v29, %v2812_v25  ;;  %2414 = vst.msk [vmem:[#allocation4 + $0x30] sm:$0xff] %vm2198_vm1, %v2305_v32  ;;  %v4363_v19 = vrot.slane %v4362_v28, 4 }
 0x1a1   : > { %3462 = vmatmul.mubr.bf16.gmra.mxu0 %v9072_v6  ;;  %v2814_v22 = vpop.f32.mrf.mxu1  ;;  %v2307_v50 = vpop.f32.mrf.mxu0 }
 0x1a2   : > { %7430 = vmatprep.mubr.msk.bf16.mxu0 %vm2198_vm1, %v9076_v7  ;;  %2991 = vst.msk [vmem:[#allocation4 + $0x20] sm:$0xff] %vm2198_vm1, %v2959_v10  ;;  %v4368_v40 = vsel %vm8263_vm11, %v4363_v19, %v4367_v48  ;;  %v7404_v22 = vcombine.low %v9145_v46, %v9141_v39 }
 0x1a3   : > { %v2815_v6 = vpop.f32.mrf.mxu1  ;;  %v2928_v56 = vld [vmem:[#allocation4 + $0x28] sm:$0xff]  ;;  %v2308_v18 = vpop.f32.mrf.mxu0  ;;  %4787 = vrot.lane.b32.xlu0 %v4368_v40, %s8065_s23 }
 0x1a4   : > { %v2960_v45 = vadd.f32 %v2928_v56, %v2815_v6  ;;  %2415 = vst.msk [vmem:[#allocation4 + $0x38] sm:$0xff] %vm2198_vm1, %v2308_v18  ;;  %v7912_v6 = vld [vmem:[%s10411_s3 + $0x38] sm:$0xff]  }
 0x1a5   : > { %v2817_v30 = vpop.f32.mrf.mxu1  ;;  %v2310_v7 = vpop.f32.mrf.mxu0  ;;  %5558 = vmatpush1.bf16.msra.mxu1 %v7912_v6 }
 0x1a6   : > { %2992 = vst.msk [vmem:[#allocation4 + $0x28] sm:$0xff] %vm2198_vm1, %v2960_v45  ;;  %5559 = vmatprep.subr.bf16.mxu1 %v8064_v0 }
 0x1a7   : > { %v2820_v53 = vpop.f32.mrf.mxu1  ;;  %v2929_v27 = vld [vmem:[#allocation4 + $0x30] sm:$0xff]  ;;  %v2313_v51 = vpop.f32.mrf.mxu0 }
 0x1a8   : > { %v2961_v57 = vadd.f32 %v2929_v27, %v2820_v53  ;;  %2416 = vst.msk [vmem:[#allocation4 + $0x40] sm:$0xff] %vm2198_vm1, %v2313_v51 }
 0x1a9   : > { %3470 = vmatmul.mubr.bf16.gmra.mxu0 %v9083_v12  ;;  %v2822_v59 = vpop.f32.mrf.mxu1  ;;  %v2315_v60 = vpop.f32.mrf.mxu0 }
 0x1aa   : > { %7431 = vmatprep.mubr.msk.bf16.mxu0 %vm2198_vm1, %v9098_v37  ;;  %2993 = vst.msk [vmem:[#allocation4 + $0x30] sm:$0xff] %vm2198_vm1, %v2961_v57  ;;  %v7913_v57 = vld [vmem:[%s10411_s3 + $0x30] sm:$0xff]  }
 0x1ab   : > { %v2823_v12 = vpop.f32.mrf.mxu1  ;;  %v2930_v9 = vld [vmem:[#allocation4 + $0x38] sm:$0xff]  ;;  %v2316_v41 = vpop.f32.mrf.mxu0  ;;  %5560 = vmatpush1.bf16.msra.mxu1 %v7913_v57 }
 0x1ac   : > { %v2962_v61 = vadd.f32 %v2930_v9, %v2823_v12  ;;  %2417 = vst.msk [vmem:[#allocation4 + $0x48] sm:$0xff] %vm2198_vm1, %v2316_v41  ;;  %5561 = vmatprep.subr.bf16.mxu1 %v8064_v0 }
 0x1ad   : > { %v2825_v5 = vpop.f32.mrf.mxu1  ;;  %v2318_v8 = vpop.f32.mrf.mxu0 }
 0x1ae   : > { %2994 = vst.msk [vmem:[#allocation4 + $0x38] sm:$0xff] %vm2198_vm1, %v2962_v61 }
 0x1af   : > { %v2931_v37 = vld [vmem:[#allocation4 + $0x40] sm:$0xff] }
 0x1b1   : > { %v2828_v14 = vpop.f32.mrf.mxu1  ;;  %v2321_v4 = vpop.f32.mrf.mxu0  ;;  %3478 = vmatmul.mubr.bf16.gmra.mxu0 %v9100_v42 }
 0x1b2   : > { %v2963_v11 = vadd.f32 %v2931_v37, %v2828_v14  ;;  %2418 = vst.msk [vmem:[#allocation4 + $0x50] sm:$0xff] %vm2198_vm1, %v2321_v4  ;;  %7432 = vmatprep.mubr.msk.bf16.mxu0 %vm2198_vm1, %v9110_v47 }
 0x1b3   : > { %v2830_v15 = vpop.f32.mrf.mxu1  ;;  %v2323_v17 = vpop.f32.mrf.mxu0  ;;  %v2932_v21 = vld [vmem:[#allocation4 + $0x48] sm:$0xff] }
 0x1b4   : > { %2995 = vst.msk [vmem:[#allocation4 + $0x40] sm:$0xff] %vm2198_vm1, %v2963_v11 }
 0x1b5   : > { %v2831_v20 = vpop.f32.mrf.mxu1  ;;  %v2324_v43 = vpop.f32.mrf.mxu0 }
 0x1b6   : > { %v2964_v23 = vadd.f32 %v2932_v21, %v2831_v20  ;;  %2419 = vst.msk [vmem:[#allocation4 + $0x58] sm:$0xff] %vm2198_vm1, %v2324_v43 }
 0x1b7   : > { %v2833_v42 = vpop.f32.mrf.mxu1  ;;  %v2326_v24 = vpop.f32.mrf.mxu0 }
 0x1b8   : > { %2996 = vst.msk [vmem:[#allocation4 + $0x48] sm:$0xff] %vm2198_vm1, %v2964_v23 }
 0x1b9   : > { %v2836_v25 = vpop.f32.mrf.mxu1  ;;  %v2933_v29 = vld [vmem:[#allocation4 + $0x50] sm:$0xff]  ;;  %v2329_v47 = vpop.f32.mrf.mxu0  ;;  %3486 = vmatmul.mubr.bf16.gmra.mxu0 %v9114_v13 }
 0x1ba   : > { %v2965_v32 = vadd.f32 %v2933_v29, %v2836_v25  ;;  %2420 = vst.msk [vmem:[#allocation4 + $0x60] sm:$0xff] %vm2198_vm1, %v2329_v47  ;;  %7433 = vmatprep.mubr.msk.bf16.mxu0 %vm2198_vm1, %v7405_v2  ;;  %v7914_v2 = vld [vmem:[%s10411_s3 + $0x28] sm:$0xff]  }
 0x1bb   : > { %v2838_v3 = vpop.f32.mrf.mxu1  ;;  %v2331_v34 = vpop.f32.mrf.mxu0  ;;  %5562 = vmatpush1.bf16.msra.mxu1 %v7914_v2 }
 0x1bc   : > { %2997 = vst.msk [vmem:[#allocation4 + $0x50] sm:$0xff] %vm2198_vm1, %v2965_v32  ;;  %5563 = vmatprep.subr.bf16.mxu1 %v8064_v0 }
 0x1bd   : > { %v2839_v36 = vpop.f32.mrf.mxu1  ;;  %v2934_v38 = vld [vmem:[#allocation4 + $0x58] sm:$0xff]  ;;  %v2332_v10 = vpop.f32.mrf.mxu0 }
 0x1be   : > { %v2966_v50 = vadd.f32 %v2934_v38, %v2839_v36  ;;  %2421 = vst.msk [vmem:[#allocation4 + $0x68] sm:$0xff] %vm2198_vm1, %v2332_v10 }
 0x1bf   : > { %v2841_v52 = vpop.f32.mrf.mxu1  ;;  %v2334_v13 = vpop.f32.mrf.mxu0 }
 0x1c0   : > { %2998 = vst.msk [vmem:[#allocation4 + $0x58] sm:$0xff] %vm2198_vm1, %v2966_v50  ;;  %v7915_v13 = vld [vmem:[%s10411_s3 + $0x20] sm:$0xff]  }
 0x1c1   : > { %v2844_v16 = vpop.f32.mrf.mxu1  ;;  %v2935_v48 = vld [vmem:[#allocation4 + $0x60] sm:$0xff]  ;;  %v2337_v33 = vpop.f32.mrf.mxu0  ;;  %3494 = vmatmul.mubr.bf16.gmra.mxu0 %v7404_v22  ;;  %5564 = vmatpush1.bf16.msra.mxu1 %v7915_v13 }
 0x1c2   : > { %v2967_v55 = vadd.f32 %v2935_v48, %v2844_v16  ;;  %2422 = vst.msk [vmem:[#allocation4 + $0x70] sm:$0xff] %vm2198_vm1, %v2337_v33  ;;  %5565 = vmatprep.subr.bf16.mxu1 %v8064_v0 }
 0x1c3   : > { %v2846_v56 = vpop.f32.mrf.mxu1  ;;  %v2339_v39 = vpop.f32.mrf.mxu0 }
 0x1c4   : > { %2999 = vst.msk [vmem:[#allocation4 + $0x60] sm:$0xff] %vm2198_vm1, %v2967_v55 }
 0x1c5   : > { %v2847_v46 = vpop.f32.mrf.mxu1  ;;  %v2936_v18 = vld [vmem:[#allocation4 + $0x68] sm:$0xff]  ;;  %v2340_v28 = vpop.f32.mrf.mxu0 }
 0x1c6   : > { %v2968_v26 = vadd.f32 %v2936_v18, %v2847_v46  ;;  %2423 = vst.msk [vmem:[#allocation4 + $0x78] sm:$0xff] %vm2198_vm1, %v2340_v28 }
 0x1c7   : > { %v2849_v49 = vpop.f32.mrf.mxu1  ;;  %v2342_v45 = vpop.f32.mrf.mxu0 }
 0x1c8   : > { %3000 = vst.msk [vmem:[#allocation4 + $0x68] sm:$0xff] %vm2198_vm1, %v2968_v26 }
 0x1c9   : > { %v2852_v30 = vpop.f32.mrf.mxu1  ;;  %v2937_v7 = vld [vmem:[#allocation4 + $0x70] sm:$0xff]  ;;  %v2345_v19 = vpop.f32.mrf.mxu0 }
 0x1ca   : > { %v2969_v35 = vadd.f32 %v2937_v7, %v2852_v30  ;;  %2424 = vst.msk [vmem:[#allocation4 + $0x80] sm:$0xff] %vm2198_vm1, %v2345_v19 }
 0x1cb   : > { %v2854_v62 = vpop.f32.mrf.mxu1  ;;  %v2347_v53 = vpop.f32.mrf.mxu0 }
 0x1cc   : > { %3001 = vst.msk [vmem:[#allocation4 + $0x70] sm:$0xff] %vm2198_vm1, %v2969_v35 }
 0x1cd   : > { %v2855_v27 = vpop.f32.mrf.mxu1  ;;  %v2938_v51 = vld [vmem:[#allocation4 + $0x78] sm:$0xff]  ;;  %v2348_v40 = vpop.f32.mrf.mxu0 }
 0x1ce   : > { %v2970_v54 = vadd.f32 %v2938_v51, %v2855_v27  ;;  %2425 = vst.msk [vmem:[#allocation4 + $0x88] sm:$0xff] %vm2198_vm1, %v2348_v40  ;;  %v7916_v40 = vld [vmem:[%s10411_s3 + $0x18] sm:$0xff]  }
 0x1cf   : > { %v2857_v59 = vpop.f32.mrf.mxu1  ;;  %v2350_v60 = vpop.f32.mrf.mxu0  ;;  %5566 = vmatpush1.bf16.msra.mxu1 %v7916_v40 }
 0x1d0   : > { %3002 = vst.msk [vmem:[#allocation4 + $0x78] sm:$0xff] %vm2198_vm1, %v2970_v54  ;;  %5567 = vmatprep.subr.bf16.mxu1 %v8064_v0 }
 0x1d1   : > { %v2860_v12 = vpop.f32.mrf.mxu1  ;;  %v2939_v9 = vld [vmem:[#allocation4 + $0x80] sm:$0xff]  ;;  %v2353_v41 = vpop.f32.mrf.mxu0 }
 0x1d2   : > { %v2971_v61 = vadd.f32 %v2939_v9, %v2860_v12  ;;  %2426 = vst.msk [vmem:[#allocation4 + $0x90] sm:$0xff] %vm2198_vm1, %v2353_v41 }
 0x1d3   : > { %v2862_v5 = vpop.f32.mrf.mxu1  ;;  %v2355_v8 = vpop.f32.mrf.mxu0 }
 0x1d4   : > { %3003 = vst.msk [vmem:[#allocation4 + $0x80] sm:$0xff] %vm2198_vm1, %v2971_v61 }
 0x1d5   : > { %v2863_v14 = vpop.f32.mrf.mxu1  ;;  %v2940_v37 = vld [vmem:[#allocation4 + $0x88] sm:$0xff]  ;;  %v2356_v4 = vpop.f32.mrf.mxu0 }
 0x1d6   : > { %v2972_v11 = vadd.f32 %v2940_v37, %v2863_v14  ;;  %2427 = vst.msk [vmem:[#allocation4 + $0x98] sm:$0xff] %vm2198_vm1, %v2356_v4 }
 0x1d7   : > { %v2865_v15 = vpop.f32.mrf.mxu1  ;;  %v2358_v17 = vpop.f32.mrf.mxu0 }
 0x1d8   : > { %3004 = vst.msk [vmem:[#allocation4 + $0x88] sm:$0xff] %vm2198_vm1, %v2972_v11 }
 0x1d9   : > { %v2868_v20 = vpop.f32.mrf.mxu1  ;;  %v2941_v21 = vld [vmem:[#allocation4 + $0x90] sm:$0xff]  ;;  %v2361_v43 = vpop.f32.mrf.mxu0 }
 0x1da   : > { %v2973_v23 = vadd.f32 %v2941_v21, %v2868_v20  ;;  %2428 = vst.msk [vmem:[#allocation4 + $0xa0] sm:$0xff] %vm2198_vm1, %v2361_v43 }
 0x1db   : > { %v2870_v42 = vpop.f32.mrf.mxu1  ;;  %v2363_v24 = vpop.f32.mrf.mxu0 }
 0x1dc   : > { %3005 = vst.msk [vmem:[#allocation4 + $0x90] sm:$0xff] %vm2198_vm1, %v2973_v23  ;;  %v7917_v23 = vld [vmem:[%s10411_s3 + $0x10] sm:$0xff]  }
 0x1dd   : > { %v2871_v25 = vpop.f32.mrf.mxu1  ;;  %v2942_v29 = vld [vmem:[#allocation4 + $0x98] sm:$0xff]  ;;  %v2364_v47 = vpop.f32.mrf.mxu0  ;;  %5568 = vmatpush1.bf16.msra.mxu1 %v7917_v23 }
 0x1de   : > { %v2974_v32 = vadd.f32 %v2942_v29, %v2871_v25  ;;  %2429 = vst.msk [vmem:[#allocation4 + $0xa8] sm:$0xff] %vm2198_vm1, %v2364_v47  ;;  %5569 = vmatprep.subr.bf16.mxu1 %v8064_v0 }
 0x1df   : > { %v2873_v3 = vpop.f32.mrf.mxu1  ;;  %v2366_v34 = vpop.f32.mrf.mxu0 }
 0x1e0   : > { %3006 = vst.msk [vmem:[#allocation4 + $0x98] sm:$0xff] %vm2198_vm1, %v2974_v32 }
 0x1e1   : > { %v2876_v36 = vpop.f32.mrf.mxu1  ;;  %v2943_v38 = vld [vmem:[#allocation4 + $0xa0] sm:$0xff]  ;;  %v2369_v10 = vpop.f32.mrf.mxu0 }
 0x1e2   : > { %v2975_v22 = vadd.f32 %v2943_v38, %v2876_v36  ;;  %2430 = vst.msk [vmem:[#allocation4 + $0xb0] sm:$0xff] %vm2198_vm1, %v2369_v10  ;;  %v7918_v10 = vld [vmem:[%s10411_s3 + $0x8] sm:$0xff]  }
 0x1e3   : > { %v2878_v50 = vpop.f32.mrf.mxu1  ;;  %v2371_v52 = vpop.f32.mrf.mxu0  ;;  %5570 = vmatpush1.bf16.msra.mxu1 %v7918_v10 }
 0x1e4   : > { %3007 = vst.msk [vmem:[#allocation4 + $0xa0] sm:$0xff] %vm2198_vm1, %v2975_v22  ;;  %5571 = vmatprep.subr.bf16.mxu1 %v8064_v0 }
 0x1e5   : > { %v2879_v16 = vpop.f32.mrf.mxu1  ;;  %v2944_v48 = vld [vmem:[#allocation4 + $0xa8] sm:$0xff]  ;;  %v2372_v33 = vpop.f32.mrf.mxu0 }
 0x1e6   : > { %v2976_v55 = vadd.f32 %v2944_v48, %v2879_v16  ;;  %2431 = vst.msk [vmem:[#allocation4 + $0xb8] sm:$0xff] %vm2198_vm1, %v2372_v33  ;;  %v3502_v33 = vld [vmem:[#allocation4] sm:$0xff] }
 0x1e7   : > { %v2881_v6 = vpop.f32.mrf.mxu1  ;;  %v2374_v56 = vpop.f32.mrf.mxu0 }
 0x1e8   : > { %3008 = vst.msk [vmem:[#allocation4 + $0xa8] sm:$0xff] %vm2198_vm1, %v2976_v55 }
 0x1e9   : > { %v2884_v39 = vpop.f32.mrf.mxu1  ;;  %v2945_v46 = vld [vmem:[#allocation4 + $0xb0] sm:$0xff]  ;;  %v2377_v18 = vpop.f32.mrf.mxu0 }
 0x1ea   : > { %v2977_v28 = vadd.f32 %v2945_v46, %v2884_v39  ;;  %2432 = vst.msk [vmem:[#allocation4 + $0xc0] sm:$0xff] %vm2198_vm1, %v2377_v18 }
 0x1eb   : > { %v2886_v26 = vpop.f32.mrf.mxu1  ;;  %v2379_v49 = vpop.f32.mrf.mxu0 }
 0x1ec   : > { %3009 = vst.msk [vmem:[#allocation4 + $0xb0] sm:$0xff] %vm2198_vm1, %v2977_v28  ;;  %v3503_v26 = vld [vmem:[#allocation4 + $0x8] sm:$0xff] }
 0x1ed   : > { %v2887_v45 = vpop.f32.mrf.mxu1  ;;  %v2946_v30 = vld [vmem:[#allocation4 + $0xb8] sm:$0xff]  ;;  %v2380_v7 = vpop.f32.mrf.mxu0 }
 0x1ee   : > { %v2978_v19 = vadd.f32 %v2946_v30, %v2887_v45  ;;  %2433 = vst.msk [vmem:[#allocation4 + $0xc8] sm:$0xff] %vm2198_vm1, %v2380_v7 }
 0x1ef   : > { %v2889_v35 = vpop.f32.mrf.mxu1  ;;  %v2382_v62 = vpop.f32.mrf.mxu0 }
 0x1f0   : > { %3010 = vst.msk [vmem:[#allocation4 + $0xb8] sm:$0xff] %vm2198_vm1, %v2978_v19  ;;  %v9282_v19 = vld [vmem:[%s10410_s2] ss:$0 sm:$0xff]  ;;  %v3504_v62 = vld [vmem:[#allocation4 + $0x10] sm:$0xff] }
 0x1f1   : > { %v2892_v53 = vpop.f32.mrf.mxu1  ;;  %v2947_v27 = vld [vmem:[#allocation4 + $0xc0] sm:$0xff]  ;;  %v2385_v51 = vpop.f32.mrf.mxu0 }
 0x1f2   : > { %v2979_v54 = vadd.f32 %v2947_v27, %v2892_v53  ;;  %2434 = vst.msk [vmem:[#allocation4 + $0xd0] sm:$0xff] %vm2198_vm1, %v2385_v51 }
 0x1f3   : > { %v2894_v57 = vpop.f32.mrf.mxu1  ;;  %v2387_v59 = vpop.f32.mrf.mxu0 }
 0x1f4   : > { %3011 = vst.msk [vmem:[#allocation4 + $0xc0] sm:$0xff] %vm2198_vm1, %v2979_v54  ;;  %v3505_v57 = vld [vmem:[#allocation4 + $0x18] sm:$0xff] }
 0x1f5   : > { %v2895_v60 = vpop.f32.mrf.mxu1  ;;  %v2948_v12 = vld [vmem:[#allocation4 + $0xc8] sm:$0xff]  ;;  %v2388_v9 = vpop.f32.mrf.mxu0 }
 0x1f6   : > { %v2980_v41 = vadd.f32 %v2948_v12, %v2895_v60  ;;  %2435 = vst.msk [vmem:[#allocation4 + $0xd8] sm:$0xff] %vm2198_vm1, %v2388_v9 }
 0x1f7   : > { %v2897_v61 = vpop.f32.mrf.mxu1  ;;  %v2390_v5 = vpop.f32.mrf.mxu0 }
 0x1f8   : > { %3012 = vst.msk [vmem:[#allocation4 + $0xc8] sm:$0xff] %vm2198_vm1, %v2980_v41  ;;  %v7919_v41 = vld [vmem:[%s10411_s3] sm:$0xff]  }
 0x1f9   : > { %v2900_v8 = vpop.f32.mrf.mxu1  ;;  %v2949_v14 = vld [vmem:[#allocation4 + $0xd0] sm:$0xff]  ;;  %v2393_v37 = vpop.f32.mrf.mxu0  ;;  %5572 = vmatpush1.bf16.msra.mxu1 %v7919_v41 }
 0x1fa   : > { %v2981_v4 = vadd.f32 %v2949_v14, %v2900_v8  ;;  %2436 = vst.msk [vmem:[#allocation4 + $0xe0] sm:$0xff] %vm2198_vm1, %v2393_v37  ;;  %v3506_v14 = vld [vmem:[#allocation4 + $0x20] sm:$0xff]  ;;  %5581 = vmatprep.subr.bf16.mxu1 %v8064_v0 }
 0x1fb   : > { %v2902_v11 = vpop.f32.mrf.mxu1  ;;  %v2395_v15 = vpop.f32.mrf.mxu0  ;;  %v7921_v37 = vld [vmem:[%s10411_s3 + $0x98] sm:$0xff]  }
 0x1fc   : > { %3013 = vst.msk [vmem:[#allocation4 + $0xd0] sm:$0xff] %vm2198_vm1, %v2981_v4  ;;  %6072 = vmatpush1.bf16.msra.mxu0 %v7921_v37 }
 0x1fd   : > { %v2903_v17 = vpop.f32.mrf.mxu1  ;;  %v2950_v20 = vld [vmem:[#allocation4 + $0xd8] sm:$0xff]  ;;  %v2396_v21 = vpop.f32.mrf.mxu0  ;;  %6073 = vmatprep.subr.bf16.mxu0 %v8064_v0 }
 0x1fe   : > { %v2982_v43 = vadd.f32 %v2950_v20, %v2903_v17  ;;  %2437 = vst.msk [vmem:[#allocation4 + $0xe8] sm:$0xff] %vm2198_vm1, %v2396_v21 }
 0x1ff   : > { %v2905_v2 = vpop.f32.mrf.mxu1  ;;  %v2398_v42 = vpop.f32.mrf.mxu0 }
 0x200   : > { %3014 = vst.msk [vmem:[#allocation4 + $0xd8] sm:$0xff] %vm2198_vm1, %v2982_v43  ;;  %v4117_v42 = vld [vmem:[#allocation2 + $0xc] sm:$0xf] }
 0x201   : > { %v2908_v24 = vpop.f32.mrf.mxu1  ;;  %v2951_v25 = vld [vmem:[#allocation4 + $0xe0] sm:$0xff]  ;;  %v2401_v29 = vpop.f32.mrf.mxu0 }
 0x202   : > { %v2983_v47 = vadd.f32 %v2951_v25, %v2908_v24  ;;  %2438 = vst.msk [vmem:[#allocation4 + $0xf0] sm:$0xff] %vm2198_vm1, %v2401_v29  ;;  %v7922_v25 = vld [vmem:[%s10411_s3 + $0x90] sm:$0xff]  }
 0x203   : > { %v2910_v32 = vpop.f32.mrf.mxu1  ;;  %v2403_v3 = vpop.f32.mrf.mxu0  ;;  %6074 = vmatpush1.bf16.msra.mxu0 %v7922_v25 }
 0x204   : > { %3015 = vst.msk [vmem:[#allocation4 + $0xe0] sm:$0xff] %vm2198_vm1, %v2983_v47  ;;  %v3507_v32 = vld [vmem:[#allocation4 + $0x28] sm:$0xff]  ;;  %6075 = vmatprep.subr.bf16.mxu0 %v8064_v0 }
 0x205   : > { %v2911_v34 = vpop.f32.mrf.mxu1  ;;  %v2952_v36 = vld [vmem:[#allocation4 + $0xe8] sm:$0xff]  ;;  %v2404_v38 = vpop.f32.mrf.mxu0 }
 0x206   : > { %v2984_v22 = vadd.f32 %v2952_v36, %v2911_v34  ;;  %2439 = vst.msk [vmem:[#allocation4 + $0xf8] sm:$0xff] %vm2198_vm1, %v2404_v38 }
 0x207   : > { %v2913_v50 = vpop.f32.mrf.mxu1  ;;  %v2406_v52 = vpop.f32.mrf.mxu0 }
 0x208   : > { %3016 = vst.msk [vmem:[#allocation4 + $0xe8] sm:$0xff] %vm2198_vm1, %v2984_v22 }
 0x209   : > { %v2916_v13 = vpop.f32.mrf.mxu1  ;;  %v2953_v16 = vld [vmem:[#allocation4 + $0xf0] sm:$0xff]  ;;  %v3375_v48 = vpop.f32.mrf.mxu0 }
 0x20a   : > { %v2985_v55 = vadd.f32 %v2953_v16, %v2916_v13  ;;  %v3534_v6 = vadd.f32 %v3502_v33, %v3375_v48  ;;  %v4121_v16 = vld [vmem:[#allocation2 + $0x14] sm:$0x1] }
 0x20b   : > { %v2918_v56 = vpop.f32.mrf.mxu1  ;;  %v3377_v39 = vpop.f32.mrf.mxu0 }
 0x20c   : > { %3017 = vst.msk [vmem:[#allocation4 + $0xf0] sm:$0xff] %vm2198_vm1, %v2985_v55  ;;  %3566 = vst.msk [vmem:[#allocation4] sm:$0xff] %vm2198_vm1, %v3534_v6  ;;  %v3508_v55 = vld [vmem:[#allocation4 + $0x30] sm:$0xff] }
 0x20d   : > { %v2919_v46 = vpop.f32.mrf.mxu1  ;;  %v2954_v18 = vld [vmem:[#allocation4 + $0xf8] sm:$0xff]  ;;  %v3378_v28 = vpop.f32.mrf.mxu0  ;;  %v7924_v6 = vld [vmem:[%s10411_s3 + $0x88] sm:$0xff]  }
 0x20e   : > { %v2986_v49 = vadd.f32 %v2954_v18, %v2919_v46  ;;  %v3535_v45 = vadd.f32 %v3503_v26, %v3378_v28  ;;  %6076 = vmatpush1.bf16.msra.mxu0 %v7924_v6  ;;  %v4131_v6 = vld [vmem:[#allocation2 + $0x24] sm:$0xf] }
 0x20f   : > { %v3380_v30 = vpop.f32.mrf.mxu0  ;;  %v2921_v7 = vpop.f32.mrf.mxu1  ;;  %6077 = vmatprep.subr.bf16.mxu0 %v8064_v0 }
 0x210   : > { %3018 = vst.msk [vmem:[#allocation4 + $0xf8] sm:$0xff] %vm2198_vm1, %v2986_v49  ;;  %3567 = vst.msk [vmem:[#allocation4 + $0x8] sm:$0xff] %vm2198_vm1, %v3535_v45 }
 0x211   : > { %v3383_v35 = vpop.f32.mrf.mxu0 }
 0x212   : > { %v3536_v53 = vadd.f32 %v3504_v62, %v3383_v35  ;;  %v7920_v62 = vld [vmem:[%s10411_s3 + $0x58] sm:$0xff]  }
 0x213   : > { %v3598_v27 = vld [vmem:[#allocation4] sm:$0xff]  ;;  %v3385_v51 = vpop.f32.mrf.mxu0  ;;  %5582 = vmatpush2.bf16.msra.mxu1 %v7920_v62 }
 0x214   : > { %v3637_v40 = vadd.f32 %v9282_v19, %v3598_v27  ;;  %3568 = vst.msk [vmem:[#allocation4 + $0x10] sm:$0xff] %vm2198_vm1, %v3536_v53  ;;  %5583 = vmatprep.subr.bf16.mxu1 %v8064_v0 }
 0x215   : > { %v3386_v54 = vpop.f32.mrf.mxu0 }
 0x216   : > { %v3669_v59 = vmax.f32 %v3637_v40, 0.0  ;;  %v3537_v60 = vadd.f32 %v3505_v57, %v3386_v54  ;;  %v3509_v40 = vld [vmem:[#allocation4 + $0x38] sm:$0xff]  ;;  %v7925_v54 = vld [vmem:[%s10411_s3 + $0x80] sm:$0xff]   ;;  %v4124_v57 = vld [vmem:[#allocation2 + $0x18] sm:$0xf] }
 0x217   : > { %v3599_v12 = vld [vmem:[#allocation4 + $0x8] sm:$0xff]  ;;  %v3388_v9 = vpop.f32.mrf.mxu0  ;;  %6078 = vmatpush1.bf16.msra.mxu0 %v7925_v54 }
 0x218   : > { %v7752_v61 = vpack.c.bf16 %v3669_v59, %v3669_v59  ;;  %v3638_v5 = vadd.f32 %v9282_v19, %v3599_v12  ;;  %3569 = vst.msk [vmem:[#allocation4 + $0x18] sm:$0xff] %vm2198_vm1, %v3537_v60  ;;  %6079 = vmatprep.subr.bf16.mxu0 %v8064_v0 }
 0x219   : > { %v3391_v8 = vpop.f32.mrf.mxu0 }
 0x21a   : > { %v3798_v4 = vshrl.u32 %v7752_v61, 16  ;;  %v3670_v11 = vmax.f32 %v3638_v5, 0.0  ;;  %v3538_v15 = vadd.f32 %v3506_v14, %v3391_v8  ;;  %v3801_v43 = vshll.u32 %v7752_v61, 16 }
 0x21b   : > { %v3600_v17 = vld [vmem:[#allocation4 + $0x10] sm:$0xff]  ;;  %v3393_v20 = vpop.f32.mrf.mxu0 }
 0x21c   : > { %v3800_v21 = vrot.slane %v3798_v4, 7  ;;  %v7753_v23 = vpack.c.bf16 %v3670_v11, %v3670_v11  ;;  %v3639_v2 = vadd.f32 %v9282_v19, %v3600_v17  ;;  %3570 = vst.msk [vmem:[#allocation4 + $0x20] sm:$0xff] %vm2198_vm1, %v3538_v15  ;;  %v4128_v15 = vld [vmem:[#allocation2 + $0x20] sm:$0x1] }
 0x21d   : > { %v3394_v24 = vpop.f32.mrf.mxu0 }
 0x21e   : > { %v3803_v29 = vor.u32 %v3801_v43, %v3800_v21  ;;  %v3806_v47 = vshrl.u32 %v7753_v23, 16  ;;  %v3671_v3 = vmax.f32 %v3639_v2, 0.0  ;;  %v3539_v36 = vadd.f32 %v3507_v32, %v3394_v24  ;;  %v7926_v2 = vld [vmem:[%s10411_s3 + $0x78] sm:$0xff]  }
 0x21f   : > { %v3601_v34 = vld [vmem:[#allocation4 + $0x18] sm:$0xff]  ;;  %v3396_v38 = vpop.f32.mrf.mxu0  ;;  %v3809_v50 = vshll.u32 %v7753_v23, 16  ;;  %v3804_v13 = vrot.slane %v3800_v21, 4  ;;  %v3510_v32 = vld [vmem:[#allocation4 + $0x40] sm:$0xff]  ;;  %6080 = vmatpush1.bf16.msra.mxu0 %v7926_v2 }
 0x220   : > { %v4118_v10 = vsel %vm8237_vm10, %v3803_v29, %v4117_v42  ;;  %v3808_v22 = vrot.slane %v3806_v47, 7  ;;  %v3640_v52 = vadd.f32 %v9282_v19, %v3601_v34  ;;  %v7754_v48 = vpack.c.bf16 %v3671_v3, %v3671_v3  ;;  %3571 = vst.msk [vmem:[#allocation4 + $0x28] sm:$0xff] %vm2198_vm1, %v3539_v36  ;;  %v7923_v23 = vld [vmem:[%s10411_s3 + $0x50] sm:$0xff]   ;;  %v4788_v42 = vpop.permute.xlu0 %4787  ;;  %v4790_v3 = vpop.permute.xlu1 %4789  ;;  %6081 = vmatprep.subr.bf16.mxu0 %v8064_v0 }
 0x221   : > { %4119 = vst [vmem:[#allocation2 + $0xc] sm:$0xf] %v4118_v10  ;;  %v3399_v33 = vpop.f32.mrf.mxu0  ;;  %4895 = vst.msk [vmem:[#allocation3] sm:$0xf] %vm1580_vm15, %v4788_v42  ;;  %5584 = vmatpush2.bf16.msra.mxu1 %v7923_v23 }
 0x222   : > { %v3811_v56 = vor.u32 %v3809_v50, %v3808_v22  ;;  %v3813_v39 = vrot.slane %v3808_v22, 4  ;;  %v3672_v46 = vmax.f32 %v3640_v52, 0.0  ;;  %v3540_v18 = vadd.f32 %v3508_v55, %v3399_v33  ;;  %4896 = vst.msk [vmem:[#allocation3 + $0x8] sm:$0xf] %vm1580_vm15, %v4790_v3  ;;  %5585 = vmatprep.subr.bf16.mxu1 %v8064_v0 }
 0x223   : > { %v3815_v28 = vshrl.u32 %v7754_v48, 16  ;;  %v3602_v26 = vld [vmem:[#allocation4 + $0x20] sm:$0xff]  ;;  %v3401_v49 = vpop.f32.mrf.mxu0  ;;  %v3818_v27 = vshll.u32 %v7754_v48, 16 }
 0x224   : > { %v3812_v45 = vsel %vm8231_vm9, %v3804_v13, %v3811_v56  ;;  %v4122_v30 = vsel %vm8153_vm3, %v3813_v39, %v4121_v16  ;;  %v7755_v7 = vpack.c.bf16 %v3672_v46, %v3672_v46  ;;  %v3641_v35 = vadd.f32 %v9282_v19, %v3602_v26  ;;  %3572 = vst.msk [vmem:[#allocation4 + $0x30] sm:$0xff] %vm2198_vm1, %v3540_v18  ;;  %v7927_v13 = vld [vmem:[%s10411_s3 + $0x48] sm:$0xff]   ;;  %v7928_v16 = vld [vmem:[%s10411_s3 + $0x70] sm:$0xff]   ;;  %v3511_v39 = vld [vmem:[#allocation4 + $0x48] sm:$0xff] }
 0x225   : > { %4120 = vst.msk [vmem:[#allocation2 + $0x10] sm:$0xf] %vm224_vm0, %v3812_v45  ;;  %4123 = vst [vmem:[#allocation2 + $0x14] sm:$0x1] %v4122_v30  ;;  %v3817_v53 = vrot.slane %v3815_v28, 7  ;;  %v3402_v51 = vpop.f32.mrf.mxu0  ;;  %5586 = vmatpush2.bf16.msra.mxu1 %v7927_v13  ;;  %6082 = vmatpush1.bf16.msra.mxu0 %v7928_v16 }
 0x226   : > { %v3823_v59 = vshrl.u32 %v7755_v7, 16  ;;  %v3673_v60 = vmax.f32 %v3641_v35, 0.0  ;;  %v3541_v12 = vadd.f32 %v3509_v40, %v3402_v51  ;;  %v3826_v8 = vshll.u32 %v7755_v7, 16  ;;  %v7929_v40 = vld [vmem:[%s10411_s3 + $0x68] sm:$0xff]   ;;  %6083 = vmatprep.subr.bf16.mxu0 %v8064_v0  ;;  %5587 = vmatprep.subr.bf16.mxu1 %v8064_v0 }
 0x227   : > { %v3820_v9 = vor.u32 %v3818_v27, %v3817_v53  ;;  %v3404_v41 = vpop.f32.mrf.mxu0  ;;  %v3821_v61 = vrot.slane %v3817_v53, 4  ;;  %v3603_v37 = vld [vmem:[#allocation4 + $0x28] sm:$0xff] }
 0x228   : > { %v3825_v5 = vrot.slane %v3823_v59, 7  ;;  %v7756_v14 = vpack.c.bf16 %v3673_v60, %v3673_v60  ;;  %3573 = vst.msk [vmem:[#allocation4 + $0x38] sm:$0xff] %vm2198_vm1, %v3541_v12  ;;  %v4304_v4 = vld [vmem:[#allocation2 + $0xc] sm:$0xf]  ;;  %v3642_v17 = vadd.f32 %v9282_v19, %v3603_v37  ;;  %v7931_v41 = vld [vmem:[%s10411_s3 + $0x40] sm:$0xff]  }
 0x229   : > { %v4125_v11 = vsel %vm8237_vm10, %v3820_v9, %v4124_v57  ;;  %v3407_v20 = vpop.f32.mrf.mxu0  ;;  %v4380_v21 = vshrl.u32 %v4304_v4, 16  ;;  %v4383_v43 = vshll.u32 %v4304_v4, 16  ;;  %v4231_v34 = vld [vmem:[#allocation2 + $0xc] sm:$0xf]  ;;  %6084 = vmatpush1.bf16.msra.mxu0 %v7929_v40  ;;  %5588 = vmatpush2.bf16.msra.mxu1 %v7931_v41 }
 0x22a   : > { %4126 = vst [vmem:[#allocation2 + $0x18] sm:$0xf] %v4125_v11  ;;  %v3828_v24 = vor.u32 %v3826_v8, %v3825_v5  ;;  %v3830_v25 = vrot.slane %v3825_v5, 4  ;;  %v3832_v29 = vshrl.u32 %v7756_v14, 16  ;;  %v3835_v47 = vshll.u32 %v7756_v14, 16  ;;  %v3512_v37 = vld [vmem:[#allocation4 + $0x50] sm:$0xff]  ;;  %6085 = vmatprep.subr.bf16.mxu0 %v8064_v0  ;;  %6649 = vmatprep.subr.bf16.mxu1 %v8064_v0 }
 0x22b   : > { %v3674_v36 = vmax.f32 %v3642_v17, 0.0  ;;  %v3604_v38 = vld [vmem:[#allocation4 + $0x30] sm:$0xff]  ;;  %v3542_v10 = vadd.f32 %v3510_v32, %v3407_v20  ;;  %v3409_v22 = vpop.f32.mrf.mxu0  ;;  %v4382_v50 = vrot.slane %v4380_v21, 4  ;;  %v4385_v52 = vrot.slane %v4383_v43, 5  ;;  %4267 = vst.msk [vmem:[#allocation3 + $0x10] sm:$0xf] %vm224_vm0, %v4231_v34 }
 0x22c   : > { %v3829_v48 = vsel %vm8231_vm9, %v3821_v61, %v3828_v24  ;;  %v4129_v33 = vsel %vm8153_vm3, %v3830_v25, %v4128_v15  ;;  %v9348_v55 = vrot.slane %v3832_v29, 7  ;;  %v3643_v56 = vadd.f32 %v9282_v19, %v3604_v38  ;;  %v4305_v46 = vld [vmem:[#allocation2 + $0x10] sm:$0xf]  ;;  %v9355_v7 = vld [vmem:[#allocation2 + $0xc] sm:$0xe] }
 0x22d   : > { %4127 = vst.msk [vmem:[#allocation2 + $0x1c] sm:$0xf] %vm224_vm0, %v3829_v48  ;;  %4130 = vst [vmem:[#allocation2 + $0x20] sm:$0x1] %v4129_v33  ;;  %v7757_v18 = vpack.c.bf16 %v3674_v36, %v3674_v36  ;;  %v3410_v28 = vpop.f32.mrf.mxu0  ;;  %v4386_v26 = vor.u32 %v4385_v52, %v4382_v50  ;;  %v4389_v49 = vshll.u32 %v4305_v46, 16  ;;  %v4393_v45 = vshrl.u32 %v4305_v46, 16 }
 0x22e   : > { %3574 = vst.msk [vmem:[#allocation4 + $0x40] sm:$0xff] %vm2198_vm1, %v3542_v10  ;;  %v4232_v30 = vld [vmem:[#allocation2 + $0x10] sm:$0xf]  ;;  %v3837_v35 = vor.u32 %v3835_v47, %v9348_v55  ;;  %v3838_v62 = vrot.slane %v9348_v55, 4  ;;  %v3675_v53 = vmax.f32 %v3643_v56, 0.0  ;;  %v3543_v27 = vadd.f32 %v3511_v39, %v3410_v28  ;;  %v7930_v36 = vld [vmem:[%s10411_s3 + $0x60] sm:$0xff]  }
 0x22f   : > { %v4306_v51 = vld [vmem:[#allocation2 + $0x14] sm:$0x1]  ;;  %4268 = vst.msk [vmem:[#allocation3 + $0x18] sm:$0xf] %vm224_vm0, %v4232_v30  ;;  %v3840_v54 = vshrl.u32 %v7757_v18, 16  ;;  %v3843_v57 = vshll.u32 %v7757_v18, 16  ;;  %v3412_v60 = vpop.f32.mrf.mxu0  ;;  %6086 = vmatpush1.bf16.msra.mxu0 %v7930_v36 }
 0x230   : > { %v3605_v59 = vld [vmem:[#allocation4 + $0x38] sm:$0xff]  ;;  %v4387_v12 = vrot.slane %v4386_v26, 4  ;;  %v4391_v9 = vrot.slane %v4389_v49, 5  ;;  %v4132_v61 = vsel %vm8237_vm10, %v3837_v35, %v4131_v6  ;;  %v4135_v5 = vld [vmem:[#allocation2 + $0x2c] sm:$0x1]  ;;  %v7758_v8 = vpack.c.bf16 %v3675_v53, %v3675_v53  ;;  %3575 = vst.msk [vmem:[#allocation4 + $0x48] sm:$0xff] %vm2198_vm1, %v3543_v27  ;;  %6095 = vmatprep.subr.bf16.mxu0 %v8064_v0 }
 0x231   : > { %v3644_v14 = vadd.f32 %v9282_v19, %v3605_v59  ;;  %v4395_v4 = vrot.slane %v4393_v45, 4  ;;  %4133 = vst [vmem:[#allocation2 + $0x24] sm:$0xf] %v4132_v61  ;;  %v3842_v11 = vrot.slane %v3840_v54, 7  ;;  %v3415_v15 = vpop.f32.mrf.mxu0  ;;  %v4399_v20 = vshll.u32 %v4306_v51, 16  ;;  %v3513_v56 = vld [vmem:[#allocation4 + $0x58] sm:$0xff] }
 0x232   : > { %v4392_v17 = vsel %vm8263_vm11, %v4387_v12, %v4391_v9  ;;  %v4307_v21 = vld [vmem:[#allocation2 + $0x18] sm:$0xf]  ;;  %v7468_v43 = vrot.slane %v9355_v7, 9  ;;  %v3849_v23 = vshrl.u32 %v7758_v8, 16  ;;  %v3852_v2 = vshll.u32 %v7758_v8, 16 }
 0x233   : > { %v3676_v42 = vmax.f32 %v3644_v14, 0.0  ;;  %v3544_v24 = vadd.f32 %v3512_v37, %v3415_v15  ;;  %4791 = vrot.lane.b32.xlu0 %v4392_v17, %s8065_s23  ;;  %v7932_v25 = vld [vmem:[#allocation3] ss:$8 sps:$4 sm:$0xff]   ;;  %v3845_v29 = vor.u32 %v3843_v57, %v3842_v11  ;;  %v3847_v47 = vrot.slane %v3842_v11, 4  ;;  %v3417_v32 = vpop.f32.mrf.mxu0  ;;  %v7934_v38 = vld [vmem:[#allocation3 + $0x4] ss:$8 sps:$4 sm:$0xff]  }
 0x234   : > { %v4396_v3 = vor.u32 %v4395_v4, %v4391_v9  ;;  %v4401_v34 = vrot.slane %v4399_v20, 5  ;;  %v9379_v10 = vrot.slane %v3849_v23, 7  ;;  %v4138_v22 = vld [vmem:[#allocation2 + $0x30] sm:$0xf]  ;;  %v4404_v13 = vshrl.u32 %v4307_v21, 16  ;;  %7529 = vmatprep.mubr.msk.bf16.mxu1 %vm2198_vm1, %v7934_v38  ;;  %v7937_v35 = vld [vmem:[%s10411_s3 + $0xf8] sm:$0xff]  }
 0x235   : > { %v7759_v50 = vpack.c.bf16 %v3676_v42, %v3676_v42  ;;  %v3606_v52 = vld [vmem:[#allocation4 + $0x40] sm:$0xff]  ;;  %3576 = vst.msk [vmem:[#allocation4 + $0x50] sm:$0xff] %vm2198_vm1, %v3544_v24  ;;  %v4407_v16 = vshll.u32 %v4307_v21, 16  ;;  %v3846_v48 = vsel %vm8231_vm9, %v3838_v62, %v3845_v29  ;;  %v4136_v33 = vsel %vm8153_vm3, %v3847_v47, %v4135_v5  ;;  %v3418_v6 = vpop.f32.mrf.mxu0  ;;  %v4309_v30 = vld [vmem:[#allocation2 + $0x20] sm:$0x1]  ;;  %5590 = vmatmul.mubr.bf16.vlgmr.msra.gmra.mxu1 %v7932_v25  ;;  %v7936_v32 = vld [vmem:[%s10411_s3 + $0xb0] sm:$0xff]  }
 0x236   : > { %v3645_v55 = vadd.f32 %v9282_v19, %v3606_v52  ;;  %v4397_v39 = vrot.slane %v4396_v3, 4  ;;  %v9389_v46 = vld [vmem:[#allocation2 + $0x1c] sm:$0xf]  ;;  %v4233_v18 = vld [vmem:[#allocation2 + $0x18] sm:$0xf]  ;;  %v3854_v28 = vor.u32 %v3852_v2, %v9379_v10  ;;  %v3855_v26 = vrot.slane %v9379_v10, 4  ;;  %6650 = vmatpush1.bf16.msra.mxu1 %v7937_v35 }
 0x237   : > { %4134 = vst.msk [vmem:[#allocation2 + $0x28] sm:$0xf] %vm224_vm0, %v3846_v48  ;;  %4137 = vst [vmem:[#allocation2 + $0x2c] sm:$0x1] %v4136_v33  ;;  %v3857_v49 = vshrl.u32 %v7759_v50, 16  ;;  %v3860_v45 = vshll.u32 %v7759_v50, 16  ;;  %v3545_v27 = vadd.f32 %v3513_v56, %v3418_v6  ;;  %v3420_v40 = vpop.f32.mrf.mxu0  ;;  %6651 = vmatprep.subr.bf16.mxu1 %v8064_v0 }
 0x238   : > { %4269 = vst.msk [vmem:[#allocation3 + $0x20] sm:$0xf] %vm224_vm0, %v4233_v18  ;;  %v3677_v62 = vmax.f32 %v3645_v55, 0.0  ;;  %v3607_v53 = vld [vmem:[#allocation4 + $0x48] sm:$0xff]  ;;  %v4402_v51 = vsel %vm8263_vm11, %v4397_v39, %v4401_v34  ;;  %v4406_v54 = vrot.slane %v4404_v13, 4  ;;  %v7935_v57 = vld [vmem:[%s10411_s3 + $0xb8] sm:$0xff]   ;;  %v4139_v60 = vsel %vm8237_vm10, %v3854_v28, %v4138_v22 }
 0x239   : > { %v4234_v59 = vld [vmem:[#allocation2 + $0x1c] sm:$0xf]  ;;  %v3859_v12 = vrot.slane %v3857_v49, 7  ;;  %v4142_v9 = vld [vmem:[#allocation2 + $0x38] sm:$0x1]  ;;  %v3646_v41 = vadd.f32 %v9282_v19, %v3607_v53  ;;  %4793 = vrot.lane.b32.xlu1 %v4402_v51, %s8065_s23  ;;  %v4409_v61 = vrot.slane %v4407_v16, 5  ;;  %v3423_v8 = vpop.f32.mrf.mxu0  ;;  %6096 = vmatpush2.bf16.msra.mxu0 %v7935_v57 }
 0x23a   : > { %4270 = vst.msk [vmem:[#allocation3 + $0x28] sm:$0xf] %vm224_vm0, %v4234_v59  ;;  %4140 = vst [vmem:[#allocation2 + $0x30] sm:$0xf] %v4139_v60  ;;  %v7760_v5 = vpack.c.bf16 %v3677_v62, %v3677_v62  ;;  %v3514_v14 = vld [vmem:[#allocation4 + $0x60] sm:$0xff]  ;;  %v4413_v37 = vshll.u32 %v9389_v46, 16  ;;  %6097 = vmatprep.subr.bf16.mxu0 %v8064_v0 }
 0x23b   : > { %3577 = vst.msk [vmem:[#allocation4 + $0x58] sm:$0xff] %vm2198_vm1, %v3545_v27  ;;  %v4417_v4 = vshrl.u32 %v9389_v46, 16  ;;  %v4423_v11 = vshll.u32 %v4309_v30, 16  ;;  %v4235_v15 = vld [vmem:[#allocation2 + $0x24] sm:$0xf]  ;;  %v3862_v17 = vor.u32 %v3860_v45, %v3859_v12  ;;  %v3864_v20 = vrot.slane %v3859_v12, 4  ;;  %v3425_v47 = vpop.f32.mrf.mxu0 }
 0x23c   : > { %v3678_v21 = vmax.f32 %v3646_v41, 0.0  ;;  %v3546_v23 = vadd.f32 %v3514_v14, %v3423_v8  ;;  %4271 = vst.msk [vmem:[#allocation3 + $0x30] sm:$0xf] %vm224_vm0, %v4235_v15  ;;  %v3866_v2 = vshrl.u32 %v7760_v5, 16  ;;  %v3869_v42 = vshll.u32 %v7760_v5, 16  ;;  %v3608_v24 = vld [vmem:[#allocation4 + $0x50] sm:$0xff] }
 0x23d   : > { %v4410_v25 = vor.u32 %v4409_v61, %v4406_v54  ;;  %v4415_v29 = vrot.slane %v4413_v37, 5  ;;  %v3863_v3 = vsel %vm8231_vm9, %v3855_v26, %v3862_v17  ;;  %v4143_v34 = vsel %vm8153_vm3, %v3864_v20, %v4142_v9  ;;  %v4145_v36 = vld [vmem:[#allocation2 + $0x3c] sm:$0xf]  ;;  %v3515_v22 = vld [vmem:[#allocation4 + $0x68] sm:$0xff]  ;;  %v3426_v13 = vpop.f32.mrf.mxu0  ;;  %6098 = vmatpush2.bf16.msra.mxu0 %v7936_v32  ;;  %v7938_v30 = vld [vmem:[%s10411_s3 + $0xa8] sm:$0xff]  }
 0x23e   : > { %v7761_v38 = vpack.c.bf16 %v3678_v21, %v3678_v21  ;;  %v3647_v10 = vadd.f32 %v9282_v19, %v3608_v24  ;;  %3578 = vst.msk [vmem:[#allocation4 + $0x60] sm:$0xff] %vm2198_vm1, %v3546_v23  ;;  %4144 = vst [vmem:[#allocation2 + $0x38] sm:$0x1] %v4143_v34  ;;  %v3868_v50 = vrot.slane %v3866_v2, 7  ;;  %v4419_v16 = vrot.slane %v4417_v4, 4  ;;  %v7943_v35 = vld [vmem:[%s10411_s3 + $0xf0] sm:$0xff]   ;;  %6099 = vmatprep.subr.bf16.mxu0 %v8064_v0 }
 0x23f   : > { %4141 = vst.msk [vmem:[#allocation2 + $0x34] sm:$0xf] %vm224_vm0, %v3863_v3  ;;  %v4411_v52 = vrot.slane %v4410_v25, 4  ;;  %v4425_v48 = vrot.slane %v4423_v11, 5  ;;  %v4310_v33 = vld [vmem:[#allocation2 + $0x24] sm:$0xf]  ;;  %v3547_v39 = vadd.f32 %v3515_v22, %v3426_v13  ;;  %v3428_v45 = vpop.f32.mrf.mxu0  ;;  %6652 = vmatpush1.bf16.msra.mxu1 %v7943_v35 }
 0x240   : > { %v3874_v55 = vshrl.u32 %v7761_v38, 16  ;;  %v3877_v6 = vshll.u32 %v7761_v38, 16  ;;  %v3679_v56 = vmax.f32 %v3647_v10, 0.0  ;;  %v9426_v46 = vld [vmem:[#allocation2 + $0x28] sm:$0xf]  ;;  %v3871_v18 = vor.u32 %v3869_v42, %v3868_v50  ;;  %6653 = vmatprep.subr.bf16.mxu1 %v8064_v0  ;;  %v7939_v2 = vld [vmem:[%s10411_s3 + $0xa0] sm:$0xff]  }
 0x241   : > { %v3872_v28 = vrot.slane %v3868_v50, 4  ;;  %v4416_v26 = vsel %vm8263_vm11, %v4411_v52, %v4415_v29  ;;  %v4420_v49 = vor.u32 %v4419_v16, %v4415_v29  ;;  %v4236_v62 = vld [vmem:[#allocation2 + $0x28] sm:$0xf]  ;;  %3579 = vst.msk [vmem:[#allocation4 + $0x68] sm:$0xff] %vm2198_vm1, %v3547_v39  ;;  %v4428_v40 = vshrl.u32 %v4310_v33, 16  ;;  %v3431_v9 = vpop.f32.mrf.mxu0  ;;  %6100 = vmatpush2.bf16.msra.mxu0 %v7938_v30  ;;  %v3517_v22 = vld [vmem:[#allocation4 + $0x78] sm:$0xff] }
 0x242   : > { %v3876_v53 = vrot.slane %v3874_v55, 7  ;;  %v7762_v27 = vpack.c.bf16 %v3679_v56, %v3679_v56  ;;  %v3609_v51 = vld [vmem:[#allocation4 + $0x58] sm:$0xff]  ;;  %4795 = vrot.lane.b32.xlu0 %v4416_v26, %s8065_s23  ;;  %v4431_v54 = vshll.u32 %v4310_v33, 16  ;;  %4272 = vst.msk [vmem:[#allocation3 + $0x38] sm:$0xf] %vm224_vm0, %v4236_v62  ;;  %v4146_v57 = vsel %vm8237_vm10, %v3871_v18, %v4145_v36  ;;  %v3516_v4 = vld [vmem:[#allocation4 + $0x70] sm:$0xff]  ;;  %6101 = vmatprep.subr.bf16.mxu0 %v8064_v0 }
 0x243   : > { %v4149_v59 = vld [vmem:[#allocation2 + $0x44] sm:$0x1]  ;;  %v3648_v60 = vadd.f32 %v9282_v19, %v3609_v51  ;;  %v4421_v12 = vrot.slane %v4420_v49, 4  ;;  %v4437_v41 = vshll.u32 %v9426_v46, 16  ;;  %v4237_v61 = vld [vmem:[#allocation2 + $0x30] sm:$0xf]  ;;  %v3548_v20 = vadd.f32 %v3516_v4, %v3431_v9  ;;  %v3433_v23 = vpop.f32.mrf.mxu0 }
 0x244   : > { %4147 = vst [vmem:[#allocation2 + $0x3c] sm:$0xf] %v4146_v57  ;;  %v3879_v5 = vor.u32 %v3877_v6, %v3876_v53  ;;  %v3881_v8 = vrot.slane %v3876_v53, 4  ;;  %v3883_v14 = vshrl.u32 %v7762_v27, 16  ;;  %v3886_v37 = vshll.u32 %v7762_v27, 16 }
 0x245   : > { %4273 = vst.msk [vmem:[#allocation3 + $0x40] sm:$0xf] %vm224_vm0, %v4237_v61  ;;  %v3680_v11 = vmax.f32 %v3648_v60, 0.0  ;;  %v3610_v15 = vld [vmem:[#allocation4 + $0x60] sm:$0xff]  ;;  %v4426_v17 = vsel %vm8263_vm11, %v4421_v12, %v4425_v48  ;;  %v4430_v21 = vrot.slane %v4428_v40, 4  ;;  %v4433_v34 = vrot.slane %v4431_v54, 5  ;;  %v3434_v10 = vpop.f32.mrf.mxu0  ;;  %6102 = vmatpush2.bf16.msra.mxu0 %v7939_v2 }
 0x246   : > { %v3880_v42 = vsel %vm8231_vm9, %v3872_v28, %v3879_v5  ;;  %v4150_v24 = vsel %vm8153_vm3, %v3881_v8, %v4149_v59  ;;  %v9455_v25 = vrot.slane %v3883_v14, 7  ;;  %v4152_v29 = vld [vmem:[#allocation2 + $0x48] sm:$0xf]  ;;  %v3649_v47 = vadd.f32 %v9282_v19, %v3610_v15  ;;  %4797 = vrot.lane.b32.xlu1 %v4426_v17, %s8065_s23  ;;  %v4312_v32 = vld [vmem:[#allocation2 + $0x2c] sm:$0x1]  ;;  %3580 = vst.msk [vmem:[#allocation4 + $0x70] sm:$0xff] %vm2198_vm1, %v3548_v20 }
 0x247   : > { %4148 = vst.msk [vmem:[#allocation2 + $0x40] sm:$0xf] %vm224_vm0, %v3880_v42  ;;  %4151 = vst [vmem:[#allocation2 + $0x44] sm:$0x1] %v4150_v24  ;;  %v7763_v3 = vpack.c.bf16 %v3680_v11, %v3680_v11  ;;  %v4439_v36 = vrot.slane %v4437_v41, 5  ;;  %v4441_v38 = vshrl.u32 %v9426_v46, 16  ;;  %v3549_v48 = vadd.f32 %v3517_v22, %v3434_v10  ;;  %v3436_v28 = vpop.f32.mrf.mxu0 }
 0x248   : > { %v4238_v50 = vld [vmem:[#allocation2 + $0x34] sm:$0xf]  ;;  %v3888_v52 = vor.u32 %v3886_v37, %v9455_v25  ;;  %v3889_v13 = vrot.slane %v9455_v25, 4  ;;  %v3681_v16 = vmax.f32 %v3649_v47, 0.0  ;;  %v9465_v33 = vld [vmem:[#allocation2 + $0x30] sm:$0xf]  ;;  %v4434_v39 = vor.u32 %v4433_v34, %v4430_v21 }
 0x249   : > { %4274 = vst.msk [vmem:[#allocation3 + $0x48] sm:$0xf] %vm224_vm0, %v4238_v50  ;;  %v3891_v55 = vshrl.u32 %v7763_v3, 16  ;;  %v3894_v6 = vshll.u32 %v7763_v3, 16  ;;  %v3611_v56 = vld [vmem:[#allocation4 + $0x68] sm:$0xff]  ;;  %v4443_v18 = vrot.slane %v4441_v38, 4  ;;  %v3439_v27 = vpop.f32.mrf.mxu0 }
 0x24a   : > { %v4153_v46 = vsel %vm8237_vm10, %v3888_v52, %v4152_v29  ;;  %v7764_v26 = vpack.c.bf16 %v3681_v16, %v3681_v16  ;;  %v3650_v49 = vadd.f32 %v9282_v19, %v3611_v56  ;;  %3581 = vst.msk [vmem:[#allocation4 + $0x78] sm:$0xff] %vm2198_vm1, %v3549_v48  ;;  %v4447_v45 = vshll.u32 %v4312_v32, 16  ;;  %v4156_v35 = vld [vmem:[#allocation2 + $0x50] sm:$0x1]  ;;  %v3518_v5 = vld [vmem:[#allocation4 + $0x80] sm:$0xff]  ;;  %v7947_v14 = vld [vmem:[%s10411_s3 + $0xe8] sm:$0xff]  }
 0x24b   : > { %4154 = vst [vmem:[#allocation2 + $0x48] sm:$0xf] %v4153_v46  ;;  %v3893_v30 = vrot.slane %v3891_v55, 7  ;;  %v4435_v62 = vrot.slane %v4434_v39, 4  ;;  %v4444_v53 = vor.u32 %v4443_v18, %v4439_v36  ;;  %v4452_v51 = vshrl.u32 %v9465_v33, 16  ;;  %v3441_v8 = vpop.f32.mrf.mxu0  ;;  %6654 = vmatpush1.bf16.msra.mxu1 %v7947_v14 }
 0x24c   : > { %v3900_v40 = vshrl.u32 %v7764_v26, 16  ;;  %v3903_v54 = vshll.u32 %v7764_v26, 16  ;;  %v3682_v57 = vmax.f32 %v3650_v49, 0.0  ;;  %v4449_v59 = vrot.slane %v4447_v45, 5  ;;  %v4239_v60 = vld [vmem:[#allocation2 + $0x3c] sm:$0xf]  ;;  %6655 = vmatprep.subr.bf16.mxu1 %v8064_v0 }
 0x24d   : > { %v3896_v12 = vor.u32 %v3894_v6, %v3893_v30  ;;  %v3898_v9 = vrot.slane %v3893_v30, 4  ;;  %v4440_v41 = vsel %vm8263_vm11, %v4435_v62, %v4439_v36  ;;  %v4445_v61 = vrot.slane %v4444_v53, 4  ;;  %4275 = vst.msk [vmem:[#allocation3 + $0x50] sm:$0xf] %vm224_vm0, %v4239_v60  ;;  %v3612_v11 = vld [vmem:[#allocation4 + $0x70] sm:$0xff]  ;;  %v3442_v25 = vpop.f32.mrf.mxu0 }
 0x24e   : > { %v3902_v37 = vrot.slane %v3900_v40, 7  ;;  %v7765_v4 = vpack.c.bf16 %v3682_v57, %v3682_v57  ;;  %4799 = vrot.lane.b32.xlu0 %v4440_v41, %s8065_s23  ;;  %v3550_v15 = vadd.f32 %v3518_v5, %v3439_v27  ;;  %v4314_v17 = vld [vmem:[#allocation2 + $0x34] sm:$0xf]  ;;  %v4454_v20 = vrot.slane %v4452_v51, 4  ;;  %v4240_v29 = vld [vmem:[#allocation2 + $0x40] sm:$0xf] }
 0x24f   : > { %v3897_v21 = vsel %vm8231_vm9, %v3889_v13, %v3896_v12  ;;  %v4157_v23 = vsel %vm8153_vm3, %v3898_v9, %v4156_v35  ;;  %v4159_v2 = vld [vmem:[#allocation2 + $0x54] sm:$0xf]  ;;  %v3651_v42 = vadd.f32 %v9282_v19, %v3612_v11  ;;  %v4450_v24 = vsel %vm8263_vm11, %v4445_v61, %v4449_v59  ;;  %v4315_v36 = vld [vmem:[#allocation2 + $0x38] sm:$0x1]  ;;  %4276 = vst.msk [vmem:[#allocation3 + $0x58] sm:$0xf] %vm224_vm0, %v4240_v29  ;;  %v3444_v16 = vpop.f32.mrf.mxu0 }
 0x250   : > { %4155 = vst.msk [vmem:[#allocation2 + $0x4c] sm:$0xf] %vm224_vm0, %v3897_v21  ;;  %4158 = vst [vmem:[#allocation2 + $0x50] sm:$0x1] %v4157_v23  ;;  %v3905_v47 = vor.u32 %v3903_v54, %v3902_v37  ;;  %v3906_v32 = vrot.slane %v3902_v37, 4  ;;  %v3908_v3 = vshrl.u32 %v7765_v4, 16  ;;  %4801 = vrot.lane.b32.xlu1 %v4450_v24, %s8065_s23 }
 0x251   : > { %v3911_v34 = vshll.u32 %v7765_v4, 16  ;;  %3582 = vst.msk [vmem:[#allocation4 + $0x80] sm:$0xff] %vm2198_vm1, %v3550_v15  ;;  %v3683_v38 = vmax.f32 %v3651_v42, 0.0  ;;  %v3613_v10 = vld [vmem:[#allocation4 + $0x78] sm:$0xff]  ;;  %v4455_v22 = vshll.u32 %v9465_v33, 16  ;;  %v4461_v50 = vshll.u32 %v4314_v17, 16  ;;  %v3447_v49 = vpop.f32.mrf.mxu0 }
 0x252   : > { %v4465_v52 = vshrl.u32 %v4314_v17, 16  ;;  %v3519_v13 = vld [vmem:[#allocation4 + $0x88] sm:$0xff]  ;;  %v4160_v48 = vsel %vm8237_vm10, %v3905_v47, %v4159_v2  ;;  %v3910_v55 = vrot.slane %v3908_v3, 7  ;;  %v4163_v6 = vld [vmem:[#allocation2 + $0x5c] sm:$0x1]  ;;  %v3652_v56 = vadd.f32 %v9282_v19, %v3613_v10  ;;  %v3520_v41 = vld [vmem:[#allocation4 + $0x90] sm:$0xff] }
 0x253   : > { %v3551_v39 = vadd.f32 %v3519_v13, %v3442_v25  ;;  %4161 = vst [vmem:[#allocation2 + $0x54] sm:$0xf] %v4160_v48  ;;  %v7766_v18 = vpack.c.bf16 %v3683_v38, %v3683_v38  ;;  %v4457_v28 = vrot.slane %v4455_v22, 5  ;;  %v4463_v46 = vrot.slane %v4461_v50, 5  ;;  %v4241_v45 = vld [vmem:[#allocation2 + $0x48] sm:$0xf]  ;;  %v3449_v57 = vpop.f32.mrf.mxu0 }
 0x254   : > { %v4467_v26 = vrot.slane %v4465_v52, 4  ;;  %v3913_v33 = vor.u32 %v3911_v34, %v3910_v55  ;;  %v3915_v30 = vrot.slane %v3910_v55, 4  ;;  %v3684_v35 = vmax.f32 %v3652_v56, 0.0  ;;  %4277 = vst.msk [vmem:[#allocation3 + $0x60] sm:$0xf] %vm224_vm0, %v4241_v45  ;;  %v7954_v2 = vld [vmem:[%s10411_s3 + $0xe0] sm:$0xff]  }
 0x255   : > { %3583 = vst.msk [vmem:[#allocation4 + $0x88] sm:$0xff] %vm2198_vm1, %v3551_v39  ;;  %v4471_v62 = vshll.u32 %v4315_v36, 16  ;;  %v3917_v53 = vshrl.u32 %v7766_v18, 16  ;;  %v3920_v27 = vshll.u32 %v7766_v18, 16  ;;  %v4458_v51 = vor.u32 %v4457_v28, %v4454_v20  ;;  %v4316_v54 = vld [vmem:[#allocation2 + $0x3c] sm:$0xf]  ;;  %v3450_v11 = vpop.f32.mrf.mxu0  ;;  %6656 = vmatpush1.bf16.msra.mxu1 %v7954_v2 }
 0x256   : > { %v4468_v40 = vor.u32 %v4467_v26, %v4463_v46  ;;  %v3914_v59 = vsel %vm8231_vm9, %v3906_v32, %v3913_v33  ;;  %v4164_v60 = vsel %vm8153_vm3, %v3915_v30, %v4163_v6  ;;  %v7767_v12 = vpack.c.bf16 %v3684_v35, %v3684_v35  ;;  %v4166_v5 = vld [vmem:[#allocation2 + $0x60] sm:$0xf]  ;;  %v4170_v25 = vld [vmem:[#allocation2 + $0x68] sm:$0x1]  ;;  %v3521_v32 = vld [vmem:[#allocation4 + $0x98] sm:$0xff]  ;;  %6657 = vmatprep.subr.bf16.mxu1 %v8064_v0 }
 0x257   : > { %v4473_v9 = vrot.slane %v4471_v62, 5  ;;  %4162 = vst.msk [vmem:[#allocation2 + $0x58] sm:$0xf] %vm224_vm0, %v3914_v59  ;;  %4165 = vst [vmem:[#allocation2 + $0x5c] sm:$0x1] %v4164_v60  ;;  %v3919_v61 = vrot.slane %v3917_v53, 7  ;;  %v3552_v4 = vadd.f32 %v3520_v41, %v3447_v49  ;;  %v3452_v3 = vpop.f32.mrf.mxu0  ;;  %v3553_v55 = vadd.f32 %v3521_v32, %v3450_v11 }
 0x258   : > { %v3614_v8 = vld [vmem:[#allocation4 + $0x80] sm:$0xff]  ;;  %v4459_v14 = vrot.slane %v4458_v51, 4  ;;  %v4469_v37 = vrot.slane %v4468_v40, 4  ;;  %v3925_v15 = vshrl.u32 %v7767_v12, 16  ;;  %v3928_v17 = vshll.u32 %v7767_v12, 16 }
 0x259   : > { %v3653_v20 = vadd.f32 %v9282_v19, %v3614_v8  ;;  %v4317_v21 = vld [vmem:[#allocation2 + $0x40] sm:$0xf]  ;;  %v4476_v23 = vshrl.u32 %v4316_v54, 16  ;;  %v3922_v42 = vor.u32 %v3920_v27, %v3919_v61  ;;  %v3923_v24 = vrot.slane %v3919_v61, 4  ;;  %3584 = vst.msk [vmem:[#allocation4 + $0x90] sm:$0xff] %vm2198_vm1, %v3552_v4  ;;  %v3455_v6 = vpop.f32.mrf.mxu0  ;;  %3585 = vst.msk [vmem:[#allocation4 + $0x98] sm:$0xff] %vm2198_vm1, %v3553_v55 }
 0x25a   : > { %v4464_v29 = vsel %vm8263_vm11, %v4459_v14, %v4463_v46  ;;  %v4474_v47 = vsel %vm8263_vm11, %v4469_v37, %v4473_v9  ;;  %v4242_v34 = vld [vmem:[#allocation2 + $0x4c] sm:$0xf]  ;;  %v3927_v36 = vrot.slane %v3925_v15, 7  ;;  %v4479_v22 = vshll.u32 %v4316_v54, 16  ;;  %v4318_v50 = vld [vmem:[#allocation2 + $0x44] sm:$0x1] }
 0x25b   : > { %v3685_v38 = vmax.f32 %v3653_v20, 0.0  ;;  %4803 = vrot.lane.b32.xlu0 %v4464_v29, %s8065_s23  ;;  %4805 = vrot.lane.b32.xlu1 %v4474_v47, %s8065_s23  ;;  %v4478_v10 = vrot.slane %v4476_v23, 4  ;;  %4278 = vst.msk [vmem:[#allocation3 + $0x68] sm:$0xf] %vm224_vm0, %v4242_v34  ;;  %v4167_v52 = vsel %vm8237_vm10, %v3922_v42, %v4166_v5  ;;  %v4485_v16 = vshll.u32 %v4317_v21, 16  ;;  %v3457_v35 = vpop.f32.mrf.mxu0  ;;  %v3522_v59 = vld [vmem:[#allocation4 + $0xa0] sm:$0xff] }
 0x25c   : > { %v3615_v13 = vld [vmem:[#allocation4 + $0x88] sm:$0xff]  ;;  %v4489_v48 = vshrl.u32 %v4317_v21, 16  ;;  %v4243_v56 = vld [vmem:[#allocation2 + $0x54] sm:$0xf]  ;;  %4168 = vst [vmem:[#allocation2 + $0x60] sm:$0xf] %v4167_v52  ;;  %v3930_v39 = vor.u32 %v3928_v17, %v3927_v36  ;;  %v3554_v61 = vadd.f32 %v3522_v59, %v3455_v6 }
 0x25d   : > { %v3932_v18 = vrot.slane %v3927_v36, 4  ;;  %v7768_v28 = vpack.c.bf16 %v3685_v38, %v3685_v38  ;;  %v3654_v46 = vadd.f32 %v9282_v19, %v3615_v13  ;;  %4279 = vst.msk [vmem:[#allocation3 + $0x70] sm:$0xf] %vm224_vm0, %v4243_v56  ;;  %v4481_v26 = vrot.slane %v4479_v22, 5  ;;  %v4319_v30 = vld [vmem:[#allocation2 + $0x48] sm:$0xf]  ;;  %v3458_v60 = vpop.f32.mrf.mxu0 }
 0x25e   : > { %v4487_v49 = vrot.slane %v4485_v16, 5  ;;  %v4491_v45 = vrot.slane %v4489_v48, 4  ;;  %v4495_v33 = vshll.u32 %v4318_v50, 16  ;;  %v3931_v62 = vsel %vm8231_vm9, %v3923_v24, %v3930_v39  ;;  %v4244_v12 = vld [vmem:[#allocation2 + $0x58] sm:$0xf]  ;;  %3586 = vst.msk [vmem:[#allocation4 + $0xa0] sm:$0xff] %vm2198_vm1, %v3554_v61 }
 0x25f   : > { %v4171_v53 = vsel %vm8153_vm3, %v3932_v18, %v4170_v25  ;;  %v3934_v27 = vshrl.u32 %v7768_v28, 16  ;;  %v3937_v19 = vshll.u32 %v7768_v28, 16  ;;  %4169 = vst.msk [vmem:[#allocation2 + $0x64] sm:$0xf] %vm224_vm0, %v3931_v62  ;;  %v3686_v51 = vmax.f32 %v3654_v46, 0.0  ;;  %v3460_v21 = vpop.f32.mrf.mxu0  ;;  %v3523_v56 = vld [vmem:[#allocation4 + $0xa8] sm:$0xff] }
 0x260   : > { %4172 = vst [vmem:[#allocation2 + $0x68] sm:$0x1] %v4171_v53  ;;  %v4482_v40 = vor.u32 %v4481_v26, %v4478_v10  ;;  %v4492_v54 = vor.u32 %v4491_v45, %v4487_v49  ;;  %v4497_v57 = vrot.slane %v4495_v33, 5  ;;  %v3616_v41 = vld [vmem:[#allocation4 + $0x90] sm:$0xff]  ;;  %v4500_v5 = vshrl.u32 %v4319_v30, 16  ;;  %v3617_v38 = vld [vmem:[#allocation4 + $0x98] sm:$0xff] }
 0x261   : > { %v9526_v9 = vrot.slane %v3934_v27, 7  ;;  %v4503_v8 = vshll.u32 %v4319_v30, 16  ;;  %4280 = vst.msk [vmem:[#allocation3 + $0x78] sm:$0xf] %vm224_vm0, %v4244_v12  ;;  %v4173_v14 = vld [vmem:[#allocation2 + $0x6c] sm:$0xf]  ;;  %v7769_v37 = vpack.c.bf16 %v3686_v51, %v3686_v51  ;;  %v3463_v34 = vpop.f32.mrf.mxu0  ;;  %v3555_v46 = vadd.f32 %v3523_v56, %v3458_v60 }
 0x262   : > { %v9532_v4 = vld [vmem:[%s10410_s2] ss:$0 sm:$0xff]  ;;  %v4483_v15 = vrot.slane %v4482_v40, 4  ;;  %v4493_v17 = vrot.slane %v4492_v54, 4  ;;  %v4320_v20 = vld [vmem:[#allocation2 + $0x4c] sm:$0xf] }
 0x263   : > { %v3655_v11 = vadd.f32 %v9532_v4, %v3616_v41  ;;  %v3939_v23 = vor.u32 %v3937_v19, %v9526_v9  ;;  %v3940_v2 = vrot.slane %v9526_v9, 4  ;;  %v4502_v42 = vrot.slane %v4500_v5, 4  ;;  %v4321_v3 = vld [vmem:[#allocation2 + $0x50] sm:$0x1]  ;;  %v4245_v52 = vld [vmem:[#allocation2 + $0x60] sm:$0xf]  ;;  %v3465_v39 = vpop.f32.mrf.mxu0 }
 0x264   : > { %v4505_v24 = vrot.slane %v4503_v8, 5  ;;  %v3942_v25 = vshrl.u32 %v7769_v37, 16  ;;  %v3945_v29 = vshll.u32 %v7769_v37, 16  ;;  %v4488_v32 = vsel %vm8263_vm11, %v4483_v15, %v4487_v49  ;;  %v4177_v16 = vld [vmem:[#allocation2 + $0x74] sm:$0x1]  ;;  %v7958_v27 = vld [vmem:[%s10411_s3 + $0xd8] sm:$0xff]  }
 0x265   : > { %v3687_v47 = vmax.f32 %v3655_v11, 0.0  ;;  %v4174_v36 = vsel %vm8237_vm10, %v3939_v23, %v4173_v14  ;;  %4807 = vrot.lane.b32.xlu0 %v4488_v32, %s8065_s23  ;;  %v4498_v10 = vsel %vm8263_vm11, %v4493_v17, %v4497_v57  ;;  %v4509_v50 = vshll.u32 %v4320_v20, 16  ;;  %4281 = vst.msk [vmem:[#allocation3 + $0x80] sm:$0xf] %vm224_vm0, %v4245_v52  ;;  %v4322_v49 = vld [vmem:[#allocation2 + $0x54] sm:$0xf]  ;;  %v3466_v53 = vpop.f32.mrf.mxu0  ;;  %6658 = vmatpush1.bf16.msra.mxu1 %v7958_v27 }
 0x266   : > { %v4506_v22 = vor.u32 %v4505_v24, %v4502_v42  ;;  %4175 = vst [vmem:[#allocation2 + $0x6c] sm:$0xf] %v4174_v36  ;;  %v3944_v13 = vrot.slane %v3942_v25, 7  ;;  %v3656_v55 = vadd.f32 %v9532_v4, %v3617_v38  ;;  %4809 = vrot.lane.b32.xlu1 %v4498_v10, %s8065_s23  ;;  %v4513_v6 = vshrl.u32 %v4320_v20, 16  ;;  %v9548_v62 = vld [vmem:[#allocation2 + $0x58] sm:$0xf]  ;;  %6659 = vmatprep.subr.bf16.mxu1 %v8064_v0 }
 0x267   : > { %v7770_v48 = vpack.c.bf16 %v3687_v47, %v3687_v47  ;;  %v4511_v28 = vrot.slane %v4509_v50, 5  ;;  %v4519_v26 = vshll.u32 %v4321_v3, 16  ;;  %3587 = vst.msk [vmem:[#allocation4 + $0xa8] sm:$0xff] %vm2198_vm1, %v3555_v46  ;;  %v3524_v57 = vld [vmem:[#allocation4 + $0xb0] sm:$0xff]  ;;  %v4246_v59 = vld [vmem:[#allocation2 + $0x64] sm:$0xf]  ;;  %v3468_v5 = vpop.f32.mrf.mxu0 }
 0x268   : > { %v4507_v18 = vrot.slane %v4506_v22, 4  ;;  %v3947_v45 = vor.u32 %v3945_v29, %v3944_v13  ;;  %v3949_v33 = vrot.slane %v3944_v13, 4  ;;  %v3688_v19 = vmax.f32 %v3656_v55, 0.0  ;;  %v3618_v41 = vld [vmem:[#allocation4 + $0xa0] sm:$0xff]  ;;  %4282 = vst.msk [vmem:[#allocation3 + $0x88] sm:$0xf] %vm224_vm0, %v4246_v59 }
 0x269   : > { %v3951_v30 = vshrl.u32 %v7770_v48, 16  ;;  %v3954_v35 = vshll.u32 %v7770_v48, 16  ;;  %v4515_v40 = vrot.slane %v4513_v6, 4  ;;  %v4521_v54 = vrot.slane %v4519_v26, 5  ;;  %v4180_v8 = vld [vmem:[#allocation2 + $0x78] sm:$0xf] }
 0x26a   : > { %v4512_v51 = vsel %vm8263_vm11, %v4507_v18, %v4511_v28  ;;  %v3948_v60 = vsel %vm8231_vm9, %v3940_v2, %v3947_v45  ;;  %v4178_v12 = vsel %vm8153_vm3, %v3949_v33, %v4177_v16  ;;  %v3556_v61 = vadd.f32 %v3524_v57, %v3463_v34  ;;  %v3471_v2 = vpop.f32.mrf.mxu0  ;;  %v4324_v47 = vld [vmem:[#allocation2 + $0x5c] sm:$0x1]  ;;  %v3525_v16 = vld [vmem:[#allocation4 + $0xb8] sm:$0xff]  ;;  %v4184_v55 = vld [vmem:[#allocation2 + $0x80] sm:$0x1] }
 0x26b   : > { %v3953_v9 = vrot.slane %v3951_v30, 7  ;;  %4811 = vrot.lane.b32.xlu0 %v4512_v51, %s8065_s23  ;;  %4176 = vst.msk [vmem:[#allocation2 + $0x70] sm:$0xf] %vm224_vm0, %v3948_v60  ;;  %4179 = vst [vmem:[#allocation2 + $0x74] sm:$0x1] %v4178_v12  ;;  %v7771_v14 = vpack.c.bf16 %v3688_v19, %v3688_v19  ;;  %v3657_v37 = vadd.f32 %v9532_v4, %v3618_v41  ;;  %v4524_v15 = vshrl.u32 %v4322_v49, 16 }
 0x26c   : > { %v4516_v11 = vor.u32 %v4515_v40, %v4511_v28  ;;  %3588 = vst.msk [vmem:[#allocation4 + $0xb0] sm:$0xff] %vm2198_vm1, %v3556_v61  ;;  %v4527_v21 = vshll.u32 %v4322_v49, 16  ;;  %v4533_v23 = vshll.u32 %v9548_v62, 16  ;;  %v3473_v38 = vpop.f32.mrf.mxu0  ;;  %v4537_v13 = vshrl.u32 %v9548_v62, 16  ;;  %v3526_v48 = vld [vmem:[#allocation4 + $0xc0] sm:$0xff]  ;;  %v7962_v12 = vld [vmem:[%s10411_s3 + $0xd0] sm:$0xff]  }
 0x26d   : > { %v3956_v17 = vor.u32 %v3954_v35, %v3953_v9  ;;  %v3957_v20 = vrot.slane %v3953_v9, 4  ;;  %v3959_v42 = vshrl.u32 %v7771_v14, 16  ;;  %v3962_v24 = vshll.u32 %v7771_v14, 16  ;;  %v4247_v10 = vld [vmem:[#allocation2 + $0x6c] sm:$0xf]  ;;  %6660 = vmatpush1.bf16.msra.mxu1 %v7962_v12 }
 0x26e   : > { %v3689_v25 = vmax.f32 %v3657_v37, 0.0  ;;  %v4517_v29 = vrot.slane %v4516_v11, 4  ;;  %v4526_v3 = vrot.slane %v4524_v15, 4  ;;  %v4529_v34 = vrot.slane %v4527_v21, 5  ;;  %4283 = vst.msk [vmem:[#allocation3 + $0x90] sm:$0xf] %vm224_vm0, %v4247_v10  ;;  %v3474_v26 = vpop.f32.mrf.mxu0  ;;  %6661 = vmatprep.subr.bf16.mxu1 %v8064_v0 }
 0x26f   : > { %v4181_v32 = vsel %vm8237_vm10, %v3956_v17, %v4180_v8  ;;  %v4535_v36 = vrot.slane %v4533_v23, 5  ;;  %v3961_v22 = vrot.slane %v3959_v42, 7  ;;  %v3619_v6 = vld [vmem:[#allocation4 + $0xa8] sm:$0xff]  ;;  %v3557_v39 = vadd.f32 %v3525_v16, %v3466_v53  ;;  %v4941_v7 = vld [vmem:[#allocation2 + $0x28] sm:$0xf] }
 0x270   : > { %4182 = vst [vmem:[#allocation2 + $0x78] sm:$0xf] %v4181_v32  ;;  %v7772_v50 = vpack.c.bf16 %v3689_v25, %v3689_v25  ;;  %v4522_v52 = vsel %vm8263_vm11, %v4517_v29, %v4521_v54  ;;  %v4530_v56 = vor.u32 %v4529_v34, %v4526_v3  ;;  %v4543_v18 = vshll.u32 %v4324_v47, 16  ;;  %v4325_v46 = vld [vmem:[#allocation2 + $0x60] sm:$0xf]  ;;  %v3476_v51 = vpop.f32.mrf.mxu0 }
 0x271   : > { %4813 = vrot.lane.b32.xlu1 %v4522_v52, %s8065_s23  ;;  %v3558_v28 = vadd.f32 %v3526_v48, %v3471_v2  ;;  %v3964_v49 = vor.u32 %v3962_v24, %v3961_v22  ;;  %v3966_v45 = vrot.slane %v3961_v22, 4  ;;  %v3658_v35 = vadd.f32 %v9532_v4, %v3619_v6  ;;  %3589 = vst.msk [vmem:[#allocation4 + $0xb8] sm:$0xff] %vm2198_vm1, %v3557_v39  ;;  %v4326_v59 = vld [vmem:[#allocation2 + $0x64] sm:$0xf]  ;;  %v4327_v25 = vld [vmem:[#allocation2 + $0x68] sm:$0x1] }
 0x272   : > { %v3968_v33 = vshrl.u32 %v7772_v50, 16  ;;  %v3971_v30 = vshll.u32 %v7772_v50, 16  ;;  %v4531_v62 = vrot.slane %v4530_v56, 4  ;;  %v4539_v27 = vrot.slane %v4537_v13, 4  ;;  %v4187_v9 = vld [vmem:[#allocation2 + $0x84] sm:$0xf]  ;;  %v3479_v14 = vpop.f32.mrf.mxu0 }
 0x273   : > { %v4545_v19 = vrot.slane %v4543_v18, 5  ;;  %3590 = vst.msk [vmem:[#allocation4 + $0xc0] sm:$0xff] %vm2198_vm1, %v3558_v28  ;;  %v3965_v53 = vsel %vm8231_vm9, %v3957_v20, %v3964_v49  ;;  %v4185_v40 = vsel %vm8153_vm3, %v3966_v45, %v4184_v55  ;;  %v3620_v57 = vld [vmem:[#allocation4 + $0xb0] sm:$0xff]  ;;  %v4548_v60 = vshrl.u32 %v4325_v46, 16  ;;  %v4248_v37 = vld [vmem:[#allocation2 + $0x70] sm:$0xf] }
 0x274   : > { %v9581_v54 = vrot.slane %v3968_v33, 7  ;;  %4183 = vst.msk [vmem:[#allocation2 + $0x7c] sm:$0xf] %vm224_vm0, %v3965_v53  ;;  %4186 = vst [vmem:[#allocation2 + $0x80] sm:$0x1] %v4185_v40  ;;  %v3690_v41 = vmax.f32 %v3658_v35, 0.0  ;;  %v3659_v61 = vadd.f32 %v9532_v4, %v3620_v57  ;;  %v4536_v5 = vsel %vm8263_vm11, %v4531_v62, %v4535_v36  ;;  %v3481_v29 = vpop.f32.mrf.mxu0 }
 0x275   : > { %v4540_v8 = vor.u32 %v4539_v27, %v4535_v36  ;;  %4815 = vrot.lane.b32.xlu0 %v4536_v5, %s8065_s23  ;;  %v4550_v17 = vrot.slane %v4548_v60, 4  ;;  %v4551_v20 = vshll.u32 %v4325_v46, 16  ;;  %4284 = vst.msk [vmem:[#allocation3 + $0x98] sm:$0xf] %vm224_vm0, %v4248_v37  ;;  %v4557_v42 = vshll.u32 %v4326_v59, 16  ;;  %v3527_v24 = vld [vmem:[#allocation4 + $0xc8] sm:$0xff] }
 0x276   : > { %v3973_v11 = vor.u32 %v3971_v30, %v9581_v54  ;;  %v3974_v15 = vrot.slane %v9581_v54, 4  ;;  %v7773_v21 = vpack.c.bf16 %v3690_v41, %v3690_v41  ;;  %v3691_v23 = vmax.f32 %v3659_v61, 0.0  ;;  %v9599_v52 = vpop.f32.mrf.mxu0  ;;  %v4191_v49 = vld [vmem:[#allocation2 + $0x8c] sm:$0x1]  ;;  %v4329_v61 = vld [vmem:[#allocation2 + $0x70] sm:$0xf] }
 0x277   : > { %v4541_v2 = vrot.slane %v4540_v8, 4  ;;  %v4553_v32 = vrot.slane %v4551_v20, 5  ;;  %v4561_v3 = vshrl.u32 %v4326_v59, 16  ;;  %v3559_v34 = vadd.f32 %v3527_v24, %v3474_v26  ;;  %v4249_v36 = vld [vmem:[#allocation2 + $0x78] sm:$0xf]  ;;  %v3528_v40 = vld [vmem:[#allocation4 + $0xd0] sm:$0xff] }
 0x278   : > { %v4188_v47 = vsel %vm8237_vm10, %v3973_v11, %v4187_v9  ;;  %v3976_v38 = vshrl.u32 %v7773_v21, 16  ;;  %v3979_v10 = vshll.u32 %v7773_v21, 16  ;;  %v7774_v22 = vpack.c.bf16 %v3691_v23, %v3691_v23  ;;  %4285 = vst.msk [vmem:[#allocation3 + $0xa0] sm:$0xf] %vm224_vm0, %v4249_v36  ;;  %v3621_v13 = vld [vmem:[#allocation4 + $0xb8] sm:$0xff]  ;;  %v3484_v26 = vpop.f32.mrf.mxu0 }
 0x279   : > { %4189 = vst [vmem:[#allocation2 + $0x84] sm:$0xf] %v4188_v47  ;;  %v4546_v50 = vsel %vm8263_vm11, %v4541_v2, %v4545_v19  ;;  %v4554_v48 = vor.u32 %v4553_v32, %v4550_v17  ;;  %v4559_v55 = vrot.slane %v4557_v42, 5  ;;  %3591 = vst.msk [vmem:[#allocation4 + $0xc8] sm:$0xff] %vm2198_vm1, %v3559_v34  ;;  %v4563_v6 = vrot.slane %v4561_v3, 4 }
 0x27a   : > { %4817 = vrot.lane.b32.xlu1 %v4546_v50, %s8065_s23  ;;  %v3622_v16 = vld [vmem:[#allocation4 + $0xc0] sm:$0xff]  ;;  %v4567_v56 = vshll.u32 %v4327_v25, 16  ;;  %v3978_v39 = vrot.slane %v3976_v38, 7  ;;  %v3985_v18 = vshrl.u32 %v7774_v22, 16  ;;  %v3988_v28 = vshll.u32 %v7774_v22, 16  ;;  %v3487_v54 = vpop.f32.mrf.mxu0 }
 0x27b   : > { %v3660_v46 = vadd.f32 %v9532_v4, %v3621_v13  ;;  %v3661_v45 = vadd.f32 %v9532_v4, %v3622_v16  ;;  %v4555_v33 = vrot.slane %v4554_v48, 4  ;;  %v4564_v30 = vor.u32 %v4563_v6, %v4559_v55  ;;  %v4328_v62 = vld [vmem:[#allocation2 + $0x6c] sm:$0xf]  ;;  %v4250_v57 = vld [vmem:[#allocation2 + $0x7c] sm:$0xf]  ;;  %v3529_v48 = vld [vmem:[#allocation4 + $0xd8] sm:$0xff] }
 0x27c   : > { %v4569_v35 = vrot.slane %v4567_v56, 5  ;;  %v3981_v27 = vor.u32 %v3979_v10, %v3978_v39  ;;  %v3983_v19 = vrot.slane %v3978_v39, 4  ;;  %v9606_v51 = vrot.slane %v3985_v18, 7  ;;  %v4194_v59 = vld [vmem:[#allocation2 + $0x90] sm:$0xf]  ;;  %v3489_v17 = vpop.f32.mrf.mxu0 }
 0x27d   : > { %v3692_v53 = vmax.f32 %v3660_v46, 0.0  ;;  %v3693_v60 = vmax.f32 %v3661_v45, 0.0  ;;  %v4560_v12 = vsel %vm8263_vm11, %v4555_v33, %v4559_v55  ;;  %v4565_v9 = vrot.slane %v4564_v30, 4  ;;  %4286 = vst.msk [vmem:[#allocation3 + $0xa8] sm:$0xf] %vm224_vm0, %v4250_v57 }
 0x27e   : > { %v3560_v41 = vadd.f32 %v3528_v40, %v3479_v14  ;;  %v3982_v5 = vsel %vm8231_vm9, %v3974_v15, %v3981_v27  ;;  %v4192_v8 = vsel %vm8153_vm3, %v3983_v19, %v4191_v49  ;;  %v3990_v37 = vor.u32 %v3988_v28, %v9606_v51  ;;  %4819 = vrot.lane.b32.xlu0 %v4560_v12, %s8065_s23  ;;  %v7969_v14 = vld [vmem:[%s10411_s3 + $0xc8] sm:$0xff]   ;;  %v9628_v32 = vpop.f32.mrf.mxu0  ;;  %v4330_v10 = vld [vmem:[#allocation2 + $0x74] sm:$0x1]  ;;  %v3530_v28 = vld [vmem:[#allocation4 + $0xe0] sm:$0xff] }
 0x27f   : > { %v3991_v11 = vrot.slane %v9606_v51, 4  ;;  %4190 = vst.msk [vmem:[#allocation2 + $0x88] sm:$0xf] %vm224_vm0, %v3982_v5  ;;  %4193 = vst [vmem:[#allocation2 + $0x8c] sm:$0x1] %v4192_v8  ;;  %v7775_v20 = vpack.c.bf16 %v3692_v53, %v3692_v53  ;;  %v7776_v21 = vpack.c.bf16 %v3693_v60, %v3693_v60  ;;  %v4570_v15 = vsel %vm8263_vm11, %v4565_v9, %v4569_v35 }
 0x280   : > { %3592 = vst.msk [vmem:[#allocation4 + $0xd0] sm:$0xff] %vm2198_vm1, %v3560_v41  ;;  %v4572_v23 = vshrl.u32 %v4328_v62, 16  ;;  %v4251_v2 = vld [vmem:[#allocation2 + $0x84] sm:$0xf]  ;;  %v4195_v42 = vsel %vm8237_vm10, %v3990_v37, %v4194_v59  ;;  %4821 = vrot.lane.b32.xlu1 %v4570_v15, %s8065_s23  ;;  %v4575_v25 = vshll.u32 %v4328_v62, 16  ;;  %v4581_v29 = vshll.u32 %v4329_v61, 16  ;;  %6662 = vmatpush1.bf16.msra.mxu1 %v7969_v14  ;;  %v3492_v55 = vpop.f32.mrf.mxu0 }
 0x281   : > { %v3623_v24 = vld [vmem:[#allocation4 + $0xc8] sm:$0xff]  ;;  %v4585_v47 = vshrl.u32 %v4329_v61, 16  ;;  %4287 = vst.msk [vmem:[#allocation3 + $0xb0] sm:$0xf] %vm224_vm0, %v4251_v2  ;;  %4196 = vst [vmem:[#allocation2 + $0x90] sm:$0xf] %v4195_v42  ;;  %6663 = vmatprep.subr.bf16.mxu1 %v8064_v0  ;;  %v3561_v39 = vadd.f32 %v3529_v48, %v9599_v52  ;;  %v3562_v30 = vadd.f32 %v3530_v28, %v3487_v54 }
 0x282   : > { %v3993_v3 = vshrl.u32 %v7775_v20, 16  ;;  %v3996_v34 = vshll.u32 %v7775_v20, 16  ;;  %v4002_v36 = vshrl.u32 %v7776_v21, 16  ;;  %v4005_v38 = vshll.u32 %v7776_v21, 16  ;;  %v4198_v46 = vld [vmem:[#allocation2 + $0x98] sm:$0x1]  ;;  %v9636_v35 = vpop.f32.mrf.mxu0 }
 0x283   : > { %v3662_v22 = vadd.f32 %v9532_v4, %v3623_v24  ;;  %v4574_v50 = vrot.slane %v4572_v23, 4  ;;  %v4577_v13 = vrot.slane %v4575_v25, 5  ;;  %v4583_v16 = vrot.slane %v4581_v29, 5  ;;  %v4201_v26 = vld [vmem:[#allocation2 + $0x9c] sm:$0xf]  ;;  %3593 = vst.msk [vmem:[#allocation4 + $0xd8] sm:$0xff] %vm2198_vm1, %v3561_v39 }
 0x284   : > { %v3995_v6 = vrot.slane %v3993_v3, 7  ;;  %v9633_v56 = vrot.slane %v4002_v36, 7  ;;  %v4587_v18 = vrot.slane %v4585_v47, 4  ;;  %v4591_v33 = vshll.u32 %v4330_v10, 16  ;;  %v4331_v53 = vld [vmem:[#allocation2 + $0x78] sm:$0xf]  ;;  %v3497_v54 = vpop.f32.mrf.mxu0 }
 0x285   : > { %v3694_v49 = vmax.f32 %v3662_v22, 0.0  ;;  %v4578_v45 = vor.u32 %v4577_v13, %v4574_v50  ;;  %3594 = vst.msk [vmem:[#allocation4 + $0xe0] sm:$0xff] %vm2198_vm1, %v3562_v30  ;;  %v4332_v12 = vld [vmem:[#allocation2 + $0x7c] sm:$0xf]  ;;  %v4333_v21 = vld [vmem:[#allocation2 + $0x80] sm:$0x1] }
 0x286   : > { %v3998_v62 = vor.u32 %v3996_v34, %v3995_v6  ;;  %v4000_v27 = vrot.slane %v3995_v6, 4  ;;  %v4007_v19 = vor.u32 %v4005_v38, %v9633_v56  ;;  %v4008_v51 = vrot.slane %v9633_v56, 4  ;;  %v4252_v8 = vld [vmem:[#allocation2 + $0x88] sm:$0xf]  ;;  %v9652_v15 = vpop.f32.mrf.mxu0  ;;  %v4205_v38 = vld [vmem:[#allocation2 + $0xa4] sm:$0x1] }
 0x287   : > { %v7777_v52 = vpack.c.bf16 %v3694_v49, %v3694_v49  ;;  %v3624_v40 = vld [vmem:[#allocation4 + $0xd0] sm:$0xff]  ;;  %v4579_v57 = vrot.slane %v4578_v45, 4  ;;  %v4588_v59 = vor.u32 %v4587_v18, %v4583_v16  ;;  %v4593_v60 = vrot.slane %v4591_v33, 5  ;;  %4288 = vst.msk [vmem:[#allocation3 + $0xb8] sm:$0xf] %vm224_vm0, %v4252_v8  ;;  %v7973_v54 = vld [vmem:[%s10411_s3 + $0xc0] sm:$0xff]  }
 0x288   : > { %v3999_v9 = vsel %vm8231_vm9, %v3991_v11, %v3998_v62  ;;  %v4199_v41 = vsel %vm8153_vm3, %v4000_v27, %v4198_v46  ;;  %v4202_v61 = vsel %vm8237_vm10, %v4007_v19, %v4201_v26  ;;  %v3663_v5 = vadd.f32 %v9532_v4, %v3624_v40  ;;  %v3531_v11 = vld [vmem:[#allocation4 + $0xe8] sm:$0xff]  ;;  %v4253_v25 = vld [vmem:[#allocation2 + $0x90] sm:$0xf]  ;;  %v3500_v36 = vpop.f32.mrf.mxu0  ;;  %v4208_v33 = vld [vmem:[#allocation2 + $0xa8] sm:$0xf]  ;;  %6664 = vmatpush1.bf16.msra.mxu1 %v7973_v54 }
 0x289   : > { %4197 = vst.msk [vmem:[#allocation2 + $0x94] sm:$0xf] %vm224_vm0, %v3999_v9  ;;  %4200 = vst [vmem:[#allocation2 + $0x98] sm:$0x1] %v4199_v41  ;;  %v4010_v37 = vshrl.u32 %v7777_v52, 16  ;;  %v4013_v17 = vshll.u32 %v7777_v52, 16  ;;  %v4584_v14 = vsel %vm8263_vm11, %v4579_v57, %v4583_v16  ;;  %v3563_v34 = vadd.f32 %v3531_v11, %v9628_v32  ;;  %6673 = vmatprep.subr.bf16.mxu1 %v8064_v0 }
 0x28a   : > { %4203 = vst [vmem:[#allocation2 + $0x9c] sm:$0xf] %v4202_v61  ;;  %v4589_v20 = vrot.slane %v4588_v59, 4  ;;  %v3695_v23 = vmax.f32 %v3663_v5, 0.0  ;;  %4823 = vrot.lane.b32.xlu0 %v4584_v14, %s8065_s23  ;;  %v4596_v2 = vshrl.u32 %v4331_v53, 16  ;;  %v4599_v42 = vshll.u32 %v4331_v53, 16 }
 0x28b   : > { %v4605_v24 = vshll.u32 %v4332_v12, 16  ;;  %v4012_v29 = vrot.slane %v4010_v37, 7  ;;  %v4609_v3 = vshrl.u32 %v4332_v12, 16  ;;  %4289 = vst.msk [vmem:[#allocation3 + $0xc0] sm:$0xf] %vm224_vm0, %v4253_v25  ;;  %v3625_v55 = vld [vmem:[#allocation4 + $0xd8] sm:$0xff] }
 0x28c   : > { %v4594_v47 = vsel %vm8263_vm11, %v4589_v20, %v4593_v60  ;;  %v7778_v10 = vpack.c.bf16 %v3695_v23, %v3695_v23  ;;  %v4598_v22 = vrot.slane %v4596_v2, 4  ;;  %v4601_v50 = vrot.slane %v4599_v42, 5  ;;  %3595 = vst.msk [vmem:[#allocation4 + $0xe8] sm:$0xff] %vm2198_vm1, %v3563_v34  ;;  %v3626_v28 = vld [vmem:[#allocation4 + $0xe0] sm:$0xff]  ;;  %v4334_v26 = vld [vmem:[#allocation2 + $0x84] sm:$0xf] }
 0x28d   : > { %4825 = vrot.lane.b32.xlu1 %v4594_v47, %s8065_s23  ;;  %v4607_v13 = vrot.slane %v4605_v24, 5  ;;  %v4015_v16 = vor.u32 %v4013_v17, %v4012_v29  ;;  %v4017_v48 = vrot.slane %v4012_v29, 4  ;;  %v4611_v6 = vrot.slane %v4609_v3, 4  ;;  %v3532_v40 = vld [vmem:[#allocation4 + $0xf0] sm:$0xff]  ;;  %v3533_v34 = vld [vmem:[#allocation4 + $0xf8] sm:$0xff] }
 0x28e   : > { %v4615_v56 = vshll.u32 %v4333_v21, 16  ;;  %v4019_v39 = vshrl.u32 %v7778_v10, 16  ;;  %v4022_v18 = vshll.u32 %v7778_v10, 16  ;;  %v3664_v32 = vadd.f32 %v9532_v4, %v3625_v55  ;;  %v4335_v60 = vld [vmem:[#allocation2 + $0x88] sm:$0xf] }
 0x28f   : > { %v4602_v46 = vor.u32 %v4601_v50, %v4598_v22  ;;  %v4016_v49 = vsel %vm8231_vm9, %v4008_v51, %v4015_v16  ;;  %v4206_v45 = vsel %vm8153_vm3, %v4017_v48, %v4205_v38  ;;  %v3665_v30 = vadd.f32 %v9532_v4, %v3626_v28  ;;  %v4336_v24 = vld [vmem:[#allocation2 + $0x8c] sm:$0x1]  ;;  %v4337_v36 = vld [vmem:[#allocation2 + $0x90] sm:$0xf] }
 0x290   : > { %v4612_v62 = vor.u32 %v4611_v6, %v4607_v13  ;;  %4204 = vst.msk [vmem:[#allocation2 + $0xa0] sm:$0xf] %vm224_vm0, %v4016_v49  ;;  %4207 = vst [vmem:[#allocation2 + $0xa4] sm:$0x1] %v4206_v45  ;;  %v9669_v27 = vrot.slane %v4019_v39, 7  ;;  %v3696_v19 = vmax.f32 %v3664_v32, 0.0  ;;  %v3564_v51 = vadd.f32 %v3532_v40, %v9636_v35 }
 0x291   : > { %v4603_v53 = vrot.slane %v4602_v46, 4  ;;  %v4617_v52 = vrot.slane %v4615_v56, 5  ;;  %v3697_v57 = vmax.f32 %v3665_v30, 0.0  ;;  %v4620_v12 = vshrl.u32 %v4334_v26, 16  ;;  %v4254_v8 = vld [vmem:[#allocation2 + $0x94] sm:$0xf] }
 0x292   : > { %v4613_v59 = vrot.slane %v4612_v62, 4  ;;  %v4024_v9 = vor.u32 %v4022_v18, %v9669_v27  ;;  %v4025_v41 = vrot.slane %v9669_v27, 4  ;;  %v7779_v61 = vpack.c.bf16 %v3696_v19, %v3696_v19  ;;  %3596 = vst.msk [vmem:[#allocation4 + $0xf0] sm:$0xff] %vm2198_vm1, %v3564_v51  ;;  %v4255_v20 = vld [vmem:[#allocation2 + $0x9c] sm:$0xf] }
 0x293   : > { %v4608_v5 = vsel %vm8263_vm11, %v4603_v53, %v4607_v13  ;;  %v7780_v37 = vpack.c.bf16 %v3697_v57, %v3697_v57  ;;  %v4622_v17 = vrot.slane %v4620_v12, 4  ;;  %v4623_v14 = vshll.u32 %v4334_v26, 16  ;;  %4290 = vst.msk [vmem:[#allocation3 + $0xc8] sm:$0xf] %vm224_vm0, %v4254_v8  ;;  %v3627_v2 = vld [vmem:[#allocation4 + $0xe8] sm:$0xff] }
 0x294   : > { %4827 = vrot.lane.b32.xlu0 %v4608_v5, %s8065_s23  ;;  %v4618_v35 = vsel %vm8263_vm11, %v4613_v59, %v4617_v52  ;;  %v4209_v11 = vsel %vm8237_vm10, %v4024_v9, %v4208_v33  ;;  %v4027_v21 = vshrl.u32 %v7779_v61, 16  ;;  %v4030_v23 = vshll.u32 %v7779_v61, 16  ;;  %4291 = vst.msk [vmem:[#allocation3 + $0xd0] sm:$0xf] %vm224_vm0, %v4255_v20  ;;  %v4212_v13 = vld [vmem:[#allocation2 + $0xb0] sm:$0x1] }
 0x295   : > { %4829 = vrot.lane.b32.xlu1 %v4618_v35, %s8065_s23  ;;  %v4629_v42 = vshll.u32 %v4335_v60, 16  ;;  %4210 = vst [vmem:[#allocation2 + $0xa8] sm:$0xf] %v4209_v11  ;;  %v4036_v25 = vshrl.u32 %v7780_v37, 16  ;;  %v4039_v29 = vshll.u32 %v7780_v37, 16  ;;  %v3666_v47 = vadd.f32 %v9532_v4, %v3627_v2  ;;  %v7977_v52 = vld [vmem:[%s10411_s3 + $0x118] sm:$0xff]  }
 0x296   : > { %v4625_v3 = vrot.slane %v4623_v14, 5  ;;  %v4029_v38 = vrot.slane %v4027_v21, 7  ;;  %v4633_v22 = vshrl.u32 %v4335_v60, 16  ;;  %v3565_v50 = vadd.f32 %v3533_v34, %v9652_v15  ;;  %v4215_v18 = vld [vmem:[#allocation2 + $0xb4] sm:$0xf]  ;;  %6674 = vmatpush2.bf16.msra.mxu1 %v7977_v52 }
 0x297   : > { %v4631_v10 = vrot.slane %v4629_v42, 5  ;;  %v9691_v16 = vrot.slane %v4036_v25, 7  ;;  %v3698_v48 = vmax.f32 %v3666_v47, 0.0  ;;  %v4639_v6 = vshll.u32 %v4336_v24, 16  ;;  %v4256_v15 = vld [vmem:[#allocation2 + $0xa0] sm:$0xf]  ;;  %6675 = vmatprep.subr.bf16.mxu1 %v8064_v0 }
 0x298   : > { %v4626_v55 = vor.u32 %v4625_v3, %v4622_v17  ;;  %v4032_v56 = vor.u32 %v4030_v23, %v4029_v38  ;;  %v4034_v39 = vrot.slane %v4029_v38, 4  ;;  %3597 = vst.msk [vmem:[#allocation4 + $0xf8] sm:$0xff] %vm2198_vm1, %v3565_v50  ;;  %v4635_v32 = vrot.slane %v4633_v22, 4  ;;  %v4338_v53 = vld [vmem:[#allocation2 + $0x94] sm:$0xf] }
 0x299   : > { %v4644_v28 = vshrl.u32 %v4337_v36, 16  ;;  %v4041_v46 = vor.u32 %v4039_v29, %v9691_v16  ;;  %v4042_v26 = vrot.slane %v9691_v16, 4  ;;  %v7781_v49 = vpack.c.bf16 %v3698_v48, %v3698_v48  ;;  %v3628_v62 = vld [vmem:[#allocation4 + $0xf0] sm:$0xff]  ;;  %4292 = vst.msk [vmem:[#allocation3 + $0xd8] sm:$0xf] %vm224_vm0, %v4256_v15 }
 0x29a   : > { %v4627_v45 = vrot.slane %v4626_v55, 4  ;;  %v4033_v33 = vsel %vm8231_vm9, %v4025_v41, %v4032_v56  ;;  %v4213_v30 = vsel %vm8153_vm3, %v4034_v39, %v4212_v13  ;;  %v4636_v27 = vor.u32 %v4635_v32, %v4631_v10  ;;  %v4339_v60 = vld [vmem:[#allocation2 + $0x98] sm:$0x1]  ;;  %v4340_v12 = vld [vmem:[#allocation2 + $0x9c] sm:$0xf] }
 0x29b   : > { %v4641_v19 = vrot.slane %v4639_v6, 5  ;;  %4211 = vst.msk [vmem:[#allocation2 + $0xac] sm:$0xf] %vm224_vm0, %v4033_v33  ;;  %4214 = vst [vmem:[#allocation2 + $0xb0] sm:$0x1] %v4213_v30  ;;  %v4216_v40 = vsel %vm8237_vm10, %v4041_v46, %v4215_v18  ;;  %v4044_v57 = vshrl.u32 %v7781_v49, 16  ;;  %v3667_v51 = vadd.f32 %v9532_v4, %v3628_v62 }
 0x29c   : > { %v4047_v59 = vshll.u32 %v7781_v49, 16  ;;  %4217 = vst [vmem:[#allocation2 + $0xb4] sm:$0xf] %v4216_v40  ;;  %v4632_v54 = vsel %vm8263_vm11, %v4627_v45, %v4631_v10  ;;  %v4637_v9 = vrot.slane %v4636_v27, 4  ;;  %v4646_v41 = vrot.slane %v4644_v28, 4  ;;  %v7984_v62 = vld [vmem:[%s10411_s3 + $0x110] sm:$0xff]  }
 0x29d   : > { %v4647_v61 = vshll.u32 %v4337_v36, 16  ;;  %v4046_v5 = vrot.slane %v4044_v57, 7  ;;  %v3699_v8 = vmax.f32 %v3667_v51, 0.0  ;;  %4831 = vrot.lane.b32.xlu0 %v4632_v54, %s8065_s23  ;;  %v4653_v37 = vshll.u32 %v4338_v53, 16  ;;  %v4257_v17 = vld [vmem:[#allocation2 + $0xa8] sm:$0xf]  ;;  %6676 = vmatpush2.bf16.msra.mxu1 %v7984_v62 }
 0x29e   : > { %v4657_v35 = vshrl.u32 %v4338_v53, 16  ;;  %v4219_v14 = vld [vmem:[#allocation2 + $0xbc] sm:$0x1]  ;;  %v4642_v20 = vsel %vm8263_vm11, %v4637_v9, %v4641_v19  ;;  %v4663_v21 = vshll.u32 %v4339_v60, 16  ;;  %v4668_v23 = vshrl.u32 %v4340_v12, 16  ;;  %6677 = vmatprep.subr.bf16.mxu1 %v8064_v0 }
 0x29f   : > { %v4649_v11 = vrot.slane %v4647_v61, 5  ;;  %4293 = vst.msk [vmem:[#allocation3 + $0xe0] sm:$0xf] %vm224_vm0, %v4257_v17  ;;  %v4049_v2 = vor.u32 %v4047_v59, %v4046_v5  ;;  %v4051_v42 = vrot.slane %v4046_v5, 4  ;;  %v7782_v24 = vpack.c.bf16 %v3699_v8, %v3699_v8  ;;  %v3629_v25 = vld [vmem:[#allocation4 + $0xf8] sm:$0xff]  ;;  %4833 = vrot.lane.b32.xlu1 %v4642_v20, %s8065_s23 }
 0x2a0   : > { %v4655_v29 = vrot.slane %v4653_v37, 5  ;;  %v3668_v47 = vadd.f32 %v9532_v4, %v3629_v25  ;;  %v4659_v34 = vrot.slane %v4657_v35, 4  ;;  %v4665_v36 = vrot.slane %v4663_v21, 5  ;;  %v4341_v38 = vld [vmem:[#allocation2 + $0xa0] sm:$0xf] }
 0x2a1   : > { %v4650_v3 = vor.u32 %v4649_v11, %v4646_v41  ;;  %v4050_v10 = vsel %vm8231_vm9, %v4042_v26, %v4049_v2  ;;  %v4220_v22 = vsel %vm8153_vm3, %v4051_v42, %v4219_v14  ;;  %v4053_v50 = vshrl.u32 %v7782_v24, 16  ;;  %v4342_v16 = vld [vmem:[#allocation2 + $0xa4] sm:$0x1]  ;;  %v4222_v48 = vld [vmem:[#allocation2 + $0xc0] sm:$0xf] }
 0x2a2   : > { %v4056_v13 = vshll.u32 %v7782_v24, 16  ;;  %4218 = vst.msk [vmem:[#allocation2 + $0xb8] sm:$0xf] %vm224_vm0, %v4050_v10  ;;  %4221 = vst [vmem:[#allocation2 + $0xbc] sm:$0x1] %v4220_v22  ;;  %v3700_v55 = vmax.f32 %v3668_v47, 0.0  ;;  %v4660_v4 = vor.u32 %v4659_v34, %v4655_v29 }
 0x2a3   : > { %v4651_v6 = vrot.slane %v4650_v3, 4  ;;  %v4670_v56 = vrot.slane %v4668_v23, 4  ;;  %v4343_v39 = vld [vmem:[#allocation2 + $0xa8] sm:$0xf]  ;;  %v4055_v18 = vrot.slane %v4053_v50, 7  ;;  %v4671_v32 = vshll.u32 %v4340_v12, 16 }
 0x2a4   : > { %v4677_v28 = vshll.u32 %v4341_v38, 16  ;;  %v4681_v46 = vshrl.u32 %v4341_v38, 16  ;;  %v4344_v26 = vld [vmem:[#allocation2 + $0xac] sm:$0xf]  ;;  %v7783_v49 = vpack.c.bf16 %v3700_v55, %v3700_v55  ;;  %v4661_v15 = vrot.slane %v4660_v4, 4 }
 0x2a5   : > { %v4656_v45 = vsel %vm8263_vm11, %v4651_v6, %v4655_v29  ;;  %v4687_v33 = vshll.u32 %v4342_v16, 16  ;;  %v4345_v30 = vld [vmem:[#allocation2 + $0xb0] sm:$0x1]  ;;  %v4058_v27 = vor.u32 %v4056_v13, %v4055_v18  ;;  %v4059_v19 = vrot.slane %v4055_v18, 4  ;;  %v4258_v40 = vld [vmem:[#allocation2 + $0xac] sm:$0xf]  ;;  %v4792_v20 = vpop.permute.xlu0 %4791 }
 0x2a6   : > { %4835 = vrot.lane.b32.xlu0 %v4656_v45, %s8065_s23  ;;  %v4673_v53 = vrot.slane %v4671_v32, 5  ;;  %v4679_v52 = vrot.slane %v4677_v28, 5  ;;  %v4061_v57 = vshrl.u32 %v7783_v49, 16  ;;  %v4064_v59 = vshll.u32 %v7783_v49, 16  ;;  %4294 = vst.msk [vmem:[#allocation3 + $0xe8] sm:$0xf] %vm224_vm0, %v4258_v40 }
 0x2a7   : > { %v4666_v51 = vsel %vm8263_vm11, %v4661_v15, %v4665_v36  ;;  %v4683_v60 = vrot.slane %v4681_v46, 4  ;;  %v4259_v12 = vld [vmem:[#allocation2 + $0xb4] sm:$0xf]  ;;  %v4223_v54 = vsel %vm8237_vm10, %v4058_v27, %v4222_v48  ;;  %v4226_v9 = vld [vmem:[#allocation2 + $0xc8] sm:$0x1]  ;;  %v4689_v61 = vrot.slane %v4687_v33, 5 }
 0x2a8   : > { %4837 = vrot.lane.b32.xlu1 %v4666_v51, %s8065_s23  ;;  %v4674_v41 = vor.u32 %v4673_v53, %v4670_v56  ;;  %v4692_v5 = vshrl.u32 %v4343_v39, 16  ;;  %4295 = vst.msk [vmem:[#allocation3 + $0xf0] sm:$0xf] %vm224_vm0, %v4259_v12  ;;  %4224 = vst [vmem:[#allocation2 + $0xc0] sm:$0xf] %v4223_v54  ;;  %v4063_v8 = vrot.slane %v4061_v57, 7 }
 0x2a9   : > { %v4684_v37 = vor.u32 %v4683_v60, %v4679_v52  ;;  %v4695_v35 = vshll.u32 %v4343_v39, 16  ;;  %v4701_v17 = vshll.u32 %v4344_v26, 16  ;;  %v4346_v14 = vld [vmem:[#allocation2 + $0xb4] sm:$0xf]  ;;  %v4705_v21 = vshrl.u32 %v4344_v26, 16  ;;  %v7988_v55 = vld [vmem:[%s10411_s3 + $0x108] sm:$0xff]  }
 0x2aa   : > { %v4675_v11 = vrot.slane %v4674_v41, 4  ;;  %v4694_v63 = vrot.slane %v4692_v5, 4  ;;  %v4711_v23 = vshll.u32 %v4345_v30, 16  ;;  %v4347_v2 = vld [vmem:[#allocation2 + $0xb8] sm:$0xf]  ;;  %v4066_v24 = vor.u32 %v4064_v59, %v4063_v8  ;;  %6678 = vmatpush2.bf16.msra.mxu1 %v7988_v55 }
 0x2ab   : > { %4897 = vst.msk [vmem:[#allocation3 + $0x10] sm:$0xf] %vm1580_vm15, %v4792_v20  ;;  %v4935_v42 = vld [vmem:[#allocation2 + $0x10] sm:$0xf]  ;;  %v4068_v25 = vrot.slane %v4063_v8, 4  ;;  %v4685_v29 = vrot.slane %v4684_v37, 4  ;;  %v4794_v28 = vpop.permute.xlu1 %4793  ;;  %6679 = vmatprep.subr.bf16.mxu1 %v8064_v0 }
 0x2ac   : > { %v4697_v47 = vrot.slane %v4695_v35, 5  ;;  %v4348_v3 = vld [vmem:[#allocation2 + $0xbc] sm:$0x1]  ;;  %v4680_v34 = vsel %vm8263_vm11, %v4675_v11, %v4679_v52  ;;  %v4703_v36 = vrot.slane %v4701_v17, 5  ;;  %v4707_v38 = vrot.slane %v4705_v21, 4 }
 0x2ad   : > { %v4713_v10 = vrot.slane %v4711_v23, 5  ;;  %v4260_v22 = vld [vmem:[#allocation2 + $0xb8] sm:$0xf]  ;;  %v4067_v50 = vsel %vm8231_vm9, %v4059_v19, %v4066_v24  ;;  %v4227_v13 = vsel %vm8153_vm3, %v4068_v25, %v4226_v9  ;;  %4839 = vrot.lane.b32.xlu0 %v4680_v34, %s8065_s23  ;;  %v4690_v16 = vsel %vm8263_vm11, %v4685_v29, %v4689_v61  ;;  %v4936_v56 = vld [vmem:[#allocation2 + $0x14] sm:$0x1] }
 0x2ae   : > { %v4698_v48 = vor.u32 %v4697_v47, %v4694_v63  ;;  %4296 = vst.msk [vmem:[#allocation3 + $0xf8] sm:$0xf] %vm224_vm0, %v4260_v22  ;;  %4225 = vst.msk [vmem:[#allocation2 + $0xc4] sm:$0xf] %vm224_vm0, %v4067_v50  ;;  %4841 = vrot.lane.b32.xlu1 %v4690_v16, %s8065_s23  ;;  %v4708_v58 = vor.u32 %v4707_v38, %v4703_v36  ;;  %v4716_v1 = vshrl.u32 %v4346_v14, 16  ;;  %v4719_v6 = vshll.u32 %v4346_v14, 16 }
 0x2af   : > { %4228 = vst [vmem:[#allocation2 + $0xc8] sm:$0x1] %v4227_v13  ;;  %v4725_v4 = vshll.u32 %v4347_v2, 16  ;;  %v4729_v18 = vshrl.u32 %v4347_v2, 16  ;;  %v4735_v32 = vshll.u32 %v4348_v3, 16  ;;  %v5048_v46 = vrot.slane %v4935_v42, 5 }
 0x2b0   : > { %v4699_v39 = vrot.slane %v4698_v48, 4  ;;  %v4937_v26 = vld [vmem:[#allocation2 + $0x18] sm:$0xe]  ;;  %v4938_v49 = vld [vmem:[#allocation2 + $0x1c] sm:$0xf]  ;;  %v4709_v45 = vrot.slane %v4708_v58, 4 }
 0x2b1   : > { %v4718_v15 = vrot.slane %v4716_v1, 4  ;;  %v4721_v33 = vrot.slane %v4719_v6, 5  ;;  %v4727_v30 = vrot.slane %v4725_v4, 5  ;;  %4898 = vst.msk [vmem:[#allocation3 + $0x18] sm:$0xf] %vm1580_vm15, %v4794_v28  ;;  %v4731_v19 = vrot.slane %v4729_v18, 4 }
 0x2b2   : > { %v4349_v62 = vld [vmem:[#allocation2 + $0xc0] sm:$0xf]  ;;  %v4704_v27 = vsel %vm8263_vm11, %v4699_v39, %v4703_v36  ;;  %v4737_v53 = vrot.slane %v4735_v32, 5  ;;  %v4714_v57 = vsel %vm8263_vm11, %v4709_v45, %v4713_v10  ;;  %v5049_v60 = vsel %vm8602_vm14, %v7468_v43, %v5048_v46  ;;  %v4940_v61 = vld [vmem:[#allocation2 + $0x24] sm:$0xe] }
 0x2b3   : > { %v4740_v52 = vshrl.u32 %v4349_v62, 16  ;;  %v4261_v40 = vld [vmem:[#allocation2 + $0xc0] sm:$0xf]  ;;  %4843 = vrot.lane.b32.xlu0 %v4704_v27, %s8065_s23  ;;  %v4722_v59 = vor.u32 %v4721_v33, %v4718_v15  ;;  %v4743_v51 = vshll.u32 %v4349_v62, 16  ;;  %4845 = vrot.lane.b32.xlu1 %v4714_v57, %s8065_s23  ;;  %v4732_v12 = vor.u32 %v4731_v19, %v4727_v30  ;;  %5203 = vst.msk [vmem:[#allocation3 + $0x14] sm:$0xf] %vm224_vm0, %v5049_v60 }
 0x2b4   : > { %v4939_v0 = vld [vmem:[#allocation2 + $0x20] sm:$0x1]  ;;  %4297 = vst.msk [vmem:[#allocation3 + $0x100] sm:$0xf] %vm224_vm0, %v4261_v40  ;;  %v5050_v9 = vrot.slane %v5048_v46, 4  ;;  %v5051_v41 = vrot.slane %v4936_v56, 5  ;;  %v4796_v34 = vpop.permute.xlu0 %4795 }
 0x2b5   : > { %v4742_v54 = vrot.slane %v4740_v52, 4  ;;  %v4723_v5 = vrot.slane %v4722_v59, 4  ;;  %v4745_v8 = vrot.slane %v4743_v51, 5  ;;  %v7469_v37 = vrot.slane %v4937_v26, 9  ;;  %v9766_v17 = vld [vmem:[#allocation2 + $0x2c] sm:$0x1] }
 0x2b6   : > { %v5055_v35 = vrot.slane %v4938_v49, 5  ;;  %v4733_v43 = vrot.slane %v4732_v12, 4  ;;  %v4350_v14 = vld [vmem:[#allocation2 + $0xc4] sm:$0xf]  ;;  %v4351_v20 = vld [vmem:[#allocation2 + $0xc8] sm:$0x1]  ;;  %v5052_v11 = vsel %vm8602_vm14, %v5050_v9, %v5051_v41 }
 0x2b7   : > { %v5058_v63 = vrot.slane %v4939_v0, 5  ;;  %v4943_v21 = vld [vmem:[#allocation2 + $0x30] sm:$0xe]  ;;  %v4944_v23 = vld [vmem:[#allocation2 + $0x34] sm:$0xf]  ;;  %v4728_v2 = vsel %vm8263_vm11, %v4723_v5, %v4727_v30  ;;  %v4746_v42 = vor.u32 %v4745_v8, %v4742_v54  ;;  %v4749_v24 = vshll.u32 %v4350_v14, 16 }
 0x2b8   : > { %v4753_v25 = vshrl.u32 %v4350_v14, 16  ;;  %5204 = vst.msk [vmem:[#allocation3 + $0x1c] sm:$0xf] %vm224_vm0, %v5052_v11  ;;  %v4262_v29 = vld [vmem:[#allocation2 + $0xc4] sm:$0xf]  ;;  %4847 = vrot.lane.b32.xlu0 %v4728_v2, %s8065_s23  ;;  %v4738_v3 = vsel %vm8263_vm11, %v4733_v43, %v4737_v53  ;;  %v4759_v36 = vshll.u32 %v4351_v20, 16  ;;  %v5056_v38 = vsel %vm8602_vm14, %v7469_v37, %v5055_v35  ;;  %v4798_v15 = vpop.permute.xlu1 %4797 }
 0x2b9   : > { %v7992_v47 = vld [vmem:[%s10411_s3 + $0x100] sm:$0xff]   ;;  %v5057_v10 = vrot.slane %v5055_v35, 4  ;;  %v4945_v22 = vld [vmem:[#allocation2 + $0x38] sm:$0x1]  ;;  %v4946_v50 = vld [vmem:[#allocation2 + $0x3c] sm:$0xe]  ;;  %4849 = vrot.lane.b32.xlu1 %v4738_v3, %s8065_s23 }
 0x2ba   : > { %4298 = vst.msk [vmem:[#allocation3 + $0x108] sm:$0xf] %vm224_vm0, %v4262_v29  ;;  %v4747_v13 = vrot.slane %v4746_v42, 4  ;;  %v4751_v16 = vrot.slane %v4749_v24, 5  ;;  %v4755_v48 = vrot.slane %v4753_v25, 4  ;;  %v7470_v55 = vrot.slane %v4940_v61, 9  ;;  %6680 = vmatpush2.bf16.msra.mxu1 %v7992_v47 }
 0x2bb   : > { %4899 = vst.msk [vmem:[#allocation3 + $0x20] sm:$0xf] %vm1580_vm15, %v4796_v34  ;;  %v4947_v58 = vld [vmem:[#allocation2 + $0x40] sm:$0xf]  ;;  %v4761_v1 = vrot.slane %v4759_v36, 5  ;;  %v5059_v6 = vsel %vm8602_vm14, %v5057_v10, %v5058_v63  ;;  %v5062_v4 = vrot.slane %v4941_v7, 5 }
 0x2bc   : > { %5205 = vst.msk [vmem:[#allocation3 + $0x24] sm:$0xf] %vm224_vm0, %v5056_v38  ;;  %v5065_v56 = vrot.slane %v9766_v17, 5  ;;  %v4948_v39 = vld [vmem:[#allocation2 + $0x44] sm:$0x1]  ;;  %v4752_v18 = vsel %vm8263_vm11, %v4747_v13, %v4751_v16  ;;  %v4756_v32 = vor.u32 %v4755_v48, %v4751_v16  ;;  %v7471_v28 = vrot.slane %v4943_v21, 9 }
 0x2bd   : > { %5206 = vst.msk [vmem:[#allocation3 + $0x2c] sm:$0xf] %vm224_vm0, %v5059_v6  ;;  %v5069_v46 = vrot.slane %v4944_v23, 5  ;;  %v4949_v26 = vld [vmem:[#allocation2 + $0x48] sm:$0xe]  ;;  %4851 = vrot.lane.b32.xlu0 %v4752_v18, %s8065_s23  ;;  %v5063_v33 = vsel %vm8602_vm14, %v7470_v55, %v5062_v4  ;;  %v5064_v30 = vrot.slane %v5062_v4, 4 }
 0x2be   : > { %v4950_v49 = vld [vmem:[#allocation2 + $0x4c] sm:$0xf]  ;;  %v9791_v45 = vld [vmem:[#allocation2 + $0x50] sm:$0x1]  ;;  %v5072_v62 = vrot.slane %v4945_v22, 5  ;;  %v7472_v27 = vrot.slane %v4946_v50, 9 }
 0x2bf   : > { %v4952_v19 = vld [vmem:[#allocation2 + $0x54] sm:$0xe]  ;;  %v4953_v53 = vld [vmem:[#allocation2 + $0x58] sm:$0xf]  ;;  %v9796_v52 = vld [vmem:[#allocation2 + $0x5c] sm:$0x1]  ;;  %v5070_v57 = vsel %vm8602_vm14, %v7471_v28, %v5069_v46  ;;  %v5066_v9 = vsel %vm8602_vm14, %v5064_v30, %v5065_v56 }
 0x2c0   : > { %v4757_v40 = vrot.slane %v4756_v32, 4  ;;  %4900 = vst.msk [vmem:[#allocation3 + $0x28] sm:$0xf] %vm1580_vm15, %v4798_v15  ;;  %v5071_v59 = vrot.slane %v5069_v46, 4  ;;  %v5076_v51 = vrot.slane %v4947_v58, 5  ;;  %v5079_v41 = vrot.slane %v4948_v39, 5  ;;  %v4800_v58 = vpop.permute.xlu0 %4799 }
 0x2c1   : > { %5207 = vst.msk [vmem:[#allocation3 + $0x34] sm:$0xf] %vm224_vm0, %v5063_v33  ;;  %v4955_v60 = vld [vmem:[#allocation2 + $0x60] sm:$0xe]  ;;  %v4956_v0 = vld [vmem:[#allocation2 + $0x64] sm:$0xf] }
 0x2c2   : > { %v7940_v12 = vld [vmem:[#allocation3 + $0x14] ss:$8 sps:$4 sm:$0xff]   ;;  %v7942_v54 = vld [vmem:[#allocation3 + $0x10] ss:$8 sps:$4 sm:$0xff]   ;;  %5209 = vst.msk [vmem:[#allocation3 + $0x44] sm:$0xf] %vm224_vm0, %v5070_v57  ;;  %v4762_v61 = vsel %vm8263_vm11, %v4757_v40, %v4761_v1  ;;  %v5073_v5 = vsel %vm8602_vm14, %v5071_v59, %v5072_v62  ;;  %v5077_v8 = vsel %vm8602_vm14, %v7472_v27, %v5076_v51  ;;  %v4802_v33 = vpop.permute.xlu1 %4801 }
 0x2c3   : > { %5208 = vst.msk [vmem:[#allocation3 + $0x3c] sm:$0xf] %vm224_vm0, %v5066_v9  ;;  %v5078_v37 = vrot.slane %v5076_v51, 4  ;;  %v4957_v35 = vld [vmem:[#allocation2 + $0x68] sm:$0x1]  ;;  %4853 = vrot.lane.b32.xlu1 %v4762_v61, %s8065_s23  ;;  %7530 = vmatprep.mubr.msk.bf16.mxu1 %vm2198_vm1, %v7940_v12  ;;  %v7473_v43 = vrot.slane %v4949_v26, 9 }
 0x2c4   : > { %v4958_v7 = vld [vmem:[#allocation2 + $0x6c] sm:$0xe]  ;;  %v4959_v17 = vld [vmem:[#allocation2 + $0x70] sm:$0xf]  ;;  %5210 = vst.msk [vmem:[#allocation3 + $0x4c] sm:$0xf] %vm224_vm0, %v5073_v5  ;;  %7613 = vmatprep.mubr.msk.bf16.mxu0 %vm2198_vm1, %v7940_v12  ;;  %5598 = vmatmul.mubr.bf16.gmra.mxu1 %v7942_v54 }
 0x2c5   : > { %5211 = vst.msk [vmem:[#allocation3 + $0x54] sm:$0xf] %vm224_vm0, %v5077_v8  ;;  %v5083_v14 = vrot.slane %v4950_v49, 5  ;;  %v5086_v20 = vrot.slane %v9791_v45, 5  ;;  %v4960_v11 = vld [vmem:[#allocation2 + $0x74] sm:$0x1]  ;;  %v5080_v63 = vsel %vm8602_vm14, %v5078_v37, %v5079_v41  ;;  %6104 = vmatmul.mubr.bf16.vlgmr.msra.gmra.mxu0 %v7942_v54 }
 0x2c6   : > { %v7474_v21 = vrot.slane %v4952_v19, 9  ;;  %v5090_v23 = vrot.slane %v4953_v53, 5  ;;  %v5093_v2 = vrot.slane %v9796_v52, 5  ;;  %v4961_v42 = vld [vmem:[#allocation2 + $0x78] sm:$0xe]  ;;  %v7475_v3 = vrot.slane %v4955_v60, 9 }
 0x2c7   : > { %v4962_v24 = vld [vmem:[#allocation2 + $0x7c] sm:$0xf]  ;;  %v9821_v25 = vld [vmem:[#allocation2 + $0x80] sm:$0x1]  ;;  %5212 = vst.msk [vmem:[#allocation3 + $0x5c] sm:$0xf] %vm224_vm0, %v5080_v63  ;;  %v5084_v29 = vsel %vm8602_vm14, %v7473_v43, %v5083_v14 }
 0x2c8   : > { %v5085_v47 = vrot.slane %v5083_v14, 4  ;;  %v5097_v34 = vrot.slane %v4956_v0, 5  ;;  %v4964_v36 = vld [vmem:[#allocation2 + $0x84] sm:$0xe]  ;;  %v4965_v38 = vld [vmem:[#allocation2 + $0x88] sm:$0xf]  ;;  %v5091_v22 = vsel %vm8602_vm14, %v7474_v21, %v5090_v23 }
 0x2c9   : > { %v9826_v10 = vld [vmem:[#allocation2 + $0x8c] sm:$0x1]  ;;  %5213 = vst.msk [vmem:[#allocation3 + $0x64] sm:$0xf] %vm224_vm0, %v5084_v29  ;;  %v5092_v50 = vrot.slane %v5090_v23, 4  ;;  %v7476_v13 = vrot.slane %v4958_v7, 9 }
 0x2ca   : > { %v5104_v16 = vrot.slane %v4959_v17, 5  ;;  %v4967_v48 = vld [vmem:[#allocation2 + $0x90] sm:$0xe]  ;;  %v4968_v55 = vld [vmem:[#allocation2 + $0x94] sm:$0xf]  ;;  %v5087_v6 = vsel %vm8602_vm14, %v5085_v47, %v5086_v20  ;;  %v5098_v4 = vsel %vm8602_vm14, %v7475_v3, %v5097_v34  ;;  %v5099_v56 = vrot.slane %v5097_v34, 4 }
 0x2cb   : > { %v9831_v1 = vld [vmem:[#allocation3 + $0x24] ss:$8 sps:$4 sm:$0xff]   ;;  %5215 = vst.msk [vmem:[#allocation3 + $0x74] sm:$0xf] %vm224_vm0, %v5091_v22  ;;  %v5100_v39 = vrot.slane %v4957_v35, 5  ;;  %v5094_v46 = vsel %vm8602_vm14, %v5092_v50, %v5093_v2  ;;  %v5107_v45 = vrot.slane %v4960_v11, 5 }
 0x2cc   : > { %v4969_v18 = vld [vmem:[#allocation2 + $0x98] sm:$0x1]  ;;  %v4970_v32 = vld [vmem:[#allocation2 + $0x9c] sm:$0xe]  ;;  %4901 = vst.msk [vmem:[#allocation3 + $0x30] sm:$0xf] %vm1580_vm15, %v4800_v58  ;;  %v5105_v26 = vsel %vm8602_vm14, %v7476_v13, %v5104_v16  ;;  %7531 = vmatprep.mubr.msk.bf16.mxu1 %vm2198_vm1, %v9831_v1  ;;  %7614 = vmatprep.mubr.msk.bf16.mxu0 %vm2198_vm1, %v9831_v1 }
 0x2cd   : > { %v9839_v28 = vld [vmem:[#allocation3 + $0x20] ss:$8 sps:$4 sm:$0xff]   ;;  %5214 = vst.msk [vmem:[#allocation3 + $0x6c] sm:$0xf] %vm224_vm0, %v5087_v6  ;;  %5217 = vst.msk [vmem:[#allocation3 + $0x84] sm:$0xf] %vm224_vm0, %v5098_v4  ;;  %v5101_v30 = vsel %vm8602_vm14, %v5099_v56, %v5100_v39 }
 0x2ce   : > { %v5106_v49 = vrot.slane %v5104_v16, 4  ;;  %v4971_v15 = vld [vmem:[#allocation2 + $0xa0] sm:$0xf]  ;;  %5216 = vst.msk [vmem:[#allocation3 + $0x7c] sm:$0xf] %vm224_vm0, %v5094_v46  ;;  %v7477_v62 = vrot.slane %v4961_v42, 9  ;;  %5606 = vmatmul.mubr.bf16.gmra.mxu1 %v9839_v28  ;;  %6112 = vmatmul.mubr.bf16.gmra.mxu0 %v9839_v28 }
 0x2cf   : > { %5219 = vst.msk [vmem:[#allocation3 + $0x94] sm:$0xf] %vm224_vm0, %v5105_v26  ;;  %v5111_v27 = vrot.slane %v4962_v24, 5  ;;  %v5114_v19 = vrot.slane %v9821_v25, 5  ;;  %v4972_v53 = vld [vmem:[#allocation2 + $0xa4] sm:$0x1] }
 0x2d0   : > { %v4973_v52 = vld [vmem:[#allocation2 + $0xa8] sm:$0xe]  ;;  %4902 = vst.msk [vmem:[#allocation3 + $0x38] sm:$0xf] %vm1580_vm15, %v4802_v33  ;;  %v5108_v40 = vsel %vm8602_vm14, %v5106_v49, %v5107_v45  ;;  %v7478_v57 = vrot.slane %v4964_v36, 9  ;;  %v5118_v59 = vrot.slane %v4965_v38, 5 }
 0x2d1   : > { %5218 = vst.msk [vmem:[#allocation3 + $0x8c] sm:$0xf] %vm224_vm0, %v5101_v30  ;;  %v5121_v51 = vrot.slane %v9826_v10, 5  ;;  %v4974_v60 = vld [vmem:[#allocation2 + $0xac] sm:$0xf]  ;;  %v5112_v0 = vsel %vm8602_vm14, %v7477_v62, %v5111_v27  ;;  %v5113_v12 = vrot.slane %v5111_v27, 4 }
 0x2d2   : > { %5220 = vst.msk [vmem:[#allocation3 + $0x9c] sm:$0xf] %vm224_vm0, %v5108_v40  ;;  %v7479_v54 = vrot.slane %v4967_v48, 9  ;;  %v5125_v9 = vrot.slane %v4968_v55, 5  ;;  %v4975_v41 = vld [vmem:[#allocation2 + $0xb0] sm:$0x1]  ;;  %v5119_v61 = vsel %vm8602_vm14, %v7478_v57, %v5118_v59 }
 0x2d3   : > { %5221 = vst.msk [vmem:[#allocation3 + $0xa4] sm:$0xf] %vm224_vm0, %v5112_v0  ;;  %v5120_v5 = vrot.slane %v5118_v59, 4  ;;  %v5128_v8 = vrot.slane %v4969_v18, 5  ;;  %v7480_v37 = vrot.slane %v4970_v32, 9  ;;  %v5115_v7 = vsel %vm8602_vm14, %v5113_v12, %v5114_v19  ;;  %v4804_v18 = vpop.permute.xlu0 %4803  ;;  %v4806_v32 = vpop.permute.xlu1 %4805 }
 0x2d4   : > { %v4976_v35 = vld [vmem:[#allocation2 + $0xb4] sm:$0xe]  ;;  %5223 = vst.msk [vmem:[#allocation3 + $0xb4] sm:$0xf] %vm224_vm0, %v5119_v61  ;;  %v5126_v17 = vsel %vm8602_vm14, %v7479_v54, %v5125_v9  ;;  %v5127_v43 = vrot.slane %v5125_v9, 4  ;;  %v5132_v14 = vrot.slane %v4971_v15, 5 }
 0x2d5   : > { %v4977_v20 = vld [vmem:[#allocation2 + $0xb8] sm:$0xf]  ;;  %v4978_v11 = vld [vmem:[#allocation2 + $0xbc] sm:$0x1]  ;;  %5222 = vst.msk [vmem:[#allocation3 + $0xac] sm:$0xf] %vm224_vm0, %v5115_v7  ;;  %v5122_v63 = vsel %vm8602_vm14, %v5120_v5, %v5121_v51 }
 0x2d6   : > { %5225 = vst.msk [vmem:[#allocation3 + $0xc4] sm:$0xf] %vm224_vm0, %v5126_v17  ;;  %v5135_v21 = vrot.slane %v4972_v53, 5  ;;  %v7481_v23 = vrot.slane %v4973_v52, 9  ;;  %v5139_v2 = vrot.slane %v4974_v60, 5  ;;  %v5129_v24 = vsel %vm8602_vm14, %v5127_v43, %v5128_v8 }
 0x2d7   : > { %v4353_v42 = vld [vmem:[#allocation2 + $0xd0] sm:$0xf]  ;;  %5224 = vst.msk [vmem:[#allocation3 + $0xbc] sm:$0xf] %vm224_vm0, %v5122_v63  ;;  %v5133_v25 = vsel %vm8602_vm14, %v7480_v37, %v5132_v14  ;;  %v5134_v29 = vrot.slane %v5132_v14, 4  ;;  %v5142_v47 = vrot.slane %v4975_v41, 5  ;;  %v4808_v44 = vpop.permute.xlu0 %4807 }
 0x2d8   : > { %v4354_v3 = vld [vmem:[#allocation2 + $0xd4] sm:$0x1]  ;;  %v4979_v34 = vld [vmem:[#allocation2 + $0xc0] sm:$0xe]  ;;  %v4980_v36 = vld [vmem:[#allocation2 + $0xc4] sm:$0xf]  ;;  %v5140_v38 = vsel %vm8602_vm14, %v7481_v23, %v5139_v2  ;;  %v4810_v37 = vpop.permute.xlu1 %4809 }
 0x2d9   : > { %5226 = vst.msk [vmem:[#allocation3 + $0xcc] sm:$0xf] %vm224_vm0, %v5129_v24  ;;  %5227 = vst.msk [vmem:[#allocation3 + $0xd4] sm:$0xf] %vm224_vm0, %v5133_v25  ;;  %v5141_v10 = vrot.slane %v5139_v2, 4  ;;  %v7482_v22 = vrot.slane %v4976_v35, 9  ;;  %v5136_v55 = vsel %vm8602_vm14, %v5134_v29, %v5135_v21 }
 0x2da   : > { %v5146_v50 = vrot.slane %v4977_v20, 5  ;;  %v4352_v13 = vld [vmem:[#allocation2 + $0xcc] sm:$0xf]  ;;  %v9889_v48 = vld [vmem:[#allocation3 + $0x30] ss:$8 sps:$4 sm:$0xff]   ;;  %v5149_v58 = vrot.slane %v4978_v11, 5 }
 0x2db   : > { %v9887_v16 = vld [vmem:[#allocation3 + $0x34] ss:$8 sps:$4 sm:$0xff]   ;;  %5229 = vst.msk [vmem:[#allocation3 + $0xe4] sm:$0xf] %vm224_vm0, %v5140_v38  ;;  %5228 = vst.msk [vmem:[#allocation3 + $0xdc] sm:$0xf] %vm224_vm0, %v5136_v55  ;;  %v5143_v6 = vsel %vm8602_vm14, %v5141_v10, %v5142_v47 }
 0x2dc   : > { %v5147_v4 = vsel %vm8602_vm14, %v7482_v22, %v5146_v50  ;;  %v5148_v56 = vrot.slane %v5146_v50, 4  ;;  %v4773_v39 = vshll.u32 %v4353_v42, 16  ;;  %7532 = vmatprep.mubr.msk.bf16.mxu1 %vm2198_vm1, %v9887_v16  ;;  %7615 = vmatprep.mubr.msk.bf16.mxu0 %vm2198_vm1, %v9887_v16  ;;  %5230 = vst.msk [vmem:[#allocation3 + $0xec] sm:$0xf] %vm224_vm0, %v5143_v6  ;;  %v4777_v46 = vshrl.u32 %v4353_v42, 16 }
 0x2dd   : > { %5231 = vst.msk [vmem:[#allocation3 + $0xf4] sm:$0xf] %vm224_vm0, %v5147_v4  ;;  %v4783_v26 = vshll.u32 %v4354_v3, 16  ;;  %v4764_v49 = vshrl.u32 %v4352_v13, 16  ;;  %v4767_v45 = vshll.u32 %v4352_v13, 16  ;;  %5614 = vmatmul.mubr.bf16.gmra.mxu1 %v9889_v48  ;;  %v7483_v62 = vrot.slane %v4979_v34, 9  ;;  %6120 = vmatmul.mubr.bf16.gmra.mxu0 %v9889_v48  ;;  %v4812_v31 = vpop.permute.xlu0 %4811 }
 0x2de   : > { %v4981_v15 = vld [vmem:[#allocation2 + $0xc8] sm:$0x1]  ;;  %4903 = vst.msk [vmem:[#allocation3 + $0x40] sm:$0xf] %vm1580_vm15, %v4804_v18  ;;  %4904 = vst.msk [vmem:[#allocation3 + $0x48] sm:$0xf] %vm1580_vm15, %v4806_v32  ;;  %v5150_v33 = vsel %vm8602_vm14, %v5148_v56, %v5149_v58 }
 0x2df   : > { %v4775_v30 = vrot.slane %v4773_v39, 5  ;;  %v5153_v27 = vrot.slane %v4980_v36, 5  ;;  %5232 = vst.msk [vmem:[#allocation3 + $0xfc] sm:$0xf] %vm224_vm0, %v5150_v33  ;;  %v4779_v19 = vrot.slane %v4777_v46, 4  ;;  %v4766_v53 = vrot.slane %v4764_v49, 4 }
 0x2e0   : > { %v4769_v52 = vrot.slane %v4767_v45, 5  ;;  %v5156_v59 = vrot.slane %v4981_v15, 5  ;;  %v4785_v60 = vrot.slane %v4783_v26, 5  ;;  %v9918_v41 = vld [vmem:[#allocation3 + $0x44] ss:$8 sps:$4 sm:$0xff]  }
 0x2e1   : > { %v5154_v40 = vsel %vm8602_vm14, %v7483_v62, %v5153_v27  ;;  %v5155_v57 = vrot.slane %v5153_v27, 4  ;;  %v4780_v51 = vor.u32 %v4779_v19, %v4775_v30  ;;  %7533 = vmatprep.mubr.msk.bf16.mxu1 %vm2198_vm1, %v9918_v41  ;;  %7616 = vmatprep.mubr.msk.bf16.mxu0 %vm2198_vm1, %v9918_v41  ;;  %4905 = vst.msk [vmem:[#allocation3 + $0x50] sm:$0xf] %vm1580_vm15, %v4808_v44  ;;  %4906 = vst.msk [vmem:[#allocation3 + $0x58] sm:$0xf] %vm1580_vm15, %v4810_v37 }
 0x2e2   : > { %v4770_v0 = vor.u32 %v4769_v52, %v4766_v53  ;;  %5233 = vst.msk [vmem:[#allocation3 + $0x104] sm:$0xf] %vm224_vm0, %v5154_v40  ;;  %v9937_v35 = vld [vmem:[#allocation3 + $0x54] ss:$8 sps:$4 sm:$0xff]   ;;  %v9949_v14 = vld [vmem:[#allocation3 + $0x64] ss:$8 sps:$4 sm:$0xff]  }
 0x2e3   : > { %v5157_v12 = vsel %vm8602_vm14, %v5155_v57, %v5156_v59  ;;  %v4781_v54 = vrot.slane %v4780_v51, 4  ;;  %4907 = vst.msk [vmem:[#allocation3 + $0x60] sm:$0xf] %vm1580_vm15, %v4812_v31  ;;  %v4814_v17 = vpop.permute.xlu1 %4813  ;;  %v9962_v23 = vld [vmem:[#allocation3 + $0x74] ss:$8 sps:$4 sm:$0xff]  }
 0x2e4   : > { %v4771_v9 = vrot.slane %v4770_v0, 4  ;;  %5234 = vst.msk [vmem:[#allocation3 + $0x10c] sm:$0xf] %vm224_vm0, %v5157_v12  ;;  %v9972_v42 = vld [vmem:[#allocation3 + $0x84] ss:$8 sps:$4 sm:$0xff]  }
 0x2e5   : > { %v4786_v61 = vsel %vm8263_vm11, %v4781_v54, %v4785_v60  ;;  %v9924_v8 = vld [vmem:[#allocation3 + $0x40] ss:$8 sps:$4 sm:$0xff]   ;;  %4908 = vst.msk [vmem:[#allocation3 + $0x68] sm:$0xf] %vm1580_vm15, %v4814_v17  ;;  %v9987_v22 = vld [vmem:[#allocation3 + $0x94] ss:$8 sps:$4 sm:$0xff]  }
 0x2e6   : > { %v4776_v5 = vsel %vm8263_vm11, %v4771_v9, %v4775_v30  ;;  %4857 = vrot.lane.b32.xlu1 %v4786_v61, %s8065_s23  ;;  %5622 = vmatmul.mubr.bf16.gmra.mxu1 %v9924_v8  ;;  %v9998_v13 = vld [vmem:[#allocation3 + $0xa4] ss:$8 sps:$4 sm:$0xff]   ;;  %v10011_v39 = vld [vmem:[#allocation3 + $0xb4] ss:$8 sps:$4 sm:$0xff]  }
 0x2e7   : > { %4855 = vrot.lane.b32.xlu0 %v4776_v5, %s8065_s23  ;;  %6128 = vmatmul.mubr.bf16.gmra.mxu0 %v9924_v8  ;;  %v4816_v43 = vpop.permute.xlu0 %4815  ;;  %v10024_v26 = vld [vmem:[#allocation3 + $0xc4] ss:$8 sps:$4 sm:$0xff]   ;;  %v10036_v33 = vld [vmem:[#allocation3 + $0xd4] ss:$8 sps:$4 sm:$0xff]   ;;  %s215_s23 = sand.u32 1, %s8054_s19  }
 0x2e8   : > { %v9939_v7 = vld [vmem:[#allocation3 + $0x50] ss:$8 sps:$4 sm:$0xff]   ;;  %7534 = vmatprep.mubr.msk.bf16.mxu1 %vm2198_vm1, %v9937_v35  ;;  %7617 = vmatprep.mubr.msk.bf16.mxu0 %vm2198_vm1, %v9937_v35  ;;  %4909 = vst.msk [vmem:[#allocation3 + $0x70] sm:$0xf] %vm1580_vm15, %v4816_v43  ;;  %v10048_v19 = vld [vmem:[#allocation3 + $0xe4] ss:$8 sps:$4 sm:$0xff]  }
 0x2e9   : > { %v10058_v57 = vld [vmem:[#allocation3 + $0xf4] ss:$8 sps:$4 sm:$0xff]   ;;  %s7153_s30 = sshll.u32 %s215_s23, 8  ;;  %s10368_s22 = scalar_lea.sflag [#allocation6], %s215_s23 }
 0x2ea   : > { %s10201_s6 = scalar_lea.vmem [#allocation5], %s7153_s30 }
 0x2eb   : > { %v10068_v51 = vld [vmem:[#allocation3 + $0x104] ss:$8 sps:$4 sm:$0xff]   ;;  %s7087_s8 = sshll.u32 %s10201_s6, 4  ;;  %s10362_s8 = int_to_ptr.vmem [resolvable:$true] %s7087_s8 }
 0x2ec   : > { %v9951_v20 = vld [vmem:[#allocation3 + $0x60] ss:$8 sps:$4 sm:$0xff]   ;;  %v4818_v11 = vpop.permute.xlu1 %4817  ;;  %p8009_p0 = scmp.lt.s32.totalorder %s10362_s8, %s8007_s13 }
 0x2ed   : > { %4910 = vst.msk [vmem:[#allocation3 + $0x78] sm:$0xf] %vm1580_vm15, %v4818_v11 }
 0x2ee   : > { %5630 = vmatmul.mubr.bf16.gmra.mxu1 %v9939_v7 }
 0x2ef   : > { %6136 = vmatmul.mubr.bf16.gmra.mxu0 %v9939_v7  ;;  %7535 = vmatprep.mubr.msk.bf16.mxu1 %vm2198_vm1, %v9949_v14 }
 0x2f0   : > { %7618 = vmatprep.mubr.msk.bf16.mxu0 %vm2198_vm1, %v9949_v14  ;;  %v4820_v63 = vpop.permute.xlu0 %4819 }
 0x2f1   : > { %4911 = vst.msk [vmem:[#allocation3 + $0x80] sm:$0xf] %vm1580_vm15, %v4820_v63 }
 0x2f2   : > { %v4822_v21 = vpop.permute.xlu1 %4821 }
 0x2f3   : > { %4912 = vst.msk [vmem:[#allocation3 + $0x88] sm:$0xf] %vm1580_vm15, %v4822_v21 }
 0x2f4   : > { %v9964_v2 = vld [vmem:[#allocation3 + $0x70] ss:$8 sps:$4 sm:$0xff]  }
 0x2f5   : > { %v5591_v29 = vpop.f32.mrf.mxu1 }
 0x2f6   : > { %5638 = vmatmul.mubr.bf16.gmra.mxu1 %v9951_v20  ;;  %5718 = vst.msk [vmem:[#allocation4] sm:$0xff] %vm2198_vm1, %v5591_v29 }
 0x2f7   : > { %6144 = vmatmul.mubr.bf16.gmra.mxu0 %v9951_v20  ;;  %7536 = vmatprep.mubr.msk.bf16.mxu1 %vm2198_vm1, %v9962_v23  ;;  %v5593_v3 = vpop.f32.mrf.mxu1 }
 0x2f8   : > { %7619 = vmatprep.mubr.msk.bf16.mxu0 %vm2198_vm1, %v9962_v23 }
 0x2f9   : > { %v5594_v34 = vpop.f32.mrf.mxu1 }
 0x2fa   : > { %v9974_v24 = vld [vmem:[#allocation3 + $0x80] ss:$8 sps:$4 sm:$0xff]   ;;  %5719 = vst.msk [vmem:[#allocation4 + $0x8] sm:$0xff] %vm2198_vm1, %v5594_v34 }
 0x2fb   : > { %v5596_v36 = vpop.f32.mrf.mxu1 }
 0x2fc   : > { %v4824_v25 = vpop.permute.xlu0 %4823 }
 0x2fd   : > { %4913 = vst.msk [vmem:[#allocation3 + $0x90] sm:$0xf] %vm1580_vm15, %v4824_v25 }
 0x2fe   : > { %5646 = vmatmul.mubr.bf16.gmra.mxu1 %v9964_v2 }
 0x2ff   : > { %6152 = vmatmul.mubr.bf16.gmra.mxu0 %v9964_v2  ;;  %7537 = vmatprep.mubr.msk.bf16.mxu1 %vm2198_vm1, %v9972_v42  ;;  %v4826_v47 = vpop.permute.xlu1 %4825 }
 0x300   : > { %7620 = vmatprep.mubr.msk.bf16.mxu0 %vm2198_vm1, %v9972_v42  ;;  %4914 = vst.msk [vmem:[#allocation3 + $0x98] sm:$0xf] %vm1580_vm15, %v4826_v47 }
 0x301   : > { %v6233_v5 = vld [vmem:[#allocation4 + $0x8] sm:$0xff] }
 0x306   : > { %5654 = vmatmul.mubr.bf16.gmra.mxu1 %v9974_v24  ;;  %v4828_v38 = vpop.permute.xlu0 %4827 }
 0x307   : > { %6160 = vmatmul.mubr.bf16.gmra.mxu0 %v9974_v24  ;;  %4915 = vst.msk [vmem:[#allocation3 + $0xa0] sm:$0xf] %vm1580_vm15, %v4828_v38  ;;  %v4830_v10 = vpop.permute.xlu1 %4829  ;;  %v9989_v50 = vld [vmem:[#allocation3 + $0x90] ss:$8 sps:$4 sm:$0xff]   ;;  %7538 = vmatprep.mubr.msk.bf16.mxu1 %vm2198_vm1, %v9987_v22 }
 0x308   : > { %4916 = vst.msk [vmem:[#allocation3 + $0xa8] sm:$0xf] %vm1580_vm15, %v4830_v10  ;;  %7621 = vmatprep.mubr.msk.bf16.mxu0 %vm2198_vm1, %v9987_v22 }
 0x30e   : > { %5662 = vmatmul.mubr.bf16.gmra.mxu1 %v9989_v50 }
 0x30f   : > { %6168 = vmatmul.mubr.bf16.gmra.mxu0 %v9989_v50  ;;  %v10000_v55 = vld [vmem:[#allocation3 + $0xa0] ss:$8 sps:$4 sm:$0xff]   ;;  %v4832_v58 = vpop.permute.xlu0 %4831  ;;  %7539 = vmatprep.mubr.msk.bf16.mxu1 %vm2198_vm1, %v9998_v13 }
 0x310   : > { %4917 = vst.msk [vmem:[#allocation3 + $0xb0] sm:$0xf] %vm1580_vm15, %v4832_v58  ;;  %7622 = vmatprep.mubr.msk.bf16.mxu0 %vm2198_vm1, %v9998_v13 }
 0x311   : > { %v4834_v6 = vpop.permute.xlu1 %4833 }
 0x312   : > { %4918 = vst.msk [vmem:[#allocation3 + $0xb8] sm:$0xf] %vm1580_vm15, %v4834_v6 }
 0x316   : > { %5670 = vmatmul.mubr.bf16.gmra.mxu1 %v10000_v55 }
 0x317   : > { %6176 = vmatmul.mubr.bf16.gmra.mxu0 %v10000_v55  ;;  %7540 = vmatprep.mubr.msk.bf16.mxu1 %vm2198_vm1, %v10011_v39 }
 0x318   : > { %v4836_v4 = vpop.permute.xlu0 %4835  ;;  %7623 = vmatprep.mubr.msk.bf16.mxu0 %vm2198_vm1, %v10011_v39 }
 0x319   : > { %4919 = vst.msk [vmem:[#allocation3 + $0xc0] sm:$0xf] %vm1580_vm15, %v4836_v4  ;;  %v10013_v18 = vld [vmem:[#allocation3 + $0xb0] ss:$8 sps:$4 sm:$0xff]  }
 0x31a   : > { %v4838_v56 = vpop.permute.xlu1 %4837 }
 0x31b   : > { %4920 = vst.msk [vmem:[#allocation3 + $0xc8] sm:$0xf] %vm1580_vm15, %v4838_v56 }
 0x31e   : > { %5678 = vmatmul.mubr.bf16.gmra.mxu1 %v10013_v18 }
 0x31f   : > { %6184 = vmatmul.mubr.bf16.gmra.mxu0 %v10013_v18  ;;  %v4840_v32 = vpop.permute.xlu0 %4839  ;;  %7541 = vmatprep.mubr.msk.bf16.mxu1 %vm2198_vm1, %v10024_v26 }
 0x320   : > { %4921 = vst.msk [vmem:[#allocation3 + $0xd0] sm:$0xf] %vm1580_vm15, %v4840_v32  ;;  %v4842_v46 = vpop.permute.xlu1 %4841  ;;  %7624 = vmatprep.mubr.msk.bf16.mxu0 %vm2198_vm1, %v10024_v26 }
 0x321   : > { %4922 = vst.msk [vmem:[#allocation3 + $0xd8] sm:$0xf] %vm1580_vm15, %v4842_v46 }
 0x322   : > { %v10026_v49 = vld [vmem:[#allocation3 + $0xc0] ss:$8 sps:$4 sm:$0xff]  }
 0x325   : > { %v4844_v45 = vpop.permute.xlu0 %4843  ;;  %v4846_v15 = vpop.permute.xlu1 %4845 }
 0x326   : > { %5686 = vmatmul.mubr.bf16.gmra.mxu1 %v10026_v49  ;;  %4923 = vst.msk [vmem:[#allocation3 + $0xe0] sm:$0xf] %vm1580_vm15, %v4844_v45  ;;  %4924 = vst.msk [vmem:[#allocation3 + $0xe8] sm:$0xf] %vm1580_vm15, %v4846_v15 }
 0x327   : > { %6192 = vmatmul.mubr.bf16.gmra.mxu0 %v10026_v49  ;;  %7542 = vmatprep.mubr.msk.bf16.mxu1 %vm2198_vm1, %v10036_v33 }
 0x328   : > { %v10038_v30 = vld [vmem:[#allocation3 + $0xd0] ss:$8 sps:$4 sm:$0xff]   ;;  %7625 = vmatprep.mubr.msk.bf16.mxu0 %vm2198_vm1, %v10036_v33 }
 0x32a   : > { %v4848_v62 = vpop.permute.xlu0 %4847 }
 0x32b   : > { %4925 = vst.msk [vmem:[#allocation3 + $0xf0] sm:$0xf] %vm1580_vm15, %v4848_v62  ;;  %v4850_v27 = vpop.permute.xlu1 %4849 }
 0x32c   : > { %4926 = vst.msk [vmem:[#allocation3 + $0xf8] sm:$0xf] %vm1580_vm15, %v4850_v27 }
 0x32d   : > { %v10055_v52 = vld [vmem:[#allocation3 + $0xe0] ss:$8 sps:$4 sm:$0xff]  }
 0x32e   : > { %5694 = vmatmul.mubr.bf16.gmra.mxu1 %v10038_v30 }
 0x32f   : > { %6200 = vmatmul.mubr.bf16.gmra.mxu0 %v10038_v30  ;;  %v4852_v53 = vpop.permute.xlu0 %4851  ;;  %7543 = vmatprep.mubr.msk.bf16.mxu1 %vm2198_vm1, %v10048_v19 }
 0x330   : > { %4927 = vst.msk [vmem:[#allocation3 + $0x100] sm:$0xf] %vm1580_vm15, %v4852_v53  ;;  %7626 = vmatprep.mubr.msk.bf16.mxu0 %vm2198_vm1, %v10048_v19 }
 0x333   : > { %v10066_v59 = vld [vmem:[#allocation3 + $0xf0] ss:$8 sps:$4 sm:$0xff]  }
 0x335   : > { %v4854_v40 = vpop.permute.xlu1 %4853 }
 0x336   : > { %4928 = vst.msk [vmem:[#allocation3 + $0x108] sm:$0xf] %vm1580_vm15, %v4854_v40  ;;  %5702 = vmatmul.mubr.bf16.gmra.mxu1 %v10055_v52 }
 0x337   : > { %6208 = vmatmul.mubr.bf16.gmra.mxu0 %v10055_v52  ;;  %7544 = vmatprep.mubr.msk.bf16.mxu1 %vm2198_vm1, %v10058_v57 }
 0x338   : > { %7627 = vmatprep.mubr.msk.bf16.mxu0 %vm2198_vm1, %v10058_v57 }
 0x33d   : > { %v10076_v60 = vld [vmem:[#allocation3 + $0x100] ss:$8 sps:$4 sm:$0xff]  }
 0x33e   : > { %5710 = vmatmul.mubr.bf16.gmra.mxu1 %v10066_v59 }
 0x33f   : > { %6216 = vmatmul.mubr.bf16.gmra.mxu0 %v10066_v59  ;;  %7697 = vmatprep.mubr.msk.bf16.mxu1 %vm2198_vm1, %v9831_v1  ;;  %v6232_v1 = vld [vmem:[#allocation4] sm:$0xff] }
 0x340   : > { %7628 = vmatprep.mubr.msk.bf16.mxu0 %vm2198_vm1, %v10068_v51 }
 0x346   : > { %6682 = vmatmul.mubr.bf16.vlgmr.msra.gmra.mxu1 %v9839_v28 }
 0x347   : > { %6224 = vmatmul.mubr.bf16.gmra.mxu0 %v10076_v60  ;;  %7698 = vmatprep.mubr.msk.bf16.mxu1 %vm2198_vm1, %v9887_v16 }
 0x34e   : > { %6690 = vmatmul.mubr.bf16.gmra.mxu1 %v9889_v48 }
 0x34f   : > { %7699 = vmatprep.mubr.msk.bf16.mxu1 %vm2198_vm1, %v9918_v41 }
 0x356   : > { %6698 = vmatmul.mubr.bf16.gmra.mxu1 %v9924_v8 }
 0x357   : > { %7700 = vmatprep.mubr.msk.bf16.mxu1 %vm2198_vm1, %v9937_v35 }
 0x358   : > { %v4858_v0 = vpop.permute.xlu1 %4857 }
 0x359   : > { %v4856_v12 = vpop.permute.xlu0 %4855  ;;  %4930 = vst.msk [vmem:[#allocation3 + $0x118] sm:$0xf] %vm1580_vm15, %v4858_v0 }
 0x35a   : > { %4929 = vst.msk [vmem:[#allocation3 + $0x110] sm:$0xf] %vm1580_vm15, %v4856_v12 }
 0x35e   : > { %6706 = vmatmul.mubr.bf16.gmra.mxu1 %v9939_v7 }
 0x35f   : > { %7701 = vmatprep.mubr.msk.bf16.mxu1 %vm2198_vm1, %v9949_v14 }
 0x366   : > { %6714 = vmatmul.mubr.bf16.gmra.mxu1 %v9951_v20 }
 0x367   : > { %7702 = vmatprep.mubr.msk.bf16.mxu1 %vm2198_vm1, %v9962_v23 }
 0x36e   : > { %6722 = vmatmul.mubr.bf16.gmra.mxu1 %v9964_v2 }
 0x36f   : > { %7703 = vmatprep.mubr.msk.bf16.mxu1 %vm2198_vm1, %v9972_v42 }
 0x376   : > { %6730 = vmatmul.mubr.bf16.gmra.mxu1 %v9974_v24 }
 0x377   : > { %7704 = vmatprep.mubr.msk.bf16.mxu1 %vm2198_vm1, %v9987_v22 }
 0x37e   : > { %6738 = vmatmul.mubr.bf16.gmra.mxu1 %v9989_v50 }
 0x37f   : > { %7705 = vmatprep.mubr.msk.bf16.mxu1 %vm2198_vm1, %v9998_v13 }
 0x384   : > { %v5599_v28 = vpop.f32.mrf.mxu1 }
 0x385   : > { %5720 = vst.msk [vmem:[#allocation4 + $0x10] sm:$0xff] %vm2198_vm1, %v5599_v28  ;;  %v6105_v16 = vpop.f32.mrf.mxu0 }
 0x386   : > { %v6264_v48 = vadd.f32 %v6232_v1, %v6105_v16  ;;  %v5601_v54 = vpop.f32.mrf.mxu1  ;;  %6746 = vmatmul.mubr.bf16.gmra.mxu1 %v10000_v55 }
 0x387   : > { %v6107_v9 = vpop.f32.mrf.mxu0  ;;  %7706 = vmatprep.mubr.msk.bf16.mxu1 %vm2198_vm1, %v10011_v39 }
 0x388   : > { %6296 = vst.msk [vmem:[#allocation4] sm:$0xff] %vm2198_vm1, %v6264_v48  ;;  %v5602_v41 = vpop.f32.mrf.mxu1 }
 0x389   : > { %5721 = vst.msk [vmem:[#allocation4 + $0x18] sm:$0xff] %vm2198_vm1, %v5602_v41  ;;  %v6108_v61 = vpop.f32.mrf.mxu0  ;;  %v7999_v41 = vld [vmem:[#allocation3 + $0x114] ss:$8 sps:$4 sm:$0xff]  }
 0x38a   : > { %v6265_v8 = vadd.f32 %v6233_v5, %v6108_v61  ;;  %v5604_v44 = vpop.f32.mrf.mxu1 }
 0x38b   : > { %v6110_v37 = vpop.f32.mrf.mxu0  ;;  %v6358_v44 = vld [vmem:[#allocation3 + $0x110] sm:$0xff] }
 0x38c   : > { %6297 = vst.msk [vmem:[#allocation4 + $0x8] sm:$0xff] %vm2198_vm1, %v6265_v8  ;;  %v6234_v35 = vld [vmem:[#allocation4 + $0x10] sm:$0xff]  ;;  %v6359_v37 = vld [vmem:[#allocation3 + $0x118] sm:$0xff] }
 0x38e   : > { %v5607_v31 = vpop.f32.mrf.mxu1  ;;  %v6113_v7 = vpop.f32.mrf.mxu0  ;;  %6754 = vmatmul.mubr.bf16.gmra.mxu1 %v10013_v18 }
 0x38f   : > { %5722 = vst.msk [vmem:[#allocation4 + $0x20] sm:$0xff] %vm2198_vm1, %v5607_v31  ;;  %v6266_v17 = vadd.f32 %v6234_v35, %v6113_v7  ;;  %7707 = vmatprep.mubr.msk.bf16.mxu1 %vm2198_vm1, %v10024_v26 }
 0x390   : > { %v5609_v43 = vpop.f32.mrf.mxu1  ;;  %v6115_v14 = vpop.f32.mrf.mxu0  ;;  %v6235_v11 = vld [vmem:[#allocation4 + $0x18] sm:$0xff] }
 0x391   : > { %6298 = vst.msk [vmem:[#allocation4 + $0x10] sm:$0xff] %vm2198_vm1, %v6266_v17  ;;  %v7683_v43 = vcombine.low %v6358_v44, %v6359_v37 }
 0x392   : > { %v5610_v20 = vpop.f32.mrf.mxu1  ;;  %v6116_v63 = vpop.f32.mrf.mxu0 }
 0x393   : > { %5723 = vst.msk [vmem:[#allocation4 + $0x28] sm:$0xff] %vm2198_vm1, %v5610_v20  ;;  %v6267_v21 = vadd.f32 %v6235_v11, %v6116_v63 }
 0x394   : > { %v5612_v23 = vpop.f32.mrf.mxu1  ;;  %v6118_v2 = vpop.f32.mrf.mxu0 }
 0x395   : > { %6299 = vst.msk [vmem:[#allocation4 + $0x18] sm:$0xff] %vm2198_vm1, %v6267_v21 }
 0x396   : > { %v6236_v24 = vld [vmem:[#allocation4 + $0x20] sm:$0xff]  ;;  %6762 = vmatmul.mubr.bf16.gmra.mxu1 %v10026_v49 }
 0x397   : > { %7708 = vmatprep.mubr.msk.bf16.mxu1 %vm2198_vm1, %v10036_v33 }
 0x39a   : > { %v6237_v36 = vld [vmem:[#allocation4 + $0x28] sm:$0xff] }
 0x39d   : > { %v5615_v42 = vpop.f32.mrf.mxu1  ;;  %v6121_v25 = vpop.f32.mrf.mxu0 }
 0x39e   : > { %5724 = vst.msk [vmem:[#allocation4 + $0x30] sm:$0xff] %vm2198_vm1, %v5615_v42  ;;  %v6268_v29 = vadd.f32 %v6236_v24, %v6121_v25  ;;  %6770 = vmatmul.mubr.bf16.gmra.mxu1 %v10038_v30 }
 0x39f   : > { %v5617_v47 = vpop.f32.mrf.mxu1  ;;  %v6123_v3 = vpop.f32.mrf.mxu0  ;;  %7709 = vmatprep.mubr.msk.bf16.mxu1 %vm2198_vm1, %v10048_v19 }
 0x3a0   : > { %6300 = vst.msk [vmem:[#allocation4 + $0x20] sm:$0xff] %vm2198_vm1, %v6268_v29 }
 0x3a1   : > { %v5618_v34 = vpop.f32.mrf.mxu1  ;;  %v6124_v38 = vpop.f32.mrf.mxu0 }
 0x3a2   : > { %5725 = vst.msk [vmem:[#allocation4 + $0x38] sm:$0xff] %vm2198_vm1, %v5618_v34  ;;  %v6269_v10 = vadd.f32 %v6237_v36, %v6124_v38 }
 0x3a3   : > { %v5620_v22 = vpop.f32.mrf.mxu1  ;;  %v6126_v50 = vpop.f32.mrf.mxu0 }
 0x3a4   : > { %6301 = vst.msk [vmem:[#allocation4 + $0x28] sm:$0xff] %vm2198_vm1, %v6269_v10 }
 0x3a5   : > { %v6238_v13 = vld [vmem:[#allocation4 + $0x30] sm:$0xff] }
 0x3a6   : > { %v5623_v55 = vpop.f32.mrf.mxu1  ;;  %6778 = vmatmul.mubr.bf16.gmra.mxu1 %v10055_v52 }
 0x3a7   : > { %v6129_v58 = vpop.f32.mrf.mxu0  ;;  %5726 = vst.msk [vmem:[#allocation4 + $0x40] sm:$0xff] %vm2198_vm1, %v5623_v55  ;;  %7710 = vmatprep.mubr.msk.bf16.mxu1 %vm2198_vm1, %v10058_v57 }
 0x3a8   : > { %v6270_v6 = vadd.f32 %v6238_v13, %v6129_v58  ;;  %v5625_v4 = vpop.f32.mrf.mxu1 }
 0x3a9   : > { %v6131_v56 = vpop.f32.mrf.mxu0  ;;  %v6239_v39 = vld [vmem:[#allocation4 + $0x38] sm:$0xff] }
 0x3aa   : > { %6302 = vst.msk [vmem:[#allocation4 + $0x30] sm:$0xff] %vm2198_vm1, %v6270_v6  ;;  %v5626_v18 = vpop.f32.mrf.mxu1 }
 0x3ab   : > { %v6132_v32 = vpop.f32.mrf.mxu0  ;;  %5727 = vst.msk [vmem:[#allocation4 + $0x48] sm:$0xff] %vm2198_vm1, %v5626_v18 }
 0x3ac   : > { %v6271_v46 = vadd.f32 %v6239_v39, %v6132_v32  ;;  %v5628_v26 = vpop.f32.mrf.mxu1 }
 0x3ad   : > { %v6134_v49 = vpop.f32.mrf.mxu0 }
 0x3ae   : > { %6303 = vst.msk [vmem:[#allocation4 + $0x38] sm:$0xff] %vm2198_vm1, %v6271_v46  ;;  %v6240_v45 = vld [vmem:[#allocation4 + $0x40] sm:$0xff]  ;;  %v5631_v15 = vpop.f32.mrf.mxu1  ;;  %6786 = vmatmul.mubr.bf16.gmra.mxu1 %v10066_v59 }
 0x3af   : > { %v6137_v33 = vpop.f32.mrf.mxu0  ;;  %5728 = vst.msk [vmem:[#allocation4 + $0x50] sm:$0xff] %vm2198_vm1, %v5631_v15  ;;  %7711 = vmatprep.mubr.msk.bf16.mxu1 %vm2198_vm1, %v10068_v51 }
 0x3b0   : > { %v6272_v30 = vadd.f32 %v6240_v45, %v6137_v33  ;;  %v5633_v62 = vpop.f32.mrf.mxu1 }
 0x3b1   : > { %v6139_v27 = vpop.f32.mrf.mxu0 }
 0x3b2   : > { %v6241_v19 = vld [vmem:[#allocation4 + $0x48] sm:$0xff]  ;;  %6304 = vst.msk [vmem:[#allocation4 + $0x40] sm:$0xff] %vm2198_vm1, %v6272_v30  ;;  %v5634_v53 = vpop.f32.mrf.mxu1 }
 0x3b3   : > { %v6140_v40 = vpop.f32.mrf.mxu0  ;;  %5729 = vst.msk [vmem:[#allocation4 + $0x58] sm:$0xff] %vm2198_vm1, %v5634_v53 }
 0x3b4   : > { %v6273_v0 = vadd.f32 %v6241_v19, %v6140_v40  ;;  %v5636_v12 = vpop.f32.mrf.mxu1 }
 0x3b5   : > { %v6142_v52 = vpop.f32.mrf.mxu0 }
 0x3b6   : > { %6305 = vst.msk [vmem:[#allocation4 + $0x48] sm:$0xff] %vm2198_vm1, %v6273_v0  ;;  %v6242_v57 = vld [vmem:[#allocation4 + $0x50] sm:$0xff]  ;;  %v5639_v1 = vpop.f32.mrf.mxu1  ;;  %6794 = vmatmul.mubr.bf16.gmra.mxu1 %v10076_v60 }
 0x3b7   : > { %v6145_v28 = vpop.f32.mrf.mxu0  ;;  %5730 = vst.msk [vmem:[#allocation4 + $0x60] sm:$0xff] %vm2198_vm1, %v5639_v1  ;;  %7712 = vmatprep.mubr.msk.bf16.mxu1 %vm2198_vm1, %v7999_v41 }
 0x3b8   : > { %v6274_v16 = vadd.f32 %v6242_v57, %v6145_v28  ;;  %v5641_v48 = vpop.f32.mrf.mxu1 }
 0x3b9   : > { %v6147_v54 = vpop.f32.mrf.mxu0 }
 0x3ba   : > { %v6243_v9 = vld [vmem:[#allocation4 + $0x58] sm:$0xff]  ;;  %6306 = vst.msk [vmem:[#allocation4 + $0x50] sm:$0xff] %vm2198_vm1, %v6274_v16  ;;  %v5642_v61 = vpop.f32.mrf.mxu1 }
 0x3bb   : > { %v6148_v5 = vpop.f32.mrf.mxu0  ;;  %5731 = vst.msk [vmem:[#allocation4 + $0x68] sm:$0xff] %vm2198_vm1, %v5642_v61 }
 0x3bc   : > { %v6275_v59 = vadd.f32 %v6243_v9, %v6148_v5  ;;  %v5644_v8 = vpop.f32.mrf.mxu1 }
 0x3bd   : > { %v6150_v51 = vpop.f32.mrf.mxu0 }
 0x3be   : > { %6307 = vst.msk [vmem:[#allocation4 + $0x58] sm:$0xff] %vm2198_vm1, %v6275_v59  ;;  %v6244_v31 = vld [vmem:[#allocation4 + $0x60] sm:$0xff]  ;;  %v5647_v35 = vpop.f32.mrf.mxu1  ;;  %6802 = vmatmul.mubr.bf16.gmra.mxu1 %v7683_v43 }
 0x3bf   : > { %v6153_v7 = vpop.f32.mrf.mxu0  ;;  %5732 = vst.msk [vmem:[#allocation4 + $0x70] sm:$0xff] %vm2198_vm1, %v5647_v35 }
 0x3c0   : > { %v6276_v17 = vadd.f32 %v6244_v31, %v6153_v7  ;;  %v5649_v14 = vpop.f32.mrf.mxu1 }
 0x3c1   : > { %v6155_v20 = vpop.f32.mrf.mxu0 }
 0x3c2   : > { %6308 = vst.msk [vmem:[#allocation4 + $0x60] sm:$0xff] %vm2198_vm1, %v6276_v17  ;;  %v6245_v60 = vld [vmem:[#allocation4 + $0x68] sm:$0xff]  ;;  %v5650_v11 = vpop.f32.mrf.mxu1 }
 0x3c3   : > { %v6156_v63 = vpop.f32.mrf.mxu0  ;;  %5733 = vst.msk [vmem:[#allocation4 + $0x78] sm:$0xff] %vm2198_vm1, %v5650_v11 }
 0x3c4   : > { %v6277_v21 = vadd.f32 %v6245_v60, %v6156_v63  ;;  %v5652_v23 = vpop.f32.mrf.mxu1 }
 0x3c5   : > { %v6158_v2 = vpop.f32.mrf.mxu0 }
 0x3c6   : > { %6309 = vst.msk [vmem:[#allocation4 + $0x68] sm:$0xff] %vm2198_vm1, %v6277_v21  ;;  %v5655_v42 = vpop.f32.mrf.mxu1  ;;  %v6246_v25 = vld [vmem:[#allocation4 + $0x70] sm:$0xff] }
 0x3c7   : > { %v6161_v24 = vpop.f32.mrf.mxu0  ;;  %5734 = vst.msk [vmem:[#allocation4 + $0x80] sm:$0xff] %vm2198_vm1, %v5655_v42 }
 0x3c8   : > { %v6278_v29 = vadd.f32 %v6246_v25, %v6161_v24  ;;  %v5657_v47 = vpop.f32.mrf.mxu1 }
 0x3c9   : > { %v6163_v3 = vpop.f32.mrf.mxu0 }
 0x3ca   : > { %6310 = vst.msk [vmem:[#allocation4 + $0x70] sm:$0xff] %vm2198_vm1, %v6278_v29  ;;  %v5658_v34 = vpop.f32.mrf.mxu1  ;;  %v6247_v38 = vld [vmem:[#allocation4 + $0x78] sm:$0xff] }
 0x3cb   : > { %v6164_v36 = vpop.f32.mrf.mxu0  ;;  %5735 = vst.msk [vmem:[#allocation4 + $0x88] sm:$0xff] %vm2198_vm1, %v5658_v34 }
 0x3cc   : > { %v6279_v10 = vadd.f32 %v6247_v38, %v6164_v36  ;;  %v5660_v22 = vpop.f32.mrf.mxu1 }
 0x3cd   : > { %v6166_v50 = vpop.f32.mrf.mxu0 }
 0x3ce   : > { %6311 = vst.msk [vmem:[#allocation4 + $0x78] sm:$0xff] %vm2198_vm1, %v6279_v10  ;;  %v6248_v13 = vld [vmem:[#allocation4 + $0x80] sm:$0xff]  ;;  %v5663_v55 = vpop.f32.mrf.mxu1 }
 0x3cf   : > { %v6169_v58 = vpop.f32.mrf.mxu0  ;;  %5736 = vst.msk [vmem:[#allocation4 + $0x90] sm:$0xff] %vm2198_vm1, %v5663_v55 }
 0x3d0   : > { %v6280_v6 = vadd.f32 %v6248_v13, %v6169_v58  ;;  %v5665_v4 = vpop.f32.mrf.mxu1 }
 0x3d1   : > { %v6171_v56 = vpop.f32.mrf.mxu0 }
 0x3d2   : > { %v6249_v39 = vld [vmem:[#allocation4 + $0x88] sm:$0xff]  ;;  %6312 = vst.msk [vmem:[#allocation4 + $0x80] sm:$0xff] %vm2198_vm1, %v6280_v6  ;;  %v5666_v18 = vpop.f32.mrf.mxu1 }
 0x3d3   : > { %v6172_v32 = vpop.f32.mrf.mxu0  ;;  %5737 = vst.msk [vmem:[#allocation4 + $0x98] sm:$0xff] %vm2198_vm1, %v5666_v18 }
 0x3d4   : > { %v6281_v46 = vadd.f32 %v6249_v39, %v6172_v32  ;;  %v5668_v26 = vpop.f32.mrf.mxu1 }
 0x3d5   : > { %v6174_v49 = vpop.f32.mrf.mxu0 }
 0x3d6   : > { %6313 = vst.msk [vmem:[#allocation4 + $0x88] sm:$0xff] %vm2198_vm1, %v6281_v46  ;;  %v5671_v45 = vpop.f32.mrf.mxu1  ;;  %v6250_v33 = vld [vmem:[#allocation4 + $0x90] sm:$0xff] }
 0x3d7   : > { %v6177_v15 = vpop.f32.mrf.mxu0  ;;  %5738 = vst.msk [vmem:[#allocation4 + $0xa0] sm:$0xff] %vm2198_vm1, %v5671_v45 }
 0x3d8   : > { %v6282_v30 = vadd.f32 %v6250_v33, %v6177_v15  ;;  %v5673_v62 = vpop.f32.mrf.mxu1 }
 0x3d9   : > { %v6179_v27 = vpop.f32.mrf.mxu0 }
 0x3da   : > { %6314 = vst.msk [vmem:[#allocation4 + $0x90] sm:$0xff] %vm2198_vm1, %v6282_v30  ;;  %v5674_v19 = vpop.f32.mrf.mxu1  ;;  %v6251_v40 = vld [vmem:[#allocation4 + $0x98] sm:$0xff] }
 0x3db   : > { %v6180_v53 = vpop.f32.mrf.mxu0  ;;  %5739 = vst.msk [vmem:[#allocation4 + $0xa8] sm:$0xff] %vm2198_vm1, %v5674_v19 }
 0x3dc   : > { %v6283_v0 = vadd.f32 %v6251_v40, %v6180_v53  ;;  %v5676_v12 = vpop.f32.mrf.mxu1 }
 0x3dd   : > { %v6182_v52 = vpop.f32.mrf.mxu0 }
 0x3de   : > { %6315 = vst.msk [vmem:[#allocation4 + $0x98] sm:$0xff] %vm2198_vm1, %v6283_v0  ;;  %v6252_v57 = vld [vmem:[#allocation4 + $0xa0] sm:$0xff]  ;;  %v5679_v1 = vpop.f32.mrf.mxu1 }
 0x3df   : > { %v6185_v28 = vpop.f32.mrf.mxu0  ;;  %5740 = vst.msk [vmem:[#allocation4 + $0xb0] sm:$0xff] %vm2198_vm1, %v5679_v1  ;;  %v6810_v52 = vld [vmem:[#allocation4] sm:$0xff] }
 0x3e0   : > { %v6284_v16 = vadd.f32 %v6252_v57, %v6185_v28  ;;  %v5681_v48 = vpop.f32.mrf.mxu1 }
 0x3e1   : > { %v6187_v54 = vpop.f32.mrf.mxu0 }
 0x3e2   : > { %v6253_v9 = vld [vmem:[#allocation4 + $0xa8] sm:$0xff]  ;;  %6316 = vst.msk [vmem:[#allocation4 + $0xa0] sm:$0xff] %vm2198_vm1, %v6284_v16  ;;  %v5682_v41 = vpop.f32.mrf.mxu1 }
 0x3e3   : > { %v6188_v61 = vpop.f32.mrf.mxu0  ;;  %5741 = vst.msk [vmem:[#allocation4 + $0xb8] sm:$0xff] %vm2198_vm1, %v5682_v41  ;;  %v6811_v41 = vld [vmem:[#allocation4 + $0x8] sm:$0xff] }
 0x3e4   : > { %v6285_v5 = vadd.f32 %v6253_v9, %v6188_v61  ;;  %v5684_v59 = vpop.f32.mrf.mxu1 }
 0x3e5   : > { %v6190_v8 = vpop.f32.mrf.mxu0 }
 0x3e6   : > { %6317 = vst.msk [vmem:[#allocation4 + $0xa8] sm:$0xff] %vm2198_vm1, %v6285_v5  ;;  %v5687_v51 = vpop.f32.mrf.mxu1  ;;  %v6254_v37 = vld [vmem:[#allocation4 + $0xb0] sm:$0xff] }
 0x3e7   : > { %v6193_v44 = vpop.f32.mrf.mxu0  ;;  %5742 = vst.msk [vmem:[#allocation4 + $0xc0] sm:$0xff] %vm2198_vm1, %v5687_v51  ;;  %v10193_v51 = vld [vmem:[%s10412_s4] ss:$0 sm:$0xff] }
 0x3e8   : > { %v6286_v31 = vadd.f32 %v6254_v37, %v6193_v44  ;;  %v5689_v35 = vpop.f32.mrf.mxu1  ;;  %v6812_v37 = vld [vmem:[#allocation4 + $0x10] sm:$0xff] }
 0x3e9   : > { %v6195_v7 = vpop.f32.mrf.mxu0 }
 0x3ea   : > { %6318 = vst.msk [vmem:[#allocation4 + $0xb0] sm:$0xff] %vm2198_vm1, %v6286_v31  ;;  %v5690_v17 = vpop.f32.mrf.mxu1  ;;  %v6255_v14 = vld [vmem:[#allocation4 + $0xb8] sm:$0xff]  ;;  %v6977_v7 = vld [vmem:[%s8200_s15] sm:$0xff] }
 0x3eb   : > { %v6196_v43 = vpop.f32.mrf.mxu0  ;;  %5743 = vst.msk [vmem:[#allocation4 + $0xc8] sm:$0xff] %vm2198_vm1, %v5690_v17 }
 0x3ec   : > { %v6287_v20 = vadd.f32 %v6255_v14, %v6196_v43  ;;  %v5692_v60 = vpop.f32.mrf.mxu1 }
 0x3ed   : > { %v6198_v11 = vpop.f32.mrf.mxu0 }
 0x3ee   : > { %6319 = vst.msk [vmem:[#allocation4 + $0xb8] sm:$0xff] %vm2198_vm1, %v6287_v20  ;;  %v5695_v63 = vpop.f32.mrf.mxu1  ;;  %v6256_v23 = vld [vmem:[#allocation4 + $0xc0] sm:$0xff]  ;;  %v6813_v20 = vld [vmem:[#allocation4 + $0x18] sm:$0xff] }
 0x3ef   : > { %v6201_v21 = vpop.f32.mrf.mxu0  ;;  %5744 = vst.msk [vmem:[#allocation4 + $0xd0] sm:$0xff] %vm2198_vm1, %v5695_v63 }
 0x3f0   : > { %v6288_v2 = vadd.f32 %v6256_v23, %v6201_v21  ;;  %v5697_v42 = vpop.f32.mrf.mxu1  ;;  %v6978_v21 = vld [vmem:[%s8200_s15 + $0x8] sm:$0xff] }
 0x3f1   : > { %v6203_v24 = vpop.f32.mrf.mxu0 }
 0x3f2   : > { %6320 = vst.msk [vmem:[#allocation4 + $0xc0] sm:$0xff] %vm2198_vm1, %v6288_v2  ;;  %v5698_v25 = vpop.f32.mrf.mxu1  ;;  %v6257_v47 = vld [vmem:[#allocation4 + $0xc8] sm:$0xff]  ;;  %v6814_v24 = vld [vmem:[#allocation4 + $0x20] sm:$0xff] }
 0x3f3   : > { %v6204_v29 = vpop.f32.mrf.mxu0  ;;  %5745 = vst.msk [vmem:[#allocation4 + $0xd8] sm:$0xff] %vm2198_vm1, %v5698_v25 }
 0x3f4   : > { %v6289_v3 = vadd.f32 %v6257_v47, %v6204_v29  ;;  %v5700_v34 = vpop.f32.mrf.mxu1 }
 0x3f5   : > { %v6206_v36 = vpop.f32.mrf.mxu0 }
 0x3f6   : > { %6321 = vst.msk [vmem:[#allocation4 + $0xc8] sm:$0xff] %vm2198_vm1, %v6289_v3  ;;  %v5703_v38 = vpop.f32.mrf.mxu1  ;;  %v6258_v22 = vld [vmem:[#allocation4 + $0xd0] sm:$0xff]  ;;  %v6979_v3 = vld [vmem:[%s8200_s15 + $0x10] sm:$0xff] }
 0x3f7   : > { %v6209_v10 = vpop.f32.mrf.mxu0  ;;  %5746 = vst.msk [vmem:[#allocation4 + $0xe0] sm:$0xff] %vm2198_vm1, %v5703_v38 }
 0x3f8   : > { %v6290_v50 = vadd.f32 %v6258_v22, %v6209_v10  ;;  %v5705_v13 = vpop.f32.mrf.mxu1  ;;  %v6815_v10 = vld [vmem:[#allocation4 + $0x28] sm:$0xff] }
 0x3f9   : > { %v6211_v55 = vpop.f32.mrf.mxu0 }
 0x3fa   : > { %6322 = vst.msk [vmem:[#allocation4 + $0xd0] sm:$0xff] %vm2198_vm1, %v6290_v50  ;;  %v5706_v58 = vpop.f32.mrf.mxu1  ;;  %v6259_v4 = vld [vmem:[#allocation4 + $0xd8] sm:$0xff]  ;;  %v6980_v55 = vld [vmem:[%s8200_s15 + $0x18] sm:$0xff] }
 0x3fb   : > { %v6212_v6 = vpop.f32.mrf.mxu0  ;;  %5747 = vst.msk [vmem:[#allocation4 + $0xe8] sm:$0xff] %vm2198_vm1, %v5706_v58 }
 0x3fc   : > { %v6291_v56 = vadd.f32 %v6259_v4, %v6212_v6  ;;  %v5708_v39 = vpop.f32.mrf.mxu1 }
 0x3fd   : > { %v6214_v18 = vpop.f32.mrf.mxu0 }
 0x3fe   : > { %6323 = vst.msk [vmem:[#allocation4 + $0xd8] sm:$0xff] %vm2198_vm1, %v6291_v56  ;;  %v5711_v32 = vpop.f32.mrf.mxu1  ;;  %v6260_v26 = vld [vmem:[#allocation4 + $0xe0] sm:$0xff]  ;;  %v6816_v56 = vld [vmem:[#allocation4 + $0x30] sm:$0xff] }
 0x3ff   : > { %v6217_v46 = vpop.f32.mrf.mxu0  ;;  %5748 = vst.msk [vmem:[#allocation4 + $0xf0] sm:$0xff] %vm2198_vm1, %v5711_v32 }
 0x400   : > { %v6292_v49 = vadd.f32 %v6260_v26, %v6217_v46  ;;  %v5713_v45 = vpop.f32.mrf.mxu1  ;;  %v6981_v46 = vld [vmem:[%s8200_s15 + $0x20] sm:$0xff] }
 0x401   : > { %v6219_v15 = vpop.f32.mrf.mxu0 }
 0x402   : > { %6324 = vst.msk [vmem:[#allocation4 + $0xe0] sm:$0xff] %vm2198_vm1, %v6292_v49  ;;  %v5714_v33 = vpop.f32.mrf.mxu1  ;;  %v6261_v62 = vld [vmem:[#allocation4 + $0xe8] sm:$0xff]  ;;  %v6817_v15 = vld [vmem:[#allocation4 + $0x38] sm:$0xff] }
 0x403   : > { %v6220_v30 = vpop.f32.mrf.mxu0  ;;  %5749 = vst.msk [vmem:[#allocation4 + $0xf8] sm:$0xff] %vm2198_vm1, %v5714_v33 }
 0x404   : > { %v6293_v27 = vadd.f32 %v6261_v62, %v6220_v30  ;;  %v5716_v19 = vpop.f32.mrf.mxu1 }
 0x405   : > { %v6222_v53 = vpop.f32.mrf.mxu0 }
 0x406   : > { %6325 = vst.msk [vmem:[#allocation4 + $0xe8] sm:$0xff] %vm2198_vm1, %v6293_v27  ;;  %v6262_v0 = vld [vmem:[#allocation4 + $0xf0] sm:$0xff]  ;;  %v6683_v12 = vpop.f32.mrf.mxu1 }
 0x407   : > { %v6225_v40 = vpop.f32.mrf.mxu0  ;;  %v6842_v1 = vadd.f32 %v6810_v52, %v6683_v12  ;;  %v6982_v27 = vld [vmem:[%s8200_s15 + $0x28] sm:$0xff] }
 0x408   : > { %v6294_v57 = vadd.f32 %v6262_v0, %v6225_v40  ;;  %v6685_v16 = vpop.f32.mrf.mxu1  ;;  %v6818_v0 = vld [vmem:[#allocation4 + $0x40] sm:$0xff] }
 0x409   : > { %v6227_v28 = vpop.f32.mrf.mxu0  ;;  %6874 = vst.msk [vmem:[#allocation4] sm:$0xff] %vm2198_vm1, %v6842_v1  ;;  %v6983_v1 = vld [vmem:[%s8200_s15 + $0x30] sm:$0xff] }
 0x40a   : > { %6326 = vst.msk [vmem:[#allocation4 + $0xf0] sm:$0xff] %vm2198_vm1, %v6294_v57  ;;  %v6263_v54 = vld [vmem:[#allocation4 + $0xf8] sm:$0xff]  ;;  %v6686_v9 = vpop.f32.mrf.mxu1 }
 0x40b   : > { %v6228_v48 = vpop.f32.mrf.mxu0  ;;  %v6843_v5 = vadd.f32 %v6811_v41, %v6686_v9 }
 0x40c   : > { %v6295_v61 = vadd.f32 %v6263_v54, %v6228_v48  ;;  %v6688_v8 = vpop.f32.mrf.mxu1  ;;  %v6819_v54 = vld [vmem:[#allocation4 + $0x48] sm:$0xff] }
 0x40d   : > { %v6230_v59 = vpop.f32.mrf.mxu0  ;;  %6875 = vst.msk [vmem:[#allocation4 + $0x8] sm:$0xff] %vm2198_vm1, %v6843_v5  ;;  %v6984_v5 = vld [vmem:[%s8200_s15 + $0x38] sm:$0xff] }
 0x40e   : > { %6327 = vst.msk [vmem:[#allocation4 + $0xf8] sm:$0xff] %vm2198_vm1, %v6295_v61  ;;  %v6691_v44 = vpop.f32.mrf.mxu1 }
 0x40f   : > { %v6844_v31 = vadd.f32 %v6812_v37, %v6691_v44  ;;  %v6820_v37 = vld [vmem:[#allocation4 + $0x50] sm:$0xff] }
 0x410   : > { %v6906_v35 = vld [vmem:[#allocation4] sm:$0xff]  ;;  %v6693_v17 = vpop.f32.mrf.mxu1 }
 0x411   : > { %v6945_v43 = vadd.f32 %v10193_v51, %v6906_v35  ;;  %6876 = vst.msk [vmem:[#allocation4 + $0x10] sm:$0xff] %vm2198_vm1, %v6844_v31  ;;  %v6985_v17 = vld [vmem:[%s8200_s15 + $0x40] sm:$0xff] }
 0x412   : > { %v6694_v14 = vpop.f32.mrf.mxu1 }
 0x413   : > { %v7009_v60 = vadd.f32 %v6977_v7, %v6945_v43  ;;  %v6845_v11 = vadd.f32 %v6813_v20, %v6694_v14 }
 0x414   : > { %v6907_v63 = vld [vmem:[#allocation4 + $0x8] sm:$0xff]  ;;  %v6696_v23 = vpop.f32.mrf.mxu1 }
 0x415   : > { %7041 = vst.msk [vmem:[%s10201_s6] sm:$0xff] %vm2198_vm1, %v7009_v60  ;;  %v6946_v2 = vadd.f32 %v10193_v51, %v6907_v63  ;;  %6877 = vst.msk [vmem:[#allocation4 + $0x18] sm:$0xff] %vm2198_vm1, %v6845_v11  ;;  %v6821_v60 = vld [vmem:[#allocation4 + $0x58] sm:$0xff]  ;;  %v6986_v23 = vld [vmem:[%s8200_s15 + $0x48] sm:$0xff] }
 0x416   : > { %v6699_v42 = vpop.f32.mrf.mxu1 }
 0x417   : > { %v7010_v25 = vadd.f32 %v6978_v21, %v6946_v2  ;;  %v6846_v29 = vadd.f32 %v6814_v24, %v6699_v42 }
 0x418   : > { %v6908_v47 = vld [vmem:[#allocation4 + $0x10] sm:$0xff]  ;;  %v6701_v34 = vpop.f32.mrf.mxu1 }
 0x419   : > { %7042 = vst.msk [vmem:[%s10201_s6 + $0x8] sm:$0xff] %vm2198_vm1, %v7010_v25  ;;  %v6947_v36 = vadd.f32 %v10193_v51, %v6908_v47  ;;  %6878 = vst.msk [vmem:[#allocation4 + $0x20] sm:$0xff] %vm2198_vm1, %v6846_v29  ;;  %v6822_v25 = vld [vmem:[#allocation4 + $0x60] sm:$0xff]  ;;  %v6987_v34 = vld [vmem:[%s8200_s15 + $0x50] sm:$0xff] }
 0x41a   : > { %v6702_v38 = vpop.f32.mrf.mxu1 }
 0x41b   : > { %v7011_v22 = vadd.f32 %v6979_v3, %v6947_v36  ;;  %v6847_v50 = vadd.f32 %v6815_v10, %v6702_v38 }
 0x41c   : > { %v6909_v13 = vld [vmem:[#allocation4 + $0x18] sm:$0xff]  ;;  %v6704_v58 = vpop.f32.mrf.mxu1 }
 0x41d   : > { %7043 = vst.msk [vmem:[%s10201_s6 + $0x10] sm:$0xff] %vm2198_vm1, %v7011_v22  ;;  %v6948_v6 = vadd.f32 %v10193_v51, %v6909_v13  ;;  %6879 = vst.msk [vmem:[#allocation4 + $0x28] sm:$0xff] %vm2198_vm1, %v6847_v50  ;;  %v6823_v22 = vld [vmem:[#allocation4 + $0x68] sm:$0xff]  ;;  %v6988_v58 = vld [vmem:[%s8200_s15 + $0x58] sm:$0xff] }
 0x41e   : > { %v6707_v4 = vpop.f32.mrf.mxu1 }
 0x41f   : > { %v7012_v39 = vadd.f32 %v6980_v55, %v6948_v6  ;;  %v6848_v18 = vadd.f32 %v6816_v56, %v6707_v4 }
 0x420   : > { %v6910_v32 = vld [vmem:[#allocation4 + $0x20] sm:$0xff]  ;;  %v6709_v26 = vpop.f32.mrf.mxu1 }
 0x421   : > { %7044 = vst.msk [vmem:[%s10201_s6 + $0x18] sm:$0xff] %vm2198_vm1, %v7012_v39  ;;  %v6949_v49 = vadd.f32 %v10193_v51, %v6910_v32  ;;  %6880 = vst.msk [vmem:[#allocation4 + $0x30] sm:$0xff] %vm2198_vm1, %v6848_v18  ;;  %v6824_v39 = vld [vmem:[#allocation4 + $0x70] sm:$0xff]  ;;  %v6989_v26 = vld [vmem:[%s8200_s15 + $0x60] sm:$0xff] }
 0x422   : > { %v6710_v45 = vpop.f32.mrf.mxu1 }
 0x423   : > { %v7013_v33 = vadd.f32 %v6981_v46, %v6949_v49  ;;  %v6849_v30 = vadd.f32 %v6817_v15, %v6710_v45 }
 0x424   : > { %v6911_v62 = vld [vmem:[#allocation4 + $0x28] sm:$0xff]  ;;  %v6712_v19 = vpop.f32.mrf.mxu1 }
 0x425   : > { %7045 = vst.msk [vmem:[%s10201_s6 + $0x20] sm:$0xff] %vm2198_vm1, %v7013_v33  ;;  %v6950_v53 = vadd.f32 %v10193_v51, %v6911_v62  ;;  %6881 = vst.msk [vmem:[#allocation4 + $0x38] sm:$0xff] %vm2198_vm1, %v6849_v30  ;;  %v6825_v33 = vld [vmem:[#allocation4 + $0x78] sm:$0xff]  ;;  %v6990_v19 = vld [vmem:[%s8200_s15 + $0x68] sm:$0xff] }
 0x426   : > { %v6715_v40 = vpop.f32.mrf.mxu1 }
 0x427   : > { %v7014_v12 = vadd.f32 %v6982_v27, %v6950_v53  ;;  %v6850_v52 = vadd.f32 %v6818_v0, %v6715_v40 }
 0x428   : > { %v6912_v57 = vld [vmem:[#allocation4 + $0x30] sm:$0xff]  ;;  %v6717_v28 = vpop.f32.mrf.mxu1 }
 0x429   : > { %7046 = vst.msk [vmem:[%s10201_s6 + $0x28] sm:$0xff] %vm2198_vm1, %v7014_v12  ;;  %v6951_v16 = vadd.f32 %v10193_v51, %v6912_v57  ;;  %6882 = vst.msk [vmem:[#allocation4 + $0x40] sm:$0xff] %vm2198_vm1, %v6850_v52  ;;  %v6826_v12 = vld [vmem:[#allocation4 + $0x80] sm:$0xff]  ;;  %v6991_v28 = vld [vmem:[%s8200_s15 + $0x70] sm:$0xff] }
 0x42a   : > { %v6718_v48 = vpop.f32.mrf.mxu1 }
 0x42b   : > { %v7015_v9 = vadd.f32 %v6983_v1, %v6951_v16  ;;  %v6851_v41 = vadd.f32 %v6819_v54, %v6718_v48 }
 0x42c   : > { %v6913_v61 = vld [vmem:[#allocation4 + $0x38] sm:$0xff]  ;;  %v6720_v59 = vpop.f32.mrf.mxu1 }
 0x42d   : > { %7047 = vst.msk [vmem:[%s10201_s6 + $0x30] sm:$0xff] %vm2198_vm1, %v7015_v9  ;;  %v6952_v8 = vadd.f32 %v10193_v51, %v6913_v61  ;;  %6883 = vst.msk [vmem:[#allocation4 + $0x48] sm:$0xff] %vm2198_vm1, %v6851_v41  ;;  %v6827_v9 = vld [vmem:[#allocation4 + $0x88] sm:$0xff]  ;;  %v6992_v59 = vld [vmem:[%s8200_s15 + $0x78] sm:$0xff] }
 0x42e   : > { %v6723_v44 = vpop.f32.mrf.mxu1 }
 0x42f   : > { %v7016_v31 = vadd.f32 %v6984_v5, %v6952_v8  ;;  %v6852_v35 = vadd.f32 %v6820_v37, %v6723_v44 }
 0x430   : > { %v6914_v7 = vld [vmem:[#allocation4 + $0x40] sm:$0xff]  ;;  %v6725_v43 = vpop.f32.mrf.mxu1 }
 0x431   : > { %7048 = vst.msk [vmem:[%s10201_s6 + $0x38] sm:$0xff] %vm2198_vm1, %v7016_v31  ;;  %v6953_v14 = vadd.f32 %v10193_v51, %v6914_v7  ;;  %6884 = vst.msk [vmem:[#allocation4 + $0x50] sm:$0xff] %vm2198_vm1, %v6852_v35  ;;  %v6828_v31 = vld [vmem:[#allocation4 + $0x90] sm:$0xff]  ;;  %v6993_v43 = vld [vmem:[%s8200_s15 + $0x80] sm:$0xff] }
 0x432   : > { %v6726_v20 = vpop.f32.mrf.mxu1 }
 0x433   : > { %v7017_v11 = vadd.f32 %v6985_v17, %v6953_v14  ;;  %v6853_v63 = vadd.f32 %v6821_v60, %v6726_v20 }
 0x434   : > { %v6915_v21 = vld [vmem:[#allocation4 + $0x48] sm:$0xff]  ;;  %v6728_v2 = vpop.f32.mrf.mxu1 }
 0x435   : > { %7049 = vst.msk [vmem:[%s10201_s6 + $0x40] sm:$0xff] %vm2198_vm1, %v7017_v11  ;;  %v6954_v42 = vadd.f32 %v10193_v51, %v6915_v21  ;;  %6885 = vst.msk [vmem:[#allocation4 + $0x58] sm:$0xff] %vm2198_vm1, %v6853_v63  ;;  %v6829_v11 = vld [vmem:[#allocation4 + $0x98] sm:$0xff]  ;;  %v6994_v2 = vld [vmem:[%s8200_s15 + $0x88] sm:$0xff] }
 0x436   : > { %v6731_v24 = vpop.f32.mrf.mxu1 }
 0x437   : > { %v7018_v29 = vadd.f32 %v6986_v23, %v6954_v42  ;;  %v6854_v47 = vadd.f32 %v6822_v25, %v6731_v24 }
 0x438   : > { %v6916_v3 = vld [vmem:[#allocation4 + $0x50] sm:$0xff]  ;;  %v6733_v36 = vpop.f32.mrf.mxu1 }
 0x439   : > { %7050 = vst.msk [vmem:[%s10201_s6 + $0x48] sm:$0xff] %vm2198_vm1, %v7018_v29  ;;  %v6955_v38 = vadd.f32 %v10193_v51, %v6916_v3  ;;  %6886 = vst.msk [vmem:[#allocation4 + $0x60] sm:$0xff] %vm2198_vm1, %v6854_v47  ;;  %v6830_v29 = vld [vmem:[#allocation4 + $0xa0] sm:$0xff]  ;;  %v6995_v36 = vld [vmem:[%s8200_s15 + $0x90] sm:$0xff] }
 0x43a   : > { %v6734_v10 = vpop.f32.mrf.mxu1 }
 0x43b   : > { %v7019_v50 = vadd.f32 %v6987_v34, %v6955_v38  ;;  %v6855_v13 = vadd.f32 %v6823_v22, %v6734_v10 }
 0x43c   : > { %v6917_v55 = vld [vmem:[#allocation4 + $0x58] sm:$0xff]  ;;  %v6736_v6 = vpop.f32.mrf.mxu1 }
 0x43d   : > { %7051 = vst.msk [vmem:[%s10201_s6 + $0x50] sm:$0xff] %vm2198_vm1, %v7019_v50  ;;  %v6956_v4 = vadd.f32 %v10193_v51, %v6917_v55  ;;  %6887 = vst.msk [vmem:[#allocation4 + $0x68] sm:$0xff] %vm2198_vm1, %v6855_v13  ;;  %v6831_v50 = vld [vmem:[#allocation4 + $0xa8] sm:$0xff]  ;;  %v6996_v6 = vld [vmem:[%s8200_s15 + $0x98] sm:$0xff] }
 0x43e   : > { %v6739_v56 = vpop.f32.mrf.mxu1 }
 0x43f   : > { %v7020_v18 = vadd.f32 %v6988_v58, %v6956_v4  ;;  %v6856_v32 = vadd.f32 %v6824_v39, %v6739_v56 }
 0x440   : > { %v6918_v46 = vld [vmem:[#allocation4 + $0x60] sm:$0xff]  ;;  %v6741_v49 = vpop.f32.mrf.mxu1 }
 0x441   : > { %7052 = vst.msk [vmem:[%s10201_s6 + $0x58] sm:$0xff] %vm2198_vm1, %v7020_v18  ;;  %v6957_v45 = vadd.f32 %v10193_v51, %v6918_v46  ;;  %6888 = vst.msk [vmem:[#allocation4 + $0x70] sm:$0xff] %vm2198_vm1, %v6856_v32  ;;  %v6832_v18 = vld [vmem:[#allocation4 + $0xb0] sm:$0xff]  ;;  %v6997_v49 = vld [vmem:[%s8200_s15 + $0xa0] sm:$0xff] }
 0x442   : > { %v6742_v15 = vpop.f32.mrf.mxu1 }
 0x443   : > { %v7021_v30 = vadd.f32 %v6989_v26, %v6957_v45  ;;  %v6857_v62 = vadd.f32 %v6825_v33, %v6742_v15 }
 0x444   : > { %v6919_v27 = vld [vmem:[#allocation4 + $0x68] sm:$0xff]  ;;  %v6744_v53 = vpop.f32.mrf.mxu1 }
 0x445   : > { %7053 = vst.msk [vmem:[%s10201_s6 + $0x60] sm:$0xff] %vm2198_vm1, %v7021_v30  ;;  %v6958_v40 = vadd.f32 %v10193_v51, %v6919_v27  ;;  %6889 = vst.msk [vmem:[#allocation4 + $0x78] sm:$0xff] %vm2198_vm1, %v6857_v62  ;;  %v6833_v30 = vld [vmem:[#allocation4 + $0xb8] sm:$0xff]  ;;  %v6998_v53 = vld [vmem:[%s8200_s15 + $0xa8] sm:$0xff] }
 0x446   : > { %v6747_v0 = vpop.f32.mrf.mxu1 }
 0x447   : > { %v7022_v52 = vadd.f32 %v6990_v19, %v6958_v40  ;;  %v6858_v57 = vadd.f32 %v6826_v12, %v6747_v0 }
 0x448   : > { %v6920_v1 = vld [vmem:[#allocation4 + $0x70] sm:$0xff]  ;;  %v6749_v16 = vpop.f32.mrf.mxu1 }
 0x449   : > { %7054 = vst.msk [vmem:[%s10201_s6 + $0x68] sm:$0xff] %vm2198_vm1, %v7022_v52  ;;  %v6959_v48 = vadd.f32 %v10193_v51, %v6920_v1  ;;  %6890 = vst.msk [vmem:[#allocation4 + $0x80] sm:$0xff] %vm2198_vm1, %v6858_v57  ;;  %v6834_v52 = vld [vmem:[#allocation4 + $0xc0] sm:$0xff]  ;;  %v6999_v16 = vld [vmem:[%s8200_s15 + $0xb0] sm:$0xff] }
 0x44a   : > { %v6750_v54 = vpop.f32.mrf.mxu1 }
 0x44b   : > { %v7023_v41 = vadd.f32 %v6991_v28, %v6959_v48  ;;  %v6859_v61 = vadd.f32 %v6827_v9, %v6750_v54 }
 0x44c   : > { %v6921_v5 = vld [vmem:[#allocation4 + $0x78] sm:$0xff]  ;;  %v6752_v8 = vpop.f32.mrf.mxu1 }
 0x44d   : > { %7055 = vst.msk [vmem:[%s10201_s6 + $0x70] sm:$0xff] %vm2198_vm1, %v7023_v41  ;;  %v6960_v44 = vadd.f32 %v10193_v51, %v6921_v5  ;;  %6891 = vst.msk [vmem:[#allocation4 + $0x88] sm:$0xff] %vm2198_vm1, %v6859_v61  ;;  %v6835_v41 = vld [vmem:[#allocation4 + $0xc8] sm:$0xff]  ;;  %v7000_v8 = vld [vmem:[%s8200_s15 + $0xb8] sm:$0xff] }
 0x44e   : > { %v6755_v37 = vpop.f32.mrf.mxu1 }
 0x44f   : > { %v7024_v35 = vadd.f32 %v6992_v59, %v6960_v44  ;;  %v6860_v7 = vadd.f32 %v6828_v31, %v6755_v37 }
 0x450   : > { %v6922_v17 = vld [vmem:[#allocation4 + $0x80] sm:$0xff]  ;;  %v6757_v14 = vpop.f32.mrf.mxu1 }
 0x451   : > { %7056 = vst.msk [vmem:[%s10201_s6 + $0x78] sm:$0xff] %vm2198_vm1, %v7024_v35  ;;  %v6961_v20 = vadd.f32 %v10193_v51, %v6922_v17  ;;  %6892 = vst.msk [vmem:[#allocation4 + $0x90] sm:$0xff] %vm2198_vm1, %v6860_v7  ;;  %v6836_v35 = vld [vmem:[#allocation4 + $0xd0] sm:$0xff]  ;;  %v7001_v14 = vld [vmem:[%s8200_s15 + $0xc0] sm:$0xff] }
 0x452   : > { %v6758_v60 = vpop.f32.mrf.mxu1 }
 0x453   : > { %v7025_v63 = vadd.f32 %v6993_v43, %v6961_v20  ;;  %v6861_v21 = vadd.f32 %v6829_v11, %v6758_v60 }
 0x454   : > { %v6923_v23 = vld [vmem:[#allocation4 + $0x88] sm:$0xff]  ;;  %v6760_v42 = vpop.f32.mrf.mxu1 }
 0x455   : > { %7057 = vst.msk [vmem:[%s10201_s6 + $0x80] sm:$0xff] %vm2198_vm1, %v7025_v63  ;;  %v6962_v24 = vadd.f32 %v10193_v51, %v6923_v23  ;;  %6893 = vst.msk [vmem:[#allocation4 + $0x98] sm:$0xff] %vm2198_vm1, %v6861_v21  ;;  %v6837_v63 = vld [vmem:[#allocation4 + $0xd8] sm:$0xff]  ;;  %v7002_v42 = vld [vmem:[%s8200_s15 + $0xc8] sm:$0xff] }
 0x456   : > { %v6763_v25 = vpop.f32.mrf.mxu1 }
 0x457   : > { %v7026_v47 = vadd.f32 %v6994_v2, %v6962_v24  ;;  %v6862_v3 = vadd.f32 %v6830_v29, %v6763_v25 }
 0x458   : > { %v6924_v34 = vld [vmem:[#allocation4 + $0x90] sm:$0xff]  ;;  %v6765_v38 = vpop.f32.mrf.mxu1 }
 0x459   : > { %7058 = vst.msk [vmem:[%s10201_s6 + $0x88] sm:$0xff] %vm2198_vm1, %v7026_v47  ;;  %v6963_v10 = vadd.f32 %v10193_v51, %v6924_v34  ;;  %6894 = vst.msk [vmem:[#allocation4 + $0xa0] sm:$0xff] %vm2198_vm1, %v6862_v3  ;;  %v6838_v47 = vld [vmem:[#allocation4 + $0xe0] sm:$0xff]  ;;  %v7003_v38 = vld [vmem:[%s8200_s15 + $0xd0] sm:$0xff] }
 0x45a   : > { %v6766_v22 = vpop.f32.mrf.mxu1 }
 0x45b   : > { %v7027_v13 = vadd.f32 %v6995_v36, %v6963_v10  ;;  %v6863_v55 = vadd.f32 %v6831_v50, %v6766_v22 }
 0x45c   : > { %v6925_v58 = vld [vmem:[#allocation4 + $0x98] sm:$0xff]  ;;  %v6768_v4 = vpop.f32.mrf.mxu1 }
 0x45d   : > { %7059 = vst.msk [vmem:[%s10201_s6 + $0x90] sm:$0xff] %vm2198_vm1, %v7027_v13  ;;  %v6964_v56 = vadd.f32 %v10193_v51, %v6925_v58  ;;  %6895 = vst.msk [vmem:[#allocation4 + $0xa8] sm:$0xff] %vm2198_vm1, %v6863_v55  ;;  %v6839_v13 = vld [vmem:[#allocation4 + $0xe8] sm:$0xff]  ;;  %v7004_v4 = vld [vmem:[%s8200_s15 + $0xd8] sm:$0xff] }
 0x45e   : > { %v6771_v39 = vpop.f32.mrf.mxu1 }
 0x45f   : > { %v7028_v32 = vadd.f32 %v6996_v6, %v6964_v56  ;;  %v6864_v46 = vadd.f32 %v6832_v18, %v6771_v39 }
 0x460   : > { %v6926_v26 = vld [vmem:[#allocation4 + $0xa0] sm:$0xff]  ;;  %v6773_v45 = vpop.f32.mrf.mxu1 }
 0x461   : > { %7060 = vst.msk [vmem:[%s10201_s6 + $0x98] sm:$0xff] %vm2198_vm1, %v7028_v32  ;;  %v6965_v15 = vadd.f32 %v10193_v51, %v6926_v26  ;;  %6896 = vst.msk [vmem:[#allocation4 + $0xb0] sm:$0xff] %vm2198_vm1, %v6864_v46  ;;  %v6840_v32 = vld [vmem:[#allocation4 + $0xf0] sm:$0xff]  ;;  %v7005_v45 = vld [vmem:[%s8200_s15 + $0xe0] sm:$0xff] }
 0x462   : > { %v6774_v33 = vpop.f32.mrf.mxu1 }
 0x463   : > { %v7029_v62 = vadd.f32 %v6997_v49, %v6965_v15  ;;  %v6865_v27 = vadd.f32 %v6833_v30, %v6774_v33 }
 0x464   : > { %v6927_v19 = vld [vmem:[#allocation4 + $0xa8] sm:$0xff]  ;;  %v6776_v40 = vpop.f32.mrf.mxu1 }
 0x465   : > { %7061 = vst.msk [vmem:[%s10201_s6 + $0xa0] sm:$0xff] %vm2198_vm1, %v7029_v62  ;;  %v6966_v0 = vadd.f32 %v10193_v51, %v6927_v19  ;;  %6897 = vst.msk [vmem:[#allocation4 + $0xb8] sm:$0xff] %vm2198_vm1, %v6865_v27  ;;  %v6841_v62 = vld [vmem:[#allocation4 + $0xf8] sm:$0xff]  ;;  %v7006_v40 = vld [vmem:[%s8200_s15 + $0xe8] sm:$0xff] }
 0x466   : > { %v6779_v12 = vpop.f32.mrf.mxu1 }
 0x467   : > { %v7030_v57 = vadd.f32 %v6998_v53, %v6966_v0  ;;  %v6866_v1 = vadd.f32 %v6834_v52, %v6779_v12 }
 0x468   : > { %v6928_v28 = vld [vmem:[#allocation4 + $0xb0] sm:$0xff]  ;;  %v6781_v48 = vpop.f32.mrf.mxu1 }
 0x469   : > { %7062 = vst.msk [vmem:[%s10201_s6 + $0xa8] sm:$0xff] %vm2198_vm1, %v7030_v57  ;;  %v6967_v54 = vadd.f32 %v10193_v51, %v6928_v28  ;;  %6898 = vst.msk [vmem:[#allocation4 + $0xc0] sm:$0xff] %vm2198_vm1, %v6866_v1  ;;  %v7007_v1 = vld [vmem:[%s8200_s15 + $0xf0] sm:$0xff] }
 0x46a   : > { %v6782_v9 = vpop.f32.mrf.mxu1 }
 0x46b   : > { %v7031_v61 = vadd.f32 %v6999_v16, %v6967_v54  ;;  %v6867_v5 = vadd.f32 %v6835_v41, %v6782_v9  ;;  %v7008_v54 = vld [vmem:[%s8200_s15 + $0xf8] sm:$0xff]  ;;  %s8002_s15 = scalar_lea.vmem %s10362_s8, 4096 }
 0x46c   : > { %v6929_v59 = vld [vmem:[#allocation4 + $0xb8] sm:$0xff]  ;;  %v6784_v44 = vpop.f32.mrf.mxu1  ;;  %p8003_p11 = scmp.ne.s32.totalorder %s10362_s8, %s8002_s15  ;;  %p8010_p1 = scmp.lt.s32.totalorder %s8008_s14, %s8002_s15 }
 0x46d   : > { %7063 = vst.msk [vmem:[%s10201_s6 + $0xb0] sm:$0xff] %vm2198_vm1, %v7031_v61  ;;  %v6968_v37 = vadd.f32 %v10193_v51, %v6929_v59  ;;  %6899 = vst.msk [vmem:[#allocation4 + $0xc8] sm:$0xff] %vm2198_vm1, %v6867_v5 }
 0x46e   : > { %v6787_v31 = vpop.f32.mrf.mxu1  ;;  %p8004_p12 = pnand %p8003_p11, %p8137_p5  ;;  %p8011_p2 = por %p8010_p1, %p8009_p0 }
 0x46f   : > { %v7032_v7 = vadd.f32 %v7000_v8, %v6968_v37  ;;  %v6868_v17 = vadd.f32 %v6836_v35, %v6787_v31 }
 0x470   : > { %v6930_v43 = vld [vmem:[#allocation4 + $0xc0] sm:$0xff]  ;;  %v6789_v20 = vpop.f32.mrf.mxu1  ;;  %p8005_p13 = pneg %p8004_p12 }
 0x471   : > { %7064 = vst.msk [vmem:[%s10201_s6 + $0xb8] sm:$0xff] %vm2198_vm1, %v7032_v7  ;;  %v6969_v60 = vadd.f32 %v10193_v51, %v6930_v43  ;;  %6900 = vst.msk [vmem:[#allocation4 + $0xd0] sm:$0xff] %vm2198_vm1, %v6868_v17 }
 0x472   : > { %v6790_v11 = vpop.f32.mrf.mxu1  ;;  %p8012_p3 = pnand %p8011_p2, %p8005_p13 }
 0x473   : > { %v7033_v21 = vadd.f32 %v7001_v14, %v6969_v60  ;;  %v6869_v23 = vadd.f32 %v6837_v63, %v6790_v11 }
 0x474   : > { %v6931_v2 = vld [vmem:[#allocation4 + $0xc8] sm:$0xff]  ;;  %v6792_v24 = vpop.f32.mrf.mxu1 }
 0x475   : > { %7065 = vst.msk [vmem:[%s10201_s6 + $0xc0] sm:$0xff] %vm2198_vm1, %v7033_v21  ;;  %v6970_v25 = vadd.f32 %v10193_v51, %v6931_v2  ;;  %6901 = vst.msk [vmem:[#allocation4 + $0xd8] sm:$0xff] %vm2198_vm1, %v6869_v23 }
 0x476   : > { %v6795_v29 = vpop.f32.mrf.mxu1 }
 0x477   : > { %v7034_v3 = vadd.f32 %v7002_v42, %v6970_v25  ;;  %v6870_v34 = vadd.f32 %v6838_v47, %v6795_v29 }
 0x478   : > { %v6932_v36 = vld [vmem:[#allocation4 + $0xd0] sm:$0xff]  ;;  %v6797_v10 = vpop.f32.mrf.mxu1 }
 0x479   : > { %7066 = vst.msk [vmem:[%s10201_s6 + $0xc8] sm:$0xff] %vm2198_vm1, %v7034_v3  ;;  %v6971_v22 = vadd.f32 %v10193_v51, %v6932_v36  ;;  %6902 = vst.msk [vmem:[#allocation4 + $0xe0] sm:$0xff] %vm2198_vm1, %v6870_v34 }
 0x47a   : > { %v6798_v50 = vpop.f32.mrf.mxu1 }
 0x47b   : > { %v7035_v55 = vadd.f32 %v7003_v38, %v6971_v22  ;;  %v6871_v58 = vadd.f32 %v6839_v13, %v6798_v50 }
 0x47c   : > { %v6933_v6 = vld [vmem:[#allocation4 + $0xd8] sm:$0xff]  ;;  %v6800_v56 = vpop.f32.mrf.mxu1 }
 0x47d   : > { %7067 = vst.msk [vmem:[%s10201_s6 + $0xd0] sm:$0xff] %vm2198_vm1, %v7035_v55  ;;  %v6972_v39 = vadd.f32 %v10193_v51, %v6933_v6  ;;  %6903 = vst.msk [vmem:[#allocation4 + $0xe8] sm:$0xff] %vm2198_vm1, %v6871_v58 }
 0x47e   : > { %v6803_v18 = vpop.f32.mrf.mxu1 }
 0x47f   : > { %v7036_v46 = vadd.f32 %v7004_v4, %v6972_v39  ;;  %v6872_v26 = vadd.f32 %v6840_v32, %v6803_v18 }
 0x480   : > { %v6934_v49 = vld [vmem:[#allocation4 + $0xe0] sm:$0xff]  ;;  %v6805_v15 = vpop.f32.mrf.mxu1 }
 0x481   : > { %7068 = vst.msk [vmem:[%s10201_s6 + $0xd8] sm:$0xff] %vm2198_vm1, %v7036_v46  ;;  %v6973_v33 = vadd.f32 %v10193_v51, %v6934_v49  ;;  %6904 = vst.msk [vmem:[#allocation4 + $0xf0] sm:$0xff] %vm2198_vm1, %v6872_v26 }
 0x482   : > { %v6806_v30 = vpop.f32.mrf.mxu1 }
 0x483   : > { %v7037_v27 = vadd.f32 %v7005_v45, %v6973_v33  ;;  %v6873_v19 = vadd.f32 %v6841_v62, %v6806_v30 }
 0x484   : > { %v6935_v53 = vld [vmem:[#allocation4 + $0xe8] sm:$0xff]  ;;  %v6808_v0 = vpop.f32.mrf.mxu1 }
 0x485   : > { %7069 = vst.msk [vmem:[%s10201_s6 + $0xe0] sm:$0xff] %vm2198_vm1, %v7037_v27  ;;  %v6974_v12 = vadd.f32 %v10193_v51, %v6935_v53  ;;  %6905 = vst.msk [vmem:[#allocation4 + $0xf8] sm:$0xff] %vm2198_vm1, %v6873_v19 }
 0x487   : > { %v7038_v52 = vadd.f32 %v7006_v40, %v6974_v12 }
 0x488   : > { %v6936_v57 = vld [vmem:[#allocation4 + $0xf0] sm:$0xff] }
 0x489   : > { %7070 = vst.msk [vmem:[%s10201_s6 + $0xe8] sm:$0xff] %vm2198_vm1, %v7038_v52  ;;  %v6975_v28 = vadd.f32 %v10193_v51, %v6936_v57 }
 0x48b   : > { %v7039_v16 = vadd.f32 %v7007_v1, %v6975_v28 }
 0x48c   : > { %v6937_v48 = vld [vmem:[#allocation4 + $0xf8] sm:$0xff] }
 0x48d   : > { %7071 = vst.msk [vmem:[%s10201_s6 + $0xf0] sm:$0xff] %vm2198_vm1, %v7039_v16  ;;  %v6976_v9 = vadd.f32 %v10193_v51, %v6937_v48 }
 0x48f   : > { %v7040_v41 = vadd.f32 %v7008_v54, %v6976_v9 }
 0x491   : > { %7072 = vst.msk [vmem:[%s10201_s6 + $0xf8] sm:$0xff] %vm2198_vm1, %v7040_v41 }
 0x492   : > { %8015 = shalt.err (!%p8012_p3)
}
 0x493   : > { %s8016_s16 = scalar_lea.hbm %s10360_s11, 4096  ;;  %s8020_s25 = scalar_lea.hbm %s10413_s5, 8192 }
 0x494   : > { %p8017_p4 = scmp.ne.s32.totalorder %s10360_s11, %s8016_s16  ;;  %p8021_p9 = scmp.lt.s32.totalorder %s10360_s11, %s10413_s5 }
 0x495   : > { %p8022_p10 = scmp.lt.s32.totalorder %s8020_s25, %s8016_s16 }
 0x496   : > { %p8018_p7 = pnand %p8017_p4, %p8137_p5 }
 0x497   : > { %p8023_p11 = por %p8022_p10, %p8021_p9 }
 0x498   : > { %p8019_p8 = pneg %p8018_p7 }
 0x49a   : > { %p8024_p12 = pnand %p8023_p11, %p8019_p8 }
 0x49c   : > { %8027 = shalt.err (!%p8024_p12)
}
 0x49d   : > { %s8067_s6 = smov 128   ;;  %s8068_s7 = smov 8  }
 0x49e   : > { %7785 = dma.vmem_to_hbm [thread:$0]  (%p8137_p5), %s10362_s8, 4096, %s10360_s11, %s10368_s22, %s8067_s6, %s8067_s6, %s8068_s7  }
 0x49f PF: > { %p7791_p13 = scmp.ge.s32.totalorder %s8062_s21, 2  ;;  %s7102_s9 = sand.u32 1, %s8050_s18  }
 0x4a0   : > { %s7103_s10 = scalar_lea.sflag [#allocation6], %s7102_s9 }
 0x4a1   : > { %p7788_p0 = pnand %p7791_p13, %p8141_p6 }
 0x4a3   : > { %p7789_p1 = pneg %p7788_p0 }
 0x4a5   : > { %8045 = dma.done.wait (%p7789_p1), %s7103_s10, 4096  }
 0x4a6   : > { %8047 = vsyncadd (%p7789_p1), %s7103_s10, 4294963200  ;;  %p15_p2 = scmp.ge.s32.totalorder %s8124_s24, 4   ;;  %s10428_s18 = smov %s8054_s19 }
 0x4a7   : > { %s10429_s19 = smov %s8058_s20  ;;  %s10430_s20 = smov %s8135_s27 }
 0x4a8   : > { %s10431_s21 = smov %s8124_s24  ;;  %17 = sbr.rel (!%p15_p2) target bundleno = 3 (0x3), region = 83 }
 0x4ad   :  { %7108 = vsyncpa [#allocation6], 1 }
 0x4ae   :  { %7110 = vsyncpa [#allocation6 + $0x1], 1 }

</bundles_post_ra>
